<compile_context>
chip_gen: v5e
topology: v5e:2x2
jax: 0.10.0
libtpu: 0.0.40
codegen_flags: <defaults>
</compile_context>

<pallas_src>
import functools

import jax
import jax.numpy as jnp
from jax.experimental import pallas as pl
from jax.experimental.pallas import tpu as pltpu

# ---- Decoder.__init__ configuration (deterministic, in-script) ----
IMAGE_W = 64
IMAGE_H = 64
SCALE_FACTOR = 0.2
TOP_N = 64
MIN_SCORE_THRESHOLD = 0.05
NMS_THRESHOLD = 0.5
MAX_DETECTION_NUM = 16


# ---------------------------------------------------------------------------
# Kernel 1: per-anchor class max + argmax, anchors on the lane axis
# ---------------------------------------------------------------------------
def _cls_max_kernel(cls_ref, score_ref, class_ref):
    num_classes = cls_ref.shape[0]
    best = cls_ref[0]                                # (B, tile_a) -- anchors on lanes
    best_idx = jnp.zeros(best.shape, jnp.int32)
    for c in range(1, num_classes):                  # unrolled: pure VPU compare/select
        v = cls_ref[c]
        gt = v > best                                # strict ">" keeps the first max index
        best = jnp.where(gt, v, best)
        best_idx = jnp.where(gt, jnp.int32(c), best_idx)
    score_ref[...] = best
    class_ref[...] = best_idx


def _pick_anchor_tile(num_anchors, max_tile=2048):
    assert num_anchors % 128 == 0, "anchor count must be a multiple of 128"
    tile = 128
    for d in range(128, min(num_anchors, max_tile) + 1, 128):
        if num_anchors % d == 0:
            tile = d
    return tile


def class_max(cls_heads):
    B, A, C = cls_heads.shape
    cls_t = jnp.transpose(cls_heads, (2, 0, 1))      # [C, B, A]: class planes lead, anchors on lanes
    ta = _pick_anchor_tile(A)
    return pl.pallas_call(
        _cls_max_kernel,
        out_shape=(jax.ShapeDtypeStruct((B, A), jnp.float32),
                   jax.ShapeDtypeStruct((B, A), jnp.int32)),
        grid=(A // ta,),
        in_specs=[pl.BlockSpec((C, B, ta), lambda i: (0, 0, i))],
        out_specs=(pl.BlockSpec((B, ta), lambda i: (0, i)),
                   pl.BlockSpec((B, ta), lambda i: (0, i))),
        compiler_params=pltpu.CompilerParams(dimension_semantics=("parallel",)),
    )(cls_t)


# ---------------------------------------------------------------------------
# Kernel 2: fused per-image box decode + greedy NMS + fixed-size packing
# ---------------------------------------------------------------------------
def _decode_nms_pack_kernel(score_ref, class_ref, reg_ref, anc_ref,
                            out_s_ref, out_c_ref, out_b_ref,
                            *, scale, image_w, image_h,
                            min_score, nms_thr, max_det):
    T = score_ref.shape[-1]
    scores = score_ref[...]                          # (1, T) f32, sorted descending (top_k order)
    classes_f = class_ref[...].astype(jnp.float32)   # (1, T)
    reg = reg_ref[...]                               # (4, T): tx, ty, tw, th rows
    anc = anc_ref[...]                               # (4, T): x1, y1, x2, y2 rows

    # --- box decode (matches snap_tx_ty_tw_th_reg_heads_to_x1_y1_x2_y2_bboxes) ---
    if scale:                                        # matches torch `if self.scale_factor:`
        reg = reg * jnp.float32(scale)
    tx, ty, tw, th = reg[0:1, :], reg[1:2, :], reg[2:3, :], reg[3:4, :]
    ax1, ay1, ax2, ay2 = anc[0:1, :], anc[1:2, :], anc[2:3, :], anc[3:4, :]
    aw = ax2 - ax1
    ah = ay2 - ay1
    acx = ax1 + 0.5 * aw
    acy = ay1 + 0.5 * ah
    pw = jnp.exp(tw) * aw                            # EUP
    ph = jnp.exp(th) * ah
    pcx = tx * aw + acx
    pcy = ty * ah + acy
    # torch `.int()` truncates toward zero; then the reference's one-sided clamps.
    x1 = jnp.maximum((pcx - 0.5 * pw).astype(jnp.int32), 0).astype(jnp.float32)
    y1 = jnp.maximum((pcy - 0.5 * ph).astype(jnp.int32), 0).astype(jnp.float32)
    x2 = jnp.minimum((pcx + 0.5 * pw).astype(jnp.int32), image_w - 1).astype(jnp.float32)
    y2 = jnp.minimum((pcy + 0.5 * ph).astype(jnp.int32), image_h - 1).astype(jnp.float32)
    area = (x2 - x1) * (y2 - y1)                     # (1, T)

    valid = scores > jnp.float32(min_score)          # (1, T)
    lane = jax.lax.broadcasted_iota(jnp.int32, (1, T), 1)

    # --- greedy NMS, entirely in-register: boxes whose score fails the threshold start out
    #     "suppressed" (they never pivot and are never kept), the pivot's coords/area come from
    #     one masked lane-reduce over this loop-invariant (5, T) stack, and the pivot's IoU row
    #     is rebuilt on the fly (no TxT matrix ever materialized).
    packed = jnp.concatenate([x1, y1, x2, y2, area], axis=0)     # (5, T)
    lane5 = jax.lax.broadcasted_iota(jnp.int32, (5, T), 1)
    suppressed0 = jnp.where(valid, 0.0, 1.0)                     # (1, T)

    def nms_body(i, suppressed_f):
        sel5 = lane5 == i
        bi = jnp.sum(jnp.where(sel5, packed, 0.0), axis=1, keepdims=True)    # (5, 1)
        x1_i = bi[0:1, :]
        y1_i = bi[1:2, :]
        x2_i = bi[2:3, :]
        y2_i = bi[3:4, :]
        area_i = bi[4:5, :]
        # pivot still active? (valid AND not suppressed by an earlier pivot)
        act_i = jnp.max(jnp.where(lane == i, 1.0 - suppressed_f, 0.0),
                        axis=1, keepdims=True)                               # (1, 1)
        iw = jnp.maximum(jnp.minimum(x2_i, x2) - jnp.maximum(x1_i, x1), 0.0)
        ih = jnp.maximum(jnp.minimum(y2_i, y2) - jnp.maximum(y1_i, y1), 0.0)
        inter = iw * ih
        union = area_i + area - inter
        iou = inter * pl.reciprocal(union + jnp.float32(1e-8), approx=True)  # EUP slot
        newly = jnp.logical_and(
            jnp.logical_and(act_i > 0.5, iou > jnp.float32(nms_thr)), lane > i)
        return jnp.maximum(suppressed_f, newly.astype(jnp.float32))

    suppressed_f = jax.lax.fori_loop(0, T, nms_body, suppressed0, unroll=True)
    keep = suppressed_f < 0.5                        # (1, T); min-score already folded in
    keep_f = keep.astype(jnp.float32)

    # rank[t] = number of kept boxes strictly before t (exclusive prefix count),
    # computed with one tiny aligned MXU matmul (the MXU is otherwise idle here).
    lt = (jax.lax.broadcasted_iota(jnp.int32, (T, T), 0) <
          jax.lax.broadcasted_iota(jnp.int32, (T, T), 1)).astype(jnp.float32)
    keep_rows = jnp.broadcast_to(keep_f, (8, T))
    rank_f = jnp.dot(keep_rows, lt, preferred_element_type=jnp.float32)[0:1, :]
    rank = (rank_f + 0.5).astype(jnp.int32)                      # (1, T)

    # one-hot (max_det, T) selection matrix: slot k <- k-th kept box (score order)
    slot = jax.lax.broadcasted_iota(jnp.int32, (max_det, T), 0)
    onehot = jnp.logical_and(keep, rank == slot).astype(jnp.float32)         # (max_det, T)
    filled = jnp.max(onehot, axis=1, keepdims=True)                          # (max_det, 1)

    def pack(row):                                               # (1, T) -> (max_det, 1)
        return jnp.sum(onehot * row, axis=1, keepdims=True)

    neg1 = jnp.float32(-1.0)
    out_s_ref[...] = jnp.where(filled > 0.0, pack(scores), neg1)
    out_c_ref[...] = jnp.where(filled > 0.0, pack(classes_f), neg1)
    out_b_ref[...] = jnp.concatenate(
        [jnp.where(filled > 0.0, pack(v), neg1) for v in (x1, y1, x2, y2)], axis=1)


def decode_nms_pack(filt_scores, filt_classes, filt_reg, filt_anchors):
    B, T = filt_scores.shape
    scores3 = filt_scores[:, None, :]                            # [B, 1, T]
    classes3 = filt_classes[:, None, :]                          # [B, 1, T] int32
    reg_t = jnp.transpose(filt_reg, (0, 2, 1))                   # [B, 4, T]
    anc_t = jnp.transpose(filt_anchors, (0, 2, 1))               # [B, 4, T]
    kern = functools.partial(
        _decode_nms_pack_kernel, scale=SCALE_FACTOR, image_w=IMAGE_W, image_h=IMAGE_H,
        min_score=MIN_SCORE_THRESHOLD, nms_thr=NMS_THRESHOLD, max_det=MAX_DETECTION_NUM)
    out_s, out_c, out_b = pl.pallas_call(
        kern,
        out_shape=(jax.ShapeDtypeStruct((B, MAX_DETECTION_NUM, 1), jnp.float32),
                   jax.ShapeDtypeStruct((B, MAX_DETECTION_NUM, 1), jnp.float32),
                   jax.ShapeDtypeStruct((B, MAX_DETECTION_NUM, 4), jnp.float32)),
        grid=(B,),
        in_specs=[pl.BlockSpec((None, 1, T), lambda b: (b, 0, 0)),
                  pl.BlockSpec((None, 1, T), lambda b: (b, 0, 0)),
                  pl.BlockSpec((None, 4, T), lambda b: (b, 0, 0)),
                  pl.BlockSpec((None, 4, T), lambda b: (b, 0, 0))],
        out_specs=(pl.BlockSpec((None, MAX_DETECTION_NUM, 1), lambda b: (b, 0, 0)),
                   pl.BlockSpec((None, MAX_DETECTION_NUM, 1), lambda b: (b, 0, 0)),
                   pl.BlockSpec((None, MAX_DETECTION_NUM, 4), lambda b: (b, 0, 0))),
        compiler_params=pltpu.CompilerParams(dimension_semantics=("parallel",)),
    )(scores3, classes3, reg_t, anc_t)
    return out_s[..., 0], out_c[..., 0], out_b


# ---------------------------------------------------------------------------
# Full forward pass
# ---------------------------------------------------------------------------
@jax.jit
def decoder_forward(cls_heads, reg_heads, batch_anchors):
    # 1) per-anchor max score / class (Pallas kernel, anchors on the lane axis)
    scores, classes = class_max(cls_heads)                       # [B,A] f32, [B,A] i32
    # 2) top-k (sorted descending) + gathers
    # TODO(synk): top-k / gather are data-dependent global sorts with no clean Pallas
    #             equivalent; kept as plain JAX glue.
    filt_scores, idxs = jax.lax.top_k(scores, TOP_N)             # [B,T]
    filt_classes = jnp.take_along_axis(classes, idxs, axis=1)    # [B,T] i32
    filt_reg = jnp.take_along_axis(reg_heads, idxs[..., None], axis=1)        # [B,T,4]
    filt_anchors = jnp.take_along_axis(batch_anchors, idxs[..., None], axis=1)
    # 3) fused per-image decode + greedy NMS + packing (single Pallas kernel)
    return decode_nms_pack(filt_scores, filt_classes, filt_reg, filt_anchors)


if __name__ == "__main__":
    B, A, C = 2, 128, 8
    key = jax.random.PRNGKey(0)
    k1, k2, k3, k4 = jax.random.split(key, 4)
    cls_heads = jax.random.uniform(k1, (B, A, C), dtype=jnp.float32)
    reg_heads = jax.random.normal(k2, (B, A, 4), dtype=jnp.float32) * 0.5
    ctr = jax.random.uniform(k3, (B, A, 2), dtype=jnp.float32) * jnp.array(
        [IMAGE_W, IMAGE_H], jnp.float32)
    wh = 4.0 + jax.random.uniform(k4, (B, A, 2), dtype=jnp.float32) * 12.0
    batch_anchors = jnp.concatenate([ctr - 0.5 * wh, ctr + 0.5 * wh], axis=-1)

    out_scores, out_classes, out_boxes = decoder_forward(cls_heads, reg_heads, batch_anchors)
    jax.block_until_ready((out_scores, out_classes, out_boxes))
    assert out_scores.shape == (B, MAX_DETECTION_NUM)
    assert out_classes.shape == (B, MAX_DETECTION_NUM)
    assert out_boxes.shape == (B, MAX_DETECTION_NUM, 4)
    print("KERNEL_OK")
</pallas_src>

<mosaic_0001>
module attributes {stable_mosaic.version = 11 : i64} {
  func.func @_cls_max_kernel(%arg0: i32, %arg1: memref<8x2x128xf32, #tpu.memory_space<vmem>>, %arg2: memref<2x128xf32, #tpu.memory_space<vmem>>, %arg3: memref<2x128xi32, #tpu.memory_space<vmem>>) attributes {dimension_semantics = [#tpu.dimension_semantics<parallel>], iteration_bounds = array<i64: 1>, scalar_prefetch = 0 : i64, scratch_operands = 0 : i64, tpu.core_type = #tpu.core_type<tc>, window_params = [{transform_indices = @transform_0, window_bounds = array<i64: 8, 2, 128>}, {transform_indices = @transform_1, window_bounds = array<i64: 2, 128>}, {transform_indices = @transform_2, window_bounds = array<i64: 2, 128>}]} {
    %c0 = arith.constant 0 : index
    %c0_0 = arith.constant 0 : index
    %c0_1 = arith.constant 0 : index
    %0 = vector.load %arg1[%c0, %c0_0, %c0_1] : memref<8x2x128xf32, #tpu.memory_space<vmem>>, vector<1x2x128xf32>
    %1 = vector.shape_cast %0 : vector<1x2x128xf32> to vector<2x128xf32>
    %c0_i32 = arith.constant 0 : i32
    %2 = vector.broadcast %c0_i32 : i32 to vector<2x128xi32>
    %c1 = arith.constant 1 : index
    %c0_2 = arith.constant 0 : index
    %c0_3 = arith.constant 0 : index
    %3 = vector.load %arg1[%c1, %c0_2, %c0_3] : memref<8x2x128xf32, #tpu.memory_space<vmem>>, vector<1x2x128xf32>
    %4 = vector.shape_cast %3 : vector<1x2x128xf32> to vector<2x128xf32>
    %5 = arith.cmpf ogt, %4, %1 : vector<2x128xf32>
    %6 = arith.select %5, %4, %1 : vector<2x128xi1>, vector<2x128xf32>
    %c1_i32 = arith.constant 1 : i32
    %7 = vector.broadcast %c1_i32 : i32 to vector<2x128xi32>
    %8 = arith.select %5, %7, %2 : vector<2x128xi1>, vector<2x128xi32>
    %c2 = arith.constant 2 : index
    %c0_4 = arith.constant 0 : index
    %c0_5 = arith.constant 0 : index
    %9 = vector.load %arg1[%c2, %c0_4, %c0_5] : memref<8x2x128xf32, #tpu.memory_space<vmem>>, vector<1x2x128xf32>
    %10 = vector.shape_cast %9 : vector<1x2x128xf32> to vector<2x128xf32>
    %11 = arith.cmpf ogt, %10, %6 : vector<2x128xf32>
    %12 = arith.select %11, %10, %6 : vector<2x128xi1>, vector<2x128xf32>
    %c2_i32 = arith.constant 2 : i32
    %13 = vector.broadcast %c2_i32 : i32 to vector<2x128xi32>
    %14 = arith.select %11, %13, %8 : vector<2x128xi1>, vector<2x128xi32>
    %c3 = arith.constant 3 : index
    %c0_6 = arith.constant 0 : index
    %c0_7 = arith.constant 0 : index
    %15 = vector.load %arg1[%c3, %c0_6, %c0_7] : memref<8x2x128xf32, #tpu.memory_space<vmem>>, vector<1x2x128xf32>
    %16 = vector.shape_cast %15 : vector<1x2x128xf32> to vector<2x128xf32>
    %17 = arith.cmpf ogt, %16, %12 : vector<2x128xf32>
    %18 = arith.select %17, %16, %12 : vector<2x128xi1>, vector<2x128xf32>
    %c3_i32 = arith.constant 3 : i32
    %19 = vector.broadcast %c3_i32 : i32 to vector<2x128xi32>
    %20 = arith.select %17, %19, %14 : vector<2x128xi1>, vector<2x128xi32>
    %c4 = arith.constant 4 : index
    %c0_8 = arith.constant 0 : index
    %c0_9 = arith.constant 0 : index
    %21 = vector.load %arg1[%c4, %c0_8, %c0_9] : memref<8x2x128xf32, #tpu.memory_space<vmem>>, vector<1x2x128xf32>
    %22 = vector.shape_cast %21 : vector<1x2x128xf32> to vector<2x128xf32>
    %23 = arith.cmpf ogt, %22, %18 : vector<2x128xf32>
    %24 = arith.select %23, %22, %18 : vector<2x128xi1>, vector<2x128xf32>
    %c4_i32 = arith.constant 4 : i32
    %25 = vector.broadcast %c4_i32 : i32 to vector<2x128xi32>
    %26 = arith.select %23, %25, %20 : vector<2x128xi1>, vector<2x128xi32>
    %c5 = arith.constant 5 : index
    %c0_10 = arith.constant 0 : index
    %c0_11 = arith.constant 0 : index
    %27 = vector.load %arg1[%c5, %c0_10, %c0_11] : memref<8x2x128xf32, #tpu.memory_space<vmem>>, vector<1x2x128xf32>
    %28 = vector.shape_cast %27 : vector<1x2x128xf32> to vector<2x128xf32>
    %29 = arith.cmpf ogt, %28, %24 : vector<2x128xf32>
    %30 = arith.select %29, %28, %24 : vector<2x128xi1>, vector<2x128xf32>
    %c5_i32 = arith.constant 5 : i32
    %31 = vector.broadcast %c5_i32 : i32 to vector<2x128xi32>
    %32 = arith.select %29, %31, %26 : vector<2x128xi1>, vector<2x128xi32>
    %c6 = arith.constant 6 : index
    %c0_12 = arith.constant 0 : index
    %c0_13 = arith.constant 0 : index
    %33 = vector.load %arg1[%c6, %c0_12, %c0_13] : memref<8x2x128xf32, #tpu.memory_space<vmem>>, vector<1x2x128xf32>
    %34 = vector.shape_cast %33 : vector<1x2x128xf32> to vector<2x128xf32>
    %35 = arith.cmpf ogt, %34, %30 : vector<2x128xf32>
    %36 = arith.select %35, %34, %30 : vector<2x128xi1>, vector<2x128xf32>
    %c6_i32 = arith.constant 6 : i32
    %37 = vector.broadcast %c6_i32 : i32 to vector<2x128xi32>
    %38 = arith.select %35, %37, %32 : vector<2x128xi1>, vector<2x128xi32>
    %c7 = arith.constant 7 : index
    %c0_14 = arith.constant 0 : index
    %c0_15 = arith.constant 0 : index
    %39 = vector.load %arg1[%c7, %c0_14, %c0_15] : memref<8x2x128xf32, #tpu.memory_space<vmem>>, vector<1x2x128xf32>
    %40 = vector.shape_cast %39 : vector<1x2x128xf32> to vector<2x128xf32>
    %41 = arith.cmpf ogt, %40, %36 : vector<2x128xf32>
    %42 = arith.select %41, %40, %36 : vector<2x128xi1>, vector<2x128xf32>
    %c7_i32 = arith.constant 7 : i32
    %43 = vector.broadcast %c7_i32 : i32 to vector<2x128xi32>
    %44 = arith.select %41, %43, %38 : vector<2x128xi1>, vector<2x128xi32>
    %c0_16 = arith.constant 0 : index
    %c0_17 = arith.constant 0 : index
    %45 = vector.load %arg2[%c0_16, %c0_17] : memref<2x128xf32, #tpu.memory_space<vmem>>, vector<2x128xf32>
    tpu.vector_store %arg2[%c0_16, %c0_17], %42 {strides = array<i32>} : memref<2x128xf32, #tpu.memory_space<vmem>>, vector<2x128xf32>,
    %c0_18 = arith.constant 0 : index
    %c0_19 = arith.constant 0 : index
    %46 = vector.load %arg3[%c0_18, %c0_19] : memref<2x128xi32, #tpu.memory_space<vmem>>, vector<2x128xi32>
    tpu.vector_store %arg3[%c0_18, %c0_19], %44 {strides = array<i32>} : memref<2x128xi32, #tpu.memory_space<vmem>>, vector<2x128xi32>,
    return
  }
  func.func @transform_0(%arg0: i32) -> (i32, i32, i32) {
    %c0_i32 = arith.constant 0 : i32
    %c0_i32_0 = arith.constant 0 : i32
    %c0_i32_1 = arith.constant 0 : i32
    return %c0_i32, %c0_i32_0, %arg0 : i32, i32, i32
  }
  func.func @transform_1(%arg0: i32) -> (i32, i32) {
    %c0_i32 = arith.constant 0 : i32
    %c0_i32_0 = arith.constant 0 : i32
    return %c0_i32, %arg0 : i32, i32
  }
  func.func @transform_2(%arg0: i32) -> (i32, i32) {
    %c0_i32 = arith.constant 0 : i32
    %c0_i32_0 = arith.constant 0 : i32
    return %c0_i32, %arg0 : i32, i32
  }
}

module attributes {stable_mosaic.version = 11 : i64} {
  func.func @_decode_nms_pack_kernel(%arg0: i32, %arg1: memref<1x1x64xf32, #tpu.memory_space<vmem>>, %arg2: memref<1x1x64xi32, #tpu.memory_space<vmem>>, %arg3: memref<1x4x64xf32, #tpu.memory_space<vmem>>, %arg4: memref<1x4x64xf32, #tpu.memory_space<vmem>>, %arg5: memref<1x16x1xf32, #tpu.memory_space<vmem>>, %arg6: memref<1x16x1xf32, #tpu.memory_space<vmem>>, %arg7: memref<1x16x4xf32, #tpu.memory_space<vmem>>) attributes {dimension_semantics = [#tpu.dimension_semantics<parallel>], iteration_bounds = array<i64: 2>, scalar_prefetch = 0 : i64, scratch_operands = 0 : i64, tpu.core_type = #tpu.core_type<tc>, window_params = [{transform_indices = @transform_0, window_bounds = array<i64: 1, 1, 64>}, {transform_indices = @transform_1, window_bounds = array<i64: 1, 1, 64>}, {transform_indices = @transform_2, window_bounds = array<i64: 1, 4, 64>}, {transform_indices = @transform_3, window_bounds = array<i64: 1, 4, 64>}, {transform_indices = @transform_4, window_bounds = array<i64: 1, 16, 1>}, {transform_indices = @transform_5, window_bounds = array<i64: 1, 16, 1>}, {transform_indices = @transform_6, window_bounds = array<i64: 1, 16, 4>}]} {
    %c0 = arith.constant 0 : index
    %c0_0 = arith.constant 0 : index
    %c0_1 = arith.constant 0 : index
    %0 = vector.load %arg1[%c0, %c0_0, %c0_1] : memref<1x1x64xf32, #tpu.memory_space<vmem>>, vector<1x1x64xf32>
    %1 = vector.shape_cast %0 : vector<1x1x64xf32> to vector<1x64xf32>
    %c0_2 = arith.constant 0 : index
    %c0_3 = arith.constant 0 : index
    %c0_4 = arith.constant 0 : index
    %2 = vector.load %arg2[%c0_2, %c0_3, %c0_4] : memref<1x1x64xi32, #tpu.memory_space<vmem>>, vector<1x1x64xi32>
    %3 = vector.shape_cast %2 : vector<1x1x64xi32> to vector<1x64xi32>
    %4 = arith.sitofp %3 : vector<1x64xi32> to vector<1x64xf32>
    %c0_5 = arith.constant 0 : index
    %c0_6 = arith.constant 0 : index
    %c0_7 = arith.constant 0 : index
    %5 = vector.load %arg3[%c0_5, %c0_6, %c0_7] : memref<1x4x64xf32, #tpu.memory_space<vmem>>, vector<1x4x64xf32>
    %6 = vector.shape_cast %5 : vector<1x4x64xf32> to vector<4x64xf32>
    %c0_8 = arith.constant 0 : index
    %c0_9 = arith.constant 0 : index
    %c0_10 = arith.constant 0 : index
    %7 = vector.load %arg4[%c0_8, %c0_9, %c0_10] : memref<1x4x64xf32, #tpu.memory_space<vmem>>, vector<1x4x64xf32>
    %8 = vector.shape_cast %7 : vector<1x4x64xf32> to vector<4x64xf32>
    %cst = arith.constant 2.000000e-01 : f32
    %9 = vector.broadcast %cst : f32 to vector<4x64xf32>
    %10 = arith.mulf %6, %9 : vector<4x64xf32>
    %11 = vector.extract_strided_slice %10 {offsets = [0, 0], sizes = [1, 64], strides = [1, 1]} : vector<4x64xf32> to vector<1x64xf32>
    %12 = vector.extract_strided_slice %10 {offsets = [1, 0], sizes = [1, 64], strides = [1, 1]} : vector<4x64xf32> to vector<1x64xf32>
    %13 = vector.extract_strided_slice %10 {offsets = [2, 0], sizes = [1, 64], strides = [1, 1]} : vector<4x64xf32> to vector<1x64xf32>
    %14 = vector.extract_strided_slice %10 {offsets = [3, 0], sizes = [1, 64], strides = [1, 1]} : vector<4x64xf32> to vector<1x64xf32>
    %15 = vector.extract_strided_slice %8 {offsets = [0, 0], sizes = [1, 64], strides = [1, 1]} : vector<4x64xf32> to vector<1x64xf32>
    %16 = vector.extract_strided_slice %8 {offsets = [1, 0], sizes = [1, 64], strides = [1, 1]} : vector<4x64xf32> to vector<1x64xf32>
    %17 = vector.extract_strided_slice %8 {offsets = [2, 0], sizes = [1, 64], strides = [1, 1]} : vector<4x64xf32> to vector<1x64xf32>
    %18 = vector.extract_strided_slice %8 {offsets = [3, 0], sizes = [1, 64], strides = [1, 1]} : vector<4x64xf32> to vector<1x64xf32>
    %19 = arith.subf %17, %15 : vector<1x64xf32>
    %20 = arith.subf %18, %16 : vector<1x64xf32>
    %cst_11 = arith.constant 5.000000e-01 : f32
    %21 = vector.broadcast %cst_11 : f32 to vector<1x64xf32>
    %22 = arith.mulf %21, %19 : vector<1x64xf32>
    %23 = arith.addf %15, %22 : vector<1x64xf32>
    %cst_12 = arith.constant 5.000000e-01 : f32
    %24 = vector.broadcast %cst_12 : f32 to vector<1x64xf32>
    %25 = arith.mulf %24, %20 : vector<1x64xf32>
    %26 = arith.addf %16, %25 : vector<1x64xf32>
    %27 = math.exp %13 : vector<1x64xf32>
    %28 = arith.mulf %27, %19 : vector<1x64xf32>
    %29 = math.exp %14 : vector<1x64xf32>
    %30 = arith.mulf %29, %20 : vector<1x64xf32>
    %31 = arith.mulf %11, %19 : vector<1x64xf32>
    %32 = arith.addf %31, %23 : vector<1x64xf32>
    %33 = arith.mulf %12, %20 : vector<1x64xf32>
    %34 = arith.addf %33, %26 : vector<1x64xf32>
    %cst_13 = arith.constant 5.000000e-01 : f32
    %35 = vector.broadcast %cst_13 : f32 to vector<1x64xf32>
    %36 = arith.mulf %35, %28 : vector<1x64xf32>
    %37 = arith.subf %32, %36 : vector<1x64xf32>
    %38 = arith.fptosi %37 : vector<1x64xf32> to vector<1x64xi32>
    %c0_i32 = arith.constant 0 : i32
    %39 = vector.broadcast %c0_i32 : i32 to vector<1x64xi32>
    %40 = arith.maxsi %38, %39 : vector<1x64xi32>
    %41 = arith.sitofp %40 : vector<1x64xi32> to vector<1x64xf32>
    %cst_14 = arith.constant 5.000000e-01 : f32
    %42 = vector.broadcast %cst_14 : f32 to vector<1x64xf32>
    %43 = arith.mulf %42, %30 : vector<1x64xf32>
    %44 = arith.subf %34, %43 : vector<1x64xf32>
    %45 = arith.fptosi %44 : vector<1x64xf32> to vector<1x64xi32>
    %c0_i32_15 = arith.constant 0 : i32
    %46 = vector.broadcast %c0_i32_15 : i32 to vector<1x64xi32>
    %47 = arith.maxsi %45, %46 : vector<1x64xi32>
    %48 = arith.sitofp %47 : vector<1x64xi32> to vector<1x64xf32>
    %cst_16 = arith.constant 5.000000e-01 : f32
    %49 = vector.broadcast %cst_16 : f32 to vector<1x64xf32>
    %50 = arith.mulf %49, %28 : vector<1x64xf32>
    %51 = arith.addf %32, %50 : vector<1x64xf32>
    %52 = arith.fptosi %51 : vector<1x64xf32> to vector<1x64xi32>
    %c63_i32 = arith.constant 63 : i32
    %53 = vector.broadcast %c63_i32 : i32 to vector<1x64xi32>
    %54 = arith.minsi %52, %53 : vector<1x64xi32>
    %55 = arith.sitofp %54 : vector<1x64xi32> to vector<1x64xf32>
    %cst_17 = arith.constant 5.000000e-01 : f32
    %56 = vector.broadcast %cst_17 : f32 to vector<1x64xf32>
    %57 = arith.mulf %56, %30 : vector<1x64xf32>
    %58 = arith.addf %34, %57 : vector<1x64xf32>
    %59 = arith.fptosi %58 : vector<1x64xf32> to vector<1x64xi32>
    %c63_i32_18 = arith.constant 63 : i32
    %60 = vector.broadcast %c63_i32_18 : i32 to vector<1x64xi32>
    %61 = arith.minsi %59, %60 : vector<1x64xi32>
    %62 = arith.sitofp %61 : vector<1x64xi32> to vector<1x64xf32>
    %63 = arith.subf %55, %41 : vector<1x64xf32>
    %64 = arith.subf %62, %48 : vector<1x64xf32>
    %65 = arith.mulf %63, %64 : vector<1x64xf32>
    %cst_19 = arith.constant 5.000000e-02 : f32
    %66 = vector.broadcast %cst_19 : f32 to vector<1x64xf32>
    %67 = arith.cmpf ogt, %1, %66 : vector<1x64xf32>
    %68 = tpu.iota {dimensions = array<i32: 1>} : vector<1x64xi32>
    %69 = tpu.concatenate %41, %48, %55, %62, %65 in 0 : vector<1x64xf32>, vector<1x64xf32>, vector<1x64xf32>, vector<1x64xf32>, vector<1x64xf32> -> vector<5x64xf32>
    %70 = tpu.iota {dimensions = array<i32: 1>} : vector<5x64xi32>
    %cst_20 = arith.constant 0.000000e+00 : f32
    %cst_21 = arith.constant 1.000000e+00 : f32
    %71 = vector.broadcast %cst_20 : f32 to vector<1x64xf32>
    %72 = vector.broadcast %cst_21 : f32 to vector<1x64xf32>
    %73 = arith.select %67, %71, %72 : vector<1x64xi1>, vector<1x64xf32>
    %c0_i32_22 = arith.constant 0 : i32
    %74 = vector.broadcast %c0_i32_22 : i32 to vector<5x64xi32>
    %75 = arith.cmpi eq, %70, %74 : vector<5x64xi32>
    %cst_23 = arith.constant 0.000000e+00 : f32
    %76 = vector.broadcast %cst_23 : f32 to vector<5x64xf32>
    %77 = arith.select %75, %69, %76 : vector<5x64xi1>, vector<5x64xf32>
    %cst_24 = arith.constant dense<0.000000e+00> : vector<5xf32>
    %78 = vector.multi_reduction <add>, %77, %cst_24 [1] : vector<5x64xf32> to vector<5xf32>
    %79 = vector.shape_cast %78 : vector<5xf32> to vector<5x1xf32>
    %80 = vector.extract_strided_slice %79 {offsets = [0, 0], sizes = [1, 1], strides = [1, 1]} : vector<5x1xf32> to vector<1x1xf32>
    %81 = vector.extract_strided_slice %79 {offsets = [1, 0], sizes = [1, 1], strides = [1, 1]} : vector<5x1xf32> to vector<1x1xf32>
    %82 = vector.extract_strided_slice %79 {offsets = [2, 0], sizes = [1, 1], strides = [1, 1]} : vector<5x1xf32> to vector<1x1xf32>
    %83 = vector.extract_strided_slice %79 {offsets = [3, 0], sizes = [1, 1], strides = [1, 1]} : vector<5x1xf32> to vector<1x1xf32>
    %84 = vector.extract_strided_slice %79 {offsets = [4, 0], sizes = [1, 1], strides = [1, 1]} : vector<5x1xf32> to vector<1x1xf32>
    %85 = vector.broadcast %c0_i32_22 : i32 to vector<1x64xi32>
    %86 = arith.cmpi eq, %68, %85 : vector<1x64xi32>
    %cst_25 = arith.constant 1.000000e+00 : f32
    %87 = vector.broadcast %cst_25 : f32 to vector<1x64xf32>
    %88 = arith.subf %87, %73 : vector<1x64xf32>
    %cst_26 = arith.constant 0.000000e+00 : f32
    %89 = vector.broadcast %cst_26 : f32 to vector<1x64xf32>
    %90 = arith.select %86, %88, %89 : vector<1x64xi1>, vector<1x64xf32>
    %cst_27 = arith.constant dense<0xFF800000> : vector<1xf32>
    %91 = vector.multi_reduction <maximumf>, %90, %cst_27 [1] : vector<1x64xf32> to vector<1xf32>
    %92 = vector.shape_cast %91 : vector<1xf32> to vector<1x1xf32>
    %93 = vector.broadcast %82 : vector<1x1xf32> to vector<1x64xf32>
    %94 = arith.minimumf %93, %55 : vector<1x64xf32>
    %95 = vector.broadcast %80 : vector<1x1xf32> to vector<1x64xf32>
    %96 = arith.maximumf %95, %41 : vector<1x64xf32>
    %97 = arith.subf %94, %96 : vector<1x64xf32>
    %cst_28 = arith.constant 0.000000e+00 : f32
    %98 = vector.broadcast %cst_28 : f32 to vector<1x64xf32>
    %99 = arith.maximumf %97, %98 : vector<1x64xf32>
    %100 = vector.broadcast %83 : vector<1x1xf32> to vector<1x64xf32>
    %101 = arith.minimumf %100, %62 : vector<1x64xf32>
    %102 = vector.broadcast %81 : vector<1x1xf32> to vector<1x64xf32>
    %103 = arith.maximumf %102, %48 : vector<1x64xf32>
    %104 = arith.subf %101, %103 : vector<1x64xf32>
    %cst_29 = arith.constant 0.000000e+00 : f32
    %105 = vector.broadcast %cst_29 : f32 to vector<1x64xf32>
    %106 = arith.maximumf %104, %105 : vector<1x64xf32>
    %107 = arith.mulf %99, %106 : vector<1x64xf32>
    %108 = vector.broadcast %84 : vector<1x1xf32> to vector<1x64xf32>
    %109 = arith.addf %108, %65 : vector<1x64xf32>
    %110 = arith.subf %109, %107 : vector<1x64xf32>
    %cst_30 = arith.constant 9.99999993E-9 : f32
    %111 = vector.broadcast %cst_30 : f32 to vector<1x64xf32>
    %112 = arith.addf %110, %111 : vector<1x64xf32>
    %113 = tpu.reciprocal %112 {approx = true} : vector<1x64xf32> -> vector<1x64xf32>
    %114 = arith.mulf %107, %113 : vector<1x64xf32>
    %cst_31 = arith.constant 5.000000e-01 : f32
    %115 = vector.broadcast %cst_31 : f32 to vector<1x1xf32>
    %116 = arith.cmpf ogt, %92, %115 : vector<1x1xf32>
    %cst_32 = arith.constant 5.000000e-01 : f32
    %117 = vector.broadcast %cst_32 : f32 to vector<1x64xf32>
    %118 = arith.cmpf ogt, %114, %117 : vector<1x64xf32>
    %119 = vector.broadcast %116 : vector<1x1xi1> to vector<1x64xi1>
    %120 = arith.andi %119, %118 : vector<1x64xi1>
    %121 = vector.broadcast %c0_i32_22 : i32 to vector<1x64xi32>
    %122 = arith.cmpi sgt, %68, %121 : vector<1x64xi32>
    %123 = arith.andi %120, %122 : vector<1x64xi1>
    %124 = arith.extui %123 : vector<1x64xi1> to vector<1x64xi32>
    %125 = arith.sitofp %124 : vector<1x64xi32> to vector<1x64xf32>
    %126 = arith.maximumf %73, %125 : vector<1x64xf32>
    %c1_i32 = arith.constant 1 : i32
    %127 = vector.broadcast %c1_i32 : i32 to vector<5x64xi32>
    %128 = arith.cmpi eq, %70, %127 : vector<5x64xi32>
    %cst_33 = arith.constant 0.000000e+00 : f32
    %129 = vector.broadcast %cst_33 : f32 to vector<5x64xf32>
    %130 = arith.select %128, %69, %129 : vector<5x64xi1>, vector<5x64xf32>
    %cst_34 = arith.constant dense<0.000000e+00> : vector<5xf32>
    %131 = vector.multi_reduction <add>, %130, %cst_34 [1] : vector<5x64xf32> to vector<5xf32>
    %132 = vector.shape_cast %131 : vector<5xf32> to vector<5x1xf32>
    %133 = vector.extract_strided_slice %132 {offsets = [0, 0], sizes = [1, 1], strides = [1, 1]} : vector<5x1xf32> to vector<1x1xf32>
    %134 = vector.extract_strided_slice %132 {offsets = [1, 0], sizes = [1, 1], strides = [1, 1]} : vector<5x1xf32> to vector<1x1xf32>
    %135 = vector.extract_strided_slice %132 {offsets = [2, 0], sizes = [1, 1], strides = [1, 1]} : vector<5x1xf32> to vector<1x1xf32>
    %136 = vector.extract_strided_slice %132 {offsets = [3, 0], sizes = [1, 1], strides = [1, 1]} : vector<5x1xf32> to vector<1x1xf32>
    %137 = vector.extract_strided_slice %132 {offsets = [4, 0], sizes = [1, 1], strides = [1, 1]} : vector<5x1xf32> to vector<1x1xf32>
    %138 = vector.broadcast %c1_i32 : i32 to vector<1x64xi32>
    %139 = arith.cmpi eq, %68, %138 : vector<1x64xi32>
    %cst_35 = arith.constant 1.000000e+00 : f32
    %140 = vector.broadcast %cst_35 : f32 to vector<1x64xf32>
    %141 = arith.subf %140, %126 : vector<1x64xf32>
    %cst_36 = arith.constant 0.000000e+00 : f32
    %142 = vector.broadcast %cst_36 : f32 to vector<1x64xf32>
    %143 = arith.select %139, %141, %142 : vector<1x64xi1>, vector<1x64xf32>
    %cst_37 = arith.constant dense<0xFF800000> : vector<1xf32>
    %144 = vector.multi_reduction <maximumf>, %143, %cst_37 [1] : vector<1x64xf32> to vector<1xf32>
    %145 = vector.shape_cast %144 : vector<1xf32> to vector<1x1xf32>
    %146 = vector.broadcast %135 : vector<1x1xf32> to vector<1x64xf32>
    %147 = arith.minimumf %146, %55 : vector<1x64xf32>
    %148 = vector.broadcast %133 : vector<1x1xf32> to vector<1x64xf32>
    %149 = arith.maximumf %148, %41 : vector<1x64xf32>
    %150 = arith.subf %147, %149 : vector<1x64xf32>
    %cst_38 = arith.constant 0.000000e+00 : f32
    %151 = vector.broadcast %cst_38 : f32 to vector<1x64xf32>
    %152 = arith.maximumf %150, %151 : vector<1x64xf32>
    %153 = vector.broadcast %136 : vector<1x1xf32> to vector<1x64xf32>
    %154 = arith.minimumf %153, %62 : vector<1x64xf32>
    %155 = vector.broadcast %134 : vector<1x1xf32> to vector<1x64xf32>
    %156 = arith.maximumf %155, %48 : vector<1x64xf32>
    %157 = arith.subf %154, %156 : vector<1x64xf32>
    %cst_39 = arith.constant 0.000000e+00 : f32
    %158 = vector.broadcast %cst_39 : f32 to vector<1x64xf32>
    %159 = arith.maximumf %157, %158 : vector<1x64xf32>
    %160 = arith.mulf %152, %159 : vector<1x64xf32>
    %161 = vector.broadcast %137 : vector<1x1xf32> to vector<1x64xf32>
    %162 = arith.addf %161, %65 : vector<1x64xf32>
    %163 = arith.subf %162, %160 : vector<1x64xf32>
    %cst_40 = arith.constant 9.99999993E-9 : f32
    %164 = vector.broadcast %cst_40 : f32 to vector<1x64xf32>
    %165 = arith.addf %163, %164 : vector<1x64xf32>
    %166 = tpu.reciprocal %165 {approx = true} : vector<1x64xf32> -> vector<1x64xf32>
    %167 = arith.mulf %160, %166 : vector<1x64xf32>
    %cst_41 = arith.constant 5.000000e-01 : f32
    %168 = vector.broadcast %cst_41 : f32 to vector<1x1xf32>
    %169 = arith.cmpf ogt, %145, %168 : vector<1x1xf32>
    %cst_42 = arith.constant 5.000000e-01 : f32
    %170 = vector.broadcast %cst_42 : f32 to vector<1x64xf32>
    %171 = arith.cmpf ogt, %167, %170 : vector<1x64xf32>
    %172 = vector.broadcast %169 : vector<1x1xi1> to vector<1x64xi1>
    %173 = arith.andi %172, %171 : vector<1x64xi1>
    %174 = vector.broadcast %c1_i32 : i32 to vector<1x64xi32>
    %175 = arith.cmpi sgt, %68, %174 : vector<1x64xi32>
    %176 = arith.andi %173, %175 : vector<1x64xi1>
    %177 = arith.extui %176 : vector<1x64xi1> to vector<1x64xi32>
    %178 = arith.sitofp %177 : vector<1x64xi32> to vector<1x64xf32>
    %179 = arith.maximumf %126, %178 : vector<1x64xf32>
    %c2_i32 = arith.constant 2 : i32
    %180 = vector.broadcast %c2_i32 : i32 to vector<5x64xi32>
    %181 = arith.cmpi eq, %70, %180 : vector<5x64xi32>
    %cst_43 = arith.constant 0.000000e+00 : f32
    %182 = vector.broadcast %cst_43 : f32 to vector<5x64xf32>
    %183 = arith.select %181, %69, %182 : vector<5x64xi1>, vector<5x64xf32>
    %cst_44 = arith.constant dense<0.000000e+00> : vector<5xf32>
    %184 = vector.multi_reduction <add>, %183, %cst_44 [1] : vector<5x64xf32> to vector<5xf32>
    %185 = vector.shape_cast %184 : vector<5xf32> to vector<5x1xf32>
    %186 = vector.extract_strided_slice %185 {offsets = [0, 0], sizes = [1, 1], strides = [1, 1]} : vector<5x1xf32> to vector<1x1xf32>
    %187 = vector.extract_strided_slice %185 {offsets = [1, 0], sizes = [1, 1], strides = [1, 1]} : vector<5x1xf32> to vector<1x1xf32>
    %188 = vector.extract_strided_slice %185 {offsets = [2, 0], sizes = [1, 1], strides = [1, 1]} : vector<5x1xf32> to vector<1x1xf32>
    %189 = vector.extract_strided_slice %185 {offsets = [3, 0], sizes = [1, 1], strides = [1, 1]} : vector<5x1xf32> to vector<1x1xf32>
    %190 = vector.extract_strided_slice %185 {offsets = [4, 0], sizes = [1, 1], strides = [1, 1]} : vector<5x1xf32> to vector<1x1xf32>
    %191 = vector.broadcast %c2_i32 : i32 to vector<1x64xi32>
    %192 = arith.cmpi eq, %68, %191 : vector<1x64xi32>
    %cst_45 = arith.constant 1.000000e+00 : f32
    %193 = vector.broadcast %cst_45 : f32 to vector<1x64xf32>
    %194 = arith.subf %193, %179 : vector<1x64xf32>
    %cst_46 = arith.constant 0.000000e+00 : f32
    %195 = vector.broadcast %cst_46 : f32 to vector<1x64xf32>
    %196 = arith.select %192, %194, %195 : vector<1x64xi1>, vector<1x64xf32>
    %cst_47 = arith.constant dense<0xFF800000> : vector<1xf32>
    %197 = vector.multi_reduction <maximumf>, %196, %cst_47 [1] : vector<1x64xf32> to vector<1xf32>
    %198 = vector.shape_cast %197 : vector<1xf32> to vector<1x1xf32>
    %199 = vector.broadcast %188 : vector<1x1xf32> to vector<1x64xf32>
    %200 = arith.minimumf %199, %55 : vector<1x64xf32>
    %201 = vector.broadcast %186 : vector<1x1xf32> to vector<1x64xf32>
    %202 = arith.maximumf %201, %41 : vector<1x64xf32>
    %203 = arith.subf %200, %202 : vector<1x64xf32>
    %cst_48 = arith.constant 0.000000e+00 : f32
    %204 = vector.broadcast %cst_48 : f32 to vector<1x64xf32>
    %205 = arith.maximumf %203, %204 : vector<1x64xf32>
    %206 = vector.broadcast %189 : vector<1x1xf32> to vector<1x64xf32>
    %207 = arith.minimumf %206, %62 : vector<1x64xf32>
    %208 = vector.broadcast %187 : vector<1x1xf32> to vector<1x64xf32>
    %209 = arith.maximumf %208, %48 : vector<1x64xf32>
    %210 = arith.subf %207, %209 : vector<1x64xf32>
    %cst_49 = arith.constant 0.000000e+00 : f32
    %211 = vector.broadcast %cst_49 : f32 to vector<1x64xf32>
    %212 = arith.maximumf %210, %211 : vector<1x64xf32>
    %213 = arith.mulf %205, %212 : vector<1x64xf32>
    %214 = vector.broadcast %190 : vector<1x1xf32> to vector<1x64xf32>
    %215 = arith.addf %214, %65 : vector<1x64xf32>
    %216 = arith.subf %215, %213 : vector<1x64xf32>
    %cst_50 = arith.constant 9.99999993E-9 : f32
    %217 = vector.broadcast %cst_50 : f32 to vector<1x64xf32>
    %218 = arith.addf %216, %217 : vector<1x64xf32>
    %219 = tpu.reciprocal %218 {approx = true} : vector<1x64xf32> -> vector<1x64xf32>
    %220 = arith.mulf %213, %219 : vector<1x64xf32>
    %cst_51 = arith.constant 5.000000e-01 : f32
    %221 = vector.broadcast %cst_51 : f32 to vector<1x1xf32>
    %222 = arith.cmpf ogt, %198, %221 : vector<1x1xf32>
    %cst_52 = arith.constant 5.000000e-01 : f32
    %223 = vector.broadcast %cst_52 : f32 to vector<1x64xf32>
    %224 = arith.cmpf ogt, %220, %223 : vector<1x64xf32>
    %225 = vector.broadcast %222 : vector<1x1xi1> to vector<1x64xi1>
    %226 = arith.andi %225, %224 : vector<1x64xi1>
    %227 = vector.broadcast %c2_i32 : i32 to vector<1x64xi32>
    %228 = arith.cmpi sgt, %68, %227 : vector<1x64xi32>
    %229 = arith.andi %226, %228 : vector<1x64xi1>
    %230 = arith.extui %229 : vector<1x64xi1> to vector<1x64xi32>
    %231 = arith.sitofp %230 : vector<1x64xi32> to vector<1x64xf32>
    %232 = arith.maximumf %179, %231 : vector<1x64xf32>
    %c3_i32 = arith.constant 3 : i32
    %233 = vector.broadcast %c3_i32 : i32 to vector<5x64xi32>
    %234 = arith.cmpi eq, %70, %233 : vector<5x64xi32>
    %cst_53 = arith.constant 0.000000e+00 : f32
    %235 = vector.broadcast %cst_53 : f32 to vector<5x64xf32>
    %236 = arith.select %234, %69, %235 : vector<5x64xi1>, vector<5x64xf32>
    %cst_54 = arith.constant dense<0.000000e+00> : vector<5xf32>
    %237 = vector.multi_reduction <add>, %236, %cst_54 [1] : vector<5x64xf32> to vector<5xf32>
    %238 = vector.shape_cast %237 : vector<5xf32> to vector<5x1xf32>
    %239 = vector.extract_strided_slice %238 {offsets = [0, 0], sizes = [1, 1], strides = [1, 1]} : vector<5x1xf32> to vector<1x1xf32>
    %240 = vector.extract_strided_slice %238 {offsets = [1, 0], sizes = [1, 1], strides = [1, 1]} : vector<5x1xf32> to vector<1x1xf32>
    %241 = vector.extract_strided_slice %238 {offsets = [2, 0], sizes = [1, 1], strides = [1, 1]} : vector<5x1xf32> to vector<1x1xf32>
    %242 = vector.extract_strided_slice %238 {offsets = [3, 0], sizes = [1, 1], strides = [1, 1]} : vector<5x1xf32> to vector<1x1xf32>
    %243 = vector.extract_strided_slice %238 {offsets = [4, 0], sizes = [1, 1], strides = [1, 1]} : vector<5x1xf32> to vector<1x1xf32>
    %244 = vector.broadcast %c3_i32 : i32 to vector<1x64xi32>
    %245 = arith.cmpi eq, %68, %244 : vector<1x64xi32>
    %cst_55 = arith.constant 1.000000e+00 : f32
    %246 = vector.broadcast %cst_55 : f32 to vector<1x64xf32>
    %247 = arith.subf %246, %232 : vector<1x64xf32>
    %cst_56 = arith.constant 0.000000e+00 : f32
    %248 = vector.broadcast %cst_56 : f32 to vector<1x64xf32>
    %249 = arith.select %245, %247, %248 : vector<1x64xi1>, vector<1x64xf32>
    %cst_57 = arith.constant dense<0xFF800000> : vector<1xf32>
    %250 = vector.multi_reduction <maximumf>, %249, %cst_57 [1] : vector<1x64xf32> to vector<1xf32>
    %251 = vector.shape_cast %250 : vector<1xf32> to vector<1x1xf32>
    %252 = vector.broadcast %241 : vector<1x1xf32> to vector<1x64xf32>
    %253 = arith.minimumf %252, %55 : vector<1x64xf32>
    %254 = vector.broadcast %239 : vector<1x1xf32> to vector<1x64xf32>
    %255 = arith.maximumf %254, %41 : vector<1x64xf32>
    %256 = arith.subf %253, %255 : vector<1x64xf32>
    %cst_58 = arith.constant 0.000000e+00 : f32
    %257 = vector.broadcast %cst_58 : f32 to vector<1x64xf32>
    %258 = arith.maximumf %256, %257 : vector<1x64xf32>
    %259 = vector.broadcast %242 : vector<1x1xf32> to vector<1x64xf32>
    %260 = arith.minimumf %259, %62 : vector<1x64xf32>
    %261 = vector.broadcast %240 : vector<1x1xf32> to vector<1x64xf32>
    %262 = arith.maximumf %261, %48 : vector<1x64xf32>
    %263 = arith.subf %260, %262 : vector<1x64xf32>
    %cst_59 = arith.constant 0.000000e+00 : f32
    %264 = vector.broadcast %cst_59 : f32 to vector<1x64xf32>
    %265 = arith.maximumf %263, %264 : vector<1x64xf32>
    %266 = arith.mulf %258, %265 : vector<1x64xf32>
    %267 = vector.broadcast %243 : vector<1x1xf32> to vector<1x64xf32>
    %268 = arith.addf %267, %65 : vector<1x64xf32>
    %269 = arith.subf %268, %266 : vector<1x64xf32>
    %cst_60 = arith.constant 9.99999993E-9 : f32
    %270 = vector.broadcast %cst_60 : f32 to vector<1x64xf32>
    %271 = arith.addf %269, %270 : vector<1x64xf32>
    %272 = tpu.reciprocal %271 {approx = true} : vector<1x64xf32> -> vector<1x64xf32>
    %273 = arith.mulf %266, %272 : vector<1x64xf32>
    %cst_61 = arith.constant 5.000000e-01 : f32
    %274 = vector.broadcast %cst_61 : f32 to vector<1x1xf32>
    %275 = arith.cmpf ogt, %251, %274 : vector<1x1xf32>
    %cst_62 = arith.constant 5.000000e-01 : f32
    %276 = vector.broadcast %cst_62 : f32 to vector<1x64xf32>
    %277 = arith.cmpf ogt, %273, %276 : vector<1x64xf32>
    %278 = vector.broadcast %275 : vector<1x1xi1> to vector<1x64xi1>
    %279 = arith.andi %278, %277 : vector<1x64xi1>
    %280 = vector.broadcast %c3_i32 : i32 to vector<1x64xi32>
    %281 = arith.cmpi sgt, %68, %280 : vector<1x64xi32>
    %282 = arith.andi %279, %281 : vector<1x64xi1>
    %283 = arith.extui %282 : vector<1x64xi1> to vector<1x64xi32>
    %284 = arith.sitofp %283 : vector<1x64xi32> to vector<1x64xf32>
    %285 = arith.maximumf %232, %284 : vector<1x64xf32>
    %c4_i32 = arith.constant 4 : i32
    %286 = vector.broadcast %c4_i32 : i32 to vector<5x64xi32>
    %287 = arith.cmpi eq, %70, %286 : vector<5x64xi32>
    %cst_63 = arith.constant 0.000000e+00 : f32
    %288 = vector.broadcast %cst_63 : f32 to vector<5x64xf32>
    %289 = arith.select %287, %69, %288 : vector<5x64xi1>, vector<5x64xf32>
    %cst_64 = arith.constant dense<0.000000e+00> : vector<5xf32>
    %290 = vector.multi_reduction <add>, %289, %cst_64 [1] : vector<5x64xf32> to vector<5xf32>
    %291 = vector.shape_cast %290 : vector<5xf32> to vector<5x1xf32>
    %292 = vector.extract_strided_slice %291 {offsets = [0, 0], sizes = [1, 1], strides = [1, 1]} : vector<5x1xf32> to vector<1x1xf32>
    %293 = vector.extract_strided_slice %291 {offsets = [1, 0], sizes = [1, 1], strides = [1, 1]} : vector<5x1xf32> to vector<1x1xf32>
    %294 = vector.extract_strided_slice %291 {offsets = [2, 0], sizes = [1, 1], strides = [1, 1]} : vector<5x1xf32> to vector<1x1xf32>
    %295 = vector.extract_strided_slice %291 {offsets = [3, 0], sizes = [1, 1], strides = [1, 1]} : vector<5x1xf32> to vector<1x1xf32>
    %296 = vector.extract_strided_slice %291 {offsets = [4, 0], sizes = [1, 1], strides = [1, 1]} : vector<5x1xf32> to vector<1x1xf32>
    %297 = vector.broadcast %c4_i32 : i32 to vector<1x64xi32>
    %298 = arith.cmpi eq, %68, %297 : vector<1x64xi32>
    %cst_65 = arith.constant 1.000000e+00 : f32
    %299 = vector.broadcast %cst_65 : f32 to vector<1x64xf32>
    %300 = arith.subf %299, %285 : vector<1x64xf32>
    %cst_66 = arith.constant 0.000000e+00 : f32
    %301 = vector.broadcast %cst_66 : f32 to vector<1x64xf32>
    %302 = arith.select %298, %300, %301 : vector<1x64xi1>, vector<1x64xf32>
    %cst_67 = arith.constant dense<0xFF800000> : vector<1xf32>
    %303 = vector.multi_reduction <maximumf>, %302, %cst_67 [1] : vector<1x64xf32> to vector<1xf32>
    %304 = vector.shape_cast %303 : vector<1xf32> to vector<1x1xf32>
    %305 = vector.broadcast %294 : vector<1x1xf32> to vector<1x64xf32>
    %306 = arith.minimumf %305, %55 : vector<1x64xf32>
    %307 = vector.broadcast %292 : vector<1x1xf32> to vector<1x64xf32>
    %308 = arith.maximumf %307, %41 : vector<1x64xf32>
    %309 = arith.subf %306, %308 : vector<1x64xf32>
    %cst_68 = arith.constant 0.000000e+00 : f32
    %310 = vector.broadcast %cst_68 : f32 to vector<1x64xf32>
    %311 = arith.maximumf %309, %310 : vector<1x64xf32>
    %312 = vector.broadcast %295 : vector<1x1xf32> to vector<1x64xf32>
    %313 = arith.minimumf %312, %62 : vector<1x64xf32>
    %314 = vector.broadcast %293 : vector<1x1xf32> to vector<1x64xf32>
    %315 = arith.maximumf %314, %48 : vector<1x64xf32>
    %316 = arith.subf %313, %315 : vector<1x64xf32>
    %cst_69 = arith.constant 0.000000e+00 : f32
    %317 = vector.broadcast %cst_69 : f32 to vector<1x64xf32>
    %318 = arith.maximumf %316, %317 : vector<1x64xf32>
    %319 = arith.mulf %311, %318 : vector<1x64xf32>
    %320 = vector.broadcast %296 : vector<1x1xf32> to vector<1x64xf32>
    %321 = arith.addf %320, %65 : vector<1x64xf32>
    %322 = arith.subf %321, %319 : vector<1x64xf32>
    %cst_70 = arith.constant 9.99999993E-9 : f32
    %323 = vector.broadcast %cst_70 : f32 to vector<1x64xf32>
    %324 = arith.addf %322, %323 : vector<1x64xf32>
    %325 = tpu.reciprocal %324 {approx = true} : vector<1x64xf32> -> vector<1x64xf32>
    %326 = arith.mulf %319, %325 : vector<1x64xf32>
    %cst_71 = arith.constant 5.000000e-01 : f32
    %327 = vector.broadcast %cst_71 : f32 to vector<1x1xf32>
    %328 = arith.cmpf ogt, %304, %327 : vector<1x1xf32>
    %cst_72 = arith.constant 5.000000e-01 : f32
    %329 = vector.broadcast %cst_72 : f32 to vector<1x64xf32>
    %330 = arith.cmpf ogt, %326, %329 : vector<1x64xf32>
    %331 = vector.broadcast %328 : vector<1x1xi1> to vector<1x64xi1>
    %332 = arith.andi %331, %330 : vector<1x64xi1>
    %333 = vector.broadcast %c4_i32 : i32 to vector<1x64xi32>
    %334 = arith.cmpi sgt, %68, %333 : vector<1x64xi32>
    %335 = arith.andi %332, %334 : vector<1x64xi1>
    %336 = arith.extui %335 : vector<1x64xi1> to vector<1x64xi32>
    %337 = arith.sitofp %336 : vector<1x64xi32> to vector<1x64xf32>
    %338 = arith.maximumf %285, %337 : vector<1x64xf32>
    %c5_i32 = arith.constant 5 : i32
    %339 = vector.broadcast %c5_i32 : i32 to vector<5x64xi32>
    %340 = arith.cmpi eq, %70, %339 : vector<5x64xi32>
    %cst_73 = arith.constant 0.000000e+00 : f32
    %341 = vector.broadcast %cst_73 : f32 to vector<5x64xf32>
    %342 = arith.select %340, %69, %341 : vector<5x64xi1>, vector<5x64xf32>
    %cst_74 = arith.constant dense<0.000000e+00> : vector<5xf32>
    %343 = vector.multi_reduction <add>, %342, %cst_74 [1] : vector<5x64xf32> to vector<5xf32>
    %344 = vector.shape_cast %343 : vector<5xf32> to vector<5x1xf32>
    %345 = vector.extract_strided_slice %344 {offsets = [0, 0], sizes = [1, 1], strides = [1, 1]} : vector<5x1xf32> to vector<1x1xf32>
    %346 = vector.extract_strided_slice %344 {offsets = [1, 0], sizes = [1, 1], strides = [1, 1]} : vector<5x1xf32> to vector<1x1xf32>
    %347 = vector.extract_strided_slice %344 {offsets = [2, 0], sizes = [1, 1], strides = [1, 1]} : vector<5x1xf32> to vector<1x1xf32>
    %348 = vector.extract_strided_slice %344 {offsets = [3, 0], sizes = [1, 1], strides = [1, 1]} : vector<5x1xf32> to vector<1x1xf32>
    %349 = vector.extract_strided_slice %344 {offsets = [4, 0], sizes = [1, 1], strides = [1, 1]} : vector<5x1xf32> to vector<1x1xf32>
    %350 = vector.broadcast %c5_i32 : i32 to vector<1x64xi32>
    %351 = arith.cmpi eq, %68, %350 : vector<1x64xi32>
    %cst_75 = arith.constant 1.000000e+00 : f32
    %352 = vector.broadcast %cst_75 : f32 to vector<1x64xf32>
    %353 = arith.subf %352, %338 : vector<1x64xf32>
    %cst_76 = arith.constant 0.000000e+00 : f32
    %354 = vector.broadcast %cst_76 : f32 to vector<1x64xf32>
    %355 = arith.select %351, %353, %354 : vector<1x64xi1>, vector<1x64xf32>
    %cst_77 = arith.constant dense<0xFF800000> : vector<1xf32>
    %356 = vector.multi_reduction <maximumf>, %355, %cst_77 [1] : vector<1x64xf32> to vector<1xf32>
    %357 = vector.shape_cast %356 : vector<1xf32> to vector<1x1xf32>
    %358 = vector.broadcast %347 : vector<1x1xf32> to vector<1x64xf32>
    %359 = arith.minimumf %358, %55 : vector<1x64xf32>
    %360 = vector.broadcast %345 : vector<1x1xf32> to vector<1x64xf32>
    %361 = arith.maximumf %360, %41 : vector<1x64xf32>
    %362 = arith.subf %359, %361 : vector<1x64xf32>
    %cst_78 = arith.constant 0.000000e+00 : f32
    %363 = vector.broadcast %cst_78 : f32 to vector<1x64xf32>
    %364 = arith.maximumf %362, %363 : vector<1x64xf32>
    %365 = vector.broadcast %348 : vector<1x1xf32> to vector<1x64xf32>
    %366 = arith.minimumf %365, %62 : vector<1x64xf32>
    %367 = vector.broadcast %346 : vector<1x1xf32> to vector<1x64xf32>
    %368 = arith.maximumf %367, %48 : vector<1x64xf32>
    %369 = arith.subf %366, %368 : vector<1x64xf32>
    %cst_79 = arith.constant 0.000000e+00 : f32
    %370 = vector.broadcast %cst_79 : f32 to vector<1x64xf32>
    %371 = arith.maximumf %369, %370 : vector<1x64xf32>
    %372 = arith.mulf %364, %371 : vector<1x64xf32>
    %373 = vector.broadcast %349 : vector<1x1xf32> to vector<1x64xf32>
    %374 = arith.addf %373, %65 : vector<1x64xf32>
    %375 = arith.subf %374, %372 : vector<1x64xf32>
    %cst_80 = arith.constant 9.99999993E-9 : f32
    %376 = vector.broadcast %cst_80 : f32 to vector<1x64xf32>
    %377 = arith.addf %375, %376 : vector<1x64xf32>
    %378 = tpu.reciprocal %377 {approx = true} : vector<1x64xf32> -> vector<1x64xf32>
    %379 = arith.mulf %372, %378 : vector<1x64xf32>
    %cst_81 = arith.constant 5.000000e-01 : f32
    %380 = vector.broadcast %cst_81 : f32 to vector<1x1xf32>
    %381 = arith.cmpf ogt, %357, %380 : vector<1x1xf32>
    %cst_82 = arith.constant 5.000000e-01 : f32
    %382 = vector.broadcast %cst_82 : f32 to vector<1x64xf32>
    %383 = arith.cmpf ogt, %379, %382 : vector<1x64xf32>
    %384 = vector.broadcast %381 : vector<1x1xi1> to vector<1x64xi1>
    %385 = arith.andi %384, %383 : vector<1x64xi1>
    %386 = vector.broadcast %c5_i32 : i32 to vector<1x64xi32>
    %387 = arith.cmpi sgt, %68, %386 : vector<1x64xi32>
    %388 = arith.andi %385, %387 : vector<1x64xi1>
    %389 = arith.extui %388 : vector<1x64xi1> to vector<1x64xi32>
    %390 = arith.sitofp %389 : vector<1x64xi32> to vector<1x64xf32>
    %391 = arith.maximumf %338, %390 : vector<1x64xf32>
    %c6_i32 = arith.constant 6 : i32
    %392 = vector.broadcast %c6_i32 : i32 to vector<5x64xi32>
    %393 = arith.cmpi eq, %70, %392 : vector<5x64xi32>
    %cst_83 = arith.constant 0.000000e+00 : f32
    %394 = vector.broadcast %cst_83 : f32 to vector<5x64xf32>
    %395 = arith.select %393, %69, %394 : vector<5x64xi1>, vector<5x64xf32>
    %cst_84 = arith.constant dense<0.000000e+00> : vector<5xf32>
    %396 = vector.multi_reduction <add>, %395, %cst_84 [1] : vector<5x64xf32> to vector<5xf32>
    %397 = vector.shape_cast %396 : vector<5xf32> to vector<5x1xf32>
    %398 = vector.extract_strided_slice %397 {offsets = [0, 0], sizes = [1, 1], strides = [1, 1]} : vector<5x1xf32> to vector<1x1xf32>
    %399 = vector.extract_strided_slice %397 {offsets = [1, 0], sizes = [1, 1], strides = [1, 1]} : vector<5x1xf32> to vector<1x1xf32>
    %400 = vector.extract_strided_slice %397 {offsets = [2, 0], sizes = [1, 1], strides = [1, 1]} : vector<5x1xf32> to vector<1x1xf32>
    %401 = vector.extract_strided_slice %397 {offsets = [3, 0], sizes = [1, 1], strides = [1, 1]} : vector<5x1xf32> to vector<1x1xf32>
    %402 = vector.extract_strided_slice %397 {offsets = [4, 0], sizes = [1, 1], strides = [1, 1]} : vector<5x1xf32> to vector<1x1xf32>
    %403 = vector.broadcast %c6_i32 : i32 to vector<1x64xi32>
    %404 = arith.cmpi eq, %68, %403 : vector<1x64xi32>
    %cst_85 = arith.constant 1.000000e+00 : f32
    %405 = vector.broadcast %cst_85 : f32 to vector<1x64xf32>
    %406 = arith.subf %405, %391 : vector<1x64xf32>
    %cst_86 = arith.constant 0.000000e+00 : f32
    %407 = vector.broadcast %cst_86 : f32 to vector<1x64xf32>
    %408 = arith.select %404, %406, %407 : vector<1x64xi1>, vector<1x64xf32>
    %cst_87 = arith.constant dense<0xFF800000> : vector<1xf32>
    %409 = vector.multi_reduction <maximumf>, %408, %cst_87 [1] : vector<1x64xf32> to vector<1xf32>
    %410 = vector.shape_cast %409 : vector<1xf32> to vector<1x1xf32>
    %411 = vector.broadcast %400 : vector<1x1xf32> to vector<1x64xf32>
    %412 = arith.minimumf %411, %55 : vector<1x64xf32>
    %413 = vector.broadcast %398 : vector<1x1xf32> to vector<1x64xf32>
    %414 = arith.maximumf %413, %41 : vector<1x64xf32>
    %415 = arith.subf %412, %414 : vector<1x64xf32>
    %cst_88 = arith.constant 0.000000e+00 : f32
    %416 = vector.broadcast %cst_88 : f32 to vector<1x64xf32>
    %417 = arith.maximumf %415, %416 : vector<1x64xf32>
    %418 = vector.broadcast %401 : vector<1x1xf32> to vector<1x64xf32>
    %419 = arith.minimumf %418, %62 : vector<1x64xf32>
    %420 = vector.broadcast %399 : vector<1x1xf32> to vector<1x64xf32>
    %421 = arith.maximumf %420, %48 : vector<1x64xf32>
    %422 = arith.subf %419, %421 : vector<1x64xf32>
    %cst_89 = arith.constant 0.000000e+00 : f32
    %423 = vector.broadcast %cst_89 : f32 to vector<1x64xf32>
    %424 = arith.maximumf %422, %423 : vector<1x64xf32>
    %425 = arith.mulf %417, %424 : vector<1x64xf32>
    %426 = vector.broadcast %402 : vector<1x1xf32> to vector<1x64xf32>
    %427 = arith.addf %426, %65 : vector<1x64xf32>
    %428 = arith.subf %427, %425 : vector<1x64xf32>
    %cst_90 = arith.constant 9.99999993E-9 : f32
    %429 = vector.broadcast %cst_90 : f32 to vector<1x64xf32>
    %430 = arith.addf %428, %429 : vector<1x64xf32>
    %431 = tpu.reciprocal %430 {approx = true} : vector<1x64xf32> -> vector<1x64xf32>
    %432 = arith.mulf %425, %431 : vector<1x64xf32>
    %cst_91 = arith.constant 5.000000e-01 : f32
    %433 = vector.broadcast %cst_91 : f32 to vector<1x1xf32>
    %434 = arith.cmpf ogt, %410, %433 : vector<1x1xf32>
    %cst_92 = arith.constant 5.000000e-01 : f32
    %435 = vector.broadcast %cst_92 : f32 to vector<1x64xf32>
    %436 = arith.cmpf ogt, %432, %435 : vector<1x64xf32>
    %437 = vector.broadcast %434 : vector<1x1xi1> to vector<1x64xi1>
    %438 = arith.andi %437, %436 : vector<1x64xi1>
    %439 = vector.broadcast %c6_i32 : i32 to vector<1x64xi32>
    %440 = arith.cmpi sgt, %68, %439 : vector<1x64xi32>
    %441 = arith.andi %438, %440 : vector<1x64xi1>
    %442 = arith.extui %441 : vector<1x64xi1> to vector<1x64xi32>
    %443 = arith.sitofp %442 : vector<1x64xi32> to vector<1x64xf32>
    %444 = arith.maximumf %391, %443 : vector<1x64xf32>
    %c7_i32 = arith.constant 7 : i32
    %445 = vector.broadcast %c7_i32 : i32 to vector<5x64xi32>
    %446 = arith.cmpi eq, %70, %445 : vector<5x64xi32>
    %cst_93 = arith.constant 0.000000e+00 : f32
    %447 = vector.broadcast %cst_93 : f32 to vector<5x64xf32>
    %448 = arith.select %446, %69, %447 : vector<5x64xi1>, vector<5x64xf32>
    %cst_94 = arith.constant dense<0.000000e+00> : vector<5xf32>
    %449 = vector.multi_reduction <add>, %448, %cst_94 [1] : vector<5x64xf32> to vector<5xf32>
    %450 = vector.shape_cast %449 : vector<5xf32> to vector<5x1xf32>
    %451 = vector.extract_strided_slice %450 {offsets = [0, 0], sizes = [1, 1], strides = [1, 1]} : vector<5x1xf32> to vector<1x1xf32>
    %452 = vector.extract_strided_slice %450 {offsets = [1, 0], sizes = [1, 1], strides = [1, 1]} : vector<5x1xf32> to vector<1x1xf32>
    %453 = vector.extract_strided_slice %450 {offsets = [2, 0], sizes = [1, 1], strides = [1, 1]} : vector<5x1xf32> to vector<1x1xf32>
    %454 = vector.extract_strided_slice %450 {offsets = [3, 0], sizes = [1, 1], strides = [1, 1]} : vector<5x1xf32> to vector<1x1xf32>
    %455 = vector.extract_strided_slice %450 {offsets = [4, 0], sizes = [1, 1], strides = [1, 1]} : vector<5x1xf32> to vector<1x1xf32>
    %456 = vector.broadcast %c7_i32 : i32 to vector<1x64xi32>
    %457 = arith.cmpi eq, %68, %456 : vector<1x64xi32>
    %cst_95 = arith.constant 1.000000e+00 : f32
    %458 = vector.broadcast %cst_95 : f32 to vector<1x64xf32>
    %459 = arith.subf %458, %444 : vector<1x64xf32>
    %cst_96 = arith.constant 0.000000e+00 : f32
    %460 = vector.broadcast %cst_96 : f32 to vector<1x64xf32>
    %461 = arith.select %457, %459, %460 : vector<1x64xi1>, vector<1x64xf32>
    %cst_97 = arith.constant dense<0xFF800000> : vector<1xf32>
    %462 = vector.multi_reduction <maximumf>, %461, %cst_97 [1] : vector<1x64xf32> to vector<1xf32>
    %463 = vector.shape_cast %462 : vector<1xf32> to vector<1x1xf32>
    %464 = vector.broadcast %453 : vector<1x1xf32> to vector<1x64xf32>
    %465 = arith.minimumf %464, %55 : vector<1x64xf32>
    %466 = vector.broadcast %451 : vector<1x1xf32> to vector<1x64xf32>
    %467 = arith.maximumf %466, %41 : vector<1x64xf32>
    %468 = arith.subf %465, %467 : vector<1x64xf32>
    %cst_98 = arith.constant 0.000000e+00 : f32
    %469 = vector.broadcast %cst_98 : f32 to vector<1x64xf32>
    %470 = arith.maximumf %468, %469 : vector<1x64xf32>
    %471 = vector.broadcast %454 : vector<1x1xf32> to vector<1x64xf32>
    %472 = arith.minimumf %471, %62 : vector<1x64xf32>
    %473 = vector.broadcast %452 : vector<1x1xf32> to vector<1x64xf32>
    %474 = arith.maximumf %473, %48 : vector<1x64xf32>
    %475 = arith.subf %472, %474 : vector<1x64xf32>
    %cst_99 = arith.constant 0.000000e+00 : f32
    %476 = vector.broadcast %cst_99 : f32 to vector<1x64xf32>
    %477 = arith.maximumf %475, %476 : vector<1x64xf32>
    %478 = arith.mulf %470, %477 : vector<1x64xf32>
    %479 = vector.broadcast %455 : vector<1x1xf32> to vector<1x64xf32>
    %480 = arith.addf %479, %65 : vector<1x64xf32>
    %481 = arith.subf %480, %478 : vector<1x64xf32>
    %cst_100 = arith.constant 9.99999993E-9 : f32
    %482 = vector.broadcast %cst_100 : f32 to vector<1x64xf32>
    %483 = arith.addf %481, %482 : vector<1x64xf32>
    %484 = tpu.reciprocal %483 {approx = true} : vector<1x64xf32> -> vector<1x64xf32>
    %485 = arith.mulf %478, %484 : vector<1x64xf32>
    %cst_101 = arith.constant 5.000000e-01 : f32
    %486 = vector.broadcast %cst_101 : f32 to vector<1x1xf32>
    %487 = arith.cmpf ogt, %463, %486 : vector<1x1xf32>
    %cst_102 = arith.constant 5.000000e-01 : f32
    %488 = vector.broadcast %cst_102 : f32 to vector<1x64xf32>
    %489 = arith.cmpf ogt, %485, %488 : vector<1x64xf32>
    %490 = vector.broadcast %487 : vector<1x1xi1> to vector<1x64xi1>
    %491 = arith.andi %490, %489 : vector<1x64xi1>
    %492 = vector.broadcast %c7_i32 : i32 to vector<1x64xi32>
    %493 = arith.cmpi sgt, %68, %492 : vector<1x64xi32>
    %494 = arith.andi %491, %493 : vector<1x64xi1>
    %495 = arith.extui %494 : vector<1x64xi1> to vector<1x64xi32>
    %496 = arith.sitofp %495 : vector<1x64xi32> to vector<1x64xf32>
    %497 = arith.maximumf %444, %496 : vector<1x64xf32>
    %c8_i32 = arith.constant 8 : i32
    %498 = vector.broadcast %c8_i32 : i32 to vector<5x64xi32>
    %499 = arith.cmpi eq, %70, %498 : vector<5x64xi32>
    %cst_103 = arith.constant 0.000000e+00 : f32
    %500 = vector.broadcast %cst_103 : f32 to vector<5x64xf32>
    %501 = arith.select %499, %69, %500 : vector<5x64xi1>, vector<5x64xf32>
    %cst_104 = arith.constant dense<0.000000e+00> : vector<5xf32>
    %502 = vector.multi_reduction <add>, %501, %cst_104 [1] : vector<5x64xf32> to vector<5xf32>
    %503 = vector.shape_cast %502 : vector<5xf32> to vector<5x1xf32>
    %504 = vector.extract_strided_slice %503 {offsets = [0, 0], sizes = [1, 1], strides = [1, 1]} : vector<5x1xf32> to vector<1x1xf32>
    %505 = vector.extract_strided_slice %503 {offsets = [1, 0], sizes = [1, 1], strides = [1, 1]} : vector<5x1xf32> to vector<1x1xf32>
    %506 = vector.extract_strided_slice %503 {offsets = [2, 0], sizes = [1, 1], strides = [1, 1]} : vector<5x1xf32> to vector<1x1xf32>
    %507 = vector.extract_strided_slice %503 {offsets = [3, 0], sizes = [1, 1], strides = [1, 1]} : vector<5x1xf32> to vector<1x1xf32>
    %508 = vector.extract_strided_slice %503 {offsets = [4, 0], sizes = [1, 1], strides = [1, 1]} : vector<5x1xf32> to vector<1x1xf32>
    %509 = vector.broadcast %c8_i32 : i32 to vector<1x64xi32>
    %510 = arith.cmpi eq, %68, %509 : vector<1x64xi32>
    %cst_105 = arith.constant 1.000000e+00 : f32
    %511 = vector.broadcast %cst_105 : f32 to vector<1x64xf32>
    %512 = arith.subf %511, %497 : vector<1x64xf32>
    %cst_106 = arith.constant 0.000000e+00 : f32
    %513 = vector.broadcast %cst_106 : f32 to vector<1x64xf32>
    %514 = arith.select %510, %512, %513 : vector<1x64xi1>, vector<1x64xf32>
    %cst_107 = arith.constant dense<0xFF800000> : vector<1xf32>
    %515 = vector.multi_reduction <maximumf>, %514, %cst_107 [1] : vector<1x64xf32> to vector<1xf32>
    %516 = vector.shape_cast %515 : vector<1xf32> to vector<1x1xf32>
    %517 = vector.broadcast %506 : vector<1x1xf32> to vector<1x64xf32>
    %518 = arith.minimumf %517, %55 : vector<1x64xf32>
    %519 = vector.broadcast %504 : vector<1x1xf32> to vector<1x64xf32>
    %520 = arith.maximumf %519, %41 : vector<1x64xf32>
    %521 = arith.subf %518, %520 : vector<1x64xf32>
    %cst_108 = arith.constant 0.000000e+00 : f32
    %522 = vector.broadcast %cst_108 : f32 to vector<1x64xf32>
    %523 = arith.maximumf %521, %522 : vector<1x64xf32>
    %524 = vector.broadcast %507 : vector<1x1xf32> to vector<1x64xf32>
    %525 = arith.minimumf %524, %62 : vector<1x64xf32>
    %526 = vector.broadcast %505 : vector<1x1xf32> to vector<1x64xf32>
    %527 = arith.maximumf %526, %48 : vector<1x64xf32>
    %528 = arith.subf %525, %527 : vector<1x64xf32>
    %cst_109 = arith.constant 0.000000e+00 : f32
    %529 = vector.broadcast %cst_109 : f32 to vector<1x64xf32>
    %530 = arith.maximumf %528, %529 : vector<1x64xf32>
    %531 = arith.mulf %523, %530 : vector<1x64xf32>
    %532 = vector.broadcast %508 : vector<1x1xf32> to vector<1x64xf32>
    %533 = arith.addf %532, %65 : vector<1x64xf32>
    %534 = arith.subf %533, %531 : vector<1x64xf32>
    %cst_110 = arith.constant 9.99999993E-9 : f32
    %535 = vector.broadcast %cst_110 : f32 to vector<1x64xf32>
    %536 = arith.addf %534, %535 : vector<1x64xf32>
    %537 = tpu.reciprocal %536 {approx = true} : vector<1x64xf32> -> vector<1x64xf32>
    %538 = arith.mulf %531, %537 : vector<1x64xf32>
    %cst_111 = arith.constant 5.000000e-01 : f32
    %539 = vector.broadcast %cst_111 : f32 to vector<1x1xf32>
    %540 = arith.cmpf ogt, %516, %539 : vector<1x1xf32>
    %cst_112 = arith.constant 5.000000e-01 : f32
    %541 = vector.broadcast %cst_112 : f32 to vector<1x64xf32>
    %542 = arith.cmpf ogt, %538, %541 : vector<1x64xf32>
    %543 = vector.broadcast %540 : vector<1x1xi1> to vector<1x64xi1>
    %544 = arith.andi %543, %542 : vector<1x64xi1>
    %545 = vector.broadcast %c8_i32 : i32 to vector<1x64xi32>
    %546 = arith.cmpi sgt, %68, %545 : vector<1x64xi32>
    %547 = arith.andi %544, %546 : vector<1x64xi1>
    %548 = arith.extui %547 : vector<1x64xi1> to vector<1x64xi32>
    %549 = arith.sitofp %548 : vector<1x64xi32> to vector<1x64xf32>
    %550 = arith.maximumf %497, %549 : vector<1x64xf32>
    %c9_i32 = arith.constant 9 : i32
    %551 = vector.broadcast %c9_i32 : i32 to vector<5x64xi32>
    %552 = arith.cmpi eq, %70, %551 : vector<5x64xi32>
    %cst_113 = arith.constant 0.000000e+00 : f32
    %553 = vector.broadcast %cst_113 : f32 to vector<5x64xf32>
    %554 = arith.select %552, %69, %553 : vector<5x64xi1>, vector<5x64xf32>
    %cst_114 = arith.constant dense<0.000000e+00> : vector<5xf32>
    %555 = vector.multi_reduction <add>, %554, %cst_114 [1] : vector<5x64xf32> to vector<5xf32>
    %556 = vector.shape_cast %555 : vector<5xf32> to vector<5x1xf32>
    %557 = vector.extract_strided_slice %556 {offsets = [0, 0], sizes = [1, 1], strides = [1, 1]} : vector<5x1xf32> to vector<1x1xf32>
    %558 = vector.extract_strided_slice %556 {offsets = [1, 0], sizes = [1, 1], strides = [1, 1]} : vector<5x1xf32> to vector<1x1xf32>
    %559 = vector.extract_strided_slice %556 {offsets = [2, 0], sizes = [1, 1], strides = [1, 1]} : vector<5x1xf32> to vector<1x1xf32>
    %560 = vector.extract_strided_slice %556 {offsets = [3, 0], sizes = [1, 1], strides = [1, 1]} : vector<5x1xf32> to vector<1x1xf32>
    %561 = vector.extract_strided_slice %556 {offsets = [4, 0], sizes = [1, 1], strides = [1, 1]} : vector<5x1xf32> to vector<1x1xf32>
    %562 = vector.broadcast %c9_i32 : i32 to vector<1x64xi32>
    %563 = arith.cmpi eq, %68, %562 : vector<1x64xi32>
    %cst_115 = arith.constant 1.000000e+00 : f32
    %564 = vector.broadcast %cst_115 : f32 to vector<1x64xf32>
    %565 = arith.subf %564, %550 : vector<1x64xf32>
    %cst_116 = arith.constant 0.000000e+00 : f32
    %566 = vector.broadcast %cst_116 : f32 to vector<1x64xf32>
    %567 = arith.select %563, %565, %566 : vector<1x64xi1>, vector<1x64xf32>
    %cst_117 = arith.constant dense<0xFF800000> : vector<1xf32>
    %568 = vector.multi_reduction <maximumf>, %567, %cst_117 [1] : vector<1x64xf32> to vector<1xf32>
    %569 = vector.shape_cast %568 : vector<1xf32> to vector<1x1xf32>
    %570 = vector.broadcast %559 : vector<1x1xf32> to vector<1x64xf32>
    %571 = arith.minimumf %570, %55 : vector<1x64xf32>
    %572 = vector.broadcast %557 : vector<1x1xf32> to vector<1x64xf32>
    %573 = arith.maximumf %572, %41 : vector<1x64xf32>
    %574 = arith.subf %571, %573 : vector<1x64xf32>
    %cst_118 = arith.constant 0.000000e+00 : f32
    %575 = vector.broadcast %cst_118 : f32 to vector<1x64xf32>
    %576 = arith.maximumf %574, %575 : vector<1x64xf32>
    %577 = vector.broadcast %560 : vector<1x1xf32> to vector<1x64xf32>
    %578 = arith.minimumf %577, %62 : vector<1x64xf32>
    %579 = vector.broadcast %558 : vector<1x1xf32> to vector<1x64xf32>
    %580 = arith.maximumf %579, %48 : vector<1x64xf32>
    %581 = arith.subf %578, %580 : vector<1x64xf32>
    %cst_119 = arith.constant 0.000000e+00 : f32
    %582 = vector.broadcast %cst_119 : f32 to vector<1x64xf32>
    %583 = arith.maximumf %581, %582 : vector<1x64xf32>
    %584 = arith.mulf %576, %583 : vector<1x64xf32>
    %585 = vector.broadcast %561 : vector<1x1xf32> to vector<1x64xf32>
    %586 = arith.addf %585, %65 : vector<1x64xf32>
    %587 = arith.subf %586, %584 : vector<1x64xf32>
    %cst_120 = arith.constant 9.99999993E-9 : f32
    %588 = vector.broadcast %cst_120 : f32 to vector<1x64xf32>
    %589 = arith.addf %587, %588 : vector<1x64xf32>
    %590 = tpu.reciprocal %589 {approx = true} : vector<1x64xf32> -> vector<1x64xf32>
    %591 = arith.mulf %584, %590 : vector<1x64xf32>
    %cst_121 = arith.constant 5.000000e-01 : f32
    %592 = vector.broadcast %cst_121 : f32 to vector<1x1xf32>
    %593 = arith.cmpf ogt, %569, %592 : vector<1x1xf32>
    %cst_122 = arith.constant 5.000000e-01 : f32
    %594 = vector.broadcast %cst_122 : f32 to vector<1x64xf32>
    %595 = arith.cmpf ogt, %591, %594 : vector<1x64xf32>
    %596 = vector.broadcast %593 : vector<1x1xi1> to vector<1x64xi1>
    %597 = arith.andi %596, %595 : vector<1x64xi1>
    %598 = vector.broadcast %c9_i32 : i32 to vector<1x64xi32>
    %599 = arith.cmpi sgt, %68, %598 : vector<1x64xi32>
    %600 = arith.andi %597, %599 : vector<1x64xi1>
    %601 = arith.extui %600 : vector<1x64xi1> to vector<1x64xi32>
    %602 = arith.sitofp %601 : vector<1x64xi32> to vector<1x64xf32>
    %603 = arith.maximumf %550, %602 : vector<1x64xf32>
    %c10_i32 = arith.constant 10 : i32
    %604 = vector.broadcast %c10_i32 : i32 to vector<5x64xi32>
    %605 = arith.cmpi eq, %70, %604 : vector<5x64xi32>
    %cst_123 = arith.constant 0.000000e+00 : f32
    %606 = vector.broadcast %cst_123 : f32 to vector<5x64xf32>
    %607 = arith.select %605, %69, %606 : vector<5x64xi1>, vector<5x64xf32>
    %cst_124 = arith.constant dense<0.000000e+00> : vector<5xf32>
    %608 = vector.multi_reduction <add>, %607, %cst_124 [1] : vector<5x64xf32> to vector<5xf32>
    %609 = vector.shape_cast %608 : vector<5xf32> to vector<5x1xf32>
    %610 = vector.extract_strided_slice %609 {offsets = [0, 0], sizes = [1, 1], strides = [1, 1]} : vector<5x1xf32> to vector<1x1xf32>
    %611 = vector.extract_strided_slice %609 {offsets = [1, 0], sizes = [1, 1], strides = [1, 1]} : vector<5x1xf32> to vector<1x1xf32>
    %612 = vector.extract_strided_slice %609 {offsets = [2, 0], sizes = [1, 1], strides = [1, 1]} : vector<5x1xf32> to vector<1x1xf32>
    %613 = vector.extract_strided_slice %609 {offsets = [3, 0], sizes = [1, 1], strides = [1, 1]} : vector<5x1xf32> to vector<1x1xf32>
    %614 = vector.extract_strided_slice %609 {offsets = [4, 0], sizes = [1, 1], strides = [1, 1]} : vector<5x1xf32> to vector<1x1xf32>
    %615 = vector.broadcast %c10_i32 : i32 to vector<1x64xi32>
    %616 = arith.cmpi eq, %68, %615 : vector<1x64xi32>
    %cst_125 = arith.constant 1.000000e+00 : f32
    %617 = vector.broadcast %cst_125 : f32 to vector<1x64xf32>
    %618 = arith.subf %617, %603 : vector<1x64xf32>
    %cst_126 = arith.constant 0.000000e+00 : f32
    %619 = vector.broadcast %cst_126 : f32 to vector<1x64xf32>
    %620 = arith.select %616, %618, %619 : vector<1x64xi1>, vector<1x64xf32>
    %cst_127 = arith.constant dense<0xFF800000> : vector<1xf32>
    %621 = vector.multi_reduction <maximumf>, %620, %cst_127 [1] : vector<1x64xf32> to vector<1xf32>
    %622 = vector.shape_cast %621 : vector<1xf32> to vector<1x1xf32>
    %623 = vector.broadcast %612 : vector<1x1xf32> to vector<1x64xf32>
    %624 = arith.minimumf %623, %55 : vector<1x64xf32>
    %625 = vector.broadcast %610 : vector<1x1xf32> to vector<1x64xf32>
    %626 = arith.maximumf %625, %41 : vector<1x64xf32>
    %627 = arith.subf %624, %626 : vector<1x64xf32>
    %cst_128 = arith.constant 0.000000e+00 : f32
    %628 = vector.broadcast %cst_128 : f32 to vector<1x64xf32>
    %629 = arith.maximumf %627, %628 : vector<1x64xf32>
    %630 = vector.broadcast %613 : vector<1x1xf32> to vector<1x64xf32>
    %631 = arith.minimumf %630, %62 : vector<1x64xf32>
    %632 = vector.broadcast %611 : vector<1x1xf32> to vector<1x64xf32>
    %633 = arith.maximumf %632, %48 : vector<1x64xf32>
    %634 = arith.subf %631, %633 : vector<1x64xf32>
    %cst_129 = arith.constant 0.000000e+00 : f32
    %635 = vector.broadcast %cst_129 : f32 to vector<1x64xf32>
    %636 = arith.maximumf %634, %635 : vector<1x64xf32>
    %637 = arith.mulf %629, %636 : vector<1x64xf32>
    %638 = vector.broadcast %614 : vector<1x1xf32> to vector<1x64xf32>
    %639 = arith.addf %638, %65 : vector<1x64xf32>
    %640 = arith.subf %639, %637 : vector<1x64xf32>
    %cst_130 = arith.constant 9.99999993E-9 : f32
    %641 = vector.broadcast %cst_130 : f32 to vector<1x64xf32>
    %642 = arith.addf %640, %641 : vector<1x64xf32>
    %643 = tpu.reciprocal %642 {approx = true} : vector<1x64xf32> -> vector<1x64xf32>
    %644 = arith.mulf %637, %643 : vector<1x64xf32>
    %cst_131 = arith.constant 5.000000e-01 : f32
    %645 = vector.broadcast %cst_131 : f32 to vector<1x1xf32>
    %646 = arith.cmpf ogt, %622, %645 : vector<1x1xf32>
    %cst_132 = arith.constant 5.000000e-01 : f32
    %647 = vector.broadcast %cst_132 : f32 to vector<1x64xf32>
    %648 = arith.cmpf ogt, %644, %647 : vector<1x64xf32>
    %649 = vector.broadcast %646 : vector<1x1xi1> to vector<1x64xi1>
    %650 = arith.andi %649, %648 : vector<1x64xi1>
    %651 = vector.broadcast %c10_i32 : i32 to vector<1x64xi32>
    %652 = arith.cmpi sgt, %68, %651 : vector<1x64xi32>
    %653 = arith.andi %650, %652 : vector<1x64xi1>
    %654 = arith.extui %653 : vector<1x64xi1> to vector<1x64xi32>
    %655 = arith.sitofp %654 : vector<1x64xi32> to vector<1x64xf32>
    %656 = arith.maximumf %603, %655 : vector<1x64xf32>
    %c11_i32 = arith.constant 11 : i32
    %657 = vector.broadcast %c11_i32 : i32 to vector<5x64xi32>
    %658 = arith.cmpi eq, %70, %657 : vector<5x64xi32>
    %cst_133 = arith.constant 0.000000e+00 : f32
    %659 = vector.broadcast %cst_133 : f32 to vector<5x64xf32>
    %660 = arith.select %658, %69, %659 : vector<5x64xi1>, vector<5x64xf32>
    %cst_134 = arith.constant dense<0.000000e+00> : vector<5xf32>
    %661 = vector.multi_reduction <add>, %660, %cst_134 [1] : vector<5x64xf32> to vector<5xf32>
    %662 = vector.shape_cast %661 : vector<5xf32> to vector<5x1xf32>
    %663 = vector.extract_strided_slice %662 {offsets = [0, 0], sizes = [1, 1], strides = [1, 1]} : vector<5x1xf32> to vector<1x1xf32>
    %664 = vector.extract_strided_slice %662 {offsets = [1, 0], sizes = [1, 1], strides = [1, 1]} : vector<5x1xf32> to vector<1x1xf32>
    %665 = vector.extract_strided_slice %662 {offsets = [2, 0], sizes = [1, 1], strides = [1, 1]} : vector<5x1xf32> to vector<1x1xf32>
    %666 = vector.extract_strided_slice %662 {offsets = [3, 0], sizes = [1, 1], strides = [1, 1]} : vector<5x1xf32> to vector<1x1xf32>
    %667 = vector.extract_strided_slice %662 {offsets = [4, 0], sizes = [1, 1], strides = [1, 1]} : vector<5x1xf32> to vector<1x1xf32>
    %668 = vector.broadcast %c11_i32 : i32 to vector<1x64xi32>
    %669 = arith.cmpi eq, %68, %668 : vector<1x64xi32>
    %cst_135 = arith.constant 1.000000e+00 : f32
    %670 = vector.broadcast %cst_135 : f32 to vector<1x64xf32>
    %671 = arith.subf %670, %656 : vector<1x64xf32>
    %cst_136 = arith.constant 0.000000e+00 : f32
    %672 = vector.broadcast %cst_136 : f32 to vector<1x64xf32>
    %673 = arith.select %669, %671, %672 : vector<1x64xi1>, vector<1x64xf32>
    %cst_137 = arith.constant dense<0xFF800000> : vector<1xf32>
    %674 = vector.multi_reduction <maximumf>, %673, %cst_137 [1] : vector<1x64xf32> to vector<1xf32>
    %675 = vector.shape_cast %674 : vector<1xf32> to vector<1x1xf32>
    %676 = vector.broadcast %665 : vector<1x1xf32> to vector<1x64xf32>
    %677 = arith.minimumf %676, %55 : vector<1x64xf32>
    %678 = vector.broadcast %663 : vector<1x1xf32> to vector<1x64xf32>
    %679 = arith.maximumf %678, %41 : vector<1x64xf32>
    %680 = arith.subf %677, %679 : vector<1x64xf32>
    %cst_138 = arith.constant 0.000000e+00 : f32
    %681 = vector.broadcast %cst_138 : f32 to vector<1x64xf32>
    %682 = arith.maximumf %680, %681 : vector<1x64xf32>
    %683 = vector.broadcast %666 : vector<1x1xf32> to vector<1x64xf32>
    %684 = arith.minimumf %683, %62 : vector<1x64xf32>
    %685 = vector.broadcast %664 : vector<1x1xf32> to vector<1x64xf32>
    %686 = arith.maximumf %685, %48 : vector<1x64xf32>
    %687 = arith.subf %684, %686 : vector<1x64xf32>
    %cst_139 = arith.constant 0.000000e+00 : f32
    %688 = vector.broadcast %cst_139 : f32 to vector<1x64xf32>
    %689 = arith.maximumf %687, %688 : vector<1x64xf32>
    %690 = arith.mulf %682, %689 : vector<1x64xf32>
    %691 = vector.broadcast %667 : vector<1x1xf32> to vector<1x64xf32>
    %692 = arith.addf %691, %65 : vector<1x64xf32>
    %693 = arith.subf %692, %690 : vector<1x64xf32>
    %cst_140 = arith.constant 9.99999993E-9 : f32
    %694 = vector.broadcast %cst_140 : f32 to vector<1x64xf32>
    %695 = arith.addf %693, %694 : vector<1x64xf32>
    %696 = tpu.reciprocal %695 {approx = true} : vector<1x64xf32> -> vector<1x64xf32>
    %697 = arith.mulf %690, %696 : vector<1x64xf32>
    %cst_141 = arith.constant 5.000000e-01 : f32
    %698 = vector.broadcast %cst_141 : f32 to vector<1x1xf32>
    %699 = arith.cmpf ogt, %675, %698 : vector<1x1xf32>
    %cst_142 = arith.constant 5.000000e-01 : f32
    %700 = vector.broadcast %cst_142 : f32 to vector<1x64xf32>
    %701 = arith.cmpf ogt, %697, %700 : vector<1x64xf32>
    %702 = vector.broadcast %699 : vector<1x1xi1> to vector<1x64xi1>
    %703 = arith.andi %702, %701 : vector<1x64xi1>
    %704 = vector.broadcast %c11_i32 : i32 to vector<1x64xi32>
    %705 = arith.cmpi sgt, %68, %704 : vector<1x64xi32>
    %706 = arith.andi %703, %705 : vector<1x64xi1>
    %707 = arith.extui %706 : vector<1x64xi1> to vector<1x64xi32>
    %708 = arith.sitofp %707 : vector<1x64xi32> to vector<1x64xf32>
    %709 = arith.maximumf %656, %708 : vector<1x64xf32>
    %c12_i32 = arith.constant 12 : i32
    %710 = vector.broadcast %c12_i32 : i32 to vector<5x64xi32>
    %711 = arith.cmpi eq, %70, %710 : vector<5x64xi32>
    %cst_143 = arith.constant 0.000000e+00 : f32
    %712 = vector.broadcast %cst_143 : f32 to vector<5x64xf32>
    %713 = arith.select %711, %69, %712 : vector<5x64xi1>, vector<5x64xf32>
    %cst_144 = arith.constant dense<0.000000e+00> : vector<5xf32>
    %714 = vector.multi_reduction <add>, %713, %cst_144 [1] : vector<5x64xf32> to vector<5xf32>
    %715 = vector.shape_cast %714 : vector<5xf32> to vector<5x1xf32>
    %716 = vector.extract_strided_slice %715 {offsets = [0, 0], sizes = [1, 1], strides = [1, 1]} : vector<5x1xf32> to vector<1x1xf32>
    %717 = vector.extract_strided_slice %715 {offsets = [1, 0], sizes = [1, 1], strides = [1, 1]} : vector<5x1xf32> to vector<1x1xf32>
    %718 = vector.extract_strided_slice %715 {offsets = [2, 0], sizes = [1, 1], strides = [1, 1]} : vector<5x1xf32> to vector<1x1xf32>
    %719 = vector.extract_strided_slice %715 {offsets = [3, 0], sizes = [1, 1], strides = [1, 1]} : vector<5x1xf32> to vector<1x1xf32>
    %720 = vector.extract_strided_slice %715 {offsets = [4, 0], sizes = [1, 1], strides = [1, 1]} : vector<5x1xf32> to vector<1x1xf32>
    %721 = vector.broadcast %c12_i32 : i32 to vector<1x64xi32>
    %722 = arith.cmpi eq, %68, %721 : vector<1x64xi32>
    %cst_145 = arith.constant 1.000000e+00 : f32
    %723 = vector.broadcast %cst_145 : f32 to vector<1x64xf32>
    %724 = arith.subf %723, %709 : vector<1x64xf32>
    %cst_146 = arith.constant 0.000000e+00 : f32
    %725 = vector.broadcast %cst_146 : f32 to vector<1x64xf32>
    %726 = arith.select %722, %724, %725 : vector<1x64xi1>, vector<1x64xf32>
    %cst_147 = arith.constant dense<0xFF800000> : vector<1xf32>
    %727 = vector.multi_reduction <maximumf>, %726, %cst_147 [1] : vector<1x64xf32> to vector<1xf32>
    %728 = vector.shape_cast %727 : vector<1xf32> to vector<1x1xf32>
    %729 = vector.broadcast %718 : vector<1x1xf32> to vector<1x64xf32>
    %730 = arith.minimumf %729, %55 : vector<1x64xf32>
    %731 = vector.broadcast %716 : vector<1x1xf32> to vector<1x64xf32>
    %732 = arith.maximumf %731, %41 : vector<1x64xf32>
    %733 = arith.subf %730, %732 : vector<1x64xf32>
    %cst_148 = arith.constant 0.000000e+00 : f32
    %734 = vector.broadcast %cst_148 : f32 to vector<1x64xf32>
    %735 = arith.maximumf %733, %734 : vector<1x64xf32>
    %736 = vector.broadcast %719 : vector<1x1xf32> to vector<1x64xf32>
    %737 = arith.minimumf %736, %62 : vector<1x64xf32>
    %738 = vector.broadcast %717 : vector<1x1xf32> to vector<1x64xf32>
    %739 = arith.maximumf %738, %48 : vector<1x64xf32>
    %740 = arith.subf %737, %739 : vector<1x64xf32>
    %cst_149 = arith.constant 0.000000e+00 : f32
    %741 = vector.broadcast %cst_149 : f32 to vector<1x64xf32>
    %742 = arith.maximumf %740, %741 : vector<1x64xf32>
    %743 = arith.mulf %735, %742 : vector<1x64xf32>
    %744 = vector.broadcast %720 : vector<1x1xf32> to vector<1x64xf32>
    %745 = arith.addf %744, %65 : vector<1x64xf32>
    %746 = arith.subf %745, %743 : vector<1x64xf32>
    %cst_150 = arith.constant 9.99999993E-9 : f32
    %747 = vector.broadcast %cst_150 : f32 to vector<1x64xf32>
    %748 = arith.addf %746, %747 : vector<1x64xf32>
    %749 = tpu.reciprocal %748 {approx = true} : vector<1x64xf32> -> vector<1x64xf32>
    %750 = arith.mulf %743, %749 : vector<1x64xf32>
    %cst_151 = arith.constant 5.000000e-01 : f32
    %751 = vector.broadcast %cst_151 : f32 to vector<1x1xf32>
    %752 = arith.cmpf ogt, %728, %751 : vector<1x1xf32>
    %cst_152 = arith.constant 5.000000e-01 : f32
    %753 = vector.broadcast %cst_152 : f32 to vector<1x64xf32>
    %754 = arith.cmpf ogt, %750, %753 : vector<1x64xf32>
    %755 = vector.broadcast %752 : vector<1x1xi1> to vector<1x64xi1>
    %756 = arith.andi %755, %754 : vector<1x64xi1>
    %757 = vector.broadcast %c12_i32 : i32 to vector<1x64xi32>
    %758 = arith.cmpi sgt, %68, %757 : vector<1x64xi32>
    %759 = arith.andi %756, %758 : vector<1x64xi1>
    %760 = arith.extui %759 : vector<1x64xi1> to vector<1x64xi32>
    %761 = arith.sitofp %760 : vector<1x64xi32> to vector<1x64xf32>
    %762 = arith.maximumf %709, %761 : vector<1x64xf32>
    %c13_i32 = arith.constant 13 : i32
    %763 = vector.broadcast %c13_i32 : i32 to vector<5x64xi32>
    %764 = arith.cmpi eq, %70, %763 : vector<5x64xi32>
    %cst_153 = arith.constant 0.000000e+00 : f32
    %765 = vector.broadcast %cst_153 : f32 to vector<5x64xf32>
    %766 = arith.select %764, %69, %765 : vector<5x64xi1>, vector<5x64xf32>
    %cst_154 = arith.constant dense<0.000000e+00> : vector<5xf32>
    %767 = vector.multi_reduction <add>, %766, %cst_154 [1] : vector<5x64xf32> to vector<5xf32>
    %768 = vector.shape_cast %767 : vector<5xf32> to vector<5x1xf32>
    %769 = vector.extract_strided_slice %768 {offsets = [0, 0], sizes = [1, 1], strides = [1, 1]} : vector<5x1xf32> to vector<1x1xf32>
    %770 = vector.extract_strided_slice %768 {offsets = [1, 0], sizes = [1, 1], strides = [1, 1]} : vector<5x1xf32> to vector<1x1xf32>
    %771 = vector.extract_strided_slice %768 {offsets = [2, 0], sizes = [1, 1], strides = [1, 1]} : vector<5x1xf32> to vector<1x1xf32>
    %772 = vector.extract_strided_slice %768 {offsets = [3, 0], sizes = [1, 1], strides = [1, 1]} : vector<5x1xf32> to vector<1x1xf32>
    %773 = vector.extract_strided_slice %768 {offsets = [4, 0], sizes = [1, 1], strides = [1, 1]} : vector<5x1xf32> to vector<1x1xf32>
    %774 = vector.broadcast %c13_i32 : i32 to vector<1x64xi32>
    %775 = arith.cmpi eq, %68, %774 : vector<1x64xi32>
    %cst_155 = arith.constant 1.000000e+00 : f32
    %776 = vector.broadcast %cst_155 : f32 to vector<1x64xf32>
    %777 = arith.subf %776, %762 : vector<1x64xf32>
    %cst_156 = arith.constant 0.000000e+00 : f32
    %778 = vector.broadcast %cst_156 : f32 to vector<1x64xf32>
    %779 = arith.select %775, %777, %778 : vector<1x64xi1>, vector<1x64xf32>
    %cst_157 = arith.constant dense<0xFF800000> : vector<1xf32>
    %780 = vector.multi_reduction <maximumf>, %779, %cst_157 [1] : vector<1x64xf32> to vector<1xf32>
    %781 = vector.shape_cast %780 : vector<1xf32> to vector<1x1xf32>
    %782 = vector.broadcast %771 : vector<1x1xf32> to vector<1x64xf32>
    %783 = arith.minimumf %782, %55 : vector<1x64xf32>
    %784 = vector.broadcast %769 : vector<1x1xf32> to vector<1x64xf32>
    %785 = arith.maximumf %784, %41 : vector<1x64xf32>
    %786 = arith.subf %783, %785 : vector<1x64xf32>
    %cst_158 = arith.constant 0.000000e+00 : f32
    %787 = vector.broadcast %cst_158 : f32 to vector<1x64xf32>
    %788 = arith.maximumf %786, %787 : vector<1x64xf32>
    %789 = vector.broadcast %772 : vector<1x1xf32> to vector<1x64xf32>
    %790 = arith.minimumf %789, %62 : vector<1x64xf32>
    %791 = vector.broadcast %770 : vector<1x1xf32> to vector<1x64xf32>
    %792 = arith.maximumf %791, %48 : vector<1x64xf32>
    %793 = arith.subf %790, %792 : vector<1x64xf32>
    %cst_159 = arith.constant 0.000000e+00 : f32
    %794 = vector.broadcast %cst_159 : f32 to vector<1x64xf32>
    %795 = arith.maximumf %793, %794 : vector<1x64xf32>
    %796 = arith.mulf %788, %795 : vector<1x64xf32>
    %797 = vector.broadcast %773 : vector<1x1xf32> to vector<1x64xf32>
    %798 = arith.addf %797, %65 : vector<1x64xf32>
    %799 = arith.subf %798, %796 : vector<1x64xf32>
    %cst_160 = arith.constant 9.99999993E-9 : f32
    %800 = vector.broadcast %cst_160 : f32 to vector<1x64xf32>
    %801 = arith.addf %799, %800 : vector<1x64xf32>
    %802 = tpu.reciprocal %801 {approx = true} : vector<1x64xf32> -> vector<1x64xf32>
    %803 = arith.mulf %796, %802 : vector<1x64xf32>
    %cst_161 = arith.constant 5.000000e-01 : f32
    %804 = vector.broadcast %cst_161 : f32 to vector<1x1xf32>
    %805 = arith.cmpf ogt, %781, %804 : vector<1x1xf32>
    %cst_162 = arith.constant 5.000000e-01 : f32
    %806 = vector.broadcast %cst_162 : f32 to vector<1x64xf32>
    %807 = arith.cmpf ogt, %803, %806 : vector<1x64xf32>
    %808 = vector.broadcast %805 : vector<1x1xi1> to vector<1x64xi1>
    %809 = arith.andi %808, %807 : vector<1x64xi1>
    %810 = vector.broadcast %c13_i32 : i32 to vector<1x64xi32>
    %811 = arith.cmpi sgt, %68, %810 : vector<1x64xi32>
    %812 = arith.andi %809, %811 : vector<1x64xi1>
    %813 = arith.extui %812 : vector<1x64xi1> to vector<1x64xi32>
    %814 = arith.sitofp %813 : vector<1x64xi32> to vector<1x64xf32>
    %815 = arith.maximumf %762, %814 : vector<1x64xf32>
    %c14_i32 = arith.constant 14 : i32
    %816 = vector.broadcast %c14_i32 : i32 to vector<5x64xi32>
    %817 = arith.cmpi eq, %70, %816 : vector<5x64xi32>
    %cst_163 = arith.constant 0.000000e+00 : f32
    %818 = vector.broadcast %cst_163 : f32 to vector<5x64xf32>
    %819 = arith.select %817, %69, %818 : vector<5x64xi1>, vector<5x64xf32>
    %cst_164 = arith.constant dense<0.000000e+00> : vector<5xf32>
    %820 = vector.multi_reduction <add>, %819, %cst_164 [1] : vector<5x64xf32> to vector<5xf32>
    %821 = vector.shape_cast %820 : vector<5xf32> to vector<5x1xf32>
    %822 = vector.extract_strided_slice %821 {offsets = [0, 0], sizes = [1, 1], strides = [1, 1]} : vector<5x1xf32> to vector<1x1xf32>
    %823 = vector.extract_strided_slice %821 {offsets = [1, 0], sizes = [1, 1], strides = [1, 1]} : vector<5x1xf32> to vector<1x1xf32>
    %824 = vector.extract_strided_slice %821 {offsets = [2, 0], sizes = [1, 1], strides = [1, 1]} : vector<5x1xf32> to vector<1x1xf32>
    %825 = vector.extract_strided_slice %821 {offsets = [3, 0], sizes = [1, 1], strides = [1, 1]} : vector<5x1xf32> to vector<1x1xf32>
    %826 = vector.extract_strided_slice %821 {offsets = [4, 0], sizes = [1, 1], strides = [1, 1]} : vector<5x1xf32> to vector<1x1xf32>
    %827 = vector.broadcast %c14_i32 : i32 to vector<1x64xi32>
    %828 = arith.cmpi eq, %68, %827 : vector<1x64xi32>
    %cst_165 = arith.constant 1.000000e+00 : f32
    %829 = vector.broadcast %cst_165 : f32 to vector<1x64xf32>
    %830 = arith.subf %829, %815 : vector<1x64xf32>
    %cst_166 = arith.constant 0.000000e+00 : f32
    %831 = vector.broadcast %cst_166 : f32 to vector<1x64xf32>
    %832 = arith.select %828, %830, %831 : vector<1x64xi1>, vector<1x64xf32>
    %cst_167 = arith.constant dense<0xFF800000> : vector<1xf32>
    %833 = vector.multi_reduction <maximumf>, %832, %cst_167 [1] : vector<1x64xf32> to vector<1xf32>
    %834 = vector.shape_cast %833 : vector<1xf32> to vector<1x1xf32>
    %835 = vector.broadcast %824 : vector<1x1xf32> to vector<1x64xf32>
    %836 = arith.minimumf %835, %55 : vector<1x64xf32>
    %837 = vector.broadcast %822 : vector<1x1xf32> to vector<1x64xf32>
    %838 = arith.maximumf %837, %41 : vector<1x64xf32>
    %839 = arith.subf %836, %838 : vector<1x64xf32>
    %cst_168 = arith.constant 0.000000e+00 : f32
    %840 = vector.broadcast %cst_168 : f32 to vector<1x64xf32>
    %841 = arith.maximumf %839, %840 : vector<1x64xf32>
    %842 = vector.broadcast %825 : vector<1x1xf32> to vector<1x64xf32>
    %843 = arith.minimumf %842, %62 : vector<1x64xf32>
    %844 = vector.broadcast %823 : vector<1x1xf32> to vector<1x64xf32>
    %845 = arith.maximumf %844, %48 : vector<1x64xf32>
    %846 = arith.subf %843, %845 : vector<1x64xf32>
    %cst_169 = arith.constant 0.000000e+00 : f32
    %847 = vector.broadcast %cst_169 : f32 to vector<1x64xf32>
    %848 = arith.maximumf %846, %847 : vector<1x64xf32>
    %849 = arith.mulf %841, %848 : vector<1x64xf32>
    %850 = vector.broadcast %826 : vector<1x1xf32> to vector<1x64xf32>
    %851 = arith.addf %850, %65 : vector<1x64xf32>
    %852 = arith.subf %851, %849 : vector<1x64xf32>
    %cst_170 = arith.constant 9.99999993E-9 : f32
    %853 = vector.broadcast %cst_170 : f32 to vector<1x64xf32>
    %854 = arith.addf %852, %853 : vector<1x64xf32>
    %855 = tpu.reciprocal %854 {approx = true} : vector<1x64xf32> -> vector<1x64xf32>
    %856 = arith.mulf %849, %855 : vector<1x64xf32>
    %cst_171 = arith.constant 5.000000e-01 : f32
    %857 = vector.broadcast %cst_171 : f32 to vector<1x1xf32>
    %858 = arith.cmpf ogt, %834, %857 : vector<1x1xf32>
    %cst_172 = arith.constant 5.000000e-01 : f32
    %859 = vector.broadcast %cst_172 : f32 to vector<1x64xf32>
    %860 = arith.cmpf ogt, %856, %859 : vector<1x64xf32>
    %861 = vector.broadcast %858 : vector<1x1xi1> to vector<1x64xi1>
    %862 = arith.andi %861, %860 : vector<1x64xi1>
    %863 = vector.broadcast %c14_i32 : i32 to vector<1x64xi32>
    %864 = arith.cmpi sgt, %68, %863 : vector<1x64xi32>
    %865 = arith.andi %862, %864 : vector<1x64xi1>
    %866 = arith.extui %865 : vector<1x64xi1> to vector<1x64xi32>
    %867 = arith.sitofp %866 : vector<1x64xi32> to vector<1x64xf32>
    %868 = arith.maximumf %815, %867 : vector<1x64xf32>
    %c15_i32 = arith.constant 15 : i32
    %869 = vector.broadcast %c15_i32 : i32 to vector<5x64xi32>
    %870 = arith.cmpi eq, %70, %869 : vector<5x64xi32>
    %cst_173 = arith.constant 0.000000e+00 : f32
    %871 = vector.broadcast %cst_173 : f32 to vector<5x64xf32>
    %872 = arith.select %870, %69, %871 : vector<5x64xi1>, vector<5x64xf32>
    %cst_174 = arith.constant dense<0.000000e+00> : vector<5xf32>
    %873 = vector.multi_reduction <add>, %872, %cst_174 [1] : vector<5x64xf32> to vector<5xf32>
    %874 = vector.shape_cast %873 : vector<5xf32> to vector<5x1xf32>
    %875 = vector.extract_strided_slice %874 {offsets = [0, 0], sizes = [1, 1], strides = [1, 1]} : vector<5x1xf32> to vector<1x1xf32>
    %876 = vector.extract_strided_slice %874 {offsets = [1, 0], sizes = [1, 1], strides = [1, 1]} : vector<5x1xf32> to vector<1x1xf32>
    %877 = vector.extract_strided_slice %874 {offsets = [2, 0], sizes = [1, 1], strides = [1, 1]} : vector<5x1xf32> to vector<1x1xf32>
    %878 = vector.extract_strided_slice %874 {offsets = [3, 0], sizes = [1, 1], strides = [1, 1]} : vector<5x1xf32> to vector<1x1xf32>
    %879 = vector.extract_strided_slice %874 {offsets = [4, 0], sizes = [1, 1], strides = [1, 1]} : vector<5x1xf32> to vector<1x1xf32>
    %880 = vector.broadcast %c15_i32 : i32 to vector<1x64xi32>
    %881 = arith.cmpi eq, %68, %880 : vector<1x64xi32>
    %cst_175 = arith.constant 1.000000e+00 : f32
    %882 = vector.broadcast %cst_175 : f32 to vector<1x64xf32>
    %883 = arith.subf %882, %868 : vector<1x64xf32>
    %cst_176 = arith.constant 0.000000e+00 : f32
    %884 = vector.broadcast %cst_176 : f32 to vector<1x64xf32>
    %885 = arith.select %881, %883, %884 : vector<1x64xi1>, vector<1x64xf32>
    %cst_177 = arith.constant dense<0xFF800000> : vector<1xf32>
    %886 = vector.multi_reduction <maximumf>, %885, %cst_177 [1] : vector<1x64xf32> to vector<1xf32>
    %887 = vector.shape_cast %886 : vector<1xf32> to vector<1x1xf32>
    %888 = vector.broadcast %877 : vector<1x1xf32> to vector<1x64xf32>
    %889 = arith.minimumf %888, %55 : vector<1x64xf32>
    %890 = vector.broadcast %875 : vector<1x1xf32> to vector<1x64xf32>
    %891 = arith.maximumf %890, %41 : vector<1x64xf32>
    %892 = arith.subf %889, %891 : vector<1x64xf32>
    %cst_178 = arith.constant 0.000000e+00 : f32
    %893 = vector.broadcast %cst_178 : f32 to vector<1x64xf32>
    %894 = arith.maximumf %892, %893 : vector<1x64xf32>
    %895 = vector.broadcast %878 : vector<1x1xf32> to vector<1x64xf32>
    %896 = arith.minimumf %895, %62 : vector<1x64xf32>
    %897 = vector.broadcast %876 : vector<1x1xf32> to vector<1x64xf32>
    %898 = arith.maximumf %897, %48 : vector<1x64xf32>
    %899 = arith.subf %896, %898 : vector<1x64xf32>
    %cst_179 = arith.constant 0.000000e+00 : f32
    %900 = vector.broadcast %cst_179 : f32 to vector<1x64xf32>
    %901 = arith.maximumf %899, %900 : vector<1x64xf32>
    %902 = arith.mulf %894, %901 : vector<1x64xf32>
    %903 = vector.broadcast %879 : vector<1x1xf32> to vector<1x64xf32>
    %904 = arith.addf %903, %65 : vector<1x64xf32>
    %905 = arith.subf %904, %902 : vector<1x64xf32>
    %cst_180 = arith.constant 9.99999993E-9 : f32
    %906 = vector.broadcast %cst_180 : f32 to vector<1x64xf32>
    %907 = arith.addf %905, %906 : vector<1x64xf32>
    %908 = tpu.reciprocal %907 {approx = true} : vector<1x64xf32> -> vector<1x64xf32>
    %909 = arith.mulf %902, %908 : vector<1x64xf32>
    %cst_181 = arith.constant 5.000000e-01 : f32
    %910 = vector.broadcast %cst_181 : f32 to vector<1x1xf32>
    %911 = arith.cmpf ogt, %887, %910 : vector<1x1xf32>
    %cst_182 = arith.constant 5.000000e-01 : f32
    %912 = vector.broadcast %cst_182 : f32 to vector<1x64xf32>
    %913 = arith.cmpf ogt, %909, %912 : vector<1x64xf32>
    %914 = vector.broadcast %911 : vector<1x1xi1> to vector<1x64xi1>
    %915 = arith.andi %914, %913 : vector<1x64xi1>
    %916 = vector.broadcast %c15_i32 : i32 to vector<1x64xi32>
    %917 = arith.cmpi sgt, %68, %916 : vector<1x64xi32>
    %918 = arith.andi %915, %917 : vector<1x64xi1>
    %919 = arith.extui %918 : vector<1x64xi1> to vector<1x64xi32>
    %920 = arith.sitofp %919 : vector<1x64xi32> to vector<1x64xf32>
    %921 = arith.maximumf %868, %920 : vector<1x64xf32>
    %c16_i32 = arith.constant 16 : i32
    %922 = vector.broadcast %c16_i32 : i32 to vector<5x64xi32>
    %923 = arith.cmpi eq, %70, %922 : vector<5x64xi32>
    %cst_183 = arith.constant 0.000000e+00 : f32
    %924 = vector.broadcast %cst_183 : f32 to vector<5x64xf32>
    %925 = arith.select %923, %69, %924 : vector<5x64xi1>, vector<5x64xf32>
    %cst_184 = arith.constant dense<0.000000e+00> : vector<5xf32>
    %926 = vector.multi_reduction <add>, %925, %cst_184 [1] : vector<5x64xf32> to vector<5xf32>
    %927 = vector.shape_cast %926 : vector<5xf32> to vector<5x1xf32>
    %928 = vector.extract_strided_slice %927 {offsets = [0, 0], sizes = [1, 1], strides = [1, 1]} : vector<5x1xf32> to vector<1x1xf32>
    %929 = vector.extract_strided_slice %927 {offsets = [1, 0], sizes = [1, 1], strides = [1, 1]} : vector<5x1xf32> to vector<1x1xf32>
    %930 = vector.extract_strided_slice %927 {offsets = [2, 0], sizes = [1, 1], strides = [1, 1]} : vector<5x1xf32> to vector<1x1xf32>
    %931 = vector.extract_strided_slice %927 {offsets = [3, 0], sizes = [1, 1], strides = [1, 1]} : vector<5x1xf32> to vector<1x1xf32>
    %932 = vector.extract_strided_slice %927 {offsets = [4, 0], sizes = [1, 1], strides = [1, 1]} : vector<5x1xf32> to vector<1x1xf32>
    %933 = vector.broadcast %c16_i32 : i32 to vector<1x64xi32>
    %934 = arith.cmpi eq, %68, %933 : vector<1x64xi32>
    %cst_185 = arith.constant 1.000000e+00 : f32
    %935 = vector.broadcast %cst_185 : f32 to vector<1x64xf32>
    %936 = arith.subf %935, %921 : vector<1x64xf32>
    %cst_186 = arith.constant 0.000000e+00 : f32
    %937 = vector.broadcast %cst_186 : f32 to vector<1x64xf32>
    %938 = arith.select %934, %936, %937 : vector<1x64xi1>, vector<1x64xf32>
    %cst_187 = arith.constant dense<0xFF800000> : vector<1xf32>
    %939 = vector.multi_reduction <maximumf>, %938, %cst_187 [1] : vector<1x64xf32> to vector<1xf32>
    %940 = vector.shape_cast %939 : vector<1xf32> to vector<1x1xf32>
    %941 = vector.broadcast %930 : vector<1x1xf32> to vector<1x64xf32>
    %942 = arith.minimumf %941, %55 : vector<1x64xf32>
    %943 = vector.broadcast %928 : vector<1x1xf32> to vector<1x64xf32>
    %944 = arith.maximumf %943, %41 : vector<1x64xf32>
    %945 = arith.subf %942, %944 : vector<1x64xf32>
    %cst_188 = arith.constant 0.000000e+00 : f32
    %946 = vector.broadcast %cst_188 : f32 to vector<1x64xf32>
    %947 = arith.maximumf %945, %946 : vector<1x64xf32>
    %948 = vector.broadcast %931 : vector<1x1xf32> to vector<1x64xf32>
    %949 = arith.minimumf %948, %62 : vector<1x64xf32>
    %950 = vector.broadcast %929 : vector<1x1xf32> to vector<1x64xf32>
    %951 = arith.maximumf %950, %48 : vector<1x64xf32>
    %952 = arith.subf %949, %951 : vector<1x64xf32>
    %cst_189 = arith.constant 0.000000e+00 : f32
    %953 = vector.broadcast %cst_189 : f32 to vector<1x64xf32>
    %954 = arith.maximumf %952, %953 : vector<1x64xf32>
    %955 = arith.mulf %947, %954 : vector<1x64xf32>
    %956 = vector.broadcast %932 : vector<1x1xf32> to vector<1x64xf32>
    %957 = arith.addf %956, %65 : vector<1x64xf32>
    %958 = arith.subf %957, %955 : vector<1x64xf32>
    %cst_190 = arith.constant 9.99999993E-9 : f32
    %959 = vector.broadcast %cst_190 : f32 to vector<1x64xf32>
    %960 = arith.addf %958, %959 : vector<1x64xf32>
    %961 = tpu.reciprocal %960 {approx = true} : vector<1x64xf32> -> vector<1x64xf32>
    %962 = arith.mulf %955, %961 : vector<1x64xf32>
    %cst_191 = arith.constant 5.000000e-01 : f32
    %963 = vector.broadcast %cst_191 : f32 to vector<1x1xf32>
    %964 = arith.cmpf ogt, %940, %963 : vector<1x1xf32>
    %cst_192 = arith.constant 5.000000e-01 : f32
    %965 = vector.broadcast %cst_192 : f32 to vector<1x64xf32>
    %966 = arith.cmpf ogt, %962, %965 : vector<1x64xf32>
    %967 = vector.broadcast %964 : vector<1x1xi1> to vector<1x64xi1>
    %968 = arith.andi %967, %966 : vector<1x64xi1>
    %969 = vector.broadcast %c16_i32 : i32 to vector<1x64xi32>
    %970 = arith.cmpi sgt, %68, %969 : vector<1x64xi32>
    %971 = arith.andi %968, %970 : vector<1x64xi1>
    %972 = arith.extui %971 : vector<1x64xi1> to vector<1x64xi32>
    %973 = arith.sitofp %972 : vector<1x64xi32> to vector<1x64xf32>
    %974 = arith.maximumf %921, %973 : vector<1x64xf32>
    %c17_i32 = arith.constant 17 : i32
    %975 = vector.broadcast %c17_i32 : i32 to vector<5x64xi32>
    %976 = arith.cmpi eq, %70, %975 : vector<5x64xi32>
    %cst_193 = arith.constant 0.000000e+00 : f32
    %977 = vector.broadcast %cst_193 : f32 to vector<5x64xf32>
    %978 = arith.select %976, %69, %977 : vector<5x64xi1>, vector<5x64xf32>
    %cst_194 = arith.constant dense<0.000000e+00> : vector<5xf32>
    %979 = vector.multi_reduction <add>, %978, %cst_194 [1] : vector<5x64xf32> to vector<5xf32>
    %980 = vector.shape_cast %979 : vector<5xf32> to vector<5x1xf32>
    %981 = vector.extract_strided_slice %980 {offsets = [0, 0], sizes = [1, 1], strides = [1, 1]} : vector<5x1xf32> to vector<1x1xf32>
    %982 = vector.extract_strided_slice %980 {offsets = [1, 0], sizes = [1, 1], strides = [1, 1]} : vector<5x1xf32> to vector<1x1xf32>
    %983 = vector.extract_strided_slice %980 {offsets = [2, 0], sizes = [1, 1], strides = [1, 1]} : vector<5x1xf32> to vector<1x1xf32>
    %984 = vector.extract_strided_slice %980 {offsets = [3, 0], sizes = [1, 1], strides = [1, 1]} : vector<5x1xf32> to vector<1x1xf32>
    %985 = vector.extract_strided_slice %980 {offsets = [4, 0], sizes = [1, 1], strides = [1, 1]} : vector<5x1xf32> to vector<1x1xf32>
    %986 = vector.broadcast %c17_i32 : i32 to vector<1x64xi32>
    %987 = arith.cmpi eq, %68, %986 : vector<1x64xi32>
    %cst_195 = arith.constant 1.000000e+00 : f32
    %988 = vector.broadcast %cst_195 : f32 to vector<1x64xf32>
    %989 = arith.subf %988, %974 : vector<1x64xf32>
    %cst_196 = arith.constant 0.000000e+00 : f32
    %990 = vector.broadcast %cst_196 : f32 to vector<1x64xf32>
    %991 = arith.select %987, %989, %990 : vector<1x64xi1>, vector<1x64xf32>
    %cst_197 = arith.constant dense<0xFF800000> : vector<1xf32>
    %992 = vector.multi_reduction <maximumf>, %991, %cst_197 [1] : vector<1x64xf32> to vector<1xf32>
    %993 = vector.shape_cast %992 : vector<1xf32> to vector<1x1xf32>
    %994 = vector.broadcast %983 : vector<1x1xf32> to vector<1x64xf32>
    %995 = arith.minimumf %994, %55 : vector<1x64xf32>
    %996 = vector.broadcast %981 : vector<1x1xf32> to vector<1x64xf32>
    %997 = arith.maximumf %996, %41 : vector<1x64xf32>
    %998 = arith.subf %995, %997 : vector<1x64xf32>
    %cst_198 = arith.constant 0.000000e+00 : f32
    %999 = vector.broadcast %cst_198 : f32 to vector<1x64xf32>
    %1000 = arith.maximumf %998, %999 : vector<1x64xf32>
    %1001 = vector.broadcast %984 : vector<1x1xf32> to vector<1x64xf32>
    %1002 = arith.minimumf %1001, %62 : vector<1x64xf32>
    %1003 = vector.broadcast %982 : vector<1x1xf32> to vector<1x64xf32>
    %1004 = arith.maximumf %1003, %48 : vector<1x64xf32>
    %1005 = arith.subf %1002, %1004 : vector<1x64xf32>
    %cst_199 = arith.constant 0.000000e+00 : f32
    %1006 = vector.broadcast %cst_199 : f32 to vector<1x64xf32>
    %1007 = arith.maximumf %1005, %1006 : vector<1x64xf32>
    %1008 = arith.mulf %1000, %1007 : vector<1x64xf32>
    %1009 = vector.broadcast %985 : vector<1x1xf32> to vector<1x64xf32>
    %1010 = arith.addf %1009, %65 : vector<1x64xf32>
    %1011 = arith.subf %1010, %1008 : vector<1x64xf32>
    %cst_200 = arith.constant 9.99999993E-9 : f32
    %1012 = vector.broadcast %cst_200 : f32 to vector<1x64xf32>
    %1013 = arith.addf %1011, %1012 : vector<1x64xf32>
    %1014 = tpu.reciprocal %1013 {approx = true} : vector<1x64xf32> -> vector<1x64xf32>
    %1015 = arith.mulf %1008, %1014 : vector<1x64xf32>
    %cst_201 = arith.constant 5.000000e-01 : f32
    %1016 = vector.broadcast %cst_201 : f32 to vector<1x1xf32>
    %1017 = arith.cmpf ogt, %993, %1016 : vector<1x1xf32>
    %cst_202 = arith.constant 5.000000e-01 : f32
    %1018 = vector.broadcast %cst_202 : f32 to vector<1x64xf32>
    %1019 = arith.cmpf ogt, %1015, %1018 : vector<1x64xf32>
    %1020 = vector.broadcast %1017 : vector<1x1xi1> to vector<1x64xi1>
    %1021 = arith.andi %1020, %1019 : vector<1x64xi1>
    %1022 = vector.broadcast %c17_i32 : i32 to vector<1x64xi32>
    %1023 = arith.cmpi sgt, %68, %1022 : vector<1x64xi32>
    %1024 = arith.andi %1021, %1023 : vector<1x64xi1>
    %1025 = arith.extui %1024 : vector<1x64xi1> to vector<1x64xi32>
    %1026 = arith.sitofp %1025 : vector<1x64xi32> to vector<1x64xf32>
    %1027 = arith.maximumf %974, %1026 : vector<1x64xf32>
    %c18_i32 = arith.constant 18 : i32
    %1028 = vector.broadcast %c18_i32 : i32 to vector<5x64xi32>
    %1029 = arith.cmpi eq, %70, %1028 : vector<5x64xi32>
    %cst_203 = arith.constant 0.000000e+00 : f32
    %1030 = vector.broadcast %cst_203 : f32 to vector<5x64xf32>
    %1031 = arith.select %1029, %69, %1030 : vector<5x64xi1>, vector<5x64xf32>
    %cst_204 = arith.constant dense<0.000000e+00> : vector<5xf32>
    %1032 = vector.multi_reduction <add>, %1031, %cst_204 [1] : vector<5x64xf32> to vector<5xf32>
    %1033 = vector.shape_cast %1032 : vector<5xf32> to vector<5x1xf32>
    %1034 = vector.extract_strided_slice %1033 {offsets = [0, 0], sizes = [1, 1], strides = [1, 1]} : vector<5x1xf32> to vector<1x1xf32>
    %1035 = vector.extract_strided_slice %1033 {offsets = [1, 0], sizes = [1, 1], strides = [1, 1]} : vector<5x1xf32> to vector<1x1xf32>
    %1036 = vector.extract_strided_slice %1033 {offsets = [2, 0], sizes = [1, 1], strides = [1, 1]} : vector<5x1xf32> to vector<1x1xf32>
    %1037 = vector.extract_strided_slice %1033 {offsets = [3, 0], sizes = [1, 1], strides = [1, 1]} : vector<5x1xf32> to vector<1x1xf32>
    %1038 = vector.extract_strided_slice %1033 {offsets = [4, 0], sizes = [1, 1], strides = [1, 1]} : vector<5x1xf32> to vector<1x1xf32>
    %1039 = vector.broadcast %c18_i32 : i32 to vector<1x64xi32>
    %1040 = arith.cmpi eq, %68, %1039 : vector<1x64xi32>
    %cst_205 = arith.constant 1.000000e+00 : f32
    %1041 = vector.broadcast %cst_205 : f32 to vector<1x64xf32>
    %1042 = arith.subf %1041, %1027 : vector<1x64xf32>
    %cst_206 = arith.constant 0.000000e+00 : f32
    %1043 = vector.broadcast %cst_206 : f32 to vector<1x64xf32>
    %1044 = arith.select %1040, %1042, %1043 : vector<1x64xi1>, vector<1x64xf32>
    %cst_207 = arith.constant dense<0xFF800000> : vector<1xf32>
    %1045 = vector.multi_reduction <maximumf>, %1044, %cst_207 [1] : vector<1x64xf32> to vector<1xf32>
    %1046 = vector.shape_cast %1045 : vector<1xf32> to vector<1x1xf32>
    %1047 = vector.broadcast %1036 : vector<1x1xf32> to vector<1x64xf32>
    %1048 = arith.minimumf %1047, %55 : vector<1x64xf32>
    %1049 = vector.broadcast %1034 : vector<1x1xf32> to vector<1x64xf32>
    %1050 = arith.maximumf %1049, %41 : vector<1x64xf32>
    %1051 = arith.subf %1048, %1050 : vector<1x64xf32>
    %cst_208 = arith.constant 0.000000e+00 : f32
    %1052 = vector.broadcast %cst_208 : f32 to vector<1x64xf32>
    %1053 = arith.maximumf %1051, %1052 : vector<1x64xf32>
    %1054 = vector.broadcast %1037 : vector<1x1xf32> to vector<1x64xf32>
    %1055 = arith.minimumf %1054, %62 : vector<1x64xf32>
    %1056 = vector.broadcast %1035 : vector<1x1xf32> to vector<1x64xf32>
    %1057 = arith.maximumf %1056, %48 : vector<1x64xf32>
    %1058 = arith.subf %1055, %1057 : vector<1x64xf32>
    %cst_209 = arith.constant 0.000000e+00 : f32
    %1059 = vector.broadcast %cst_209 : f32 to vector<1x64xf32>
    %1060 = arith.maximumf %1058, %1059 : vector<1x64xf32>
    %1061 = arith.mulf %1053, %1060 : vector<1x64xf32>
    %1062 = vector.broadcast %1038 : vector<1x1xf32> to vector<1x64xf32>
    %1063 = arith.addf %1062, %65 : vector<1x64xf32>
    %1064 = arith.subf %1063, %1061 : vector<1x64xf32>
    %cst_210 = arith.constant 9.99999993E-9 : f32
    %1065 = vector.broadcast %cst_210 : f32 to vector<1x64xf32>
    %1066 = arith.addf %1064, %1065 : vector<1x64xf32>
    %1067 = tpu.reciprocal %1066 {approx = true} : vector<1x64xf32> -> vector<1x64xf32>
    %1068 = arith.mulf %1061, %1067 : vector<1x64xf32>
    %cst_211 = arith.constant 5.000000e-01 : f32
    %1069 = vector.broadcast %cst_211 : f32 to vector<1x1xf32>
    %1070 = arith.cmpf ogt, %1046, %1069 : vector<1x1xf32>
    %cst_212 = arith.constant 5.000000e-01 : f32
    %1071 = vector.broadcast %cst_212 : f32 to vector<1x64xf32>
    %1072 = arith.cmpf ogt, %1068, %1071 : vector<1x64xf32>
    %1073 = vector.broadcast %1070 : vector<1x1xi1> to vector<1x64xi1>
    %1074 = arith.andi %1073, %1072 : vector<1x64xi1>
    %1075 = vector.broadcast %c18_i32 : i32 to vector<1x64xi32>
    %1076 = arith.cmpi sgt, %68, %1075 : vector<1x64xi32>
    %1077 = arith.andi %1074, %1076 : vector<1x64xi1>
    %1078 = arith.extui %1077 : vector<1x64xi1> to vector<1x64xi32>
    %1079 = arith.sitofp %1078 : vector<1x64xi32> to vector<1x64xf32>
    %1080 = arith.maximumf %1027, %1079 : vector<1x64xf32>
    %c19_i32 = arith.constant 19 : i32
    %1081 = vector.broadcast %c19_i32 : i32 to vector<5x64xi32>
    %1082 = arith.cmpi eq, %70, %1081 : vector<5x64xi32>
    %cst_213 = arith.constant 0.000000e+00 : f32
    %1083 = vector.broadcast %cst_213 : f32 to vector<5x64xf32>
    %1084 = arith.select %1082, %69, %1083 : vector<5x64xi1>, vector<5x64xf32>
    %cst_214 = arith.constant dense<0.000000e+00> : vector<5xf32>
    %1085 = vector.multi_reduction <add>, %1084, %cst_214 [1] : vector<5x64xf32> to vector<5xf32>
    %1086 = vector.shape_cast %1085 : vector<5xf32> to vector<5x1xf32>
    %1087 = vector.extract_strided_slice %1086 {offsets = [0, 0], sizes = [1, 1], strides = [1, 1]} : vector<5x1xf32> to vector<1x1xf32>
    %1088 = vector.extract_strided_slice %1086 {offsets = [1, 0], sizes = [1, 1], strides = [1, 1]} : vector<5x1xf32> to vector<1x1xf32>
    %1089 = vector.extract_strided_slice %1086 {offsets = [2, 0], sizes = [1, 1], strides = [1, 1]} : vector<5x1xf32> to vector<1x1xf32>
    %1090 = vector.extract_strided_slice %1086 {offsets = [3, 0], sizes = [1, 1], strides = [1, 1]} : vector<5x1xf32> to vector<1x1xf32>
    %1091 = vector.extract_strided_slice %1086 {offsets = [4, 0], sizes = [1, 1], strides = [1, 1]} : vector<5x1xf32> to vector<1x1xf32>
    %1092 = vector.broadcast %c19_i32 : i32 to vector<1x64xi32>
    %1093 = arith.cmpi eq, %68, %1092 : vector<1x64xi32>
    %cst_215 = arith.constant 1.000000e+00 : f32
    %1094 = vector.broadcast %cst_215 : f32 to vector<1x64xf32>
    %1095 = arith.subf %1094, %1080 : vector<1x64xf32>
    %cst_216 = arith.constant 0.000000e+00 : f32
    %1096 = vector.broadcast %cst_216 : f32 to vector<1x64xf32>
    %1097 = arith.select %1093, %1095, %1096 : vector<1x64xi1>, vector<1x64xf32>
    %cst_217 = arith.constant dense<0xFF800000> : vector<1xf32>
    %1098 = vector.multi_reduction <maximumf>, %1097, %cst_217 [1] : vector<1x64xf32> to vector<1xf32>
    %1099 = vector.shape_cast %1098 : vector<1xf32> to vector<1x1xf32>
    %1100 = vector.broadcast %1089 : vector<1x1xf32> to vector<1x64xf32>
    %1101 = arith.minimumf %1100, %55 : vector<1x64xf32>
    %1102 = vector.broadcast %1087 : vector<1x1xf32> to vector<1x64xf32>
    %1103 = arith.maximumf %1102, %41 : vector<1x64xf32>
    %1104 = arith.subf %1101, %1103 : vector<1x64xf32>
    %cst_218 = arith.constant 0.000000e+00 : f32
    %1105 = vector.broadcast %cst_218 : f32 to vector<1x64xf32>
    %1106 = arith.maximumf %1104, %1105 : vector<1x64xf32>
    %1107 = vector.broadcast %1090 : vector<1x1xf32> to vector<1x64xf32>
    %1108 = arith.minimumf %1107, %62 : vector<1x64xf32>
    %1109 = vector.broadcast %1088 : vector<1x1xf32> to vector<1x64xf32>
    %1110 = arith.maximumf %1109, %48 : vector<1x64xf32>
    %1111 = arith.subf %1108, %1110 : vector<1x64xf32>
    %cst_219 = arith.constant 0.000000e+00 : f32
    %1112 = vector.broadcast %cst_219 : f32 to vector<1x64xf32>
    %1113 = arith.maximumf %1111, %1112 : vector<1x64xf32>
    %1114 = arith.mulf %1106, %1113 : vector<1x64xf32>
    %1115 = vector.broadcast %1091 : vector<1x1xf32> to vector<1x64xf32>
    %1116 = arith.addf %1115, %65 : vector<1x64xf32>
    %1117 = arith.subf %1116, %1114 : vector<1x64xf32>
    %cst_220 = arith.constant 9.99999993E-9 : f32
    %1118 = vector.broadcast %cst_220 : f32 to vector<1x64xf32>
    %1119 = arith.addf %1117, %1118 : vector<1x64xf32>
    %1120 = tpu.reciprocal %1119 {approx = true} : vector<1x64xf32> -> vector<1x64xf32>
    %1121 = arith.mulf %1114, %1120 : vector<1x64xf32>
    %cst_221 = arith.constant 5.000000e-01 : f32
    %1122 = vector.broadcast %cst_221 : f32 to vector<1x1xf32>
    %1123 = arith.cmpf ogt, %1099, %1122 : vector<1x1xf32>
    %cst_222 = arith.constant 5.000000e-01 : f32
    %1124 = vector.broadcast %cst_222 : f32 to vector<1x64xf32>
    %1125 = arith.cmpf ogt, %1121, %1124 : vector<1x64xf32>
    %1126 = vector.broadcast %1123 : vector<1x1xi1> to vector<1x64xi1>
    %1127 = arith.andi %1126, %1125 : vector<1x64xi1>
    %1128 = vector.broadcast %c19_i32 : i32 to vector<1x64xi32>
    %1129 = arith.cmpi sgt, %68, %1128 : vector<1x64xi32>
    %1130 = arith.andi %1127, %1129 : vector<1x64xi1>
    %1131 = arith.extui %1130 : vector<1x64xi1> to vector<1x64xi32>
    %1132 = arith.sitofp %1131 : vector<1x64xi32> to vector<1x64xf32>
    %1133 = arith.maximumf %1080, %1132 : vector<1x64xf32>
    %c20_i32 = arith.constant 20 : i32
    %1134 = vector.broadcast %c20_i32 : i32 to vector<5x64xi32>
    %1135 = arith.cmpi eq, %70, %1134 : vector<5x64xi32>
    %cst_223 = arith.constant 0.000000e+00 : f32
    %1136 = vector.broadcast %cst_223 : f32 to vector<5x64xf32>
    %1137 = arith.select %1135, %69, %1136 : vector<5x64xi1>, vector<5x64xf32>
    %cst_224 = arith.constant dense<0.000000e+00> : vector<5xf32>
    %1138 = vector.multi_reduction <add>, %1137, %cst_224 [1] : vector<5x64xf32> to vector<5xf32>
    %1139 = vector.shape_cast %1138 : vector<5xf32> to vector<5x1xf32>
    %1140 = vector.extract_strided_slice %1139 {offsets = [0, 0], sizes = [1, 1], strides = [1, 1]} : vector<5x1xf32> to vector<1x1xf32>
    %1141 = vector.extract_strided_slice %1139 {offsets = [1, 0], sizes = [1, 1], strides = [1, 1]} : vector<5x1xf32> to vector<1x1xf32>
    %1142 = vector.extract_strided_slice %1139 {offsets = [2, 0], sizes = [1, 1], strides = [1, 1]} : vector<5x1xf32> to vector<1x1xf32>
    %1143 = vector.extract_strided_slice %1139 {offsets = [3, 0], sizes = [1, 1], strides = [1, 1]} : vector<5x1xf32> to vector<1x1xf32>
    %1144 = vector.extract_strided_slice %1139 {offsets = [4, 0], sizes = [1, 1], strides = [1, 1]} : vector<5x1xf32> to vector<1x1xf32>
    %1145 = vector.broadcast %c20_i32 : i32 to vector<1x64xi32>
    %1146 = arith.cmpi eq, %68, %1145 : vector<1x64xi32>
    %cst_225 = arith.constant 1.000000e+00 : f32
    %1147 = vector.broadcast %cst_225 : f32 to vector<1x64xf32>
    %1148 = arith.subf %1147, %1133 : vector<1x64xf32>
    %cst_226 = arith.constant 0.000000e+00 : f32
    %1149 = vector.broadcast %cst_226 : f32 to vector<1x64xf32>
    %1150 = arith.select %1146, %1148, %1149 : vector<1x64xi1>, vector<1x64xf32>
    %cst_227 = arith.constant dense<0xFF800000> : vector<1xf32>
    %1151 = vector.multi_reduction <maximumf>, %1150, %cst_227 [1] : vector<1x64xf32> to vector<1xf32>
    %1152 = vector.shape_cast %1151 : vector<1xf32> to vector<1x1xf32>
    %1153 = vector.broadcast %1142 : vector<1x1xf32> to vector<1x64xf32>
    %1154 = arith.minimumf %1153, %55 : vector<1x64xf32>
    %1155 = vector.broadcast %1140 : vector<1x1xf32> to vector<1x64xf32>
    %1156 = arith.maximumf %1155, %41 : vector<1x64xf32>
    %1157 = arith.subf %1154, %1156 : vector<1x64xf32>
    %cst_228 = arith.constant 0.000000e+00 : f32
    %1158 = vector.broadcast %cst_228 : f32 to vector<1x64xf32>
    %1159 = arith.maximumf %1157, %1158 : vector<1x64xf32>
    %1160 = vector.broadcast %1143 : vector<1x1xf32> to vector<1x64xf32>
    %1161 = arith.minimumf %1160, %62 : vector<1x64xf32>
    %1162 = vector.broadcast %1141 : vector<1x1xf32> to vector<1x64xf32>
    %1163 = arith.maximumf %1162, %48 : vector<1x64xf32>
    %1164 = arith.subf %1161, %1163 : vector<1x64xf32>
    %cst_229 = arith.constant 0.000000e+00 : f32
    %1165 = vector.broadcast %cst_229 : f32 to vector<1x64xf32>
    %1166 = arith.maximumf %1164, %1165 : vector<1x64xf32>
    %1167 = arith.mulf %1159, %1166 : vector<1x64xf32>
    %1168 = vector.broadcast %1144 : vector<1x1xf32> to vector<1x64xf32>
    %1169 = arith.addf %1168, %65 : vector<1x64xf32>
    %1170 = arith.subf %1169, %1167 : vector<1x64xf32>
    %cst_230 = arith.constant 9.99999993E-9 : f32
    %1171 = vector.broadcast %cst_230 : f32 to vector<1x64xf32>
    %1172 = arith.addf %1170, %1171 : vector<1x64xf32>
    %1173 = tpu.reciprocal %1172 {approx = true} : vector<1x64xf32> -> vector<1x64xf32>
    %1174 = arith.mulf %1167, %1173 : vector<1x64xf32>
    %cst_231 = arith.constant 5.000000e-01 : f32
    %1175 = vector.broadcast %cst_231 : f32 to vector<1x1xf32>
    %1176 = arith.cmpf ogt, %1152, %1175 : vector<1x1xf32>
    %cst_232 = arith.constant 5.000000e-01 : f32
    %1177 = vector.broadcast %cst_232 : f32 to vector<1x64xf32>
    %1178 = arith.cmpf ogt, %1174, %1177 : vector<1x64xf32>
    %1179 = vector.broadcast %1176 : vector<1x1xi1> to vector<1x64xi1>
    %1180 = arith.andi %1179, %1178 : vector<1x64xi1>
    %1181 = vector.broadcast %c20_i32 : i32 to vector<1x64xi32>
    %1182 = arith.cmpi sgt, %68, %1181 : vector<1x64xi32>
    %1183 = arith.andi %1180, %1182 : vector<1x64xi1>
    %1184 = arith.extui %1183 : vector<1x64xi1> to vector<1x64xi32>
    %1185 = arith.sitofp %1184 : vector<1x64xi32> to vector<1x64xf32>
    %1186 = arith.maximumf %1133, %1185 : vector<1x64xf32>
    %c21_i32 = arith.constant 21 : i32
    %1187 = vector.broadcast %c21_i32 : i32 to vector<5x64xi32>
    %1188 = arith.cmpi eq, %70, %1187 : vector<5x64xi32>
    %cst_233 = arith.constant 0.000000e+00 : f32
    %1189 = vector.broadcast %cst_233 : f32 to vector<5x64xf32>
    %1190 = arith.select %1188, %69, %1189 : vector<5x64xi1>, vector<5x64xf32>
    %cst_234 = arith.constant dense<0.000000e+00> : vector<5xf32>
    %1191 = vector.multi_reduction <add>, %1190, %cst_234 [1] : vector<5x64xf32> to vector<5xf32>
    %1192 = vector.shape_cast %1191 : vector<5xf32> to vector<5x1xf32>
    %1193 = vector.extract_strided_slice %1192 {offsets = [0, 0], sizes = [1, 1], strides = [1, 1]} : vector<5x1xf32> to vector<1x1xf32>
    %1194 = vector.extract_strided_slice %1192 {offsets = [1, 0], sizes = [1, 1], strides = [1, 1]} : vector<5x1xf32> to vector<1x1xf32>
    %1195 = vector.extract_strided_slice %1192 {offsets = [2, 0], sizes = [1, 1], strides = [1, 1]} : vector<5x1xf32> to vector<1x1xf32>
    %1196 = vector.extract_strided_slice %1192 {offsets = [3, 0], sizes = [1, 1], strides = [1, 1]} : vector<5x1xf32> to vector<1x1xf32>
    %1197 = vector.extract_strided_slice %1192 {offsets = [4, 0], sizes = [1, 1], strides = [1, 1]} : vector<5x1xf32> to vector<1x1xf32>
    %1198 = vector.broadcast %c21_i32 : i32 to vector<1x64xi32>
    %1199 = arith.cmpi eq, %68, %1198 : vector<1x64xi32>
    %cst_235 = arith.constant 1.000000e+00 : f32
    %1200 = vector.broadcast %cst_235 : f32 to vector<1x64xf32>
    %1201 = arith.subf %1200, %1186 : vector<1x64xf32>
    %cst_236 = arith.constant 0.000000e+00 : f32
    %1202 = vector.broadcast %cst_236 : f32 to vector<1x64xf32>
    %1203 = arith.select %1199, %1201, %1202 : vector<1x64xi1>, vector<1x64xf32>
    %cst_237 = arith.constant dense<0xFF800000> : vector<1xf32>
    %1204 = vector.multi_reduction <maximumf>, %1203, %cst_237 [1] : vector<1x64xf32> to vector<1xf32>
    %1205 = vector.shape_cast %1204 : vector<1xf32> to vector<1x1xf32>
    %1206 = vector.broadcast %1195 : vector<1x1xf32> to vector<1x64xf32>
    %1207 = arith.minimumf %1206, %55 : vector<1x64xf32>
    %1208 = vector.broadcast %1193 : vector<1x1xf32> to vector<1x64xf32>
    %1209 = arith.maximumf %1208, %41 : vector<1x64xf32>
    %1210 = arith.subf %1207, %1209 : vector<1x64xf32>
    %cst_238 = arith.constant 0.000000e+00 : f32
    %1211 = vector.broadcast %cst_238 : f32 to vector<1x64xf32>
    %1212 = arith.maximumf %1210, %1211 : vector<1x64xf32>
    %1213 = vector.broadcast %1196 : vector<1x1xf32> to vector<1x64xf32>
    %1214 = arith.minimumf %1213, %62 : vector<1x64xf32>
    %1215 = vector.broadcast %1194 : vector<1x1xf32> to vector<1x64xf32>
    %1216 = arith.maximumf %1215, %48 : vector<1x64xf32>
    %1217 = arith.subf %1214, %1216 : vector<1x64xf32>
    %cst_239 = arith.constant 0.000000e+00 : f32
    %1218 = vector.broadcast %cst_239 : f32 to vector<1x64xf32>
    %1219 = arith.maximumf %1217, %1218 : vector<1x64xf32>
    %1220 = arith.mulf %1212, %1219 : vector<1x64xf32>
    %1221 = vector.broadcast %1197 : vector<1x1xf32> to vector<1x64xf32>
    %1222 = arith.addf %1221, %65 : vector<1x64xf32>
    %1223 = arith.subf %1222, %1220 : vector<1x64xf32>
    %cst_240 = arith.constant 9.99999993E-9 : f32
    %1224 = vector.broadcast %cst_240 : f32 to vector<1x64xf32>
    %1225 = arith.addf %1223, %1224 : vector<1x64xf32>
    %1226 = tpu.reciprocal %1225 {approx = true} : vector<1x64xf32> -> vector<1x64xf32>
    %1227 = arith.mulf %1220, %1226 : vector<1x64xf32>
    %cst_241 = arith.constant 5.000000e-01 : f32
    %1228 = vector.broadcast %cst_241 : f32 to vector<1x1xf32>
    %1229 = arith.cmpf ogt, %1205, %1228 : vector<1x1xf32>
    %cst_242 = arith.constant 5.000000e-01 : f32
    %1230 = vector.broadcast %cst_242 : f32 to vector<1x64xf32>
    %1231 = arith.cmpf ogt, %1227, %1230 : vector<1x64xf32>
    %1232 = vector.broadcast %1229 : vector<1x1xi1> to vector<1x64xi1>
    %1233 = arith.andi %1232, %1231 : vector<1x64xi1>
    %1234 = vector.broadcast %c21_i32 : i32 to vector<1x64xi32>
    %1235 = arith.cmpi sgt, %68, %1234 : vector<1x64xi32>
    %1236 = arith.andi %1233, %1235 : vector<1x64xi1>
    %1237 = arith.extui %1236 : vector<1x64xi1> to vector<1x64xi32>
    %1238 = arith.sitofp %1237 : vector<1x64xi32> to vector<1x64xf32>
    %1239 = arith.maximumf %1186, %1238 : vector<1x64xf32>
    %c22_i32 = arith.constant 22 : i32
    %1240 = vector.broadcast %c22_i32 : i32 to vector<5x64xi32>
    %1241 = arith.cmpi eq, %70, %1240 : vector<5x64xi32>
    %cst_243 = arith.constant 0.000000e+00 : f32
    %1242 = vector.broadcast %cst_243 : f32 to vector<5x64xf32>
    %1243 = arith.select %1241, %69, %1242 : vector<5x64xi1>, vector<5x64xf32>
    %cst_244 = arith.constant dense<0.000000e+00> : vector<5xf32>
    %1244 = vector.multi_reduction <add>, %1243, %cst_244 [1] : vector<5x64xf32> to vector<5xf32>
    %1245 = vector.shape_cast %1244 : vector<5xf32> to vector<5x1xf32>
    %1246 = vector.extract_strided_slice %1245 {offsets = [0, 0], sizes = [1, 1], strides = [1, 1]} : vector<5x1xf32> to vector<1x1xf32>
    %1247 = vector.extract_strided_slice %1245 {offsets = [1, 0], sizes = [1, 1], strides = [1, 1]} : vector<5x1xf32> to vector<1x1xf32>
    %1248 = vector.extract_strided_slice %1245 {offsets = [2, 0], sizes = [1, 1], strides = [1, 1]} : vector<5x1xf32> to vector<1x1xf32>
    %1249 = vector.extract_strided_slice %1245 {offsets = [3, 0], sizes = [1, 1], strides = [1, 1]} : vector<5x1xf32> to vector<1x1xf32>
    %1250 = vector.extract_strided_slice %1245 {offsets = [4, 0], sizes = [1, 1], strides = [1, 1]} : vector<5x1xf32> to vector<1x1xf32>
    %1251 = vector.broadcast %c22_i32 : i32 to vector<1x64xi32>
    %1252 = arith.cmpi eq, %68, %1251 : vector<1x64xi32>
    %cst_245 = arith.constant 1.000000e+00 : f32
    %1253 = vector.broadcast %cst_245 : f32 to vector<1x64xf32>
    %1254 = arith.subf %1253, %1239 : vector<1x64xf32>
    %cst_246 = arith.constant 0.000000e+00 : f32
    %1255 = vector.broadcast %cst_246 : f32 to vector<1x64xf32>
    %1256 = arith.select %1252, %1254, %1255 : vector<1x64xi1>, vector<1x64xf32>
    %cst_247 = arith.constant dense<0xFF800000> : vector<1xf32>
    %1257 = vector.multi_reduction <maximumf>, %1256, %cst_247 [1] : vector<1x64xf32> to vector<1xf32>
    %1258 = vector.shape_cast %1257 : vector<1xf32> to vector<1x1xf32>
    %1259 = vector.broadcast %1248 : vector<1x1xf32> to vector<1x64xf32>
    %1260 = arith.minimumf %1259, %55 : vector<1x64xf32>
    %1261 = vector.broadcast %1246 : vector<1x1xf32> to vector<1x64xf32>
    %1262 = arith.maximumf %1261, %41 : vector<1x64xf32>
    %1263 = arith.subf %1260, %1262 : vector<1x64xf32>
    %cst_248 = arith.constant 0.000000e+00 : f32
    %1264 = vector.broadcast %cst_248 : f32 to vector<1x64xf32>
    %1265 = arith.maximumf %1263, %1264 : vector<1x64xf32>
    %1266 = vector.broadcast %1249 : vector<1x1xf32> to vector<1x64xf32>
    %1267 = arith.minimumf %1266, %62 : vector<1x64xf32>
    %1268 = vector.broadcast %1247 : vector<1x1xf32> to vector<1x64xf32>
    %1269 = arith.maximumf %1268, %48 : vector<1x64xf32>
    %1270 = arith.subf %1267, %1269 : vector<1x64xf32>
    %cst_249 = arith.constant 0.000000e+00 : f32
    %1271 = vector.broadcast %cst_249 : f32 to vector<1x64xf32>
    %1272 = arith.maximumf %1270, %1271 : vector<1x64xf32>
    %1273 = arith.mulf %1265, %1272 : vector<1x64xf32>
    %1274 = vector.broadcast %1250 : vector<1x1xf32> to vector<1x64xf32>
    %1275 = arith.addf %1274, %65 : vector<1x64xf32>
    %1276 = arith.subf %1275, %1273 : vector<1x64xf32>
    %cst_250 = arith.constant 9.99999993E-9 : f32
    %1277 = vector.broadcast %cst_250 : f32 to vector<1x64xf32>
    %1278 = arith.addf %1276, %1277 : vector<1x64xf32>
    %1279 = tpu.reciprocal %1278 {approx = true} : vector<1x64xf32> -> vector<1x64xf32>
    %1280 = arith.mulf %1273, %1279 : vector<1x64xf32>
    %cst_251 = arith.constant 5.000000e-01 : f32
    %1281 = vector.broadcast %cst_251 : f32 to vector<1x1xf32>
    %1282 = arith.cmpf ogt, %1258, %1281 : vector<1x1xf32>
    %cst_252 = arith.constant 5.000000e-01 : f32
    %1283 = vector.broadcast %cst_252 : f32 to vector<1x64xf32>
    %1284 = arith.cmpf ogt, %1280, %1283 : vector<1x64xf32>
    %1285 = vector.broadcast %1282 : vector<1x1xi1> to vector<1x64xi1>
    %1286 = arith.andi %1285, %1284 : vector<1x64xi1>
    %1287 = vector.broadcast %c22_i32 : i32 to vector<1x64xi32>
    %1288 = arith.cmpi sgt, %68, %1287 : vector<1x64xi32>
    %1289 = arith.andi %1286, %1288 : vector<1x64xi1>
    %1290 = arith.extui %1289 : vector<1x64xi1> to vector<1x64xi32>
    %1291 = arith.sitofp %1290 : vector<1x64xi32> to vector<1x64xf32>
    %1292 = arith.maximumf %1239, %1291 : vector<1x64xf32>
    %c23_i32 = arith.constant 23 : i32
    %1293 = vector.broadcast %c23_i32 : i32 to vector<5x64xi32>
    %1294 = arith.cmpi eq, %70, %1293 : vector<5x64xi32>
    %cst_253 = arith.constant 0.000000e+00 : f32
    %1295 = vector.broadcast %cst_253 : f32 to vector<5x64xf32>
    %1296 = arith.select %1294, %69, %1295 : vector<5x64xi1>, vector<5x64xf32>
    %cst_254 = arith.constant dense<0.000000e+00> : vector<5xf32>
    %1297 = vector.multi_reduction <add>, %1296, %cst_254 [1] : vector<5x64xf32> to vector<5xf32>
    %1298 = vector.shape_cast %1297 : vector<5xf32> to vector<5x1xf32>
    %1299 = vector.extract_strided_slice %1298 {offsets = [0, 0], sizes = [1, 1], strides = [1, 1]} : vector<5x1xf32> to vector<1x1xf32>
    %1300 = vector.extract_strided_slice %1298 {offsets = [1, 0], sizes = [1, 1], strides = [1, 1]} : vector<5x1xf32> to vector<1x1xf32>
    %1301 = vector.extract_strided_slice %1298 {offsets = [2, 0], sizes = [1, 1], strides = [1, 1]} : vector<5x1xf32> to vector<1x1xf32>
    %1302 = vector.extract_strided_slice %1298 {offsets = [3, 0], sizes = [1, 1], strides = [1, 1]} : vector<5x1xf32> to vector<1x1xf32>
    %1303 = vector.extract_strided_slice %1298 {offsets = [4, 0], sizes = [1, 1], strides = [1, 1]} : vector<5x1xf32> to vector<1x1xf32>
    %1304 = vector.broadcast %c23_i32 : i32 to vector<1x64xi32>
    %1305 = arith.cmpi eq, %68, %1304 : vector<1x64xi32>
    %cst_255 = arith.constant 1.000000e+00 : f32
    %1306 = vector.broadcast %cst_255 : f32 to vector<1x64xf32>
    %1307 = arith.subf %1306, %1292 : vector<1x64xf32>
    %cst_256 = arith.constant 0.000000e+00 : f32
    %1308 = vector.broadcast %cst_256 : f32 to vector<1x64xf32>
    %1309 = arith.select %1305, %1307, %1308 : vector<1x64xi1>, vector<1x64xf32>
    %cst_257 = arith.constant dense<0xFF800000> : vector<1xf32>
    %1310 = vector.multi_reduction <maximumf>, %1309, %cst_257 [1] : vector<1x64xf32> to vector<1xf32>
    %1311 = vector.shape_cast %1310 : vector<1xf32> to vector<1x1xf32>
    %1312 = vector.broadcast %1301 : vector<1x1xf32> to vector<1x64xf32>
    %1313 = arith.minimumf %1312, %55 : vector<1x64xf32>
    %1314 = vector.broadcast %1299 : vector<1x1xf32> to vector<1x64xf32>
    %1315 = arith.maximumf %1314, %41 : vector<1x64xf32>
    %1316 = arith.subf %1313, %1315 : vector<1x64xf32>
    %cst_258 = arith.constant 0.000000e+00 : f32
    %1317 = vector.broadcast %cst_258 : f32 to vector<1x64xf32>
    %1318 = arith.maximumf %1316, %1317 : vector<1x64xf32>
    %1319 = vector.broadcast %1302 : vector<1x1xf32> to vector<1x64xf32>
    %1320 = arith.minimumf %1319, %62 : vector<1x64xf32>
    %1321 = vector.broadcast %1300 : vector<1x1xf32> to vector<1x64xf32>
    %1322 = arith.maximumf %1321, %48 : vector<1x64xf32>
    %1323 = arith.subf %1320, %1322 : vector<1x64xf32>
    %cst_259 = arith.constant 0.000000e+00 : f32
    %1324 = vector.broadcast %cst_259 : f32 to vector<1x64xf32>
    %1325 = arith.maximumf %1323, %1324 : vector<1x64xf32>
    %1326 = arith.mulf %1318, %1325 : vector<1x64xf32>
    %1327 = vector.broadcast %1303 : vector<1x1xf32> to vector<1x64xf32>
    %1328 = arith.addf %1327, %65 : vector<1x64xf32>
    %1329 = arith.subf %1328, %1326 : vector<1x64xf32>
    %cst_260 = arith.constant 9.99999993E-9 : f32
    %1330 = vector.broadcast %cst_260 : f32 to vector<1x64xf32>
    %1331 = arith.addf %1329, %1330 : vector<1x64xf32>
    %1332 = tpu.reciprocal %1331 {approx = true} : vector<1x64xf32> -> vector<1x64xf32>
    %1333 = arith.mulf %1326, %1332 : vector<1x64xf32>
    %cst_261 = arith.constant 5.000000e-01 : f32
    %1334 = vector.broadcast %cst_261 : f32 to vector<1x1xf32>
    %1335 = arith.cmpf ogt, %1311, %1334 : vector<1x1xf32>
    %cst_262 = arith.constant 5.000000e-01 : f32
    %1336 = vector.broadcast %cst_262 : f32 to vector<1x64xf32>
    %1337 = arith.cmpf ogt, %1333, %1336 : vector<1x64xf32>
    %1338 = vector.broadcast %1335 : vector<1x1xi1> to vector<1x64xi1>
    %1339 = arith.andi %1338, %1337 : vector<1x64xi1>
    %1340 = vector.broadcast %c23_i32 : i32 to vector<1x64xi32>
    %1341 = arith.cmpi sgt, %68, %1340 : vector<1x64xi32>
    %1342 = arith.andi %1339, %1341 : vector<1x64xi1>
    %1343 = arith.extui %1342 : vector<1x64xi1> to vector<1x64xi32>
    %1344 = arith.sitofp %1343 : vector<1x64xi32> to vector<1x64xf32>
    %1345 = arith.maximumf %1292, %1344 : vector<1x64xf32>
    %c24_i32 = arith.constant 24 : i32
    %1346 = vector.broadcast %c24_i32 : i32 to vector<5x64xi32>
    %1347 = arith.cmpi eq, %70, %1346 : vector<5x64xi32>
    %cst_263 = arith.constant 0.000000e+00 : f32
    %1348 = vector.broadcast %cst_263 : f32 to vector<5x64xf32>
    %1349 = arith.select %1347, %69, %1348 : vector<5x64xi1>, vector<5x64xf32>
    %cst_264 = arith.constant dense<0.000000e+00> : vector<5xf32>
    %1350 = vector.multi_reduction <add>, %1349, %cst_264 [1] : vector<5x64xf32> to vector<5xf32>
    %1351 = vector.shape_cast %1350 : vector<5xf32> to vector<5x1xf32>
    %1352 = vector.extract_strided_slice %1351 {offsets = [0, 0], sizes = [1, 1], strides = [1, 1]} : vector<5x1xf32> to vector<1x1xf32>
    %1353 = vector.extract_strided_slice %1351 {offsets = [1, 0], sizes = [1, 1], strides = [1, 1]} : vector<5x1xf32> to vector<1x1xf32>
    %1354 = vector.extract_strided_slice %1351 {offsets = [2, 0], sizes = [1, 1], strides = [1, 1]} : vector<5x1xf32> to vector<1x1xf32>
    %1355 = vector.extract_strided_slice %1351 {offsets = [3, 0], sizes = [1, 1], strides = [1, 1]} : vector<5x1xf32> to vector<1x1xf32>
    %1356 = vector.extract_strided_slice %1351 {offsets = [4, 0], sizes = [1, 1], strides = [1, 1]} : vector<5x1xf32> to vector<1x1xf32>
    %1357 = vector.broadcast %c24_i32 : i32 to vector<1x64xi32>
    %1358 = arith.cmpi eq, %68, %1357 : vector<1x64xi32>
    %cst_265 = arith.constant 1.000000e+00 : f32
    %1359 = vector.broadcast %cst_265 : f32 to vector<1x64xf32>
    %1360 = arith.subf %1359, %1345 : vector<1x64xf32>
    %cst_266 = arith.constant 0.000000e+00 : f32
    %1361 = vector.broadcast %cst_266 : f32 to vector<1x64xf32>
    %1362 = arith.select %1358, %1360, %1361 : vector<1x64xi1>, vector<1x64xf32>
    %cst_267 = arith.constant dense<0xFF800000> : vector<1xf32>
    %1363 = vector.multi_reduction <maximumf>, %1362, %cst_267 [1] : vector<1x64xf32> to vector<1xf32>
    %1364 = vector.shape_cast %1363 : vector<1xf32> to vector<1x1xf32>
    %1365 = vector.broadcast %1354 : vector<1x1xf32> to vector<1x64xf32>
    %1366 = arith.minimumf %1365, %55 : vector<1x64xf32>
    %1367 = vector.broadcast %1352 : vector<1x1xf32> to vector<1x64xf32>
    %1368 = arith.maximumf %1367, %41 : vector<1x64xf32>
    %1369 = arith.subf %1366, %1368 : vector<1x64xf32>
    %cst_268 = arith.constant 0.000000e+00 : f32
    %1370 = vector.broadcast %cst_268 : f32 to vector<1x64xf32>
    %1371 = arith.maximumf %1369, %1370 : vector<1x64xf32>
    %1372 = vector.broadcast %1355 : vector<1x1xf32> to vector<1x64xf32>
    %1373 = arith.minimumf %1372, %62 : vector<1x64xf32>
    %1374 = vector.broadcast %1353 : vector<1x1xf32> to vector<1x64xf32>
    %1375 = arith.maximumf %1374, %48 : vector<1x64xf32>
    %1376 = arith.subf %1373, %1375 : vector<1x64xf32>
    %cst_269 = arith.constant 0.000000e+00 : f32
    %1377 = vector.broadcast %cst_269 : f32 to vector<1x64xf32>
    %1378 = arith.maximumf %1376, %1377 : vector<1x64xf32>
    %1379 = arith.mulf %1371, %1378 : vector<1x64xf32>
    %1380 = vector.broadcast %1356 : vector<1x1xf32> to vector<1x64xf32>
    %1381 = arith.addf %1380, %65 : vector<1x64xf32>
    %1382 = arith.subf %1381, %1379 : vector<1x64xf32>
    %cst_270 = arith.constant 9.99999993E-9 : f32
    %1383 = vector.broadcast %cst_270 : f32 to vector<1x64xf32>
    %1384 = arith.addf %1382, %1383 : vector<1x64xf32>
    %1385 = tpu.reciprocal %1384 {approx = true} : vector<1x64xf32> -> vector<1x64xf32>
    %1386 = arith.mulf %1379, %1385 : vector<1x64xf32>
    %cst_271 = arith.constant 5.000000e-01 : f32
    %1387 = vector.broadcast %cst_271 : f32 to vector<1x1xf32>
    %1388 = arith.cmpf ogt, %1364, %1387 : vector<1x1xf32>
    %cst_272 = arith.constant 5.000000e-01 : f32
    %1389 = vector.broadcast %cst_272 : f32 to vector<1x64xf32>
    %1390 = arith.cmpf ogt, %1386, %1389 : vector<1x64xf32>
    %1391 = vector.broadcast %1388 : vector<1x1xi1> to vector<1x64xi1>
    %1392 = arith.andi %1391, %1390 : vector<1x64xi1>
    %1393 = vector.broadcast %c24_i32 : i32 to vector<1x64xi32>
    %1394 = arith.cmpi sgt, %68, %1393 : vector<1x64xi32>
    %1395 = arith.andi %1392, %1394 : vector<1x64xi1>
    %1396 = arith.extui %1395 : vector<1x64xi1> to vector<1x64xi32>
    %1397 = arith.sitofp %1396 : vector<1x64xi32> to vector<1x64xf32>
    %1398 = arith.maximumf %1345, %1397 : vector<1x64xf32>
    %c25_i32 = arith.constant 25 : i32
    %1399 = vector.broadcast %c25_i32 : i32 to vector<5x64xi32>
    %1400 = arith.cmpi eq, %70, %1399 : vector<5x64xi32>
    %cst_273 = arith.constant 0.000000e+00 : f32
    %1401 = vector.broadcast %cst_273 : f32 to vector<5x64xf32>
    %1402 = arith.select %1400, %69, %1401 : vector<5x64xi1>, vector<5x64xf32>
    %cst_274 = arith.constant dense<0.000000e+00> : vector<5xf32>
    %1403 = vector.multi_reduction <add>, %1402, %cst_274 [1] : vector<5x64xf32> to vector<5xf32>
    %1404 = vector.shape_cast %1403 : vector<5xf32> to vector<5x1xf32>
    %1405 = vector.extract_strided_slice %1404 {offsets = [0, 0], sizes = [1, 1], strides = [1, 1]} : vector<5x1xf32> to vector<1x1xf32>
    %1406 = vector.extract_strided_slice %1404 {offsets = [1, 0], sizes = [1, 1], strides = [1, 1]} : vector<5x1xf32> to vector<1x1xf32>
    %1407 = vector.extract_strided_slice %1404 {offsets = [2, 0], sizes = [1, 1], strides = [1, 1]} : vector<5x1xf32> to vector<1x1xf32>
    %1408 = vector.extract_strided_slice %1404 {offsets = [3, 0], sizes = [1, 1], strides = [1, 1]} : vector<5x1xf32> to vector<1x1xf32>
    %1409 = vector.extract_strided_slice %1404 {offsets = [4, 0], sizes = [1, 1], strides = [1, 1]} : vector<5x1xf32> to vector<1x1xf32>
    %1410 = vector.broadcast %c25_i32 : i32 to vector<1x64xi32>
    %1411 = arith.cmpi eq, %68, %1410 : vector<1x64xi32>
    %cst_275 = arith.constant 1.000000e+00 : f32
    %1412 = vector.broadcast %cst_275 : f32 to vector<1x64xf32>
    %1413 = arith.subf %1412, %1398 : vector<1x64xf32>
    %cst_276 = arith.constant 0.000000e+00 : f32
    %1414 = vector.broadcast %cst_276 : f32 to vector<1x64xf32>
    %1415 = arith.select %1411, %1413, %1414 : vector<1x64xi1>, vector<1x64xf32>
    %cst_277 = arith.constant dense<0xFF800000> : vector<1xf32>
    %1416 = vector.multi_reduction <maximumf>, %1415, %cst_277 [1] : vector<1x64xf32> to vector<1xf32>
    %1417 = vector.shape_cast %1416 : vector<1xf32> to vector<1x1xf32>
    %1418 = vector.broadcast %1407 : vector<1x1xf32> to vector<1x64xf32>
    %1419 = arith.minimumf %1418, %55 : vector<1x64xf32>
    %1420 = vector.broadcast %1405 : vector<1x1xf32> to vector<1x64xf32>
    %1421 = arith.maximumf %1420, %41 : vector<1x64xf32>
    %1422 = arith.subf %1419, %1421 : vector<1x64xf32>
    %cst_278 = arith.constant 0.000000e+00 : f32
    %1423 = vector.broadcast %cst_278 : f32 to vector<1x64xf32>
    %1424 = arith.maximumf %1422, %1423 : vector<1x64xf32>
    %1425 = vector.broadcast %1408 : vector<1x1xf32> to vector<1x64xf32>
    %1426 = arith.minimumf %1425, %62 : vector<1x64xf32>
    %1427 = vector.broadcast %1406 : vector<1x1xf32> to vector<1x64xf32>
    %1428 = arith.maximumf %1427, %48 : vector<1x64xf32>
    %1429 = arith.subf %1426, %1428 : vector<1x64xf32>
    %cst_279 = arith.constant 0.000000e+00 : f32
    %1430 = vector.broadcast %cst_279 : f32 to vector<1x64xf32>
    %1431 = arith.maximumf %1429, %1430 : vector<1x64xf32>
    %1432 = arith.mulf %1424, %1431 : vector<1x64xf32>
    %1433 = vector.broadcast %1409 : vector<1x1xf32> to vector<1x64xf32>
    %1434 = arith.addf %1433, %65 : vector<1x64xf32>
    %1435 = arith.subf %1434, %1432 : vector<1x64xf32>
    %cst_280 = arith.constant 9.99999993E-9 : f32
    %1436 = vector.broadcast %cst_280 : f32 to vector<1x64xf32>
    %1437 = arith.addf %1435, %1436 : vector<1x64xf32>
    %1438 = tpu.reciprocal %1437 {approx = true} : vector<1x64xf32> -> vector<1x64xf32>
    %1439 = arith.mulf %1432, %1438 : vector<1x64xf32>
    %cst_281 = arith.constant 5.000000e-01 : f32
    %1440 = vector.broadcast %cst_281 : f32 to vector<1x1xf32>
    %1441 = arith.cmpf ogt, %1417, %1440 : vector<1x1xf32>
    %cst_282 = arith.constant 5.000000e-01 : f32
    %1442 = vector.broadcast %cst_282 : f32 to vector<1x64xf32>
    %1443 = arith.cmpf ogt, %1439, %1442 : vector<1x64xf32>
    %1444 = vector.broadcast %1441 : vector<1x1xi1> to vector<1x64xi1>
    %1445 = arith.andi %1444, %1443 : vector<1x64xi1>
    %1446 = vector.broadcast %c25_i32 : i32 to vector<1x64xi32>
    %1447 = arith.cmpi sgt, %68, %1446 : vector<1x64xi32>
    %1448 = arith.andi %1445, %1447 : vector<1x64xi1>
    %1449 = arith.extui %1448 : vector<1x64xi1> to vector<1x64xi32>
    %1450 = arith.sitofp %1449 : vector<1x64xi32> to vector<1x64xf32>
    %1451 = arith.maximumf %1398, %1450 : vector<1x64xf32>
    %c26_i32 = arith.constant 26 : i32
    %1452 = vector.broadcast %c26_i32 : i32 to vector<5x64xi32>
    %1453 = arith.cmpi eq, %70, %1452 : vector<5x64xi32>
    %cst_283 = arith.constant 0.000000e+00 : f32
    %1454 = vector.broadcast %cst_283 : f32 to vector<5x64xf32>
    %1455 = arith.select %1453, %69, %1454 : vector<5x64xi1>, vector<5x64xf32>
    %cst_284 = arith.constant dense<0.000000e+00> : vector<5xf32>
    %1456 = vector.multi_reduction <add>, %1455, %cst_284 [1] : vector<5x64xf32> to vector<5xf32>
    %1457 = vector.shape_cast %1456 : vector<5xf32> to vector<5x1xf32>
    %1458 = vector.extract_strided_slice %1457 {offsets = [0, 0], sizes = [1, 1], strides = [1, 1]} : vector<5x1xf32> to vector<1x1xf32>
    %1459 = vector.extract_strided_slice %1457 {offsets = [1, 0], sizes = [1, 1], strides = [1, 1]} : vector<5x1xf32> to vector<1x1xf32>
    %1460 = vector.extract_strided_slice %1457 {offsets = [2, 0], sizes = [1, 1], strides = [1, 1]} : vector<5x1xf32> to vector<1x1xf32>
    %1461 = vector.extract_strided_slice %1457 {offsets = [3, 0], sizes = [1, 1], strides = [1, 1]} : vector<5x1xf32> to vector<1x1xf32>
    %1462 = vector.extract_strided_slice %1457 {offsets = [4, 0], sizes = [1, 1], strides = [1, 1]} : vector<5x1xf32> to vector<1x1xf32>
    %1463 = vector.broadcast %c26_i32 : i32 to vector<1x64xi32>
    %1464 = arith.cmpi eq, %68, %1463 : vector<1x64xi32>
    %cst_285 = arith.constant 1.000000e+00 : f32
    %1465 = vector.broadcast %cst_285 : f32 to vector<1x64xf32>
    %1466 = arith.subf %1465, %1451 : vector<1x64xf32>
    %cst_286 = arith.constant 0.000000e+00 : f32
    %1467 = vector.broadcast %cst_286 : f32 to vector<1x64xf32>
    %1468 = arith.select %1464, %1466, %1467 : vector<1x64xi1>, vector<1x64xf32>
    %cst_287 = arith.constant dense<0xFF800000> : vector<1xf32>
    %1469 = vector.multi_reduction <maximumf>, %1468, %cst_287 [1] : vector<1x64xf32> to vector<1xf32>
    %1470 = vector.shape_cast %1469 : vector<1xf32> to vector<1x1xf32>
    %1471 = vector.broadcast %1460 : vector<1x1xf32> to vector<1x64xf32>
    %1472 = arith.minimumf %1471, %55 : vector<1x64xf32>
    %1473 = vector.broadcast %1458 : vector<1x1xf32> to vector<1x64xf32>
    %1474 = arith.maximumf %1473, %41 : vector<1x64xf32>
    %1475 = arith.subf %1472, %1474 : vector<1x64xf32>
    %cst_288 = arith.constant 0.000000e+00 : f32
    %1476 = vector.broadcast %cst_288 : f32 to vector<1x64xf32>
    %1477 = arith.maximumf %1475, %1476 : vector<1x64xf32>
    %1478 = vector.broadcast %1461 : vector<1x1xf32> to vector<1x64xf32>
    %1479 = arith.minimumf %1478, %62 : vector<1x64xf32>
    %1480 = vector.broadcast %1459 : vector<1x1xf32> to vector<1x64xf32>
    %1481 = arith.maximumf %1480, %48 : vector<1x64xf32>
    %1482 = arith.subf %1479, %1481 : vector<1x64xf32>
    %cst_289 = arith.constant 0.000000e+00 : f32
    %1483 = vector.broadcast %cst_289 : f32 to vector<1x64xf32>
    %1484 = arith.maximumf %1482, %1483 : vector<1x64xf32>
    %1485 = arith.mulf %1477, %1484 : vector<1x64xf32>
    %1486 = vector.broadcast %1462 : vector<1x1xf32> to vector<1x64xf32>
    %1487 = arith.addf %1486, %65 : vector<1x64xf32>
    %1488 = arith.subf %1487, %1485 : vector<1x64xf32>
    %cst_290 = arith.constant 9.99999993E-9 : f32
    %1489 = vector.broadcast %cst_290 : f32 to vector<1x64xf32>
    %1490 = arith.addf %1488, %1489 : vector<1x64xf32>
    %1491 = tpu.reciprocal %1490 {approx = true} : vector<1x64xf32> -> vector<1x64xf32>
    %1492 = arith.mulf %1485, %1491 : vector<1x64xf32>
    %cst_291 = arith.constant 5.000000e-01 : f32
    %1493 = vector.broadcast %cst_291 : f32 to vector<1x1xf32>
    %1494 = arith.cmpf ogt, %1470, %1493 : vector<1x1xf32>
    %cst_292 = arith.constant 5.000000e-01 : f32
    %1495 = vector.broadcast %cst_292 : f32 to vector<1x64xf32>
    %1496 = arith.cmpf ogt, %1492, %1495 : vector<1x64xf32>
    %1497 = vector.broadcast %1494 : vector<1x1xi1> to vector<1x64xi1>
    %1498 = arith.andi %1497, %1496 : vector<1x64xi1>
    %1499 = vector.broadcast %c26_i32 : i32 to vector<1x64xi32>
    %1500 = arith.cmpi sgt, %68, %1499 : vector<1x64xi32>
    %1501 = arith.andi %1498, %1500 : vector<1x64xi1>
    %1502 = arith.extui %1501 : vector<1x64xi1> to vector<1x64xi32>
    %1503 = arith.sitofp %1502 : vector<1x64xi32> to vector<1x64xf32>
    %1504 = arith.maximumf %1451, %1503 : vector<1x64xf32>
    %c27_i32 = arith.constant 27 : i32
    %1505 = vector.broadcast %c27_i32 : i32 to vector<5x64xi32>
    %1506 = arith.cmpi eq, %70, %1505 : vector<5x64xi32>
    %cst_293 = arith.constant 0.000000e+00 : f32
    %1507 = vector.broadcast %cst_293 : f32 to vector<5x64xf32>
    %1508 = arith.select %1506, %69, %1507 : vector<5x64xi1>, vector<5x64xf32>
    %cst_294 = arith.constant dense<0.000000e+00> : vector<5xf32>
    %1509 = vector.multi_reduction <add>, %1508, %cst_294 [1] : vector<5x64xf32> to vector<5xf32>
    %1510 = vector.shape_cast %1509 : vector<5xf32> to vector<5x1xf32>
    %1511 = vector.extract_strided_slice %1510 {offsets = [0, 0], sizes = [1, 1], strides = [1, 1]} : vector<5x1xf32> to vector<1x1xf32>
    %1512 = vector.extract_strided_slice %1510 {offsets = [1, 0], sizes = [1, 1], strides = [1, 1]} : vector<5x1xf32> to vector<1x1xf32>
    %1513 = vector.extract_strided_slice %1510 {offsets = [2, 0], sizes = [1, 1], strides = [1, 1]} : vector<5x1xf32> to vector<1x1xf32>
    %1514 = vector.extract_strided_slice %1510 {offsets = [3, 0], sizes = [1, 1], strides = [1, 1]} : vector<5x1xf32> to vector<1x1xf32>
    %1515 = vector.extract_strided_slice %1510 {offsets = [4, 0], sizes = [1, 1], strides = [1, 1]} : vector<5x1xf32> to vector<1x1xf32>
    %1516 = vector.broadcast %c27_i32 : i32 to vector<1x64xi32>
    %1517 = arith.cmpi eq, %68, %1516 : vector<1x64xi32>
    %cst_295 = arith.constant 1.000000e+00 : f32
    %1518 = vector.broadcast %cst_295 : f32 to vector<1x64xf32>
    %1519 = arith.subf %1518, %1504 : vector<1x64xf32>
    %cst_296 = arith.constant 0.000000e+00 : f32
    %1520 = vector.broadcast %cst_296 : f32 to vector<1x64xf32>
    %1521 = arith.select %1517, %1519, %1520 : vector<1x64xi1>, vector<1x64xf32>
    %cst_297 = arith.constant dense<0xFF800000> : vector<1xf32>
    %1522 = vector.multi_reduction <maximumf>, %1521, %cst_297 [1] : vector<1x64xf32> to vector<1xf32>
    %1523 = vector.shape_cast %1522 : vector<1xf32> to vector<1x1xf32>
    %1524 = vector.broadcast %1513 : vector<1x1xf32> to vector<1x64xf32>
    %1525 = arith.minimumf %1524, %55 : vector<1x64xf32>
    %1526 = vector.broadcast %1511 : vector<1x1xf32> to vector<1x64xf32>
    %1527 = arith.maximumf %1526, %41 : vector<1x64xf32>
    %1528 = arith.subf %1525, %1527 : vector<1x64xf32>
    %cst_298 = arith.constant 0.000000e+00 : f32
    %1529 = vector.broadcast %cst_298 : f32 to vector<1x64xf32>
    %1530 = arith.maximumf %1528, %1529 : vector<1x64xf32>
    %1531 = vector.broadcast %1514 : vector<1x1xf32> to vector<1x64xf32>
    %1532 = arith.minimumf %1531, %62 : vector<1x64xf32>
    %1533 = vector.broadcast %1512 : vector<1x1xf32> to vector<1x64xf32>
    %1534 = arith.maximumf %1533, %48 : vector<1x64xf32>
    %1535 = arith.subf %1532, %1534 : vector<1x64xf32>
    %cst_299 = arith.constant 0.000000e+00 : f32
    %1536 = vector.broadcast %cst_299 : f32 to vector<1x64xf32>
    %1537 = arith.maximumf %1535, %1536 : vector<1x64xf32>
    %1538 = arith.mulf %1530, %1537 : vector<1x64xf32>
    %1539 = vector.broadcast %1515 : vector<1x1xf32> to vector<1x64xf32>
    %1540 = arith.addf %1539, %65 : vector<1x64xf32>
    %1541 = arith.subf %1540, %1538 : vector<1x64xf32>
    %cst_300 = arith.constant 9.99999993E-9 : f32
    %1542 = vector.broadcast %cst_300 : f32 to vector<1x64xf32>
    %1543 = arith.addf %1541, %1542 : vector<1x64xf32>
    %1544 = tpu.reciprocal %1543 {approx = true} : vector<1x64xf32> -> vector<1x64xf32>
    %1545 = arith.mulf %1538, %1544 : vector<1x64xf32>
    %cst_301 = arith.constant 5.000000e-01 : f32
    %1546 = vector.broadcast %cst_301 : f32 to vector<1x1xf32>
    %1547 = arith.cmpf ogt, %1523, %1546 : vector<1x1xf32>
    %cst_302 = arith.constant 5.000000e-01 : f32
    %1548 = vector.broadcast %cst_302 : f32 to vector<1x64xf32>
    %1549 = arith.cmpf ogt, %1545, %1548 : vector<1x64xf32>
    %1550 = vector.broadcast %1547 : vector<1x1xi1> to vector<1x64xi1>
    %1551 = arith.andi %1550, %1549 : vector<1x64xi1>
    %1552 = vector.broadcast %c27_i32 : i32 to vector<1x64xi32>
    %1553 = arith.cmpi sgt, %68, %1552 : vector<1x64xi32>
    %1554 = arith.andi %1551, %1553 : vector<1x64xi1>
    %1555 = arith.extui %1554 : vector<1x64xi1> to vector<1x64xi32>
    %1556 = arith.sitofp %1555 : vector<1x64xi32> to vector<1x64xf32>
    %1557 = arith.maximumf %1504, %1556 : vector<1x64xf32>
    %c28_i32 = arith.constant 28 : i32
    %1558 = vector.broadcast %c28_i32 : i32 to vector<5x64xi32>
    %1559 = arith.cmpi eq, %70, %1558 : vector<5x64xi32>
    %cst_303 = arith.constant 0.000000e+00 : f32
    %1560 = vector.broadcast %cst_303 : f32 to vector<5x64xf32>
    %1561 = arith.select %1559, %69, %1560 : vector<5x64xi1>, vector<5x64xf32>
    %cst_304 = arith.constant dense<0.000000e+00> : vector<5xf32>
    %1562 = vector.multi_reduction <add>, %1561, %cst_304 [1] : vector<5x64xf32> to vector<5xf32>
    %1563 = vector.shape_cast %1562 : vector<5xf32> to vector<5x1xf32>
    %1564 = vector.extract_strided_slice %1563 {offsets = [0, 0], sizes = [1, 1], strides = [1, 1]} : vector<5x1xf32> to vector<1x1xf32>
    %1565 = vector.extract_strided_slice %1563 {offsets = [1, 0], sizes = [1, 1], strides = [1, 1]} : vector<5x1xf32> to vector<1x1xf32>
    %1566 = vector.extract_strided_slice %1563 {offsets = [2, 0], sizes = [1, 1], strides = [1, 1]} : vector<5x1xf32> to vector<1x1xf32>
    %1567 = vector.extract_strided_slice %1563 {offsets = [3, 0], sizes = [1, 1], strides = [1, 1]} : vector<5x1xf32> to vector<1x1xf32>
    %1568 = vector.extract_strided_slice %1563 {offsets = [4, 0], sizes = [1, 1], strides = [1, 1]} : vector<5x1xf32> to vector<1x1xf32>
    %1569 = vector.broadcast %c28_i32 : i32 to vector<1x64xi32>
    %1570 = arith.cmpi eq, %68, %1569 : vector<1x64xi32>
    %cst_305 = arith.constant 1.000000e+00 : f32
    %1571 = vector.broadcast %cst_305 : f32 to vector<1x64xf32>
    %1572 = arith.subf %1571, %1557 : vector<1x64xf32>
    %cst_306 = arith.constant 0.000000e+00 : f32
    %1573 = vector.broadcast %cst_306 : f32 to vector<1x64xf32>
    %1574 = arith.select %1570, %1572, %1573 : vector<1x64xi1>, vector<1x64xf32>
    %cst_307 = arith.constant dense<0xFF800000> : vector<1xf32>
    %1575 = vector.multi_reduction <maximumf>, %1574, %cst_307 [1] : vector<1x64xf32> to vector<1xf32>
    %1576 = vector.shape_cast %1575 : vector<1xf32> to vector<1x1xf32>
    %1577 = vector.broadcast %1566 : vector<1x1xf32> to vector<1x64xf32>
    %1578 = arith.minimumf %1577, %55 : vector<1x64xf32>
    %1579 = vector.broadcast %1564 : vector<1x1xf32> to vector<1x64xf32>
    %1580 = arith.maximumf %1579, %41 : vector<1x64xf32>
    %1581 = arith.subf %1578, %1580 : vector<1x64xf32>
    %cst_308 = arith.constant 0.000000e+00 : f32
    %1582 = vector.broadcast %cst_308 : f32 to vector<1x64xf32>
    %1583 = arith.maximumf %1581, %1582 : vector<1x64xf32>
    %1584 = vector.broadcast %1567 : vector<1x1xf32> to vector<1x64xf32>
    %1585 = arith.minimumf %1584, %62 : vector<1x64xf32>
    %1586 = vector.broadcast %1565 : vector<1x1xf32> to vector<1x64xf32>
    %1587 = arith.maximumf %1586, %48 : vector<1x64xf32>
    %1588 = arith.subf %1585, %1587 : vector<1x64xf32>
    %cst_309 = arith.constant 0.000000e+00 : f32
    %1589 = vector.broadcast %cst_309 : f32 to vector<1x64xf32>
    %1590 = arith.maximumf %1588, %1589 : vector<1x64xf32>
    %1591 = arith.mulf %1583, %1590 : vector<1x64xf32>
    %1592 = vector.broadcast %1568 : vector<1x1xf32> to vector<1x64xf32>
    %1593 = arith.addf %1592, %65 : vector<1x64xf32>
    %1594 = arith.subf %1593, %1591 : vector<1x64xf32>
    %cst_310 = arith.constant 9.99999993E-9 : f32
    %1595 = vector.broadcast %cst_310 : f32 to vector<1x64xf32>
    %1596 = arith.addf %1594, %1595 : vector<1x64xf32>
    %1597 = tpu.reciprocal %1596 {approx = true} : vector<1x64xf32> -> vector<1x64xf32>
    %1598 = arith.mulf %1591, %1597 : vector<1x64xf32>
    %cst_311 = arith.constant 5.000000e-01 : f32
    %1599 = vector.broadcast %cst_311 : f32 to vector<1x1xf32>
    %1600 = arith.cmpf ogt, %1576, %1599 : vector<1x1xf32>
    %cst_312 = arith.constant 5.000000e-01 : f32
    %1601 = vector.broadcast %cst_312 : f32 to vector<1x64xf32>
    %1602 = arith.cmpf ogt, %1598, %1601 : vector<1x64xf32>
    %1603 = vector.broadcast %1600 : vector<1x1xi1> to vector<1x64xi1>
    %1604 = arith.andi %1603, %1602 : vector<1x64xi1>
    %1605 = vector.broadcast %c28_i32 : i32 to vector<1x64xi32>
    %1606 = arith.cmpi sgt, %68, %1605 : vector<1x64xi32>
    %1607 = arith.andi %1604, %1606 : vector<1x64xi1>
    %1608 = arith.extui %1607 : vector<1x64xi1> to vector<1x64xi32>
    %1609 = arith.sitofp %1608 : vector<1x64xi32> to vector<1x64xf32>
    %1610 = arith.maximumf %1557, %1609 : vector<1x64xf32>
    %c29_i32 = arith.constant 29 : i32
    %1611 = vector.broadcast %c29_i32 : i32 to vector<5x64xi32>
    %1612 = arith.cmpi eq, %70, %1611 : vector<5x64xi32>
    %cst_313 = arith.constant 0.000000e+00 : f32
    %1613 = vector.broadcast %cst_313 : f32 to vector<5x64xf32>
    %1614 = arith.select %1612, %69, %1613 : vector<5x64xi1>, vector<5x64xf32>
    %cst_314 = arith.constant dense<0.000000e+00> : vector<5xf32>
    %1615 = vector.multi_reduction <add>, %1614, %cst_314 [1] : vector<5x64xf32> to vector<5xf32>
    %1616 = vector.shape_cast %1615 : vector<5xf32> to vector<5x1xf32>
    %1617 = vector.extract_strided_slice %1616 {offsets = [0, 0], sizes = [1, 1], strides = [1, 1]} : vector<5x1xf32> to vector<1x1xf32>
    %1618 = vector.extract_strided_slice %1616 {offsets = [1, 0], sizes = [1, 1], strides = [1, 1]} : vector<5x1xf32> to vector<1x1xf32>
    %1619 = vector.extract_strided_slice %1616 {offsets = [2, 0], sizes = [1, 1], strides = [1, 1]} : vector<5x1xf32> to vector<1x1xf32>
    %1620 = vector.extract_strided_slice %1616 {offsets = [3, 0], sizes = [1, 1], strides = [1, 1]} : vector<5x1xf32> to vector<1x1xf32>
    %1621 = vector.extract_strided_slice %1616 {offsets = [4, 0], sizes = [1, 1], strides = [1, 1]} : vector<5x1xf32> to vector<1x1xf32>
    %1622 = vector.broadcast %c29_i32 : i32 to vector<1x64xi32>
    %1623 = arith.cmpi eq, %68, %1622 : vector<1x64xi32>
    %cst_315 = arith.constant 1.000000e+00 : f32
    %1624 = vector.broadcast %cst_315 : f32 to vector<1x64xf32>
    %1625 = arith.subf %1624, %1610 : vector<1x64xf32>
    %cst_316 = arith.constant 0.000000e+00 : f32
    %1626 = vector.broadcast %cst_316 : f32 to vector<1x64xf32>
    %1627 = arith.select %1623, %1625, %1626 : vector<1x64xi1>, vector<1x64xf32>
    %cst_317 = arith.constant dense<0xFF800000> : vector<1xf32>
    %1628 = vector.multi_reduction <maximumf>, %1627, %cst_317 [1] : vector<1x64xf32> to vector<1xf32>
    %1629 = vector.shape_cast %1628 : vector<1xf32> to vector<1x1xf32>
    %1630 = vector.broadcast %1619 : vector<1x1xf32> to vector<1x64xf32>
    %1631 = arith.minimumf %1630, %55 : vector<1x64xf32>
    %1632 = vector.broadcast %1617 : vector<1x1xf32> to vector<1x64xf32>
    %1633 = arith.maximumf %1632, %41 : vector<1x64xf32>
    %1634 = arith.subf %1631, %1633 : vector<1x64xf32>
    %cst_318 = arith.constant 0.000000e+00 : f32
    %1635 = vector.broadcast %cst_318 : f32 to vector<1x64xf32>
    %1636 = arith.maximumf %1634, %1635 : vector<1x64xf32>
    %1637 = vector.broadcast %1620 : vector<1x1xf32> to vector<1x64xf32>
    %1638 = arith.minimumf %1637, %62 : vector<1x64xf32>
    %1639 = vector.broadcast %1618 : vector<1x1xf32> to vector<1x64xf32>
    %1640 = arith.maximumf %1639, %48 : vector<1x64xf32>
    %1641 = arith.subf %1638, %1640 : vector<1x64xf32>
    %cst_319 = arith.constant 0.000000e+00 : f32
    %1642 = vector.broadcast %cst_319 : f32 to vector<1x64xf32>
    %1643 = arith.maximumf %1641, %1642 : vector<1x64xf32>
    %1644 = arith.mulf %1636, %1643 : vector<1x64xf32>
    %1645 = vector.broadcast %1621 : vector<1x1xf32> to vector<1x64xf32>
    %1646 = arith.addf %1645, %65 : vector<1x64xf32>
    %1647 = arith.subf %1646, %1644 : vector<1x64xf32>
    %cst_320 = arith.constant 9.99999993E-9 : f32
    %1648 = vector.broadcast %cst_320 : f32 to vector<1x64xf32>
    %1649 = arith.addf %1647, %1648 : vector<1x64xf32>
    %1650 = tpu.reciprocal %1649 {approx = true} : vector<1x64xf32> -> vector<1x64xf32>
    %1651 = arith.mulf %1644, %1650 : vector<1x64xf32>
    %cst_321 = arith.constant 5.000000e-01 : f32
    %1652 = vector.broadcast %cst_321 : f32 to vector<1x1xf32>
    %1653 = arith.cmpf ogt, %1629, %1652 : vector<1x1xf32>
    %cst_322 = arith.constant 5.000000e-01 : f32
    %1654 = vector.broadcast %cst_322 : f32 to vector<1x64xf32>
    %1655 = arith.cmpf ogt, %1651, %1654 : vector<1x64xf32>
    %1656 = vector.broadcast %1653 : vector<1x1xi1> to vector<1x64xi1>
    %1657 = arith.andi %1656, %1655 : vector<1x64xi1>
    %1658 = vector.broadcast %c29_i32 : i32 to vector<1x64xi32>
    %1659 = arith.cmpi sgt, %68, %1658 : vector<1x64xi32>
    %1660 = arith.andi %1657, %1659 : vector<1x64xi1>
    %1661 = arith.extui %1660 : vector<1x64xi1> to vector<1x64xi32>
    %1662 = arith.sitofp %1661 : vector<1x64xi32> to vector<1x64xf32>
    %1663 = arith.maximumf %1610, %1662 : vector<1x64xf32>
    %c30_i32 = arith.constant 30 : i32
    %1664 = vector.broadcast %c30_i32 : i32 to vector<5x64xi32>
    %1665 = arith.cmpi eq, %70, %1664 : vector<5x64xi32>
    %cst_323 = arith.constant 0.000000e+00 : f32
    %1666 = vector.broadcast %cst_323 : f32 to vector<5x64xf32>
    %1667 = arith.select %1665, %69, %1666 : vector<5x64xi1>, vector<5x64xf32>
    %cst_324 = arith.constant dense<0.000000e+00> : vector<5xf32>
    %1668 = vector.multi_reduction <add>, %1667, %cst_324 [1] : vector<5x64xf32> to vector<5xf32>
    %1669 = vector.shape_cast %1668 : vector<5xf32> to vector<5x1xf32>
    %1670 = vector.extract_strided_slice %1669 {offsets = [0, 0], sizes = [1, 1], strides = [1, 1]} : vector<5x1xf32> to vector<1x1xf32>
    %1671 = vector.extract_strided_slice %1669 {offsets = [1, 0], sizes = [1, 1], strides = [1, 1]} : vector<5x1xf32> to vector<1x1xf32>
    %1672 = vector.extract_strided_slice %1669 {offsets = [2, 0], sizes = [1, 1], strides = [1, 1]} : vector<5x1xf32> to vector<1x1xf32>
    %1673 = vector.extract_strided_slice %1669 {offsets = [3, 0], sizes = [1, 1], strides = [1, 1]} : vector<5x1xf32> to vector<1x1xf32>
    %1674 = vector.extract_strided_slice %1669 {offsets = [4, 0], sizes = [1, 1], strides = [1, 1]} : vector<5x1xf32> to vector<1x1xf32>
    %1675 = vector.broadcast %c30_i32 : i32 to vector<1x64xi32>
    %1676 = arith.cmpi eq, %68, %1675 : vector<1x64xi32>
    %cst_325 = arith.constant 1.000000e+00 : f32
    %1677 = vector.broadcast %cst_325 : f32 to vector<1x64xf32>
    %1678 = arith.subf %1677, %1663 : vector<1x64xf32>
    %cst_326 = arith.constant 0.000000e+00 : f32
    %1679 = vector.broadcast %cst_326 : f32 to vector<1x64xf32>
    %1680 = arith.select %1676, %1678, %1679 : vector<1x64xi1>, vector<1x64xf32>
    %cst_327 = arith.constant dense<0xFF800000> : vector<1xf32>
    %1681 = vector.multi_reduction <maximumf>, %1680, %cst_327 [1] : vector<1x64xf32> to vector<1xf32>
    %1682 = vector.shape_cast %1681 : vector<1xf32> to vector<1x1xf32>
    %1683 = vector.broadcast %1672 : vector<1x1xf32> to vector<1x64xf32>
    %1684 = arith.minimumf %1683, %55 : vector<1x64xf32>
    %1685 = vector.broadcast %1670 : vector<1x1xf32> to vector<1x64xf32>
    %1686 = arith.maximumf %1685, %41 : vector<1x64xf32>
    %1687 = arith.subf %1684, %1686 : vector<1x64xf32>
    %cst_328 = arith.constant 0.000000e+00 : f32
    %1688 = vector.broadcast %cst_328 : f32 to vector<1x64xf32>
    %1689 = arith.maximumf %1687, %1688 : vector<1x64xf32>
    %1690 = vector.broadcast %1673 : vector<1x1xf32> to vector<1x64xf32>
    %1691 = arith.minimumf %1690, %62 : vector<1x64xf32>
    %1692 = vector.broadcast %1671 : vector<1x1xf32> to vector<1x64xf32>
    %1693 = arith.maximumf %1692, %48 : vector<1x64xf32>
    %1694 = arith.subf %1691, %1693 : vector<1x64xf32>
    %cst_329 = arith.constant 0.000000e+00 : f32
    %1695 = vector.broadcast %cst_329 : f32 to vector<1x64xf32>
    %1696 = arith.maximumf %1694, %1695 : vector<1x64xf32>
    %1697 = arith.mulf %1689, %1696 : vector<1x64xf32>
    %1698 = vector.broadcast %1674 : vector<1x1xf32> to vector<1x64xf32>
    %1699 = arith.addf %1698, %65 : vector<1x64xf32>
    %1700 = arith.subf %1699, %1697 : vector<1x64xf32>
    %cst_330 = arith.constant 9.99999993E-9 : f32
    %1701 = vector.broadcast %cst_330 : f32 to vector<1x64xf32>
    %1702 = arith.addf %1700, %1701 : vector<1x64xf32>
    %1703 = tpu.reciprocal %1702 {approx = true} : vector<1x64xf32> -> vector<1x64xf32>
    %1704 = arith.mulf %1697, %1703 : vector<1x64xf32>
    %cst_331 = arith.constant 5.000000e-01 : f32
    %1705 = vector.broadcast %cst_331 : f32 to vector<1x1xf32>
    %1706 = arith.cmpf ogt, %1682, %1705 : vector<1x1xf32>
    %cst_332 = arith.constant 5.000000e-01 : f32
    %1707 = vector.broadcast %cst_332 : f32 to vector<1x64xf32>
    %1708 = arith.cmpf ogt, %1704, %1707 : vector<1x64xf32>
    %1709 = vector.broadcast %1706 : vector<1x1xi1> to vector<1x64xi1>
    %1710 = arith.andi %1709, %1708 : vector<1x64xi1>
    %1711 = vector.broadcast %c30_i32 : i32 to vector<1x64xi32>
    %1712 = arith.cmpi sgt, %68, %1711 : vector<1x64xi32>
    %1713 = arith.andi %1710, %1712 : vector<1x64xi1>
    %1714 = arith.extui %1713 : vector<1x64xi1> to vector<1x64xi32>
    %1715 = arith.sitofp %1714 : vector<1x64xi32> to vector<1x64xf32>
    %1716 = arith.maximumf %1663, %1715 : vector<1x64xf32>
    %c31_i32 = arith.constant 31 : i32
    %1717 = vector.broadcast %c31_i32 : i32 to vector<5x64xi32>
    %1718 = arith.cmpi eq, %70, %1717 : vector<5x64xi32>
    %cst_333 = arith.constant 0.000000e+00 : f32
    %1719 = vector.broadcast %cst_333 : f32 to vector<5x64xf32>
    %1720 = arith.select %1718, %69, %1719 : vector<5x64xi1>, vector<5x64xf32>
    %cst_334 = arith.constant dense<0.000000e+00> : vector<5xf32>
    %1721 = vector.multi_reduction <add>, %1720, %cst_334 [1] : vector<5x64xf32> to vector<5xf32>
    %1722 = vector.shape_cast %1721 : vector<5xf32> to vector<5x1xf32>
    %1723 = vector.extract_strided_slice %1722 {offsets = [0, 0], sizes = [1, 1], strides = [1, 1]} : vector<5x1xf32> to vector<1x1xf32>
    %1724 = vector.extract_strided_slice %1722 {offsets = [1, 0], sizes = [1, 1], strides = [1, 1]} : vector<5x1xf32> to vector<1x1xf32>
    %1725 = vector.extract_strided_slice %1722 {offsets = [2, 0], sizes = [1, 1], strides = [1, 1]} : vector<5x1xf32> to vector<1x1xf32>
    %1726 = vector.extract_strided_slice %1722 {offsets = [3, 0], sizes = [1, 1], strides = [1, 1]} : vector<5x1xf32> to vector<1x1xf32>
    %1727 = vector.extract_strided_slice %1722 {offsets = [4, 0], sizes = [1, 1], strides = [1, 1]} : vector<5x1xf32> to vector<1x1xf32>
    %1728 = vector.broadcast %c31_i32 : i32 to vector<1x64xi32>
    %1729 = arith.cmpi eq, %68, %1728 : vector<1x64xi32>
    %cst_335 = arith.constant 1.000000e+00 : f32
    %1730 = vector.broadcast %cst_335 : f32 to vector<1x64xf32>
    %1731 = arith.subf %1730, %1716 : vector<1x64xf32>
    %cst_336 = arith.constant 0.000000e+00 : f32
    %1732 = vector.broadcast %cst_336 : f32 to vector<1x64xf32>
    %1733 = arith.select %1729, %1731, %1732 : vector<1x64xi1>, vector<1x64xf32>
    %cst_337 = arith.constant dense<0xFF800000> : vector<1xf32>
    %1734 = vector.multi_reduction <maximumf>, %1733, %cst_337 [1] : vector<1x64xf32> to vector<1xf32>
    %1735 = vector.shape_cast %1734 : vector<1xf32> to vector<1x1xf32>
    %1736 = vector.broadcast %1725 : vector<1x1xf32> to vector<1x64xf32>
    %1737 = arith.minimumf %1736, %55 : vector<1x64xf32>
    %1738 = vector.broadcast %1723 : vector<1x1xf32> to vector<1x64xf32>
    %1739 = arith.maximumf %1738, %41 : vector<1x64xf32>
    %1740 = arith.subf %1737, %1739 : vector<1x64xf32>
    %cst_338 = arith.constant 0.000000e+00 : f32
    %1741 = vector.broadcast %cst_338 : f32 to vector<1x64xf32>
    %1742 = arith.maximumf %1740, %1741 : vector<1x64xf32>
    %1743 = vector.broadcast %1726 : vector<1x1xf32> to vector<1x64xf32>
    %1744 = arith.minimumf %1743, %62 : vector<1x64xf32>
    %1745 = vector.broadcast %1724 : vector<1x1xf32> to vector<1x64xf32>
    %1746 = arith.maximumf %1745, %48 : vector<1x64xf32>
    %1747 = arith.subf %1744, %1746 : vector<1x64xf32>
    %cst_339 = arith.constant 0.000000e+00 : f32
    %1748 = vector.broadcast %cst_339 : f32 to vector<1x64xf32>
    %1749 = arith.maximumf %1747, %1748 : vector<1x64xf32>
    %1750 = arith.mulf %1742, %1749 : vector<1x64xf32>
    %1751 = vector.broadcast %1727 : vector<1x1xf32> to vector<1x64xf32>
    %1752 = arith.addf %1751, %65 : vector<1x64xf32>
    %1753 = arith.subf %1752, %1750 : vector<1x64xf32>
    %cst_340 = arith.constant 9.99999993E-9 : f32
    %1754 = vector.broadcast %cst_340 : f32 to vector<1x64xf32>
    %1755 = arith.addf %1753, %1754 : vector<1x64xf32>
    %1756 = tpu.reciprocal %1755 {approx = true} : vector<1x64xf32> -> vector<1x64xf32>
    %1757 = arith.mulf %1750, %1756 : vector<1x64xf32>
    %cst_341 = arith.constant 5.000000e-01 : f32
    %1758 = vector.broadcast %cst_341 : f32 to vector<1x1xf32>
    %1759 = arith.cmpf ogt, %1735, %1758 : vector<1x1xf32>
    %cst_342 = arith.constant 5.000000e-01 : f32
    %1760 = vector.broadcast %cst_342 : f32 to vector<1x64xf32>
    %1761 = arith.cmpf ogt, %1757, %1760 : vector<1x64xf32>
    %1762 = vector.broadcast %1759 : vector<1x1xi1> to vector<1x64xi1>
    %1763 = arith.andi %1762, %1761 : vector<1x64xi1>
    %1764 = vector.broadcast %c31_i32 : i32 to vector<1x64xi32>
    %1765 = arith.cmpi sgt, %68, %1764 : vector<1x64xi32>
    %1766 = arith.andi %1763, %1765 : vector<1x64xi1>
    %1767 = arith.extui %1766 : vector<1x64xi1> to vector<1x64xi32>
    %1768 = arith.sitofp %1767 : vector<1x64xi32> to vector<1x64xf32>
    %1769 = arith.maximumf %1716, %1768 : vector<1x64xf32>
    %c32_i32 = arith.constant 32 : i32
    %1770 = vector.broadcast %c32_i32 : i32 to vector<5x64xi32>
    %1771 = arith.cmpi eq, %70, %1770 : vector<5x64xi32>
    %cst_343 = arith.constant 0.000000e+00 : f32
    %1772 = vector.broadcast %cst_343 : f32 to vector<5x64xf32>
    %1773 = arith.select %1771, %69, %1772 : vector<5x64xi1>, vector<5x64xf32>
    %cst_344 = arith.constant dense<0.000000e+00> : vector<5xf32>
    %1774 = vector.multi_reduction <add>, %1773, %cst_344 [1] : vector<5x64xf32> to vector<5xf32>
    %1775 = vector.shape_cast %1774 : vector<5xf32> to vector<5x1xf32>
    %1776 = vector.extract_strided_slice %1775 {offsets = [0, 0], sizes = [1, 1], strides = [1, 1]} : vector<5x1xf32> to vector<1x1xf32>
    %1777 = vector.extract_strided_slice %1775 {offsets = [1, 0], sizes = [1, 1], strides = [1, 1]} : vector<5x1xf32> to vector<1x1xf32>
    %1778 = vector.extract_strided_slice %1775 {offsets = [2, 0], sizes = [1, 1], strides = [1, 1]} : vector<5x1xf32> to vector<1x1xf32>
    %1779 = vector.extract_strided_slice %1775 {offsets = [3, 0], sizes = [1, 1], strides = [1, 1]} : vector<5x1xf32> to vector<1x1xf32>
    %1780 = vector.extract_strided_slice %1775 {offsets = [4, 0], sizes = [1, 1], strides = [1, 1]} : vector<5x1xf32> to vector<1x1xf32>
    %1781 = vector.broadcast %c32_i32 : i32 to vector<1x64xi32>
    %1782 = arith.cmpi eq, %68, %1781 : vector<1x64xi32>
    %cst_345 = arith.constant 1.000000e+00 : f32
    %1783 = vector.broadcast %cst_345 : f32 to vector<1x64xf32>
    %1784 = arith.subf %1783, %1769 : vector<1x64xf32>
    %cst_346 = arith.constant 0.000000e+00 : f32
    %1785 = vector.broadcast %cst_346 : f32 to vector<1x64xf32>
    %1786 = arith.select %1782, %1784, %1785 : vector<1x64xi1>, vector<1x64xf32>
    %cst_347 = arith.constant dense<0xFF800000> : vector<1xf32>
    %1787 = vector.multi_reduction <maximumf>, %1786, %cst_347 [1] : vector<1x64xf32> to vector<1xf32>
    %1788 = vector.shape_cast %1787 : vector<1xf32> to vector<1x1xf32>
    %1789 = vector.broadcast %1778 : vector<1x1xf32> to vector<1x64xf32>
    %1790 = arith.minimumf %1789, %55 : vector<1x64xf32>
    %1791 = vector.broadcast %1776 : vector<1x1xf32> to vector<1x64xf32>
    %1792 = arith.maximumf %1791, %41 : vector<1x64xf32>
    %1793 = arith.subf %1790, %1792 : vector<1x64xf32>
    %cst_348 = arith.constant 0.000000e+00 : f32
    %1794 = vector.broadcast %cst_348 : f32 to vector<1x64xf32>
    %1795 = arith.maximumf %1793, %1794 : vector<1x64xf32>
    %1796 = vector.broadcast %1779 : vector<1x1xf32> to vector<1x64xf32>
    %1797 = arith.minimumf %1796, %62 : vector<1x64xf32>
    %1798 = vector.broadcast %1777 : vector<1x1xf32> to vector<1x64xf32>
    %1799 = arith.maximumf %1798, %48 : vector<1x64xf32>
    %1800 = arith.subf %1797, %1799 : vector<1x64xf32>
    %cst_349 = arith.constant 0.000000e+00 : f32
    %1801 = vector.broadcast %cst_349 : f32 to vector<1x64xf32>
    %1802 = arith.maximumf %1800, %1801 : vector<1x64xf32>
    %1803 = arith.mulf %1795, %1802 : vector<1x64xf32>
    %1804 = vector.broadcast %1780 : vector<1x1xf32> to vector<1x64xf32>
    %1805 = arith.addf %1804, %65 : vector<1x64xf32>
    %1806 = arith.subf %1805, %1803 : vector<1x64xf32>
    %cst_350 = arith.constant 9.99999993E-9 : f32
    %1807 = vector.broadcast %cst_350 : f32 to vector<1x64xf32>
    %1808 = arith.addf %1806, %1807 : vector<1x64xf32>
    %1809 = tpu.reciprocal %1808 {approx = true} : vector<1x64xf32> -> vector<1x64xf32>
    %1810 = arith.mulf %1803, %1809 : vector<1x64xf32>
    %cst_351 = arith.constant 5.000000e-01 : f32
    %1811 = vector.broadcast %cst_351 : f32 to vector<1x1xf32>
    %1812 = arith.cmpf ogt, %1788, %1811 : vector<1x1xf32>
    %cst_352 = arith.constant 5.000000e-01 : f32
    %1813 = vector.broadcast %cst_352 : f32 to vector<1x64xf32>
    %1814 = arith.cmpf ogt, %1810, %1813 : vector<1x64xf32>
    %1815 = vector.broadcast %1812 : vector<1x1xi1> to vector<1x64xi1>
    %1816 = arith.andi %1815, %1814 : vector<1x64xi1>
    %1817 = vector.broadcast %c32_i32 : i32 to vector<1x64xi32>
    %1818 = arith.cmpi sgt, %68, %1817 : vector<1x64xi32>
    %1819 = arith.andi %1816, %1818 : vector<1x64xi1>
    %1820 = arith.extui %1819 : vector<1x64xi1> to vector<1x64xi32>
    %1821 = arith.sitofp %1820 : vector<1x64xi32> to vector<1x64xf32>
    %1822 = arith.maximumf %1769, %1821 : vector<1x64xf32>
    %c33_i32 = arith.constant 33 : i32
    %1823 = vector.broadcast %c33_i32 : i32 to vector<5x64xi32>
    %1824 = arith.cmpi eq, %70, %1823 : vector<5x64xi32>
    %cst_353 = arith.constant 0.000000e+00 : f32
    %1825 = vector.broadcast %cst_353 : f32 to vector<5x64xf32>
    %1826 = arith.select %1824, %69, %1825 : vector<5x64xi1>, vector<5x64xf32>
    %cst_354 = arith.constant dense<0.000000e+00> : vector<5xf32>
    %1827 = vector.multi_reduction <add>, %1826, %cst_354 [1] : vector<5x64xf32> to vector<5xf32>
    %1828 = vector.shape_cast %1827 : vector<5xf32> to vector<5x1xf32>
    %1829 = vector.extract_strided_slice %1828 {offsets = [0, 0], sizes = [1, 1], strides = [1, 1]} : vector<5x1xf32> to vector<1x1xf32>
    %1830 = vector.extract_strided_slice %1828 {offsets = [1, 0], sizes = [1, 1], strides = [1, 1]} : vector<5x1xf32> to vector<1x1xf32>
    %1831 = vector.extract_strided_slice %1828 {offsets = [2, 0], sizes = [1, 1], strides = [1, 1]} : vector<5x1xf32> to vector<1x1xf32>
    %1832 = vector.extract_strided_slice %1828 {offsets = [3, 0], sizes = [1, 1], strides = [1, 1]} : vector<5x1xf32> to vector<1x1xf32>
    %1833 = vector.extract_strided_slice %1828 {offsets = [4, 0], sizes = [1, 1], strides = [1, 1]} : vector<5x1xf32> to vector<1x1xf32>
    %1834 = vector.broadcast %c33_i32 : i32 to vector<1x64xi32>
    %1835 = arith.cmpi eq, %68, %1834 : vector<1x64xi32>
    %cst_355 = arith.constant 1.000000e+00 : f32
    %1836 = vector.broadcast %cst_355 : f32 to vector<1x64xf32>
    %1837 = arith.subf %1836, %1822 : vector<1x64xf32>
    %cst_356 = arith.constant 0.000000e+00 : f32
    %1838 = vector.broadcast %cst_356 : f32 to vector<1x64xf32>
    %1839 = arith.select %1835, %1837, %1838 : vector<1x64xi1>, vector<1x64xf32>
    %cst_357 = arith.constant dense<0xFF800000> : vector<1xf32>
    %1840 = vector.multi_reduction <maximumf>, %1839, %cst_357 [1] : vector<1x64xf32> to vector<1xf32>
    %1841 = vector.shape_cast %1840 : vector<1xf32> to vector<1x1xf32>
    %1842 = vector.broadcast %1831 : vector<1x1xf32> to vector<1x64xf32>
    %1843 = arith.minimumf %1842, %55 : vector<1x64xf32>
    %1844 = vector.broadcast %1829 : vector<1x1xf32> to vector<1x64xf32>
    %1845 = arith.maximumf %1844, %41 : vector<1x64xf32>
    %1846 = arith.subf %1843, %1845 : vector<1x64xf32>
    %cst_358 = arith.constant 0.000000e+00 : f32
    %1847 = vector.broadcast %cst_358 : f32 to vector<1x64xf32>
    %1848 = arith.maximumf %1846, %1847 : vector<1x64xf32>
    %1849 = vector.broadcast %1832 : vector<1x1xf32> to vector<1x64xf32>
    %1850 = arith.minimumf %1849, %62 : vector<1x64xf32>
    %1851 = vector.broadcast %1830 : vector<1x1xf32> to vector<1x64xf32>
    %1852 = arith.maximumf %1851, %48 : vector<1x64xf32>
    %1853 = arith.subf %1850, %1852 : vector<1x64xf32>
    %cst_359 = arith.constant 0.000000e+00 : f32
    %1854 = vector.broadcast %cst_359 : f32 to vector<1x64xf32>
    %1855 = arith.maximumf %1853, %1854 : vector<1x64xf32>
    %1856 = arith.mulf %1848, %1855 : vector<1x64xf32>
    %1857 = vector.broadcast %1833 : vector<1x1xf32> to vector<1x64xf32>
    %1858 = arith.addf %1857, %65 : vector<1x64xf32>
    %1859 = arith.subf %1858, %1856 : vector<1x64xf32>
    %cst_360 = arith.constant 9.99999993E-9 : f32
    %1860 = vector.broadcast %cst_360 : f32 to vector<1x64xf32>
    %1861 = arith.addf %1859, %1860 : vector<1x64xf32>
    %1862 = tpu.reciprocal %1861 {approx = true} : vector<1x64xf32> -> vector<1x64xf32>
    %1863 = arith.mulf %1856, %1862 : vector<1x64xf32>
    %cst_361 = arith.constant 5.000000e-01 : f32
    %1864 = vector.broadcast %cst_361 : f32 to vector<1x1xf32>
    %1865 = arith.cmpf ogt, %1841, %1864 : vector<1x1xf32>
    %cst_362 = arith.constant 5.000000e-01 : f32
    %1866 = vector.broadcast %cst_362 : f32 to vector<1x64xf32>
    %1867 = arith.cmpf ogt, %1863, %1866 : vector<1x64xf32>
    %1868 = vector.broadcast %1865 : vector<1x1xi1> to vector<1x64xi1>
    %1869 = arith.andi %1868, %1867 : vector<1x64xi1>
    %1870 = vector.broadcast %c33_i32 : i32 to vector<1x64xi32>
    %1871 = arith.cmpi sgt, %68, %1870 : vector<1x64xi32>
    %1872 = arith.andi %1869, %1871 : vector<1x64xi1>
    %1873 = arith.extui %1872 : vector<1x64xi1> to vector<1x64xi32>
    %1874 = arith.sitofp %1873 : vector<1x64xi32> to vector<1x64xf32>
    %1875 = arith.maximumf %1822, %1874 : vector<1x64xf32>
    %c34_i32 = arith.constant 34 : i32
    %1876 = vector.broadcast %c34_i32 : i32 to vector<5x64xi32>
    %1877 = arith.cmpi eq, %70, %1876 : vector<5x64xi32>
    %cst_363 = arith.constant 0.000000e+00 : f32
    %1878 = vector.broadcast %cst_363 : f32 to vector<5x64xf32>
    %1879 = arith.select %1877, %69, %1878 : vector<5x64xi1>, vector<5x64xf32>
    %cst_364 = arith.constant dense<0.000000e+00> : vector<5xf32>
    %1880 = vector.multi_reduction <add>, %1879, %cst_364 [1] : vector<5x64xf32> to vector<5xf32>
    %1881 = vector.shape_cast %1880 : vector<5xf32> to vector<5x1xf32>
    %1882 = vector.extract_strided_slice %1881 {offsets = [0, 0], sizes = [1, 1], strides = [1, 1]} : vector<5x1xf32> to vector<1x1xf32>
    %1883 = vector.extract_strided_slice %1881 {offsets = [1, 0], sizes = [1, 1], strides = [1, 1]} : vector<5x1xf32> to vector<1x1xf32>
    %1884 = vector.extract_strided_slice %1881 {offsets = [2, 0], sizes = [1, 1], strides = [1, 1]} : vector<5x1xf32> to vector<1x1xf32>
    %1885 = vector.extract_strided_slice %1881 {offsets = [3, 0], sizes = [1, 1], strides = [1, 1]} : vector<5x1xf32> to vector<1x1xf32>
    %1886 = vector.extract_strided_slice %1881 {offsets = [4, 0], sizes = [1, 1], strides = [1, 1]} : vector<5x1xf32> to vector<1x1xf32>
    %1887 = vector.broadcast %c34_i32 : i32 to vector<1x64xi32>
    %1888 = arith.cmpi eq, %68, %1887 : vector<1x64xi32>
    %cst_365 = arith.constant 1.000000e+00 : f32
    %1889 = vector.broadcast %cst_365 : f32 to vector<1x64xf32>
    %1890 = arith.subf %1889, %1875 : vector<1x64xf32>
    %cst_366 = arith.constant 0.000000e+00 : f32
    %1891 = vector.broadcast %cst_366 : f32 to vector<1x64xf32>
    %1892 = arith.select %1888, %1890, %1891 : vector<1x64xi1>, vector<1x64xf32>
    %cst_367 = arith.constant dense<0xFF800000> : vector<1xf32>
    %1893 = vector.multi_reduction <maximumf>, %1892, %cst_367 [1] : vector<1x64xf32> to vector<1xf32>
    %1894 = vector.shape_cast %1893 : vector<1xf32> to vector<1x1xf32>
    %1895 = vector.broadcast %1884 : vector<1x1xf32> to vector<1x64xf32>
    %1896 = arith.minimumf %1895, %55 : vector<1x64xf32>
    %1897 = vector.broadcast %1882 : vector<1x1xf32> to vector<1x64xf32>
    %1898 = arith.maximumf %1897, %41 : vector<1x64xf32>
    %1899 = arith.subf %1896, %1898 : vector<1x64xf32>
    %cst_368 = arith.constant 0.000000e+00 : f32
    %1900 = vector.broadcast %cst_368 : f32 to vector<1x64xf32>
    %1901 = arith.maximumf %1899, %1900 : vector<1x64xf32>
    %1902 = vector.broadcast %1885 : vector<1x1xf32> to vector<1x64xf32>
    %1903 = arith.minimumf %1902, %62 : vector<1x64xf32>
    %1904 = vector.broadcast %1883 : vector<1x1xf32> to vector<1x64xf32>
    %1905 = arith.maximumf %1904, %48 : vector<1x64xf32>
    %1906 = arith.subf %1903, %1905 : vector<1x64xf32>
    %cst_369 = arith.constant 0.000000e+00 : f32
    %1907 = vector.broadcast %cst_369 : f32 to vector<1x64xf32>
    %1908 = arith.maximumf %1906, %1907 : vector<1x64xf32>
    %1909 = arith.mulf %1901, %1908 : vector<1x64xf32>
    %1910 = vector.broadcast %1886 : vector<1x1xf32> to vector<1x64xf32>
    %1911 = arith.addf %1910, %65 : vector<1x64xf32>
    %1912 = arith.subf %1911, %1909 : vector<1x64xf32>
    %cst_370 = arith.constant 9.99999993E-9 : f32
    %1913 = vector.broadcast %cst_370 : f32 to vector<1x64xf32>
    %1914 = arith.addf %1912, %1913 : vector<1x64xf32>
    %1915 = tpu.reciprocal %1914 {approx = true} : vector<1x64xf32> -> vector<1x64xf32>
    %1916 = arith.mulf %1909, %1915 : vector<1x64xf32>
    %cst_371 = arith.constant 5.000000e-01 : f32
    %1917 = vector.broadcast %cst_371 : f32 to vector<1x1xf32>
    %1918 = arith.cmpf ogt, %1894, %1917 : vector<1x1xf32>
    %cst_372 = arith.constant 5.000000e-01 : f32
    %1919 = vector.broadcast %cst_372 : f32 to vector<1x64xf32>
    %1920 = arith.cmpf ogt, %1916, %1919 : vector<1x64xf32>
    %1921 = vector.broadcast %1918 : vector<1x1xi1> to vector<1x64xi1>
    %1922 = arith.andi %1921, %1920 : vector<1x64xi1>
    %1923 = vector.broadcast %c34_i32 : i32 to vector<1x64xi32>
    %1924 = arith.cmpi sgt, %68, %1923 : vector<1x64xi32>
    %1925 = arith.andi %1922, %1924 : vector<1x64xi1>
    %1926 = arith.extui %1925 : vector<1x64xi1> to vector<1x64xi32>
    %1927 = arith.sitofp %1926 : vector<1x64xi32> to vector<1x64xf32>
    %1928 = arith.maximumf %1875, %1927 : vector<1x64xf32>
    %c35_i32 = arith.constant 35 : i32
    %1929 = vector.broadcast %c35_i32 : i32 to vector<5x64xi32>
    %1930 = arith.cmpi eq, %70, %1929 : vector<5x64xi32>
    %cst_373 = arith.constant 0.000000e+00 : f32
    %1931 = vector.broadcast %cst_373 : f32 to vector<5x64xf32>
    %1932 = arith.select %1930, %69, %1931 : vector<5x64xi1>, vector<5x64xf32>
    %cst_374 = arith.constant dense<0.000000e+00> : vector<5xf32>
    %1933 = vector.multi_reduction <add>, %1932, %cst_374 [1] : vector<5x64xf32> to vector<5xf32>
    %1934 = vector.shape_cast %1933 : vector<5xf32> to vector<5x1xf32>
    %1935 = vector.extract_strided_slice %1934 {offsets = [0, 0], sizes = [1, 1], strides = [1, 1]} : vector<5x1xf32> to vector<1x1xf32>
    %1936 = vector.extract_strided_slice %1934 {offsets = [1, 0], sizes = [1, 1], strides = [1, 1]} : vector<5x1xf32> to vector<1x1xf32>
    %1937 = vector.extract_strided_slice %1934 {offsets = [2, 0], sizes = [1, 1], strides = [1, 1]} : vector<5x1xf32> to vector<1x1xf32>
    %1938 = vector.extract_strided_slice %1934 {offsets = [3, 0], sizes = [1, 1], strides = [1, 1]} : vector<5x1xf32> to vector<1x1xf32>
    %1939 = vector.extract_strided_slice %1934 {offsets = [4, 0], sizes = [1, 1], strides = [1, 1]} : vector<5x1xf32> to vector<1x1xf32>
    %1940 = vector.broadcast %c35_i32 : i32 to vector<1x64xi32>
    %1941 = arith.cmpi eq, %68, %1940 : vector<1x64xi32>
    %cst_375 = arith.constant 1.000000e+00 : f32
    %1942 = vector.broadcast %cst_375 : f32 to vector<1x64xf32>
    %1943 = arith.subf %1942, %1928 : vector<1x64xf32>
    %cst_376 = arith.constant 0.000000e+00 : f32
    %1944 = vector.broadcast %cst_376 : f32 to vector<1x64xf32>
    %1945 = arith.select %1941, %1943, %1944 : vector<1x64xi1>, vector<1x64xf32>
    %cst_377 = arith.constant dense<0xFF800000> : vector<1xf32>
    %1946 = vector.multi_reduction <maximumf>, %1945, %cst_377 [1] : vector<1x64xf32> to vector<1xf32>
    %1947 = vector.shape_cast %1946 : vector<1xf32> to vector<1x1xf32>
    %1948 = vector.broadcast %1937 : vector<1x1xf32> to vector<1x64xf32>
    %1949 = arith.minimumf %1948, %55 : vector<1x64xf32>
    %1950 = vector.broadcast %1935 : vector<1x1xf32> to vector<1x64xf32>
    %1951 = arith.maximumf %1950, %41 : vector<1x64xf32>
    %1952 = arith.subf %1949, %1951 : vector<1x64xf32>
    %cst_378 = arith.constant 0.000000e+00 : f32
    %1953 = vector.broadcast %cst_378 : f32 to vector<1x64xf32>
    %1954 = arith.maximumf %1952, %1953 : vector<1x64xf32>
    %1955 = vector.broadcast %1938 : vector<1x1xf32> to vector<1x64xf32>
    %1956 = arith.minimumf %1955, %62 : vector<1x64xf32>
    %1957 = vector.broadcast %1936 : vector<1x1xf32> to vector<1x64xf32>
    %1958 = arith.maximumf %1957, %48 : vector<1x64xf32>
    %1959 = arith.subf %1956, %1958 : vector<1x64xf32>
    %cst_379 = arith.constant 0.000000e+00 : f32
    %1960 = vector.broadcast %cst_379 : f32 to vector<1x64xf32>
    %1961 = arith.maximumf %1959, %1960 : vector<1x64xf32>
    %1962 = arith.mulf %1954, %1961 : vector<1x64xf32>
    %1963 = vector.broadcast %1939 : vector<1x1xf32> to vector<1x64xf32>
    %1964 = arith.addf %1963, %65 : vector<1x64xf32>
    %1965 = arith.subf %1964, %1962 : vector<1x64xf32>
    %cst_380 = arith.constant 9.99999993E-9 : f32
    %1966 = vector.broadcast %cst_380 : f32 to vector<1x64xf32>
    %1967 = arith.addf %1965, %1966 : vector<1x64xf32>
    %1968 = tpu.reciprocal %1967 {approx = true} : vector<1x64xf32> -> vector<1x64xf32>
    %1969 = arith.mulf %1962, %1968 : vector<1x64xf32>
    %cst_381 = arith.constant 5.000000e-01 : f32
    %1970 = vector.broadcast %cst_381 : f32 to vector<1x1xf32>
    %1971 = arith.cmpf ogt, %1947, %1970 : vector<1x1xf32>
    %cst_382 = arith.constant 5.000000e-01 : f32
    %1972 = vector.broadcast %cst_382 : f32 to vector<1x64xf32>
    %1973 = arith.cmpf ogt, %1969, %1972 : vector<1x64xf32>
    %1974 = vector.broadcast %1971 : vector<1x1xi1> to vector<1x64xi1>
    %1975 = arith.andi %1974, %1973 : vector<1x64xi1>
    %1976 = vector.broadcast %c35_i32 : i32 to vector<1x64xi32>
    %1977 = arith.cmpi sgt, %68, %1976 : vector<1x64xi32>
    %1978 = arith.andi %1975, %1977 : vector<1x64xi1>
    %1979 = arith.extui %1978 : vector<1x64xi1> to vector<1x64xi32>
    %1980 = arith.sitofp %1979 : vector<1x64xi32> to vector<1x64xf32>
    %1981 = arith.maximumf %1928, %1980 : vector<1x64xf32>
    %c36_i32 = arith.constant 36 : i32
    %1982 = vector.broadcast %c36_i32 : i32 to vector<5x64xi32>
    %1983 = arith.cmpi eq, %70, %1982 : vector<5x64xi32>
    %cst_383 = arith.constant 0.000000e+00 : f32
    %1984 = vector.broadcast %cst_383 : f32 to vector<5x64xf32>
    %1985 = arith.select %1983, %69, %1984 : vector<5x64xi1>, vector<5x64xf32>
    %cst_384 = arith.constant dense<0.000000e+00> : vector<5xf32>
    %1986 = vector.multi_reduction <add>, %1985, %cst_384 [1] : vector<5x64xf32> to vector<5xf32>
    %1987 = vector.shape_cast %1986 : vector<5xf32> to vector<5x1xf32>
    %1988 = vector.extract_strided_slice %1987 {offsets = [0, 0], sizes = [1, 1], strides = [1, 1]} : vector<5x1xf32> to vector<1x1xf32>
    %1989 = vector.extract_strided_slice %1987 {offsets = [1, 0], sizes = [1, 1], strides = [1, 1]} : vector<5x1xf32> to vector<1x1xf32>
    %1990 = vector.extract_strided_slice %1987 {offsets = [2, 0], sizes = [1, 1], strides = [1, 1]} : vector<5x1xf32> to vector<1x1xf32>
    %1991 = vector.extract_strided_slice %1987 {offsets = [3, 0], sizes = [1, 1], strides = [1, 1]} : vector<5x1xf32> to vector<1x1xf32>
    %1992 = vector.extract_strided_slice %1987 {offsets = [4, 0], sizes = [1, 1], strides = [1, 1]} : vector<5x1xf32> to vector<1x1xf32>
    %1993 = vector.broadcast %c36_i32 : i32 to vector<1x64xi32>
    %1994 = arith.cmpi eq, %68, %1993 : vector<1x64xi32>
    %cst_385 = arith.constant 1.000000e+00 : f32
    %1995 = vector.broadcast %cst_385 : f32 to vector<1x64xf32>
    %1996 = arith.subf %1995, %1981 : vector<1x64xf32>
    %cst_386 = arith.constant 0.000000e+00 : f32
    %1997 = vector.broadcast %cst_386 : f32 to vector<1x64xf32>
    %1998 = arith.select %1994, %1996, %1997 : vector<1x64xi1>, vector<1x64xf32>
    %cst_387 = arith.constant dense<0xFF800000> : vector<1xf32>
    %1999 = vector.multi_reduction <maximumf>, %1998, %cst_387 [1] : vector<1x64xf32> to vector<1xf32>
    %2000 = vector.shape_cast %1999 : vector<1xf32> to vector<1x1xf32>
    %2001 = vector.broadcast %1990 : vector<1x1xf32> to vector<1x64xf32>
    %2002 = arith.minimumf %2001, %55 : vector<1x64xf32>
    %2003 = vector.broadcast %1988 : vector<1x1xf32> to vector<1x64xf32>
    %2004 = arith.maximumf %2003, %41 : vector<1x64xf32>
    %2005 = arith.subf %2002, %2004 : vector<1x64xf32>
    %cst_388 = arith.constant 0.000000e+00 : f32
    %2006 = vector.broadcast %cst_388 : f32 to vector<1x64xf32>
    %2007 = arith.maximumf %2005, %2006 : vector<1x64xf32>
    %2008 = vector.broadcast %1991 : vector<1x1xf32> to vector<1x64xf32>
    %2009 = arith.minimumf %2008, %62 : vector<1x64xf32>
    %2010 = vector.broadcast %1989 : vector<1x1xf32> to vector<1x64xf32>
    %2011 = arith.maximumf %2010, %48 : vector<1x64xf32>
    %2012 = arith.subf %2009, %2011 : vector<1x64xf32>
    %cst_389 = arith.constant 0.000000e+00 : f32
    %2013 = vector.broadcast %cst_389 : f32 to vector<1x64xf32>
    %2014 = arith.maximumf %2012, %2013 : vector<1x64xf32>
    %2015 = arith.mulf %2007, %2014 : vector<1x64xf32>
    %2016 = vector.broadcast %1992 : vector<1x1xf32> to vector<1x64xf32>
    %2017 = arith.addf %2016, %65 : vector<1x64xf32>
    %2018 = arith.subf %2017, %2015 : vector<1x64xf32>
    %cst_390 = arith.constant 9.99999993E-9 : f32
    %2019 = vector.broadcast %cst_390 : f32 to vector<1x64xf32>
    %2020 = arith.addf %2018, %2019 : vector<1x64xf32>
    %2021 = tpu.reciprocal %2020 {approx = true} : vector<1x64xf32> -> vector<1x64xf32>
    %2022 = arith.mulf %2015, %2021 : vector<1x64xf32>
    %cst_391 = arith.constant 5.000000e-01 : f32
    %2023 = vector.broadcast %cst_391 : f32 to vector<1x1xf32>
    %2024 = arith.cmpf ogt, %2000, %2023 : vector<1x1xf32>
    %cst_392 = arith.constant 5.000000e-01 : f32
    %2025 = vector.broadcast %cst_392 : f32 to vector<1x64xf32>
    %2026 = arith.cmpf ogt, %2022, %2025 : vector<1x64xf32>
    %2027 = vector.broadcast %2024 : vector<1x1xi1> to vector<1x64xi1>
    %2028 = arith.andi %2027, %2026 : vector<1x64xi1>
    %2029 = vector.broadcast %c36_i32 : i32 to vector<1x64xi32>
    %2030 = arith.cmpi sgt, %68, %2029 : vector<1x64xi32>
    %2031 = arith.andi %2028, %2030 : vector<1x64xi1>
    %2032 = arith.extui %2031 : vector<1x64xi1> to vector<1x64xi32>
    %2033 = arith.sitofp %2032 : vector<1x64xi32> to vector<1x64xf32>
    %2034 = arith.maximumf %1981, %2033 : vector<1x64xf32>
    %c37_i32 = arith.constant 37 : i32
    %2035 = vector.broadcast %c37_i32 : i32 to vector<5x64xi32>
    %2036 = arith.cmpi eq, %70, %2035 : vector<5x64xi32>
    %cst_393 = arith.constant 0.000000e+00 : f32
    %2037 = vector.broadcast %cst_393 : f32 to vector<5x64xf32>
    %2038 = arith.select %2036, %69, %2037 : vector<5x64xi1>, vector<5x64xf32>
    %cst_394 = arith.constant dense<0.000000e+00> : vector<5xf32>
    %2039 = vector.multi_reduction <add>, %2038, %cst_394 [1] : vector<5x64xf32> to vector<5xf32>
    %2040 = vector.shape_cast %2039 : vector<5xf32> to vector<5x1xf32>
    %2041 = vector.extract_strided_slice %2040 {offsets = [0, 0], sizes = [1, 1], strides = [1, 1]} : vector<5x1xf32> to vector<1x1xf32>
    %2042 = vector.extract_strided_slice %2040 {offsets = [1, 0], sizes = [1, 1], strides = [1, 1]} : vector<5x1xf32> to vector<1x1xf32>
    %2043 = vector.extract_strided_slice %2040 {offsets = [2, 0], sizes = [1, 1], strides = [1, 1]} : vector<5x1xf32> to vector<1x1xf32>
    %2044 = vector.extract_strided_slice %2040 {offsets = [3, 0], sizes = [1, 1], strides = [1, 1]} : vector<5x1xf32> to vector<1x1xf32>
    %2045 = vector.extract_strided_slice %2040 {offsets = [4, 0], sizes = [1, 1], strides = [1, 1]} : vector<5x1xf32> to vector<1x1xf32>
    %2046 = vector.broadcast %c37_i32 : i32 to vector<1x64xi32>
    %2047 = arith.cmpi eq, %68, %2046 : vector<1x64xi32>
    %cst_395 = arith.constant 1.000000e+00 : f32
    %2048 = vector.broadcast %cst_395 : f32 to vector<1x64xf32>
    %2049 = arith.subf %2048, %2034 : vector<1x64xf32>
    %cst_396 = arith.constant 0.000000e+00 : f32
    %2050 = vector.broadcast %cst_396 : f32 to vector<1x64xf32>
    %2051 = arith.select %2047, %2049, %2050 : vector<1x64xi1>, vector<1x64xf32>
    %cst_397 = arith.constant dense<0xFF800000> : vector<1xf32>
    %2052 = vector.multi_reduction <maximumf>, %2051, %cst_397 [1] : vector<1x64xf32> to vector<1xf32>
    %2053 = vector.shape_cast %2052 : vector<1xf32> to vector<1x1xf32>
    %2054 = vector.broadcast %2043 : vector<1x1xf32> to vector<1x64xf32>
    %2055 = arith.minimumf %2054, %55 : vector<1x64xf32>
    %2056 = vector.broadcast %2041 : vector<1x1xf32> to vector<1x64xf32>
    %2057 = arith.maximumf %2056, %41 : vector<1x64xf32>
    %2058 = arith.subf %2055, %2057 : vector<1x64xf32>
    %cst_398 = arith.constant 0.000000e+00 : f32
    %2059 = vector.broadcast %cst_398 : f32 to vector<1x64xf32>
    %2060 = arith.maximumf %2058, %2059 : vector<1x64xf32>
    %2061 = vector.broadcast %2044 : vector<1x1xf32> to vector<1x64xf32>
    %2062 = arith.minimumf %2061, %62 : vector<1x64xf32>
    %2063 = vector.broadcast %2042 : vector<1x1xf32> to vector<1x64xf32>
    %2064 = arith.maximumf %2063, %48 : vector<1x64xf32>
    %2065 = arith.subf %2062, %2064 : vector<1x64xf32>
    %cst_399 = arith.constant 0.000000e+00 : f32
    %2066 = vector.broadcast %cst_399 : f32 to vector<1x64xf32>
    %2067 = arith.maximumf %2065, %2066 : vector<1x64xf32>
    %2068 = arith.mulf %2060, %2067 : vector<1x64xf32>
    %2069 = vector.broadcast %2045 : vector<1x1xf32> to vector<1x64xf32>
    %2070 = arith.addf %2069, %65 : vector<1x64xf32>
    %2071 = arith.subf %2070, %2068 : vector<1x64xf32>
    %cst_400 = arith.constant 9.99999993E-9 : f32
    %2072 = vector.broadcast %cst_400 : f32 to vector<1x64xf32>
    %2073 = arith.addf %2071, %2072 : vector<1x64xf32>
    %2074 = tpu.reciprocal %2073 {approx = true} : vector<1x64xf32> -> vector<1x64xf32>
    %2075 = arith.mulf %2068, %2074 : vector<1x64xf32>
    %cst_401 = arith.constant 5.000000e-01 : f32
    %2076 = vector.broadcast %cst_401 : f32 to vector<1x1xf32>
    %2077 = arith.cmpf ogt, %2053, %2076 : vector<1x1xf32>
    %cst_402 = arith.constant 5.000000e-01 : f32
    %2078 = vector.broadcast %cst_402 : f32 to vector<1x64xf32>
    %2079 = arith.cmpf ogt, %2075, %2078 : vector<1x64xf32>
    %2080 = vector.broadcast %2077 : vector<1x1xi1> to vector<1x64xi1>
    %2081 = arith.andi %2080, %2079 : vector<1x64xi1>
    %2082 = vector.broadcast %c37_i32 : i32 to vector<1x64xi32>
    %2083 = arith.cmpi sgt, %68, %2082 : vector<1x64xi32>
    %2084 = arith.andi %2081, %2083 : vector<1x64xi1>
    %2085 = arith.extui %2084 : vector<1x64xi1> to vector<1x64xi32>
    %2086 = arith.sitofp %2085 : vector<1x64xi32> to vector<1x64xf32>
    %2087 = arith.maximumf %2034, %2086 : vector<1x64xf32>
    %c38_i32 = arith.constant 38 : i32
    %2088 = vector.broadcast %c38_i32 : i32 to vector<5x64xi32>
    %2089 = arith.cmpi eq, %70, %2088 : vector<5x64xi32>
    %cst_403 = arith.constant 0.000000e+00 : f32
    %2090 = vector.broadcast %cst_403 : f32 to vector<5x64xf32>
    %2091 = arith.select %2089, %69, %2090 : vector<5x64xi1>, vector<5x64xf32>
    %cst_404 = arith.constant dense<0.000000e+00> : vector<5xf32>
    %2092 = vector.multi_reduction <add>, %2091, %cst_404 [1] : vector<5x64xf32> to vector<5xf32>
    %2093 = vector.shape_cast %2092 : vector<5xf32> to vector<5x1xf32>
    %2094 = vector.extract_strided_slice %2093 {offsets = [0, 0], sizes = [1, 1], strides = [1, 1]} : vector<5x1xf32> to vector<1x1xf32>
    %2095 = vector.extract_strided_slice %2093 {offsets = [1, 0], sizes = [1, 1], strides = [1, 1]} : vector<5x1xf32> to vector<1x1xf32>
    %2096 = vector.extract_strided_slice %2093 {offsets = [2, 0], sizes = [1, 1], strides = [1, 1]} : vector<5x1xf32> to vector<1x1xf32>
    %2097 = vector.extract_strided_slice %2093 {offsets = [3, 0], sizes = [1, 1], strides = [1, 1]} : vector<5x1xf32> to vector<1x1xf32>
    %2098 = vector.extract_strided_slice %2093 {offsets = [4, 0], sizes = [1, 1], strides = [1, 1]} : vector<5x1xf32> to vector<1x1xf32>
    %2099 = vector.broadcast %c38_i32 : i32 to vector<1x64xi32>
    %2100 = arith.cmpi eq, %68, %2099 : vector<1x64xi32>
    %cst_405 = arith.constant 1.000000e+00 : f32
    %2101 = vector.broadcast %cst_405 : f32 to vector<1x64xf32>
    %2102 = arith.subf %2101, %2087 : vector<1x64xf32>
    %cst_406 = arith.constant 0.000000e+00 : f32
    %2103 = vector.broadcast %cst_406 : f32 to vector<1x64xf32>
    %2104 = arith.select %2100, %2102, %2103 : vector<1x64xi1>, vector<1x64xf32>
    %cst_407 = arith.constant dense<0xFF800000> : vector<1xf32>
    %2105 = vector.multi_reduction <maximumf>, %2104, %cst_407 [1] : vector<1x64xf32> to vector<1xf32>
    %2106 = vector.shape_cast %2105 : vector<1xf32> to vector<1x1xf32>
    %2107 = vector.broadcast %2096 : vector<1x1xf32> to vector<1x64xf32>
    %2108 = arith.minimumf %2107, %55 : vector<1x64xf32>
    %2109 = vector.broadcast %2094 : vector<1x1xf32> to vector<1x64xf32>
    %2110 = arith.maximumf %2109, %41 : vector<1x64xf32>
    %2111 = arith.subf %2108, %2110 : vector<1x64xf32>
    %cst_408 = arith.constant 0.000000e+00 : f32
    %2112 = vector.broadcast %cst_408 : f32 to vector<1x64xf32>
    %2113 = arith.maximumf %2111, %2112 : vector<1x64xf32>
    %2114 = vector.broadcast %2097 : vector<1x1xf32> to vector<1x64xf32>
    %2115 = arith.minimumf %2114, %62 : vector<1x64xf32>
    %2116 = vector.broadcast %2095 : vector<1x1xf32> to vector<1x64xf32>
    %2117 = arith.maximumf %2116, %48 : vector<1x64xf32>
    %2118 = arith.subf %2115, %2117 : vector<1x64xf32>
    %cst_409 = arith.constant 0.000000e+00 : f32
    %2119 = vector.broadcast %cst_409 : f32 to vector<1x64xf32>
    %2120 = arith.maximumf %2118, %2119 : vector<1x64xf32>
    %2121 = arith.mulf %2113, %2120 : vector<1x64xf32>
    %2122 = vector.broadcast %2098 : vector<1x1xf32> to vector<1x64xf32>
    %2123 = arith.addf %2122, %65 : vector<1x64xf32>
    %2124 = arith.subf %2123, %2121 : vector<1x64xf32>
    %cst_410 = arith.constant 9.99999993E-9 : f32
    %2125 = vector.broadcast %cst_410 : f32 to vector<1x64xf32>
    %2126 = arith.addf %2124, %2125 : vector<1x64xf32>
    %2127 = tpu.reciprocal %2126 {approx = true} : vector<1x64xf32> -> vector<1x64xf32>
    %2128 = arith.mulf %2121, %2127 : vector<1x64xf32>
    %cst_411 = arith.constant 5.000000e-01 : f32
    %2129 = vector.broadcast %cst_411 : f32 to vector<1x1xf32>
    %2130 = arith.cmpf ogt, %2106, %2129 : vector<1x1xf32>
    %cst_412 = arith.constant 5.000000e-01 : f32
    %2131 = vector.broadcast %cst_412 : f32 to vector<1x64xf32>
    %2132 = arith.cmpf ogt, %2128, %2131 : vector<1x64xf32>
    %2133 = vector.broadcast %2130 : vector<1x1xi1> to vector<1x64xi1>
    %2134 = arith.andi %2133, %2132 : vector<1x64xi1>
    %2135 = vector.broadcast %c38_i32 : i32 to vector<1x64xi32>
    %2136 = arith.cmpi sgt, %68, %2135 : vector<1x64xi32>
    %2137 = arith.andi %2134, %2136 : vector<1x64xi1>
    %2138 = arith.extui %2137 : vector<1x64xi1> to vector<1x64xi32>
    %2139 = arith.sitofp %2138 : vector<1x64xi32> to vector<1x64xf32>
    %2140 = arith.maximumf %2087, %2139 : vector<1x64xf32>
    %c39_i32 = arith.constant 39 : i32
    %2141 = vector.broadcast %c39_i32 : i32 to vector<5x64xi32>
    %2142 = arith.cmpi eq, %70, %2141 : vector<5x64xi32>
    %cst_413 = arith.constant 0.000000e+00 : f32
    %2143 = vector.broadcast %cst_413 : f32 to vector<5x64xf32>
    %2144 = arith.select %2142, %69, %2143 : vector<5x64xi1>, vector<5x64xf32>
    %cst_414 = arith.constant dense<0.000000e+00> : vector<5xf32>
    %2145 = vector.multi_reduction <add>, %2144, %cst_414 [1] : vector<5x64xf32> to vector<5xf32>
    %2146 = vector.shape_cast %2145 : vector<5xf32> to vector<5x1xf32>
    %2147 = vector.extract_strided_slice %2146 {offsets = [0, 0], sizes = [1, 1], strides = [1, 1]} : vector<5x1xf32> to vector<1x1xf32>
    %2148 = vector.extract_strided_slice %2146 {offsets = [1, 0], sizes = [1, 1], strides = [1, 1]} : vector<5x1xf32> to vector<1x1xf32>
    %2149 = vector.extract_strided_slice %2146 {offsets = [2, 0], sizes = [1, 1], strides = [1, 1]} : vector<5x1xf32> to vector<1x1xf32>
    %2150 = vector.extract_strided_slice %2146 {offsets = [3, 0], sizes = [1, 1], strides = [1, 1]} : vector<5x1xf32> to vector<1x1xf32>
    %2151 = vector.extract_strided_slice %2146 {offsets = [4, 0], sizes = [1, 1], strides = [1, 1]} : vector<5x1xf32> to vector<1x1xf32>
    %2152 = vector.broadcast %c39_i32 : i32 to vector<1x64xi32>
    %2153 = arith.cmpi eq, %68, %2152 : vector<1x64xi32>
    %cst_415 = arith.constant 1.000000e+00 : f32
    %2154 = vector.broadcast %cst_415 : f32 to vector<1x64xf32>
    %2155 = arith.subf %2154, %2140 : vector<1x64xf32>
    %cst_416 = arith.constant 0.000000e+00 : f32
    %2156 = vector.broadcast %cst_416 : f32 to vector<1x64xf32>
    %2157 = arith.select %2153, %2155, %2156 : vector<1x64xi1>, vector<1x64xf32>
    %cst_417 = arith.constant dense<0xFF800000> : vector<1xf32>
    %2158 = vector.multi_reduction <maximumf>, %2157, %cst_417 [1] : vector<1x64xf32> to vector<1xf32>
    %2159 = vector.shape_cast %2158 : vector<1xf32> to vector<1x1xf32>
    %2160 = vector.broadcast %2149 : vector<1x1xf32> to vector<1x64xf32>
    %2161 = arith.minimumf %2160, %55 : vector<1x64xf32>
    %2162 = vector.broadcast %2147 : vector<1x1xf32> to vector<1x64xf32>
    %2163 = arith.maximumf %2162, %41 : vector<1x64xf32>
    %2164 = arith.subf %2161, %2163 : vector<1x64xf32>
    %cst_418 = arith.constant 0.000000e+00 : f32
    %2165 = vector.broadcast %cst_418 : f32 to vector<1x64xf32>
    %2166 = arith.maximumf %2164, %2165 : vector<1x64xf32>
    %2167 = vector.broadcast %2150 : vector<1x1xf32> to vector<1x64xf32>
    %2168 = arith.minimumf %2167, %62 : vector<1x64xf32>
    %2169 = vector.broadcast %2148 : vector<1x1xf32> to vector<1x64xf32>
    %2170 = arith.maximumf %2169, %48 : vector<1x64xf32>
    %2171 = arith.subf %2168, %2170 : vector<1x64xf32>
    %cst_419 = arith.constant 0.000000e+00 : f32
    %2172 = vector.broadcast %cst_419 : f32 to vector<1x64xf32>
    %2173 = arith.maximumf %2171, %2172 : vector<1x64xf32>
    %2174 = arith.mulf %2166, %2173 : vector<1x64xf32>
    %2175 = vector.broadcast %2151 : vector<1x1xf32> to vector<1x64xf32>
    %2176 = arith.addf %2175, %65 : vector<1x64xf32>
    %2177 = arith.subf %2176, %2174 : vector<1x64xf32>
    %cst_420 = arith.constant 9.99999993E-9 : f32
    %2178 = vector.broadcast %cst_420 : f32 to vector<1x64xf32>
    %2179 = arith.addf %2177, %2178 : vector<1x64xf32>
    %2180 = tpu.reciprocal %2179 {approx = true} : vector<1x64xf32> -> vector<1x64xf32>
    %2181 = arith.mulf %2174, %2180 : vector<1x64xf32>
    %cst_421 = arith.constant 5.000000e-01 : f32
    %2182 = vector.broadcast %cst_421 : f32 to vector<1x1xf32>
    %2183 = arith.cmpf ogt, %2159, %2182 : vector<1x1xf32>
    %cst_422 = arith.constant 5.000000e-01 : f32
    %2184 = vector.broadcast %cst_422 : f32 to vector<1x64xf32>
    %2185 = arith.cmpf ogt, %2181, %2184 : vector<1x64xf32>
    %2186 = vector.broadcast %2183 : vector<1x1xi1> to vector<1x64xi1>
    %2187 = arith.andi %2186, %2185 : vector<1x64xi1>
    %2188 = vector.broadcast %c39_i32 : i32 to vector<1x64xi32>
    %2189 = arith.cmpi sgt, %68, %2188 : vector<1x64xi32>
    %2190 = arith.andi %2187, %2189 : vector<1x64xi1>
    %2191 = arith.extui %2190 : vector<1x64xi1> to vector<1x64xi32>
    %2192 = arith.sitofp %2191 : vector<1x64xi32> to vector<1x64xf32>
    %2193 = arith.maximumf %2140, %2192 : vector<1x64xf32>
    %c40_i32 = arith.constant 40 : i32
    %2194 = vector.broadcast %c40_i32 : i32 to vector<5x64xi32>
    %2195 = arith.cmpi eq, %70, %2194 : vector<5x64xi32>
    %cst_423 = arith.constant 0.000000e+00 : f32
    %2196 = vector.broadcast %cst_423 : f32 to vector<5x64xf32>
    %2197 = arith.select %2195, %69, %2196 : vector<5x64xi1>, vector<5x64xf32>
    %cst_424 = arith.constant dense<0.000000e+00> : vector<5xf32>
    %2198 = vector.multi_reduction <add>, %2197, %cst_424 [1] : vector<5x64xf32> to vector<5xf32>
    %2199 = vector.shape_cast %2198 : vector<5xf32> to vector<5x1xf32>
    %2200 = vector.extract_strided_slice %2199 {offsets = [0, 0], sizes = [1, 1], strides = [1, 1]} : vector<5x1xf32> to vector<1x1xf32>
    %2201 = vector.extract_strided_slice %2199 {offsets = [1, 0], sizes = [1, 1], strides = [1, 1]} : vector<5x1xf32> to vector<1x1xf32>
    %2202 = vector.extract_strided_slice %2199 {offsets = [2, 0], sizes = [1, 1], strides = [1, 1]} : vector<5x1xf32> to vector<1x1xf32>
    %2203 = vector.extract_strided_slice %2199 {offsets = [3, 0], sizes = [1, 1], strides = [1, 1]} : vector<5x1xf32> to vector<1x1xf32>
    %2204 = vector.extract_strided_slice %2199 {offsets = [4, 0], sizes = [1, 1], strides = [1, 1]} : vector<5x1xf32> to vector<1x1xf32>
    %2205 = vector.broadcast %c40_i32 : i32 to vector<1x64xi32>
    %2206 = arith.cmpi eq, %68, %2205 : vector<1x64xi32>
    %cst_425 = arith.constant 1.000000e+00 : f32
    %2207 = vector.broadcast %cst_425 : f32 to vector<1x64xf32>
    %2208 = arith.subf %2207, %2193 : vector<1x64xf32>
    %cst_426 = arith.constant 0.000000e+00 : f32
    %2209 = vector.broadcast %cst_426 : f32 to vector<1x64xf32>
    %2210 = arith.select %2206, %2208, %2209 : vector<1x64xi1>, vector<1x64xf32>
    %cst_427 = arith.constant dense<0xFF800000> : vector<1xf32>
    %2211 = vector.multi_reduction <maximumf>, %2210, %cst_427 [1] : vector<1x64xf32> to vector<1xf32>
    %2212 = vector.shape_cast %2211 : vector<1xf32> to vector<1x1xf32>
    %2213 = vector.broadcast %2202 : vector<1x1xf32> to vector<1x64xf32>
    %2214 = arith.minimumf %2213, %55 : vector<1x64xf32>
    %2215 = vector.broadcast %2200 : vector<1x1xf32> to vector<1x64xf32>
    %2216 = arith.maximumf %2215, %41 : vector<1x64xf32>
    %2217 = arith.subf %2214, %2216 : vector<1x64xf32>
    %cst_428 = arith.constant 0.000000e+00 : f32
    %2218 = vector.broadcast %cst_428 : f32 to vector<1x64xf32>
    %2219 = arith.maximumf %2217, %2218 : vector<1x64xf32>
    %2220 = vector.broadcast %2203 : vector<1x1xf32> to vector<1x64xf32>
    %2221 = arith.minimumf %2220, %62 : vector<1x64xf32>
    %2222 = vector.broadcast %2201 : vector<1x1xf32> to vector<1x64xf32>
    %2223 = arith.maximumf %2222, %48 : vector<1x64xf32>
    %2224 = arith.subf %2221, %2223 : vector<1x64xf32>
    %cst_429 = arith.constant 0.000000e+00 : f32
    %2225 = vector.broadcast %cst_429 : f32 to vector<1x64xf32>
    %2226 = arith.maximumf %2224, %2225 : vector<1x64xf32>
    %2227 = arith.mulf %2219, %2226 : vector<1x64xf32>
    %2228 = vector.broadcast %2204 : vector<1x1xf32> to vector<1x64xf32>
    %2229 = arith.addf %2228, %65 : vector<1x64xf32>
    %2230 = arith.subf %2229, %2227 : vector<1x64xf32>
    %cst_430 = arith.constant 9.99999993E-9 : f32
    %2231 = vector.broadcast %cst_430 : f32 to vector<1x64xf32>
    %2232 = arith.addf %2230, %2231 : vector<1x64xf32>
    %2233 = tpu.reciprocal %2232 {approx = true} : vector<1x64xf32> -> vector<1x64xf32>
    %2234 = arith.mulf %2227, %2233 : vector<1x64xf32>
    %cst_431 = arith.constant 5.000000e-01 : f32
    %2235 = vector.broadcast %cst_431 : f32 to vector<1x1xf32>
    %2236 = arith.cmpf ogt, %2212, %2235 : vector<1x1xf32>
    %cst_432 = arith.constant 5.000000e-01 : f32
    %2237 = vector.broadcast %cst_432 : f32 to vector<1x64xf32>
    %2238 = arith.cmpf ogt, %2234, %2237 : vector<1x64xf32>
    %2239 = vector.broadcast %2236 : vector<1x1xi1> to vector<1x64xi1>
    %2240 = arith.andi %2239, %2238 : vector<1x64xi1>
    %2241 = vector.broadcast %c40_i32 : i32 to vector<1x64xi32>
    %2242 = arith.cmpi sgt, %68, %2241 : vector<1x64xi32>
    %2243 = arith.andi %2240, %2242 : vector<1x64xi1>
    %2244 = arith.extui %2243 : vector<1x64xi1> to vector<1x64xi32>
    %2245 = arith.sitofp %2244 : vector<1x64xi32> to vector<1x64xf32>
    %2246 = arith.maximumf %2193, %2245 : vector<1x64xf32>
    %c41_i32 = arith.constant 41 : i32
    %2247 = vector.broadcast %c41_i32 : i32 to vector<5x64xi32>
    %2248 = arith.cmpi eq, %70, %2247 : vector<5x64xi32>
    %cst_433 = arith.constant 0.000000e+00 : f32
    %2249 = vector.broadcast %cst_433 : f32 to vector<5x64xf32>
    %2250 = arith.select %2248, %69, %2249 : vector<5x64xi1>, vector<5x64xf32>
    %cst_434 = arith.constant dense<0.000000e+00> : vector<5xf32>
    %2251 = vector.multi_reduction <add>, %2250, %cst_434 [1] : vector<5x64xf32> to vector<5xf32>
    %2252 = vector.shape_cast %2251 : vector<5xf32> to vector<5x1xf32>
    %2253 = vector.extract_strided_slice %2252 {offsets = [0, 0], sizes = [1, 1], strides = [1, 1]} : vector<5x1xf32> to vector<1x1xf32>
    %2254 = vector.extract_strided_slice %2252 {offsets = [1, 0], sizes = [1, 1], strides = [1, 1]} : vector<5x1xf32> to vector<1x1xf32>
    %2255 = vector.extract_strided_slice %2252 {offsets = [2, 0], sizes = [1, 1], strides = [1, 1]} : vector<5x1xf32> to vector<1x1xf32>
    %2256 = vector.extract_strided_slice %2252 {offsets = [3, 0], sizes = [1, 1], strides = [1, 1]} : vector<5x1xf32> to vector<1x1xf32>
    %2257 = vector.extract_strided_slice %2252 {offsets = [4, 0], sizes = [1, 1], strides = [1, 1]} : vector<5x1xf32> to vector<1x1xf32>
    %2258 = vector.broadcast %c41_i32 : i32 to vector<1x64xi32>
    %2259 = arith.cmpi eq, %68, %2258 : vector<1x64xi32>
    %cst_435 = arith.constant 1.000000e+00 : f32
    %2260 = vector.broadcast %cst_435 : f32 to vector<1x64xf32>
    %2261 = arith.subf %2260, %2246 : vector<1x64xf32>
    %cst_436 = arith.constant 0.000000e+00 : f32
    %2262 = vector.broadcast %cst_436 : f32 to vector<1x64xf32>
    %2263 = arith.select %2259, %2261, %2262 : vector<1x64xi1>, vector<1x64xf32>
    %cst_437 = arith.constant dense<0xFF800000> : vector<1xf32>
    %2264 = vector.multi_reduction <maximumf>, %2263, %cst_437 [1] : vector<1x64xf32> to vector<1xf32>
    %2265 = vector.shape_cast %2264 : vector<1xf32> to vector<1x1xf32>
    %2266 = vector.broadcast %2255 : vector<1x1xf32> to vector<1x64xf32>
    %2267 = arith.minimumf %2266, %55 : vector<1x64xf32>
    %2268 = vector.broadcast %2253 : vector<1x1xf32> to vector<1x64xf32>
    %2269 = arith.maximumf %2268, %41 : vector<1x64xf32>
    %2270 = arith.subf %2267, %2269 : vector<1x64xf32>
    %cst_438 = arith.constant 0.000000e+00 : f32
    %2271 = vector.broadcast %cst_438 : f32 to vector<1x64xf32>
    %2272 = arith.maximumf %2270, %2271 : vector<1x64xf32>
    %2273 = vector.broadcast %2256 : vector<1x1xf32> to vector<1x64xf32>
    %2274 = arith.minimumf %2273, %62 : vector<1x64xf32>
    %2275 = vector.broadcast %2254 : vector<1x1xf32> to vector<1x64xf32>
    %2276 = arith.maximumf %2275, %48 : vector<1x64xf32>
    %2277 = arith.subf %2274, %2276 : vector<1x64xf32>
    %cst_439 = arith.constant 0.000000e+00 : f32
    %2278 = vector.broadcast %cst_439 : f32 to vector<1x64xf32>
    %2279 = arith.maximumf %2277, %2278 : vector<1x64xf32>
    %2280 = arith.mulf %2272, %2279 : vector<1x64xf32>
    %2281 = vector.broadcast %2257 : vector<1x1xf32> to vector<1x64xf32>
    %2282 = arith.addf %2281, %65 : vector<1x64xf32>
    %2283 = arith.subf %2282, %2280 : vector<1x64xf32>
    %cst_440 = arith.constant 9.99999993E-9 : f32
    %2284 = vector.broadcast %cst_440 : f32 to vector<1x64xf32>
    %2285 = arith.addf %2283, %2284 : vector<1x64xf32>
    %2286 = tpu.reciprocal %2285 {approx = true} : vector<1x64xf32> -> vector<1x64xf32>
    %2287 = arith.mulf %2280, %2286 : vector<1x64xf32>
    %cst_441 = arith.constant 5.000000e-01 : f32
    %2288 = vector.broadcast %cst_441 : f32 to vector<1x1xf32>
    %2289 = arith.cmpf ogt, %2265, %2288 : vector<1x1xf32>
    %cst_442 = arith.constant 5.000000e-01 : f32
    %2290 = vector.broadcast %cst_442 : f32 to vector<1x64xf32>
    %2291 = arith.cmpf ogt, %2287, %2290 : vector<1x64xf32>
    %2292 = vector.broadcast %2289 : vector<1x1xi1> to vector<1x64xi1>
    %2293 = arith.andi %2292, %2291 : vector<1x64xi1>
    %2294 = vector.broadcast %c41_i32 : i32 to vector<1x64xi32>
    %2295 = arith.cmpi sgt, %68, %2294 : vector<1x64xi32>
    %2296 = arith.andi %2293, %2295 : vector<1x64xi1>
    %2297 = arith.extui %2296 : vector<1x64xi1> to vector<1x64xi32>
    %2298 = arith.sitofp %2297 : vector<1x64xi32> to vector<1x64xf32>
    %2299 = arith.maximumf %2246, %2298 : vector<1x64xf32>
    %c42_i32 = arith.constant 42 : i32
    %2300 = vector.broadcast %c42_i32 : i32 to vector<5x64xi32>
    %2301 = arith.cmpi eq, %70, %2300 : vector<5x64xi32>
    %cst_443 = arith.constant 0.000000e+00 : f32
    %2302 = vector.broadcast %cst_443 : f32 to vector<5x64xf32>
    %2303 = arith.select %2301, %69, %2302 : vector<5x64xi1>, vector<5x64xf32>
    %cst_444 = arith.constant dense<0.000000e+00> : vector<5xf32>
    %2304 = vector.multi_reduction <add>, %2303, %cst_444 [1] : vector<5x64xf32> to vector<5xf32>
    %2305 = vector.shape_cast %2304 : vector<5xf32> to vector<5x1xf32>
    %2306 = vector.extract_strided_slice %2305 {offsets = [0, 0], sizes = [1, 1], strides = [1, 1]} : vector<5x1xf32> to vector<1x1xf32>
    %2307 = vector.extract_strided_slice %2305 {offsets = [1, 0], sizes = [1, 1], strides = [1, 1]} : vector<5x1xf32> to vector<1x1xf32>
    %2308 = vector.extract_strided_slice %2305 {offsets = [2, 0], sizes = [1, 1], strides = [1, 1]} : vector<5x1xf32> to vector<1x1xf32>
    %2309 = vector.extract_strided_slice %2305 {offsets = [3, 0], sizes = [1, 1], strides = [1, 1]} : vector<5x1xf32> to vector<1x1xf32>
    %2310 = vector.extract_strided_slice %2305 {offsets = [4, 0], sizes = [1, 1], strides = [1, 1]} : vector<5x1xf32> to vector<1x1xf32>
    %2311 = vector.broadcast %c42_i32 : i32 to vector<1x64xi32>
    %2312 = arith.cmpi eq, %68, %2311 : vector<1x64xi32>
    %cst_445 = arith.constant 1.000000e+00 : f32
    %2313 = vector.broadcast %cst_445 : f32 to vector<1x64xf32>
    %2314 = arith.subf %2313, %2299 : vector<1x64xf32>
    %cst_446 = arith.constant 0.000000e+00 : f32
    %2315 = vector.broadcast %cst_446 : f32 to vector<1x64xf32>
    %2316 = arith.select %2312, %2314, %2315 : vector<1x64xi1>, vector<1x64xf32>
    %cst_447 = arith.constant dense<0xFF800000> : vector<1xf32>
    %2317 = vector.multi_reduction <maximumf>, %2316, %cst_447 [1] : vector<1x64xf32> to vector<1xf32>
    %2318 = vector.shape_cast %2317 : vector<1xf32> to vector<1x1xf32>
    %2319 = vector.broadcast %2308 : vector<1x1xf32> to vector<1x64xf32>
    %2320 = arith.minimumf %2319, %55 : vector<1x64xf32>
    %2321 = vector.broadcast %2306 : vector<1x1xf32> to vector<1x64xf32>
    %2322 = arith.maximumf %2321, %41 : vector<1x64xf32>
    %2323 = arith.subf %2320, %2322 : vector<1x64xf32>
    %cst_448 = arith.constant 0.000000e+00 : f32
    %2324 = vector.broadcast %cst_448 : f32 to vector<1x64xf32>
    %2325 = arith.maximumf %2323, %2324 : vector<1x64xf32>
    %2326 = vector.broadcast %2309 : vector<1x1xf32> to vector<1x64xf32>
    %2327 = arith.minimumf %2326, %62 : vector<1x64xf32>
    %2328 = vector.broadcast %2307 : vector<1x1xf32> to vector<1x64xf32>
    %2329 = arith.maximumf %2328, %48 : vector<1x64xf32>
    %2330 = arith.subf %2327, %2329 : vector<1x64xf32>
    %cst_449 = arith.constant 0.000000e+00 : f32
    %2331 = vector.broadcast %cst_449 : f32 to vector<1x64xf32>
    %2332 = arith.maximumf %2330, %2331 : vector<1x64xf32>
    %2333 = arith.mulf %2325, %2332 : vector<1x64xf32>
    %2334 = vector.broadcast %2310 : vector<1x1xf32> to vector<1x64xf32>
    %2335 = arith.addf %2334, %65 : vector<1x64xf32>
    %2336 = arith.subf %2335, %2333 : vector<1x64xf32>
    %cst_450 = arith.constant 9.99999993E-9 : f32
    %2337 = vector.broadcast %cst_450 : f32 to vector<1x64xf32>
    %2338 = arith.addf %2336, %2337 : vector<1x64xf32>
    %2339 = tpu.reciprocal %2338 {approx = true} : vector<1x64xf32> -> vector<1x64xf32>
    %2340 = arith.mulf %2333, %2339 : vector<1x64xf32>
    %cst_451 = arith.constant 5.000000e-01 : f32
    %2341 = vector.broadcast %cst_451 : f32 to vector<1x1xf32>
    %2342 = arith.cmpf ogt, %2318, %2341 : vector<1x1xf32>
    %cst_452 = arith.constant 5.000000e-01 : f32
    %2343 = vector.broadcast %cst_452 : f32 to vector<1x64xf32>
    %2344 = arith.cmpf ogt, %2340, %2343 : vector<1x64xf32>
    %2345 = vector.broadcast %2342 : vector<1x1xi1> to vector<1x64xi1>
    %2346 = arith.andi %2345, %2344 : vector<1x64xi1>
    %2347 = vector.broadcast %c42_i32 : i32 to vector<1x64xi32>
    %2348 = arith.cmpi sgt, %68, %2347 : vector<1x64xi32>
    %2349 = arith.andi %2346, %2348 : vector<1x64xi1>
    %2350 = arith.extui %2349 : vector<1x64xi1> to vector<1x64xi32>
    %2351 = arith.sitofp %2350 : vector<1x64xi32> to vector<1x64xf32>
    %2352 = arith.maximumf %2299, %2351 : vector<1x64xf32>
    %c43_i32 = arith.constant 43 : i32
    %2353 = vector.broadcast %c43_i32 : i32 to vector<5x64xi32>
    %2354 = arith.cmpi eq, %70, %2353 : vector<5x64xi32>
    %cst_453 = arith.constant 0.000000e+00 : f32
    %2355 = vector.broadcast %cst_453 : f32 to vector<5x64xf32>
    %2356 = arith.select %2354, %69, %2355 : vector<5x64xi1>, vector<5x64xf32>
    %cst_454 = arith.constant dense<0.000000e+00> : vector<5xf32>
    %2357 = vector.multi_reduction <add>, %2356, %cst_454 [1] : vector<5x64xf32> to vector<5xf32>
    %2358 = vector.shape_cast %2357 : vector<5xf32> to vector<5x1xf32>
    %2359 = vector.extract_strided_slice %2358 {offsets = [0, 0], sizes = [1, 1], strides = [1, 1]} : vector<5x1xf32> to vector<1x1xf32>
    %2360 = vector.extract_strided_slice %2358 {offsets = [1, 0], sizes = [1, 1], strides = [1, 1]} : vector<5x1xf32> to vector<1x1xf32>
    %2361 = vector.extract_strided_slice %2358 {offsets = [2, 0], sizes = [1, 1], strides = [1, 1]} : vector<5x1xf32> to vector<1x1xf32>
    %2362 = vector.extract_strided_slice %2358 {offsets = [3, 0], sizes = [1, 1], strides = [1, 1]} : vector<5x1xf32> to vector<1x1xf32>
    %2363 = vector.extract_strided_slice %2358 {offsets = [4, 0], sizes = [1, 1], strides = [1, 1]} : vector<5x1xf32> to vector<1x1xf32>
    %2364 = vector.broadcast %c43_i32 : i32 to vector<1x64xi32>
    %2365 = arith.cmpi eq, %68, %2364 : vector<1x64xi32>
    %cst_455 = arith.constant 1.000000e+00 : f32
    %2366 = vector.broadcast %cst_455 : f32 to vector<1x64xf32>
    %2367 = arith.subf %2366, %2352 : vector<1x64xf32>
    %cst_456 = arith.constant 0.000000e+00 : f32
    %2368 = vector.broadcast %cst_456 : f32 to vector<1x64xf32>
    %2369 = arith.select %2365, %2367, %2368 : vector<1x64xi1>, vector<1x64xf32>
    %cst_457 = arith.constant dense<0xFF800000> : vector<1xf32>
    %2370 = vector.multi_reduction <maximumf>, %2369, %cst_457 [1] : vector<1x64xf32> to vector<1xf32>
    %2371 = vector.shape_cast %2370 : vector<1xf32> to vector<1x1xf32>
    %2372 = vector.broadcast %2361 : vector<1x1xf32> to vector<1x64xf32>
    %2373 = arith.minimumf %2372, %55 : vector<1x64xf32>
    %2374 = vector.broadcast %2359 : vector<1x1xf32> to vector<1x64xf32>
    %2375 = arith.maximumf %2374, %41 : vector<1x64xf32>
    %2376 = arith.subf %2373, %2375 : vector<1x64xf32>
    %cst_458 = arith.constant 0.000000e+00 : f32
    %2377 = vector.broadcast %cst_458 : f32 to vector<1x64xf32>
    %2378 = arith.maximumf %2376, %2377 : vector<1x64xf32>
    %2379 = vector.broadcast %2362 : vector<1x1xf32> to vector<1x64xf32>
    %2380 = arith.minimumf %2379, %62 : vector<1x64xf32>
    %2381 = vector.broadcast %2360 : vector<1x1xf32> to vector<1x64xf32>
    %2382 = arith.maximumf %2381, %48 : vector<1x64xf32>
    %2383 = arith.subf %2380, %2382 : vector<1x64xf32>
    %cst_459 = arith.constant 0.000000e+00 : f32
    %2384 = vector.broadcast %cst_459 : f32 to vector<1x64xf32>
    %2385 = arith.maximumf %2383, %2384 : vector<1x64xf32>
    %2386 = arith.mulf %2378, %2385 : vector<1x64xf32>
    %2387 = vector.broadcast %2363 : vector<1x1xf32> to vector<1x64xf32>
    %2388 = arith.addf %2387, %65 : vector<1x64xf32>
    %2389 = arith.subf %2388, %2386 : vector<1x64xf32>
    %cst_460 = arith.constant 9.99999993E-9 : f32
    %2390 = vector.broadcast %cst_460 : f32 to vector<1x64xf32>
    %2391 = arith.addf %2389, %2390 : vector<1x64xf32>
    %2392 = tpu.reciprocal %2391 {approx = true} : vector<1x64xf32> -> vector<1x64xf32>
    %2393 = arith.mulf %2386, %2392 : vector<1x64xf32>
    %cst_461 = arith.constant 5.000000e-01 : f32
    %2394 = vector.broadcast %cst_461 : f32 to vector<1x1xf32>
    %2395 = arith.cmpf ogt, %2371, %2394 : vector<1x1xf32>
    %cst_462 = arith.constant 5.000000e-01 : f32
    %2396 = vector.broadcast %cst_462 : f32 to vector<1x64xf32>
    %2397 = arith.cmpf ogt, %2393, %2396 : vector<1x64xf32>
    %2398 = vector.broadcast %2395 : vector<1x1xi1> to vector<1x64xi1>
    %2399 = arith.andi %2398, %2397 : vector<1x64xi1>
    %2400 = vector.broadcast %c43_i32 : i32 to vector<1x64xi32>
    %2401 = arith.cmpi sgt, %68, %2400 : vector<1x64xi32>
    %2402 = arith.andi %2399, %2401 : vector<1x64xi1>
    %2403 = arith.extui %2402 : vector<1x64xi1> to vector<1x64xi32>
    %2404 = arith.sitofp %2403 : vector<1x64xi32> to vector<1x64xf32>
    %2405 = arith.maximumf %2352, %2404 : vector<1x64xf32>
    %c44_i32 = arith.constant 44 : i32
    %2406 = vector.broadcast %c44_i32 : i32 to vector<5x64xi32>
    %2407 = arith.cmpi eq, %70, %2406 : vector<5x64xi32>
    %cst_463 = arith.constant 0.000000e+00 : f32
    %2408 = vector.broadcast %cst_463 : f32 to vector<5x64xf32>
    %2409 = arith.select %2407, %69, %2408 : vector<5x64xi1>, vector<5x64xf32>
    %cst_464 = arith.constant dense<0.000000e+00> : vector<5xf32>
    %2410 = vector.multi_reduction <add>, %2409, %cst_464 [1] : vector<5x64xf32> to vector<5xf32>
    %2411 = vector.shape_cast %2410 : vector<5xf32> to vector<5x1xf32>
    %2412 = vector.extract_strided_slice %2411 {offsets = [0, 0], sizes = [1, 1], strides = [1, 1]} : vector<5x1xf32> to vector<1x1xf32>
    %2413 = vector.extract_strided_slice %2411 {offsets = [1, 0], sizes = [1, 1], strides = [1, 1]} : vector<5x1xf32> to vector<1x1xf32>
    %2414 = vector.extract_strided_slice %2411 {offsets = [2, 0], sizes = [1, 1], strides = [1, 1]} : vector<5x1xf32> to vector<1x1xf32>
    %2415 = vector.extract_strided_slice %2411 {offsets = [3, 0], sizes = [1, 1], strides = [1, 1]} : vector<5x1xf32> to vector<1x1xf32>
    %2416 = vector.extract_strided_slice %2411 {offsets = [4, 0], sizes = [1, 1], strides = [1, 1]} : vector<5x1xf32> to vector<1x1xf32>
    %2417 = vector.broadcast %c44_i32 : i32 to vector<1x64xi32>
    %2418 = arith.cmpi eq, %68, %2417 : vector<1x64xi32>
    %cst_465 = arith.constant 1.000000e+00 : f32
    %2419 = vector.broadcast %cst_465 : f32 to vector<1x64xf32>
    %2420 = arith.subf %2419, %2405 : vector<1x64xf32>
    %cst_466 = arith.constant 0.000000e+00 : f32
    %2421 = vector.broadcast %cst_466 : f32 to vector<1x64xf32>
    %2422 = arith.select %2418, %2420, %2421 : vector<1x64xi1>, vector<1x64xf32>
    %cst_467 = arith.constant dense<0xFF800000> : vector<1xf32>
    %2423 = vector.multi_reduction <maximumf>, %2422, %cst_467 [1] : vector<1x64xf32> to vector<1xf32>
    %2424 = vector.shape_cast %2423 : vector<1xf32> to vector<1x1xf32>
    %2425 = vector.broadcast %2414 : vector<1x1xf32> to vector<1x64xf32>
    %2426 = arith.minimumf %2425, %55 : vector<1x64xf32>
    %2427 = vector.broadcast %2412 : vector<1x1xf32> to vector<1x64xf32>
    %2428 = arith.maximumf %2427, %41 : vector<1x64xf32>
    %2429 = arith.subf %2426, %2428 : vector<1x64xf32>
    %cst_468 = arith.constant 0.000000e+00 : f32
    %2430 = vector.broadcast %cst_468 : f32 to vector<1x64xf32>
    %2431 = arith.maximumf %2429, %2430 : vector<1x64xf32>
    %2432 = vector.broadcast %2415 : vector<1x1xf32> to vector<1x64xf32>
    %2433 = arith.minimumf %2432, %62 : vector<1x64xf32>
    %2434 = vector.broadcast %2413 : vector<1x1xf32> to vector<1x64xf32>
    %2435 = arith.maximumf %2434, %48 : vector<1x64xf32>
    %2436 = arith.subf %2433, %2435 : vector<1x64xf32>
    %cst_469 = arith.constant 0.000000e+00 : f32
    %2437 = vector.broadcast %cst_469 : f32 to vector<1x64xf32>
    %2438 = arith.maximumf %2436, %2437 : vector<1x64xf32>
    %2439 = arith.mulf %2431, %2438 : vector<1x64xf32>
    %2440 = vector.broadcast %2416 : vector<1x1xf32> to vector<1x64xf32>
    %2441 = arith.addf %2440, %65 : vector<1x64xf32>
    %2442 = arith.subf %2441, %2439 : vector<1x64xf32>
    %cst_470 = arith.constant 9.99999993E-9 : f32
    %2443 = vector.broadcast %cst_470 : f32 to vector<1x64xf32>
    %2444 = arith.addf %2442, %2443 : vector<1x64xf32>
    %2445 = tpu.reciprocal %2444 {approx = true} : vector<1x64xf32> -> vector<1x64xf32>
    %2446 = arith.mulf %2439, %2445 : vector<1x64xf32>
    %cst_471 = arith.constant 5.000000e-01 : f32
    %2447 = vector.broadcast %cst_471 : f32 to vector<1x1xf32>
    %2448 = arith.cmpf ogt, %2424, %2447 : vector<1x1xf32>
    %cst_472 = arith.constant 5.000000e-01 : f32
    %2449 = vector.broadcast %cst_472 : f32 to vector<1x64xf32>
    %2450 = arith.cmpf ogt, %2446, %2449 : vector<1x64xf32>
    %2451 = vector.broadcast %2448 : vector<1x1xi1> to vector<1x64xi1>
    %2452 = arith.andi %2451, %2450 : vector<1x64xi1>
    %2453 = vector.broadcast %c44_i32 : i32 to vector<1x64xi32>
    %2454 = arith.cmpi sgt, %68, %2453 : vector<1x64xi32>
    %2455 = arith.andi %2452, %2454 : vector<1x64xi1>
    %2456 = arith.extui %2455 : vector<1x64xi1> to vector<1x64xi32>
    %2457 = arith.sitofp %2456 : vector<1x64xi32> to vector<1x64xf32>
    %2458 = arith.maximumf %2405, %2457 : vector<1x64xf32>
    %c45_i32 = arith.constant 45 : i32
    %2459 = vector.broadcast %c45_i32 : i32 to vector<5x64xi32>
    %2460 = arith.cmpi eq, %70, %2459 : vector<5x64xi32>
    %cst_473 = arith.constant 0.000000e+00 : f32
    %2461 = vector.broadcast %cst_473 : f32 to vector<5x64xf32>
    %2462 = arith.select %2460, %69, %2461 : vector<5x64xi1>, vector<5x64xf32>
    %cst_474 = arith.constant dense<0.000000e+00> : vector<5xf32>
    %2463 = vector.multi_reduction <add>, %2462, %cst_474 [1] : vector<5x64xf32> to vector<5xf32>
    %2464 = vector.shape_cast %2463 : vector<5xf32> to vector<5x1xf32>
    %2465 = vector.extract_strided_slice %2464 {offsets = [0, 0], sizes = [1, 1], strides = [1, 1]} : vector<5x1xf32> to vector<1x1xf32>
    %2466 = vector.extract_strided_slice %2464 {offsets = [1, 0], sizes = [1, 1], strides = [1, 1]} : vector<5x1xf32> to vector<1x1xf32>
    %2467 = vector.extract_strided_slice %2464 {offsets = [2, 0], sizes = [1, 1], strides = [1, 1]} : vector<5x1xf32> to vector<1x1xf32>
    %2468 = vector.extract_strided_slice %2464 {offsets = [3, 0], sizes = [1, 1], strides = [1, 1]} : vector<5x1xf32> to vector<1x1xf32>
    %2469 = vector.extract_strided_slice %2464 {offsets = [4, 0], sizes = [1, 1], strides = [1, 1]} : vector<5x1xf32> to vector<1x1xf32>
    %2470 = vector.broadcast %c45_i32 : i32 to vector<1x64xi32>
    %2471 = arith.cmpi eq, %68, %2470 : vector<1x64xi32>
    %cst_475 = arith.constant 1.000000e+00 : f32
    %2472 = vector.broadcast %cst_475 : f32 to vector<1x64xf32>
    %2473 = arith.subf %2472, %2458 : vector<1x64xf32>
    %cst_476 = arith.constant 0.000000e+00 : f32
    %2474 = vector.broadcast %cst_476 : f32 to vector<1x64xf32>
    %2475 = arith.select %2471, %2473, %2474 : vector<1x64xi1>, vector<1x64xf32>
    %cst_477 = arith.constant dense<0xFF800000> : vector<1xf32>
    %2476 = vector.multi_reduction <maximumf>, %2475, %cst_477 [1] : vector<1x64xf32> to vector<1xf32>
    %2477 = vector.shape_cast %2476 : vector<1xf32> to vector<1x1xf32>
    %2478 = vector.broadcast %2467 : vector<1x1xf32> to vector<1x64xf32>
    %2479 = arith.minimumf %2478, %55 : vector<1x64xf32>
    %2480 = vector.broadcast %2465 : vector<1x1xf32> to vector<1x64xf32>
    %2481 = arith.maximumf %2480, %41 : vector<1x64xf32>
    %2482 = arith.subf %2479, %2481 : vector<1x64xf32>
    %cst_478 = arith.constant 0.000000e+00 : f32
    %2483 = vector.broadcast %cst_478 : f32 to vector<1x64xf32>
    %2484 = arith.maximumf %2482, %2483 : vector<1x64xf32>
    %2485 = vector.broadcast %2468 : vector<1x1xf32> to vector<1x64xf32>
    %2486 = arith.minimumf %2485, %62 : vector<1x64xf32>
    %2487 = vector.broadcast %2466 : vector<1x1xf32> to vector<1x64xf32>
    %2488 = arith.maximumf %2487, %48 : vector<1x64xf32>
    %2489 = arith.subf %2486, %2488 : vector<1x64xf32>
    %cst_479 = arith.constant 0.000000e+00 : f32
    %2490 = vector.broadcast %cst_479 : f32 to vector<1x64xf32>
    %2491 = arith.maximumf %2489, %2490 : vector<1x64xf32>
    %2492 = arith.mulf %2484, %2491 : vector<1x64xf32>
    %2493 = vector.broadcast %2469 : vector<1x1xf32> to vector<1x64xf32>
    %2494 = arith.addf %2493, %65 : vector<1x64xf32>
    %2495 = arith.subf %2494, %2492 : vector<1x64xf32>
    %cst_480 = arith.constant 9.99999993E-9 : f32
    %2496 = vector.broadcast %cst_480 : f32 to vector<1x64xf32>
    %2497 = arith.addf %2495, %2496 : vector<1x64xf32>
    %2498 = tpu.reciprocal %2497 {approx = true} : vector<1x64xf32> -> vector<1x64xf32>
    %2499 = arith.mulf %2492, %2498 : vector<1x64xf32>
    %cst_481 = arith.constant 5.000000e-01 : f32
    %2500 = vector.broadcast %cst_481 : f32 to vector<1x1xf32>
    %2501 = arith.cmpf ogt, %2477, %2500 : vector<1x1xf32>
    %cst_482 = arith.constant 5.000000e-01 : f32
    %2502 = vector.broadcast %cst_482 : f32 to vector<1x64xf32>
    %2503 = arith.cmpf ogt, %2499, %2502 : vector<1x64xf32>
    %2504 = vector.broadcast %2501 : vector<1x1xi1> to vector<1x64xi1>
    %2505 = arith.andi %2504, %2503 : vector<1x64xi1>
    %2506 = vector.broadcast %c45_i32 : i32 to vector<1x64xi32>
    %2507 = arith.cmpi sgt, %68, %2506 : vector<1x64xi32>
    %2508 = arith.andi %2505, %2507 : vector<1x64xi1>
    %2509 = arith.extui %2508 : vector<1x64xi1> to vector<1x64xi32>
    %2510 = arith.sitofp %2509 : vector<1x64xi32> to vector<1x64xf32>
    %2511 = arith.maximumf %2458, %2510 : vector<1x64xf32>
    %c46_i32 = arith.constant 46 : i32
    %2512 = vector.broadcast %c46_i32 : i32 to vector<5x64xi32>
    %2513 = arith.cmpi eq, %70, %2512 : vector<5x64xi32>
    %cst_483 = arith.constant 0.000000e+00 : f32
    %2514 = vector.broadcast %cst_483 : f32 to vector<5x64xf32>
    %2515 = arith.select %2513, %69, %2514 : vector<5x64xi1>, vector<5x64xf32>
    %cst_484 = arith.constant dense<0.000000e+00> : vector<5xf32>
    %2516 = vector.multi_reduction <add>, %2515, %cst_484 [1] : vector<5x64xf32> to vector<5xf32>
    %2517 = vector.shape_cast %2516 : vector<5xf32> to vector<5x1xf32>
    %2518 = vector.extract_strided_slice %2517 {offsets = [0, 0], sizes = [1, 1], strides = [1, 1]} : vector<5x1xf32> to vector<1x1xf32>
    %2519 = vector.extract_strided_slice %2517 {offsets = [1, 0], sizes = [1, 1], strides = [1, 1]} : vector<5x1xf32> to vector<1x1xf32>
    %2520 = vector.extract_strided_slice %2517 {offsets = [2, 0], sizes = [1, 1], strides = [1, 1]} : vector<5x1xf32> to vector<1x1xf32>
    %2521 = vector.extract_strided_slice %2517 {offsets = [3, 0], sizes = [1, 1], strides = [1, 1]} : vector<5x1xf32> to vector<1x1xf32>
    %2522 = vector.extract_strided_slice %2517 {offsets = [4, 0], sizes = [1, 1], strides = [1, 1]} : vector<5x1xf32> to vector<1x1xf32>
    %2523 = vector.broadcast %c46_i32 : i32 to vector<1x64xi32>
    %2524 = arith.cmpi eq, %68, %2523 : vector<1x64xi32>
    %cst_485 = arith.constant 1.000000e+00 : f32
    %2525 = vector.broadcast %cst_485 : f32 to vector<1x64xf32>
    %2526 = arith.subf %2525, %2511 : vector<1x64xf32>
    %cst_486 = arith.constant 0.000000e+00 : f32
    %2527 = vector.broadcast %cst_486 : f32 to vector<1x64xf32>
    %2528 = arith.select %2524, %2526, %2527 : vector<1x64xi1>, vector<1x64xf32>
    %cst_487 = arith.constant dense<0xFF800000> : vector<1xf32>
    %2529 = vector.multi_reduction <maximumf>, %2528, %cst_487 [1] : vector<1x64xf32> to vector<1xf32>
    %2530 = vector.shape_cast %2529 : vector<1xf32> to vector<1x1xf32>
    %2531 = vector.broadcast %2520 : vector<1x1xf32> to vector<1x64xf32>
    %2532 = arith.minimumf %2531, %55 : vector<1x64xf32>
    %2533 = vector.broadcast %2518 : vector<1x1xf32> to vector<1x64xf32>
    %2534 = arith.maximumf %2533, %41 : vector<1x64xf32>
    %2535 = arith.subf %2532, %2534 : vector<1x64xf32>
    %cst_488 = arith.constant 0.000000e+00 : f32
    %2536 = vector.broadcast %cst_488 : f32 to vector<1x64xf32>
    %2537 = arith.maximumf %2535, %2536 : vector<1x64xf32>
    %2538 = vector.broadcast %2521 : vector<1x1xf32> to vector<1x64xf32>
    %2539 = arith.minimumf %2538, %62 : vector<1x64xf32>
    %2540 = vector.broadcast %2519 : vector<1x1xf32> to vector<1x64xf32>
    %2541 = arith.maximumf %2540, %48 : vector<1x64xf32>
    %2542 = arith.subf %2539, %2541 : vector<1x64xf32>
    %cst_489 = arith.constant 0.000000e+00 : f32
    %2543 = vector.broadcast %cst_489 : f32 to vector<1x64xf32>
    %2544 = arith.maximumf %2542, %2543 : vector<1x64xf32>
    %2545 = arith.mulf %2537, %2544 : vector<1x64xf32>
    %2546 = vector.broadcast %2522 : vector<1x1xf32> to vector<1x64xf32>
    %2547 = arith.addf %2546, %65 : vector<1x64xf32>
    %2548 = arith.subf %2547, %2545 : vector<1x64xf32>
    %cst_490 = arith.constant 9.99999993E-9 : f32
    %2549 = vector.broadcast %cst_490 : f32 to vector<1x64xf32>
    %2550 = arith.addf %2548, %2549 : vector<1x64xf32>
    %2551 = tpu.reciprocal %2550 {approx = true} : vector<1x64xf32> -> vector<1x64xf32>
    %2552 = arith.mulf %2545, %2551 : vector<1x64xf32>
    %cst_491 = arith.constant 5.000000e-01 : f32
    %2553 = vector.broadcast %cst_491 : f32 to vector<1x1xf32>
    %2554 = arith.cmpf ogt, %2530, %2553 : vector<1x1xf32>
    %cst_492 = arith.constant 5.000000e-01 : f32
    %2555 = vector.broadcast %cst_492 : f32 to vector<1x64xf32>
    %2556 = arith.cmpf ogt, %2552, %2555 : vector<1x64xf32>
    %2557 = vector.broadcast %2554 : vector<1x1xi1> to vector<1x64xi1>
    %2558 = arith.andi %2557, %2556 : vector<1x64xi1>
    %2559 = vector.broadcast %c46_i32 : i32 to vector<1x64xi32>
    %2560 = arith.cmpi sgt, %68, %2559 : vector<1x64xi32>
    %2561 = arith.andi %2558, %2560 : vector<1x64xi1>
    %2562 = arith.extui %2561 : vector<1x64xi1> to vector<1x64xi32>
    %2563 = arith.sitofp %2562 : vector<1x64xi32> to vector<1x64xf32>
    %2564 = arith.maximumf %2511, %2563 : vector<1x64xf32>
    %c47_i32 = arith.constant 47 : i32
    %2565 = vector.broadcast %c47_i32 : i32 to vector<5x64xi32>
    %2566 = arith.cmpi eq, %70, %2565 : vector<5x64xi32>
    %cst_493 = arith.constant 0.000000e+00 : f32
    %2567 = vector.broadcast %cst_493 : f32 to vector<5x64xf32>
    %2568 = arith.select %2566, %69, %2567 : vector<5x64xi1>, vector<5x64xf32>
    %cst_494 = arith.constant dense<0.000000e+00> : vector<5xf32>
    %2569 = vector.multi_reduction <add>, %2568, %cst_494 [1] : vector<5x64xf32> to vector<5xf32>
    %2570 = vector.shape_cast %2569 : vector<5xf32> to vector<5x1xf32>
    %2571 = vector.extract_strided_slice %2570 {offsets = [0, 0], sizes = [1, 1], strides = [1, 1]} : vector<5x1xf32> to vector<1x1xf32>
    %2572 = vector.extract_strided_slice %2570 {offsets = [1, 0], sizes = [1, 1], strides = [1, 1]} : vector<5x1xf32> to vector<1x1xf32>
    %2573 = vector.extract_strided_slice %2570 {offsets = [2, 0], sizes = [1, 1], strides = [1, 1]} : vector<5x1xf32> to vector<1x1xf32>
    %2574 = vector.extract_strided_slice %2570 {offsets = [3, 0], sizes = [1, 1], strides = [1, 1]} : vector<5x1xf32> to vector<1x1xf32>
    %2575 = vector.extract_strided_slice %2570 {offsets = [4, 0], sizes = [1, 1], strides = [1, 1]} : vector<5x1xf32> to vector<1x1xf32>
    %2576 = vector.broadcast %c47_i32 : i32 to vector<1x64xi32>
    %2577 = arith.cmpi eq, %68, %2576 : vector<1x64xi32>
    %cst_495 = arith.constant 1.000000e+00 : f32
    %2578 = vector.broadcast %cst_495 : f32 to vector<1x64xf32>
    %2579 = arith.subf %2578, %2564 : vector<1x64xf32>
    %cst_496 = arith.constant 0.000000e+00 : f32
    %2580 = vector.broadcast %cst_496 : f32 to vector<1x64xf32>
    %2581 = arith.select %2577, %2579, %2580 : vector<1x64xi1>, vector<1x64xf32>
    %cst_497 = arith.constant dense<0xFF800000> : vector<1xf32>
    %2582 = vector.multi_reduction <maximumf>, %2581, %cst_497 [1] : vector<1x64xf32> to vector<1xf32>
    %2583 = vector.shape_cast %2582 : vector<1xf32> to vector<1x1xf32>
    %2584 = vector.broadcast %2573 : vector<1x1xf32> to vector<1x64xf32>
    %2585 = arith.minimumf %2584, %55 : vector<1x64xf32>
    %2586 = vector.broadcast %2571 : vector<1x1xf32> to vector<1x64xf32>
    %2587 = arith.maximumf %2586, %41 : vector<1x64xf32>
    %2588 = arith.subf %2585, %2587 : vector<1x64xf32>
    %cst_498 = arith.constant 0.000000e+00 : f32
    %2589 = vector.broadcast %cst_498 : f32 to vector<1x64xf32>
    %2590 = arith.maximumf %2588, %2589 : vector<1x64xf32>
    %2591 = vector.broadcast %2574 : vector<1x1xf32> to vector<1x64xf32>
    %2592 = arith.minimumf %2591, %62 : vector<1x64xf32>
    %2593 = vector.broadcast %2572 : vector<1x1xf32> to vector<1x64xf32>
    %2594 = arith.maximumf %2593, %48 : vector<1x64xf32>
    %2595 = arith.subf %2592, %2594 : vector<1x64xf32>
    %cst_499 = arith.constant 0.000000e+00 : f32
    %2596 = vector.broadcast %cst_499 : f32 to vector<1x64xf32>
    %2597 = arith.maximumf %2595, %2596 : vector<1x64xf32>
    %2598 = arith.mulf %2590, %2597 : vector<1x64xf32>
    %2599 = vector.broadcast %2575 : vector<1x1xf32> to vector<1x64xf32>
    %2600 = arith.addf %2599, %65 : vector<1x64xf32>
    %2601 = arith.subf %2600, %2598 : vector<1x64xf32>
    %cst_500 = arith.constant 9.99999993E-9 : f32
    %2602 = vector.broadcast %cst_500 : f32 to vector<1x64xf32>
    %2603 = arith.addf %2601, %2602 : vector<1x64xf32>
    %2604 = tpu.reciprocal %2603 {approx = true} : vector<1x64xf32> -> vector<1x64xf32>
    %2605 = arith.mulf %2598, %2604 : vector<1x64xf32>
    %cst_501 = arith.constant 5.000000e-01 : f32
    %2606 = vector.broadcast %cst_501 : f32 to vector<1x1xf32>
    %2607 = arith.cmpf ogt, %2583, %2606 : vector<1x1xf32>
    %cst_502 = arith.constant 5.000000e-01 : f32
    %2608 = vector.broadcast %cst_502 : f32 to vector<1x64xf32>
    %2609 = arith.cmpf ogt, %2605, %2608 : vector<1x64xf32>
    %2610 = vector.broadcast %2607 : vector<1x1xi1> to vector<1x64xi1>
    %2611 = arith.andi %2610, %2609 : vector<1x64xi1>
    %2612 = vector.broadcast %c47_i32 : i32 to vector<1x64xi32>
    %2613 = arith.cmpi sgt, %68, %2612 : vector<1x64xi32>
    %2614 = arith.andi %2611, %2613 : vector<1x64xi1>
    %2615 = arith.extui %2614 : vector<1x64xi1> to vector<1x64xi32>
    %2616 = arith.sitofp %2615 : vector<1x64xi32> to vector<1x64xf32>
    %2617 = arith.maximumf %2564, %2616 : vector<1x64xf32>
    %c48_i32 = arith.constant 48 : i32
    %2618 = vector.broadcast %c48_i32 : i32 to vector<5x64xi32>
    %2619 = arith.cmpi eq, %70, %2618 : vector<5x64xi32>
    %cst_503 = arith.constant 0.000000e+00 : f32
    %2620 = vector.broadcast %cst_503 : f32 to vector<5x64xf32>
    %2621 = arith.select %2619, %69, %2620 : vector<5x64xi1>, vector<5x64xf32>
    %cst_504 = arith.constant dense<0.000000e+00> : vector<5xf32>
    %2622 = vector.multi_reduction <add>, %2621, %cst_504 [1] : vector<5x64xf32> to vector<5xf32>
    %2623 = vector.shape_cast %2622 : vector<5xf32> to vector<5x1xf32>
    %2624 = vector.extract_strided_slice %2623 {offsets = [0, 0], sizes = [1, 1], strides = [1, 1]} : vector<5x1xf32> to vector<1x1xf32>
    %2625 = vector.extract_strided_slice %2623 {offsets = [1, 0], sizes = [1, 1], strides = [1, 1]} : vector<5x1xf32> to vector<1x1xf32>
    %2626 = vector.extract_strided_slice %2623 {offsets = [2, 0], sizes = [1, 1], strides = [1, 1]} : vector<5x1xf32> to vector<1x1xf32>
    %2627 = vector.extract_strided_slice %2623 {offsets = [3, 0], sizes = [1, 1], strides = [1, 1]} : vector<5x1xf32> to vector<1x1xf32>
    %2628 = vector.extract_strided_slice %2623 {offsets = [4, 0], sizes = [1, 1], strides = [1, 1]} : vector<5x1xf32> to vector<1x1xf32>
    %2629 = vector.broadcast %c48_i32 : i32 to vector<1x64xi32>
    %2630 = arith.cmpi eq, %68, %2629 : vector<1x64xi32>
    %cst_505 = arith.constant 1.000000e+00 : f32
    %2631 = vector.broadcast %cst_505 : f32 to vector<1x64xf32>
    %2632 = arith.subf %2631, %2617 : vector<1x64xf32>
    %cst_506 = arith.constant 0.000000e+00 : f32
    %2633 = vector.broadcast %cst_506 : f32 to vector<1x64xf32>
    %2634 = arith.select %2630, %2632, %2633 : vector<1x64xi1>, vector<1x64xf32>
    %cst_507 = arith.constant dense<0xFF800000> : vector<1xf32>
    %2635 = vector.multi_reduction <maximumf>, %2634, %cst_507 [1] : vector<1x64xf32> to vector<1xf32>
    %2636 = vector.shape_cast %2635 : vector<1xf32> to vector<1x1xf32>
    %2637 = vector.broadcast %2626 : vector<1x1xf32> to vector<1x64xf32>
    %2638 = arith.minimumf %2637, %55 : vector<1x64xf32>
    %2639 = vector.broadcast %2624 : vector<1x1xf32> to vector<1x64xf32>
    %2640 = arith.maximumf %2639, %41 : vector<1x64xf32>
    %2641 = arith.subf %2638, %2640 : vector<1x64xf32>
    %cst_508 = arith.constant 0.000000e+00 : f32
    %2642 = vector.broadcast %cst_508 : f32 to vector<1x64xf32>
    %2643 = arith.maximumf %2641, %2642 : vector<1x64xf32>
    %2644 = vector.broadcast %2627 : vector<1x1xf32> to vector<1x64xf32>
    %2645 = arith.minimumf %2644, %62 : vector<1x64xf32>
    %2646 = vector.broadcast %2625 : vector<1x1xf32> to vector<1x64xf32>
    %2647 = arith.maximumf %2646, %48 : vector<1x64xf32>
    %2648 = arith.subf %2645, %2647 : vector<1x64xf32>
    %cst_509 = arith.constant 0.000000e+00 : f32
    %2649 = vector.broadcast %cst_509 : f32 to vector<1x64xf32>
    %2650 = arith.maximumf %2648, %2649 : vector<1x64xf32>
    %2651 = arith.mulf %2643, %2650 : vector<1x64xf32>
    %2652 = vector.broadcast %2628 : vector<1x1xf32> to vector<1x64xf32>
    %2653 = arith.addf %2652, %65 : vector<1x64xf32>
    %2654 = arith.subf %2653, %2651 : vector<1x64xf32>
    %cst_510 = arith.constant 9.99999993E-9 : f32
    %2655 = vector.broadcast %cst_510 : f32 to vector<1x64xf32>
    %2656 = arith.addf %2654, %2655 : vector<1x64xf32>
    %2657 = tpu.reciprocal %2656 {approx = true} : vector<1x64xf32> -> vector<1x64xf32>
    %2658 = arith.mulf %2651, %2657 : vector<1x64xf32>
    %cst_511 = arith.constant 5.000000e-01 : f32
    %2659 = vector.broadcast %cst_511 : f32 to vector<1x1xf32>
    %2660 = arith.cmpf ogt, %2636, %2659 : vector<1x1xf32>
    %cst_512 = arith.constant 5.000000e-01 : f32
    %2661 = vector.broadcast %cst_512 : f32 to vector<1x64xf32>
    %2662 = arith.cmpf ogt, %2658, %2661 : vector<1x64xf32>
    %2663 = vector.broadcast %2660 : vector<1x1xi1> to vector<1x64xi1>
    %2664 = arith.andi %2663, %2662 : vector<1x64xi1>
    %2665 = vector.broadcast %c48_i32 : i32 to vector<1x64xi32>
    %2666 = arith.cmpi sgt, %68, %2665 : vector<1x64xi32>
    %2667 = arith.andi %2664, %2666 : vector<1x64xi1>
    %2668 = arith.extui %2667 : vector<1x64xi1> to vector<1x64xi32>
    %2669 = arith.sitofp %2668 : vector<1x64xi32> to vector<1x64xf32>
    %2670 = arith.maximumf %2617, %2669 : vector<1x64xf32>
    %c49_i32 = arith.constant 49 : i32
    %2671 = vector.broadcast %c49_i32 : i32 to vector<5x64xi32>
    %2672 = arith.cmpi eq, %70, %2671 : vector<5x64xi32>
    %cst_513 = arith.constant 0.000000e+00 : f32
    %2673 = vector.broadcast %cst_513 : f32 to vector<5x64xf32>
    %2674 = arith.select %2672, %69, %2673 : vector<5x64xi1>, vector<5x64xf32>
    %cst_514 = arith.constant dense<0.000000e+00> : vector<5xf32>
    %2675 = vector.multi_reduction <add>, %2674, %cst_514 [1] : vector<5x64xf32> to vector<5xf32>
    %2676 = vector.shape_cast %2675 : vector<5xf32> to vector<5x1xf32>
    %2677 = vector.extract_strided_slice %2676 {offsets = [0, 0], sizes = [1, 1], strides = [1, 1]} : vector<5x1xf32> to vector<1x1xf32>
    %2678 = vector.extract_strided_slice %2676 {offsets = [1, 0], sizes = [1, 1], strides = [1, 1]} : vector<5x1xf32> to vector<1x1xf32>
    %2679 = vector.extract_strided_slice %2676 {offsets = [2, 0], sizes = [1, 1], strides = [1, 1]} : vector<5x1xf32> to vector<1x1xf32>
    %2680 = vector.extract_strided_slice %2676 {offsets = [3, 0], sizes = [1, 1], strides = [1, 1]} : vector<5x1xf32> to vector<1x1xf32>
    %2681 = vector.extract_strided_slice %2676 {offsets = [4, 0], sizes = [1, 1], strides = [1, 1]} : vector<5x1xf32> to vector<1x1xf32>
    %2682 = vector.broadcast %c49_i32 : i32 to vector<1x64xi32>
    %2683 = arith.cmpi eq, %68, %2682 : vector<1x64xi32>
    %cst_515 = arith.constant 1.000000e+00 : f32
    %2684 = vector.broadcast %cst_515 : f32 to vector<1x64xf32>
    %2685 = arith.subf %2684, %2670 : vector<1x64xf32>
    %cst_516 = arith.constant 0.000000e+00 : f32
    %2686 = vector.broadcast %cst_516 : f32 to vector<1x64xf32>
    %2687 = arith.select %2683, %2685, %2686 : vector<1x64xi1>, vector<1x64xf32>
    %cst_517 = arith.constant dense<0xFF800000> : vector<1xf32>
    %2688 = vector.multi_reduction <maximumf>, %2687, %cst_517 [1] : vector<1x64xf32> to vector<1xf32>
    %2689 = vector.shape_cast %2688 : vector<1xf32> to vector<1x1xf32>
    %2690 = vector.broadcast %2679 : vector<1x1xf32> to vector<1x64xf32>
    %2691 = arith.minimumf %2690, %55 : vector<1x64xf32>
    %2692 = vector.broadcast %2677 : vector<1x1xf32> to vector<1x64xf32>
    %2693 = arith.maximumf %2692, %41 : vector<1x64xf32>
    %2694 = arith.subf %2691, %2693 : vector<1x64xf32>
    %cst_518 = arith.constant 0.000000e+00 : f32
    %2695 = vector.broadcast %cst_518 : f32 to vector<1x64xf32>
    %2696 = arith.maximumf %2694, %2695 : vector<1x64xf32>
    %2697 = vector.broadcast %2680 : vector<1x1xf32> to vector<1x64xf32>
    %2698 = arith.minimumf %2697, %62 : vector<1x64xf32>
    %2699 = vector.broadcast %2678 : vector<1x1xf32> to vector<1x64xf32>
    %2700 = arith.maximumf %2699, %48 : vector<1x64xf32>
    %2701 = arith.subf %2698, %2700 : vector<1x64xf32>
    %cst_519 = arith.constant 0.000000e+00 : f32
    %2702 = vector.broadcast %cst_519 : f32 to vector<1x64xf32>
    %2703 = arith.maximumf %2701, %2702 : vector<1x64xf32>
    %2704 = arith.mulf %2696, %2703 : vector<1x64xf32>
    %2705 = vector.broadcast %2681 : vector<1x1xf32> to vector<1x64xf32>
    %2706 = arith.addf %2705, %65 : vector<1x64xf32>
    %2707 = arith.subf %2706, %2704 : vector<1x64xf32>
    %cst_520 = arith.constant 9.99999993E-9 : f32
    %2708 = vector.broadcast %cst_520 : f32 to vector<1x64xf32>
    %2709 = arith.addf %2707, %2708 : vector<1x64xf32>
    %2710 = tpu.reciprocal %2709 {approx = true} : vector<1x64xf32> -> vector<1x64xf32>
    %2711 = arith.mulf %2704, %2710 : vector<1x64xf32>
    %cst_521 = arith.constant 5.000000e-01 : f32
    %2712 = vector.broadcast %cst_521 : f32 to vector<1x1xf32>
    %2713 = arith.cmpf ogt, %2689, %2712 : vector<1x1xf32>
    %cst_522 = arith.constant 5.000000e-01 : f32
    %2714 = vector.broadcast %cst_522 : f32 to vector<1x64xf32>
    %2715 = arith.cmpf ogt, %2711, %2714 : vector<1x64xf32>
    %2716 = vector.broadcast %2713 : vector<1x1xi1> to vector<1x64xi1>
    %2717 = arith.andi %2716, %2715 : vector<1x64xi1>
    %2718 = vector.broadcast %c49_i32 : i32 to vector<1x64xi32>
    %2719 = arith.cmpi sgt, %68, %2718 : vector<1x64xi32>
    %2720 = arith.andi %2717, %2719 : vector<1x64xi1>
    %2721 = arith.extui %2720 : vector<1x64xi1> to vector<1x64xi32>
    %2722 = arith.sitofp %2721 : vector<1x64xi32> to vector<1x64xf32>
    %2723 = arith.maximumf %2670, %2722 : vector<1x64xf32>
    %c50_i32 = arith.constant 50 : i32
    %2724 = vector.broadcast %c50_i32 : i32 to vector<5x64xi32>
    %2725 = arith.cmpi eq, %70, %2724 : vector<5x64xi32>
    %cst_523 = arith.constant 0.000000e+00 : f32
    %2726 = vector.broadcast %cst_523 : f32 to vector<5x64xf32>
    %2727 = arith.select %2725, %69, %2726 : vector<5x64xi1>, vector<5x64xf32>
    %cst_524 = arith.constant dense<0.000000e+00> : vector<5xf32>
    %2728 = vector.multi_reduction <add>, %2727, %cst_524 [1] : vector<5x64xf32> to vector<5xf32>
    %2729 = vector.shape_cast %2728 : vector<5xf32> to vector<5x1xf32>
    %2730 = vector.extract_strided_slice %2729 {offsets = [0, 0], sizes = [1, 1], strides = [1, 1]} : vector<5x1xf32> to vector<1x1xf32>
    %2731 = vector.extract_strided_slice %2729 {offsets = [1, 0], sizes = [1, 1], strides = [1, 1]} : vector<5x1xf32> to vector<1x1xf32>
    %2732 = vector.extract_strided_slice %2729 {offsets = [2, 0], sizes = [1, 1], strides = [1, 1]} : vector<5x1xf32> to vector<1x1xf32>
    %2733 = vector.extract_strided_slice %2729 {offsets = [3, 0], sizes = [1, 1], strides = [1, 1]} : vector<5x1xf32> to vector<1x1xf32>
    %2734 = vector.extract_strided_slice %2729 {offsets = [4, 0], sizes = [1, 1], strides = [1, 1]} : vector<5x1xf32> to vector<1x1xf32>
    %2735 = vector.broadcast %c50_i32 : i32 to vector<1x64xi32>
    %2736 = arith.cmpi eq, %68, %2735 : vector<1x64xi32>
    %cst_525 = arith.constant 1.000000e+00 : f32
    %2737 = vector.broadcast %cst_525 : f32 to vector<1x64xf32>
    %2738 = arith.subf %2737, %2723 : vector<1x64xf32>
    %cst_526 = arith.constant 0.000000e+00 : f32
    %2739 = vector.broadcast %cst_526 : f32 to vector<1x64xf32>
    %2740 = arith.select %2736, %2738, %2739 : vector<1x64xi1>, vector<1x64xf32>
    %cst_527 = arith.constant dense<0xFF800000> : vector<1xf32>
    %2741 = vector.multi_reduction <maximumf>, %2740, %cst_527 [1] : vector<1x64xf32> to vector<1xf32>
    %2742 = vector.shape_cast %2741 : vector<1xf32> to vector<1x1xf32>
    %2743 = vector.broadcast %2732 : vector<1x1xf32> to vector<1x64xf32>
    %2744 = arith.minimumf %2743, %55 : vector<1x64xf32>
    %2745 = vector.broadcast %2730 : vector<1x1xf32> to vector<1x64xf32>
    %2746 = arith.maximumf %2745, %41 : vector<1x64xf32>
    %2747 = arith.subf %2744, %2746 : vector<1x64xf32>
    %cst_528 = arith.constant 0.000000e+00 : f32
    %2748 = vector.broadcast %cst_528 : f32 to vector<1x64xf32>
    %2749 = arith.maximumf %2747, %2748 : vector<1x64xf32>
    %2750 = vector.broadcast %2733 : vector<1x1xf32> to vector<1x64xf32>
    %2751 = arith.minimumf %2750, %62 : vector<1x64xf32>
    %2752 = vector.broadcast %2731 : vector<1x1xf32> to vector<1x64xf32>
    %2753 = arith.maximumf %2752, %48 : vector<1x64xf32>
    %2754 = arith.subf %2751, %2753 : vector<1x64xf32>
    %cst_529 = arith.constant 0.000000e+00 : f32
    %2755 = vector.broadcast %cst_529 : f32 to vector<1x64xf32>
    %2756 = arith.maximumf %2754, %2755 : vector<1x64xf32>
    %2757 = arith.mulf %2749, %2756 : vector<1x64xf32>
    %2758 = vector.broadcast %2734 : vector<1x1xf32> to vector<1x64xf32>
    %2759 = arith.addf %2758, %65 : vector<1x64xf32>
    %2760 = arith.subf %2759, %2757 : vector<1x64xf32>
    %cst_530 = arith.constant 9.99999993E-9 : f32
    %2761 = vector.broadcast %cst_530 : f32 to vector<1x64xf32>
    %2762 = arith.addf %2760, %2761 : vector<1x64xf32>
    %2763 = tpu.reciprocal %2762 {approx = true} : vector<1x64xf32> -> vector<1x64xf32>
    %2764 = arith.mulf %2757, %2763 : vector<1x64xf32>
    %cst_531 = arith.constant 5.000000e-01 : f32
    %2765 = vector.broadcast %cst_531 : f32 to vector<1x1xf32>
    %2766 = arith.cmpf ogt, %2742, %2765 : vector<1x1xf32>
    %cst_532 = arith.constant 5.000000e-01 : f32
    %2767 = vector.broadcast %cst_532 : f32 to vector<1x64xf32>
    %2768 = arith.cmpf ogt, %2764, %2767 : vector<1x64xf32>
    %2769 = vector.broadcast %2766 : vector<1x1xi1> to vector<1x64xi1>
    %2770 = arith.andi %2769, %2768 : vector<1x64xi1>
    %2771 = vector.broadcast %c50_i32 : i32 to vector<1x64xi32>
    %2772 = arith.cmpi sgt, %68, %2771 : vector<1x64xi32>
    %2773 = arith.andi %2770, %2772 : vector<1x64xi1>
    %2774 = arith.extui %2773 : vector<1x64xi1> to vector<1x64xi32>
    %2775 = arith.sitofp %2774 : vector<1x64xi32> to vector<1x64xf32>
    %2776 = arith.maximumf %2723, %2775 : vector<1x64xf32>
    %c51_i32 = arith.constant 51 : i32
    %2777 = vector.broadcast %c51_i32 : i32 to vector<5x64xi32>
    %2778 = arith.cmpi eq, %70, %2777 : vector<5x64xi32>
    %cst_533 = arith.constant 0.000000e+00 : f32
    %2779 = vector.broadcast %cst_533 : f32 to vector<5x64xf32>
    %2780 = arith.select %2778, %69, %2779 : vector<5x64xi1>, vector<5x64xf32>
    %cst_534 = arith.constant dense<0.000000e+00> : vector<5xf32>
    %2781 = vector.multi_reduction <add>, %2780, %cst_534 [1] : vector<5x64xf32> to vector<5xf32>
    %2782 = vector.shape_cast %2781 : vector<5xf32> to vector<5x1xf32>
    %2783 = vector.extract_strided_slice %2782 {offsets = [0, 0], sizes = [1, 1], strides = [1, 1]} : vector<5x1xf32> to vector<1x1xf32>
    %2784 = vector.extract_strided_slice %2782 {offsets = [1, 0], sizes = [1, 1], strides = [1, 1]} : vector<5x1xf32> to vector<1x1xf32>
    %2785 = vector.extract_strided_slice %2782 {offsets = [2, 0], sizes = [1, 1], strides = [1, 1]} : vector<5x1xf32> to vector<1x1xf32>
    %2786 = vector.extract_strided_slice %2782 {offsets = [3, 0], sizes = [1, 1], strides = [1, 1]} : vector<5x1xf32> to vector<1x1xf32>
    %2787 = vector.extract_strided_slice %2782 {offsets = [4, 0], sizes = [1, 1], strides = [1, 1]} : vector<5x1xf32> to vector<1x1xf32>
    %2788 = vector.broadcast %c51_i32 : i32 to vector<1x64xi32>
    %2789 = arith.cmpi eq, %68, %2788 : vector<1x64xi32>
    %cst_535 = arith.constant 1.000000e+00 : f32
    %2790 = vector.broadcast %cst_535 : f32 to vector<1x64xf32>
    %2791 = arith.subf %2790, %2776 : vector<1x64xf32>
    %cst_536 = arith.constant 0.000000e+00 : f32
    %2792 = vector.broadcast %cst_536 : f32 to vector<1x64xf32>
    %2793 = arith.select %2789, %2791, %2792 : vector<1x64xi1>, vector<1x64xf32>
    %cst_537 = arith.constant dense<0xFF800000> : vector<1xf32>
    %2794 = vector.multi_reduction <maximumf>, %2793, %cst_537 [1] : vector<1x64xf32> to vector<1xf32>
    %2795 = vector.shape_cast %2794 : vector<1xf32> to vector<1x1xf32>
    %2796 = vector.broadcast %2785 : vector<1x1xf32> to vector<1x64xf32>
    %2797 = arith.minimumf %2796, %55 : vector<1x64xf32>
    %2798 = vector.broadcast %2783 : vector<1x1xf32> to vector<1x64xf32>
    %2799 = arith.maximumf %2798, %41 : vector<1x64xf32>
    %2800 = arith.subf %2797, %2799 : vector<1x64xf32>
    %cst_538 = arith.constant 0.000000e+00 : f32
    %2801 = vector.broadcast %cst_538 : f32 to vector<1x64xf32>
    %2802 = arith.maximumf %2800, %2801 : vector<1x64xf32>
    %2803 = vector.broadcast %2786 : vector<1x1xf32> to vector<1x64xf32>
    %2804 = arith.minimumf %2803, %62 : vector<1x64xf32>
    %2805 = vector.broadcast %2784 : vector<1x1xf32> to vector<1x64xf32>
    %2806 = arith.maximumf %2805, %48 : vector<1x64xf32>
    %2807 = arith.subf %2804, %2806 : vector<1x64xf32>
    %cst_539 = arith.constant 0.000000e+00 : f32
    %2808 = vector.broadcast %cst_539 : f32 to vector<1x64xf32>
    %2809 = arith.maximumf %2807, %2808 : vector<1x64xf32>
    %2810 = arith.mulf %2802, %2809 : vector<1x64xf32>
    %2811 = vector.broadcast %2787 : vector<1x1xf32> to vector<1x64xf32>
    %2812 = arith.addf %2811, %65 : vector<1x64xf32>
    %2813 = arith.subf %2812, %2810 : vector<1x64xf32>
    %cst_540 = arith.constant 9.99999993E-9 : f32
    %2814 = vector.broadcast %cst_540 : f32 to vector<1x64xf32>
    %2815 = arith.addf %2813, %2814 : vector<1x64xf32>
    %2816 = tpu.reciprocal %2815 {approx = true} : vector<1x64xf32> -> vector<1x64xf32>
    %2817 = arith.mulf %2810, %2816 : vector<1x64xf32>
    %cst_541 = arith.constant 5.000000e-01 : f32
    %2818 = vector.broadcast %cst_541 : f32 to vector<1x1xf32>
    %2819 = arith.cmpf ogt, %2795, %2818 : vector<1x1xf32>
    %cst_542 = arith.constant 5.000000e-01 : f32
    %2820 = vector.broadcast %cst_542 : f32 to vector<1x64xf32>
    %2821 = arith.cmpf ogt, %2817, %2820 : vector<1x64xf32>
    %2822 = vector.broadcast %2819 : vector<1x1xi1> to vector<1x64xi1>
    %2823 = arith.andi %2822, %2821 : vector<1x64xi1>
    %2824 = vector.broadcast %c51_i32 : i32 to vector<1x64xi32>
    %2825 = arith.cmpi sgt, %68, %2824 : vector<1x64xi32>
    %2826 = arith.andi %2823, %2825 : vector<1x64xi1>
    %2827 = arith.extui %2826 : vector<1x64xi1> to vector<1x64xi32>
    %2828 = arith.sitofp %2827 : vector<1x64xi32> to vector<1x64xf32>
    %2829 = arith.maximumf %2776, %2828 : vector<1x64xf32>
    %c52_i32 = arith.constant 52 : i32
    %2830 = vector.broadcast %c52_i32 : i32 to vector<5x64xi32>
    %2831 = arith.cmpi eq, %70, %2830 : vector<5x64xi32>
    %cst_543 = arith.constant 0.000000e+00 : f32
    %2832 = vector.broadcast %cst_543 : f32 to vector<5x64xf32>
    %2833 = arith.select %2831, %69, %2832 : vector<5x64xi1>, vector<5x64xf32>
    %cst_544 = arith.constant dense<0.000000e+00> : vector<5xf32>
    %2834 = vector.multi_reduction <add>, %2833, %cst_544 [1] : vector<5x64xf32> to vector<5xf32>
    %2835 = vector.shape_cast %2834 : vector<5xf32> to vector<5x1xf32>
    %2836 = vector.extract_strided_slice %2835 {offsets = [0, 0], sizes = [1, 1], strides = [1, 1]} : vector<5x1xf32> to vector<1x1xf32>
    %2837 = vector.extract_strided_slice %2835 {offsets = [1, 0], sizes = [1, 1], strides = [1, 1]} : vector<5x1xf32> to vector<1x1xf32>
    %2838 = vector.extract_strided_slice %2835 {offsets = [2, 0], sizes = [1, 1], strides = [1, 1]} : vector<5x1xf32> to vector<1x1xf32>
    %2839 = vector.extract_strided_slice %2835 {offsets = [3, 0], sizes = [1, 1], strides = [1, 1]} : vector<5x1xf32> to vector<1x1xf32>
    %2840 = vector.extract_strided_slice %2835 {offsets = [4, 0], sizes = [1, 1], strides = [1, 1]} : vector<5x1xf32> to vector<1x1xf32>
    %2841 = vector.broadcast %c52_i32 : i32 to vector<1x64xi32>
    %2842 = arith.cmpi eq, %68, %2841 : vector<1x64xi32>
    %cst_545 = arith.constant 1.000000e+00 : f32
    %2843 = vector.broadcast %cst_545 : f32 to vector<1x64xf32>
    %2844 = arith.subf %2843, %2829 : vector<1x64xf32>
    %cst_546 = arith.constant 0.000000e+00 : f32
    %2845 = vector.broadcast %cst_546 : f32 to vector<1x64xf32>
    %2846 = arith.select %2842, %2844, %2845 : vector<1x64xi1>, vector<1x64xf32>
    %cst_547 = arith.constant dense<0xFF800000> : vector<1xf32>
    %2847 = vector.multi_reduction <maximumf>, %2846, %cst_547 [1] : vector<1x64xf32> to vector<1xf32>
    %2848 = vector.shape_cast %2847 : vector<1xf32> to vector<1x1xf32>
    %2849 = vector.broadcast %2838 : vector<1x1xf32> to vector<1x64xf32>
    %2850 = arith.minimumf %2849, %55 : vector<1x64xf32>
    %2851 = vector.broadcast %2836 : vector<1x1xf32> to vector<1x64xf32>
    %2852 = arith.maximumf %2851, %41 : vector<1x64xf32>
    %2853 = arith.subf %2850, %2852 : vector<1x64xf32>
    %cst_548 = arith.constant 0.000000e+00 : f32
    %2854 = vector.broadcast %cst_548 : f32 to vector<1x64xf32>
    %2855 = arith.maximumf %2853, %2854 : vector<1x64xf32>
    %2856 = vector.broadcast %2839 : vector<1x1xf32> to vector<1x64xf32>
    %2857 = arith.minimumf %2856, %62 : vector<1x64xf32>
    %2858 = vector.broadcast %2837 : vector<1x1xf32> to vector<1x64xf32>
    %2859 = arith.maximumf %2858, %48 : vector<1x64xf32>
    %2860 = arith.subf %2857, %2859 : vector<1x64xf32>
    %cst_549 = arith.constant 0.000000e+00 : f32
    %2861 = vector.broadcast %cst_549 : f32 to vector<1x64xf32>
    %2862 = arith.maximumf %2860, %2861 : vector<1x64xf32>
    %2863 = arith.mulf %2855, %2862 : vector<1x64xf32>
    %2864 = vector.broadcast %2840 : vector<1x1xf32> to vector<1x64xf32>
    %2865 = arith.addf %2864, %65 : vector<1x64xf32>
    %2866 = arith.subf %2865, %2863 : vector<1x64xf32>
    %cst_550 = arith.constant 9.99999993E-9 : f32
    %2867 = vector.broadcast %cst_550 : f32 to vector<1x64xf32>
    %2868 = arith.addf %2866, %2867 : vector<1x64xf32>
    %2869 = tpu.reciprocal %2868 {approx = true} : vector<1x64xf32> -> vector<1x64xf32>
    %2870 = arith.mulf %2863, %2869 : vector<1x64xf32>
    %cst_551 = arith.constant 5.000000e-01 : f32
    %2871 = vector.broadcast %cst_551 : f32 to vector<1x1xf32>
    %2872 = arith.cmpf ogt, %2848, %2871 : vector<1x1xf32>
    %cst_552 = arith.constant 5.000000e-01 : f32
    %2873 = vector.broadcast %cst_552 : f32 to vector<1x64xf32>
    %2874 = arith.cmpf ogt, %2870, %2873 : vector<1x64xf32>
    %2875 = vector.broadcast %2872 : vector<1x1xi1> to vector<1x64xi1>
    %2876 = arith.andi %2875, %2874 : vector<1x64xi1>
    %2877 = vector.broadcast %c52_i32 : i32 to vector<1x64xi32>
    %2878 = arith.cmpi sgt, %68, %2877 : vector<1x64xi32>
    %2879 = arith.andi %2876, %2878 : vector<1x64xi1>
    %2880 = arith.extui %2879 : vector<1x64xi1> to vector<1x64xi32>
    %2881 = arith.sitofp %2880 : vector<1x64xi32> to vector<1x64xf32>
    %2882 = arith.maximumf %2829, %2881 : vector<1x64xf32>
    %c53_i32 = arith.constant 53 : i32
    %2883 = vector.broadcast %c53_i32 : i32 to vector<5x64xi32>
    %2884 = arith.cmpi eq, %70, %2883 : vector<5x64xi32>
    %cst_553 = arith.constant 0.000000e+00 : f32
    %2885 = vector.broadcast %cst_553 : f32 to vector<5x64xf32>
    %2886 = arith.select %2884, %69, %2885 : vector<5x64xi1>, vector<5x64xf32>
    %cst_554 = arith.constant dense<0.000000e+00> : vector<5xf32>
    %2887 = vector.multi_reduction <add>, %2886, %cst_554 [1] : vector<5x64xf32> to vector<5xf32>
    %2888 = vector.shape_cast %2887 : vector<5xf32> to vector<5x1xf32>
    %2889 = vector.extract_strided_slice %2888 {offsets = [0, 0], sizes = [1, 1], strides = [1, 1]} : vector<5x1xf32> to vector<1x1xf32>
    %2890 = vector.extract_strided_slice %2888 {offsets = [1, 0], sizes = [1, 1], strides = [1, 1]} : vector<5x1xf32> to vector<1x1xf32>
    %2891 = vector.extract_strided_slice %2888 {offsets = [2, 0], sizes = [1, 1], strides = [1, 1]} : vector<5x1xf32> to vector<1x1xf32>
    %2892 = vector.extract_strided_slice %2888 {offsets = [3, 0], sizes = [1, 1], strides = [1, 1]} : vector<5x1xf32> to vector<1x1xf32>
    %2893 = vector.extract_strided_slice %2888 {offsets = [4, 0], sizes = [1, 1], strides = [1, 1]} : vector<5x1xf32> to vector<1x1xf32>
    %2894 = vector.broadcast %c53_i32 : i32 to vector<1x64xi32>
    %2895 = arith.cmpi eq, %68, %2894 : vector<1x64xi32>
    %cst_555 = arith.constant 1.000000e+00 : f32
    %2896 = vector.broadcast %cst_555 : f32 to vector<1x64xf32>
    %2897 = arith.subf %2896, %2882 : vector<1x64xf32>
    %cst_556 = arith.constant 0.000000e+00 : f32
    %2898 = vector.broadcast %cst_556 : f32 to vector<1x64xf32>
    %2899 = arith.select %2895, %2897, %2898 : vector<1x64xi1>, vector<1x64xf32>
    %cst_557 = arith.constant dense<0xFF800000> : vector<1xf32>
    %2900 = vector.multi_reduction <maximumf>, %2899, %cst_557 [1] : vector<1x64xf32> to vector<1xf32>
    %2901 = vector.shape_cast %2900 : vector<1xf32> to vector<1x1xf32>
    %2902 = vector.broadcast %2891 : vector<1x1xf32> to vector<1x64xf32>
    %2903 = arith.minimumf %2902, %55 : vector<1x64xf32>
    %2904 = vector.broadcast %2889 : vector<1x1xf32> to vector<1x64xf32>
    %2905 = arith.maximumf %2904, %41 : vector<1x64xf32>
    %2906 = arith.subf %2903, %2905 : vector<1x64xf32>
    %cst_558 = arith.constant 0.000000e+00 : f32
    %2907 = vector.broadcast %cst_558 : f32 to vector<1x64xf32>
    %2908 = arith.maximumf %2906, %2907 : vector<1x64xf32>
    %2909 = vector.broadcast %2892 : vector<1x1xf32> to vector<1x64xf32>
    %2910 = arith.minimumf %2909, %62 : vector<1x64xf32>
    %2911 = vector.broadcast %2890 : vector<1x1xf32> to vector<1x64xf32>
    %2912 = arith.maximumf %2911, %48 : vector<1x64xf32>
    %2913 = arith.subf %2910, %2912 : vector<1x64xf32>
    %cst_559 = arith.constant 0.000000e+00 : f32
    %2914 = vector.broadcast %cst_559 : f32 to vector<1x64xf32>
    %2915 = arith.maximumf %2913, %2914 : vector<1x64xf32>
    %2916 = arith.mulf %2908, %2915 : vector<1x64xf32>
    %2917 = vector.broadcast %2893 : vector<1x1xf32> to vector<1x64xf32>
    %2918 = arith.addf %2917, %65 : vector<1x64xf32>
    %2919 = arith.subf %2918, %2916 : vector<1x64xf32>
    %cst_560 = arith.constant 9.99999993E-9 : f32
    %2920 = vector.broadcast %cst_560 : f32 to vector<1x64xf32>
    %2921 = arith.addf %2919, %2920 : vector<1x64xf32>
    %2922 = tpu.reciprocal %2921 {approx = true} : vector<1x64xf32> -> vector<1x64xf32>
    %2923 = arith.mulf %2916, %2922 : vector<1x64xf32>
    %cst_561 = arith.constant 5.000000e-01 : f32
    %2924 = vector.broadcast %cst_561 : f32 to vector<1x1xf32>
    %2925 = arith.cmpf ogt, %2901, %2924 : vector<1x1xf32>
    %cst_562 = arith.constant 5.000000e-01 : f32
    %2926 = vector.broadcast %cst_562 : f32 to vector<1x64xf32>
    %2927 = arith.cmpf ogt, %2923, %2926 : vector<1x64xf32>
    %2928 = vector.broadcast %2925 : vector<1x1xi1> to vector<1x64xi1>
    %2929 = arith.andi %2928, %2927 : vector<1x64xi1>
    %2930 = vector.broadcast %c53_i32 : i32 to vector<1x64xi32>
    %2931 = arith.cmpi sgt, %68, %2930 : vector<1x64xi32>
    %2932 = arith.andi %2929, %2931 : vector<1x64xi1>
    %2933 = arith.extui %2932 : vector<1x64xi1> to vector<1x64xi32>
    %2934 = arith.sitofp %2933 : vector<1x64xi32> to vector<1x64xf32>
    %2935 = arith.maximumf %2882, %2934 : vector<1x64xf32>
    %c54_i32 = arith.constant 54 : i32
    %2936 = vector.broadcast %c54_i32 : i32 to vector<5x64xi32>
    %2937 = arith.cmpi eq, %70, %2936 : vector<5x64xi32>
    %cst_563 = arith.constant 0.000000e+00 : f32
    %2938 = vector.broadcast %cst_563 : f32 to vector<5x64xf32>
    %2939 = arith.select %2937, %69, %2938 : vector<5x64xi1>, vector<5x64xf32>
    %cst_564 = arith.constant dense<0.000000e+00> : vector<5xf32>
    %2940 = vector.multi_reduction <add>, %2939, %cst_564 [1] : vector<5x64xf32> to vector<5xf32>
    %2941 = vector.shape_cast %2940 : vector<5xf32> to vector<5x1xf32>
    %2942 = vector.extract_strided_slice %2941 {offsets = [0, 0], sizes = [1, 1], strides = [1, 1]} : vector<5x1xf32> to vector<1x1xf32>
    %2943 = vector.extract_strided_slice %2941 {offsets = [1, 0], sizes = [1, 1], strides = [1, 1]} : vector<5x1xf32> to vector<1x1xf32>
    %2944 = vector.extract_strided_slice %2941 {offsets = [2, 0], sizes = [1, 1], strides = [1, 1]} : vector<5x1xf32> to vector<1x1xf32>
    %2945 = vector.extract_strided_slice %2941 {offsets = [3, 0], sizes = [1, 1], strides = [1, 1]} : vector<5x1xf32> to vector<1x1xf32>
    %2946 = vector.extract_strided_slice %2941 {offsets = [4, 0], sizes = [1, 1], strides = [1, 1]} : vector<5x1xf32> to vector<1x1xf32>
    %2947 = vector.broadcast %c54_i32 : i32 to vector<1x64xi32>
    %2948 = arith.cmpi eq, %68, %2947 : vector<1x64xi32>
    %cst_565 = arith.constant 1.000000e+00 : f32
    %2949 = vector.broadcast %cst_565 : f32 to vector<1x64xf32>
    %2950 = arith.subf %2949, %2935 : vector<1x64xf32>
    %cst_566 = arith.constant 0.000000e+00 : f32
    %2951 = vector.broadcast %cst_566 : f32 to vector<1x64xf32>
    %2952 = arith.select %2948, %2950, %2951 : vector<1x64xi1>, vector<1x64xf32>
    %cst_567 = arith.constant dense<0xFF800000> : vector<1xf32>
    %2953 = vector.multi_reduction <maximumf>, %2952, %cst_567 [1] : vector<1x64xf32> to vector<1xf32>
    %2954 = vector.shape_cast %2953 : vector<1xf32> to vector<1x1xf32>
    %2955 = vector.broadcast %2944 : vector<1x1xf32> to vector<1x64xf32>
    %2956 = arith.minimumf %2955, %55 : vector<1x64xf32>
    %2957 = vector.broadcast %2942 : vector<1x1xf32> to vector<1x64xf32>
    %2958 = arith.maximumf %2957, %41 : vector<1x64xf32>
    %2959 = arith.subf %2956, %2958 : vector<1x64xf32>
    %cst_568 = arith.constant 0.000000e+00 : f32
    %2960 = vector.broadcast %cst_568 : f32 to vector<1x64xf32>
    %2961 = arith.maximumf %2959, %2960 : vector<1x64xf32>
    %2962 = vector.broadcast %2945 : vector<1x1xf32> to vector<1x64xf32>
    %2963 = arith.minimumf %2962, %62 : vector<1x64xf32>
    %2964 = vector.broadcast %2943 : vector<1x1xf32> to vector<1x64xf32>
    %2965 = arith.maximumf %2964, %48 : vector<1x64xf32>
    %2966 = arith.subf %2963, %2965 : vector<1x64xf32>
    %cst_569 = arith.constant 0.000000e+00 : f32
    %2967 = vector.broadcast %cst_569 : f32 to vector<1x64xf32>
    %2968 = arith.maximumf %2966, %2967 : vector<1x64xf32>
    %2969 = arith.mulf %2961, %2968 : vector<1x64xf32>
    %2970 = vector.broadcast %2946 : vector<1x1xf32> to vector<1x64xf32>
    %2971 = arith.addf %2970, %65 : vector<1x64xf32>
    %2972 = arith.subf %2971, %2969 : vector<1x64xf32>
    %cst_570 = arith.constant 9.99999993E-9 : f32
    %2973 = vector.broadcast %cst_570 : f32 to vector<1x64xf32>
    %2974 = arith.addf %2972, %2973 : vector<1x64xf32>
    %2975 = tpu.reciprocal %2974 {approx = true} : vector<1x64xf32> -> vector<1x64xf32>
    %2976 = arith.mulf %2969, %2975 : vector<1x64xf32>
    %cst_571 = arith.constant 5.000000e-01 : f32
    %2977 = vector.broadcast %cst_571 : f32 to vector<1x1xf32>
    %2978 = arith.cmpf ogt, %2954, %2977 : vector<1x1xf32>
    %cst_572 = arith.constant 5.000000e-01 : f32
    %2979 = vector.broadcast %cst_572 : f32 to vector<1x64xf32>
    %2980 = arith.cmpf ogt, %2976, %2979 : vector<1x64xf32>
    %2981 = vector.broadcast %2978 : vector<1x1xi1> to vector<1x64xi1>
    %2982 = arith.andi %2981, %2980 : vector<1x64xi1>
    %2983 = vector.broadcast %c54_i32 : i32 to vector<1x64xi32>
    %2984 = arith.cmpi sgt, %68, %2983 : vector<1x64xi32>
    %2985 = arith.andi %2982, %2984 : vector<1x64xi1>
    %2986 = arith.extui %2985 : vector<1x64xi1> to vector<1x64xi32>
    %2987 = arith.sitofp %2986 : vector<1x64xi32> to vector<1x64xf32>
    %2988 = arith.maximumf %2935, %2987 : vector<1x64xf32>
    %c55_i32 = arith.constant 55 : i32
    %2989 = vector.broadcast %c55_i32 : i32 to vector<5x64xi32>
    %2990 = arith.cmpi eq, %70, %2989 : vector<5x64xi32>
    %cst_573 = arith.constant 0.000000e+00 : f32
    %2991 = vector.broadcast %cst_573 : f32 to vector<5x64xf32>
    %2992 = arith.select %2990, %69, %2991 : vector<5x64xi1>, vector<5x64xf32>
    %cst_574 = arith.constant dense<0.000000e+00> : vector<5xf32>
    %2993 = vector.multi_reduction <add>, %2992, %cst_574 [1] : vector<5x64xf32> to vector<5xf32>
    %2994 = vector.shape_cast %2993 : vector<5xf32> to vector<5x1xf32>
    %2995 = vector.extract_strided_slice %2994 {offsets = [0, 0], sizes = [1, 1], strides = [1, 1]} : vector<5x1xf32> to vector<1x1xf32>
    %2996 = vector.extract_strided_slice %2994 {offsets = [1, 0], sizes = [1, 1], strides = [1, 1]} : vector<5x1xf32> to vector<1x1xf32>
    %2997 = vector.extract_strided_slice %2994 {offsets = [2, 0], sizes = [1, 1], strides = [1, 1]} : vector<5x1xf32> to vector<1x1xf32>
    %2998 = vector.extract_strided_slice %2994 {offsets = [3, 0], sizes = [1, 1], strides = [1, 1]} : vector<5x1xf32> to vector<1x1xf32>
    %2999 = vector.extract_strided_slice %2994 {offsets = [4, 0], sizes = [1, 1], strides = [1, 1]} : vector<5x1xf32> to vector<1x1xf32>
    %3000 = vector.broadcast %c55_i32 : i32 to vector<1x64xi32>
    %3001 = arith.cmpi eq, %68, %3000 : vector<1x64xi32>
    %cst_575 = arith.constant 1.000000e+00 : f32
    %3002 = vector.broadcast %cst_575 : f32 to vector<1x64xf32>
    %3003 = arith.subf %3002, %2988 : vector<1x64xf32>
    %cst_576 = arith.constant 0.000000e+00 : f32
    %3004 = vector.broadcast %cst_576 : f32 to vector<1x64xf32>
    %3005 = arith.select %3001, %3003, %3004 : vector<1x64xi1>, vector<1x64xf32>
    %cst_577 = arith.constant dense<0xFF800000> : vector<1xf32>
    %3006 = vector.multi_reduction <maximumf>, %3005, %cst_577 [1] : vector<1x64xf32> to vector<1xf32>
    %3007 = vector.shape_cast %3006 : vector<1xf32> to vector<1x1xf32>
    %3008 = vector.broadcast %2997 : vector<1x1xf32> to vector<1x64xf32>
    %3009 = arith.minimumf %3008, %55 : vector<1x64xf32>
    %3010 = vector.broadcast %2995 : vector<1x1xf32> to vector<1x64xf32>
    %3011 = arith.maximumf %3010, %41 : vector<1x64xf32>
    %3012 = arith.subf %3009, %3011 : vector<1x64xf32>
    %cst_578 = arith.constant 0.000000e+00 : f32
    %3013 = vector.broadcast %cst_578 : f32 to vector<1x64xf32>
    %3014 = arith.maximumf %3012, %3013 : vector<1x64xf32>
    %3015 = vector.broadcast %2998 : vector<1x1xf32> to vector<1x64xf32>
    %3016 = arith.minimumf %3015, %62 : vector<1x64xf32>
    %3017 = vector.broadcast %2996 : vector<1x1xf32> to vector<1x64xf32>
    %3018 = arith.maximumf %3017, %48 : vector<1x64xf32>
    %3019 = arith.subf %3016, %3018 : vector<1x64xf32>
    %cst_579 = arith.constant 0.000000e+00 : f32
    %3020 = vector.broadcast %cst_579 : f32 to vector<1x64xf32>
    %3021 = arith.maximumf %3019, %3020 : vector<1x64xf32>
    %3022 = arith.mulf %3014, %3021 : vector<1x64xf32>
    %3023 = vector.broadcast %2999 : vector<1x1xf32> to vector<1x64xf32>
    %3024 = arith.addf %3023, %65 : vector<1x64xf32>
    %3025 = arith.subf %3024, %3022 : vector<1x64xf32>
    %cst_580 = arith.constant 9.99999993E-9 : f32
    %3026 = vector.broadcast %cst_580 : f32 to vector<1x64xf32>
    %3027 = arith.addf %3025, %3026 : vector<1x64xf32>
    %3028 = tpu.reciprocal %3027 {approx = true} : vector<1x64xf32> -> vector<1x64xf32>
    %3029 = arith.mulf %3022, %3028 : vector<1x64xf32>
    %cst_581 = arith.constant 5.000000e-01 : f32
    %3030 = vector.broadcast %cst_581 : f32 to vector<1x1xf32>
    %3031 = arith.cmpf ogt, %3007, %3030 : vector<1x1xf32>
    %cst_582 = arith.constant 5.000000e-01 : f32
    %3032 = vector.broadcast %cst_582 : f32 to vector<1x64xf32>
    %3033 = arith.cmpf ogt, %3029, %3032 : vector<1x64xf32>
    %3034 = vector.broadcast %3031 : vector<1x1xi1> to vector<1x64xi1>
    %3035 = arith.andi %3034, %3033 : vector<1x64xi1>
    %3036 = vector.broadcast %c55_i32 : i32 to vector<1x64xi32>
    %3037 = arith.cmpi sgt, %68, %3036 : vector<1x64xi32>
    %3038 = arith.andi %3035, %3037 : vector<1x64xi1>
    %3039 = arith.extui %3038 : vector<1x64xi1> to vector<1x64xi32>
    %3040 = arith.sitofp %3039 : vector<1x64xi32> to vector<1x64xf32>
    %3041 = arith.maximumf %2988, %3040 : vector<1x64xf32>
    %c56_i32 = arith.constant 56 : i32
    %3042 = vector.broadcast %c56_i32 : i32 to vector<5x64xi32>
    %3043 = arith.cmpi eq, %70, %3042 : vector<5x64xi32>
    %cst_583 = arith.constant 0.000000e+00 : f32
    %3044 = vector.broadcast %cst_583 : f32 to vector<5x64xf32>
    %3045 = arith.select %3043, %69, %3044 : vector<5x64xi1>, vector<5x64xf32>
    %cst_584 = arith.constant dense<0.000000e+00> : vector<5xf32>
    %3046 = vector.multi_reduction <add>, %3045, %cst_584 [1] : vector<5x64xf32> to vector<5xf32>
    %3047 = vector.shape_cast %3046 : vector<5xf32> to vector<5x1xf32>
    %3048 = vector.extract_strided_slice %3047 {offsets = [0, 0], sizes = [1, 1], strides = [1, 1]} : vector<5x1xf32> to vector<1x1xf32>
    %3049 = vector.extract_strided_slice %3047 {offsets = [1, 0], sizes = [1, 1], strides = [1, 1]} : vector<5x1xf32> to vector<1x1xf32>
    %3050 = vector.extract_strided_slice %3047 {offsets = [2, 0], sizes = [1, 1], strides = [1, 1]} : vector<5x1xf32> to vector<1x1xf32>
    %3051 = vector.extract_strided_slice %3047 {offsets = [3, 0], sizes = [1, 1], strides = [1, 1]} : vector<5x1xf32> to vector<1x1xf32>
    %3052 = vector.extract_strided_slice %3047 {offsets = [4, 0], sizes = [1, 1], strides = [1, 1]} : vector<5x1xf32> to vector<1x1xf32>
    %3053 = vector.broadcast %c56_i32 : i32 to vector<1x64xi32>
    %3054 = arith.cmpi eq, %68, %3053 : vector<1x64xi32>
    %cst_585 = arith.constant 1.000000e+00 : f32
    %3055 = vector.broadcast %cst_585 : f32 to vector<1x64xf32>
    %3056 = arith.subf %3055, %3041 : vector<1x64xf32>
    %cst_586 = arith.constant 0.000000e+00 : f32
    %3057 = vector.broadcast %cst_586 : f32 to vector<1x64xf32>
    %3058 = arith.select %3054, %3056, %3057 : vector<1x64xi1>, vector<1x64xf32>
    %cst_587 = arith.constant dense<0xFF800000> : vector<1xf32>
    %3059 = vector.multi_reduction <maximumf>, %3058, %cst_587 [1] : vector<1x64xf32> to vector<1xf32>
    %3060 = vector.shape_cast %3059 : vector<1xf32> to vector<1x1xf32>
    %3061 = vector.broadcast %3050 : vector<1x1xf32> to vector<1x64xf32>
    %3062 = arith.minimumf %3061, %55 : vector<1x64xf32>
    %3063 = vector.broadcast %3048 : vector<1x1xf32> to vector<1x64xf32>
    %3064 = arith.maximumf %3063, %41 : vector<1x64xf32>
    %3065 = arith.subf %3062, %3064 : vector<1x64xf32>
    %cst_588 = arith.constant 0.000000e+00 : f32
    %3066 = vector.broadcast %cst_588 : f32 to vector<1x64xf32>
    %3067 = arith.maximumf %3065, %3066 : vector<1x64xf32>
    %3068 = vector.broadcast %3051 : vector<1x1xf32> to vector<1x64xf32>
    %3069 = arith.minimumf %3068, %62 : vector<1x64xf32>
    %3070 = vector.broadcast %3049 : vector<1x1xf32> to vector<1x64xf32>
    %3071 = arith.maximumf %3070, %48 : vector<1x64xf32>
    %3072 = arith.subf %3069, %3071 : vector<1x64xf32>
    %cst_589 = arith.constant 0.000000e+00 : f32
    %3073 = vector.broadcast %cst_589 : f32 to vector<1x64xf32>
    %3074 = arith.maximumf %3072, %3073 : vector<1x64xf32>
    %3075 = arith.mulf %3067, %3074 : vector<1x64xf32>
    %3076 = vector.broadcast %3052 : vector<1x1xf32> to vector<1x64xf32>
    %3077 = arith.addf %3076, %65 : vector<1x64xf32>
    %3078 = arith.subf %3077, %3075 : vector<1x64xf32>
    %cst_590 = arith.constant 9.99999993E-9 : f32
    %3079 = vector.broadcast %cst_590 : f32 to vector<1x64xf32>
    %3080 = arith.addf %3078, %3079 : vector<1x64xf32>
    %3081 = tpu.reciprocal %3080 {approx = true} : vector<1x64xf32> -> vector<1x64xf32>
    %3082 = arith.mulf %3075, %3081 : vector<1x64xf32>
    %cst_591 = arith.constant 5.000000e-01 : f32
    %3083 = vector.broadcast %cst_591 : f32 to vector<1x1xf32>
    %3084 = arith.cmpf ogt, %3060, %3083 : vector<1x1xf32>
    %cst_592 = arith.constant 5.000000e-01 : f32
    %3085 = vector.broadcast %cst_592 : f32 to vector<1x64xf32>
    %3086 = arith.cmpf ogt, %3082, %3085 : vector<1x64xf32>
    %3087 = vector.broadcast %3084 : vector<1x1xi1> to vector<1x64xi1>
    %3088 = arith.andi %3087, %3086 : vector<1x64xi1>
    %3089 = vector.broadcast %c56_i32 : i32 to vector<1x64xi32>
    %3090 = arith.cmpi sgt, %68, %3089 : vector<1x64xi32>
    %3091 = arith.andi %3088, %3090 : vector<1x64xi1>
    %3092 = arith.extui %3091 : vector<1x64xi1> to vector<1x64xi32>
    %3093 = arith.sitofp %3092 : vector<1x64xi32> to vector<1x64xf32>
    %3094 = arith.maximumf %3041, %3093 : vector<1x64xf32>
    %c57_i32 = arith.constant 57 : i32
    %3095 = vector.broadcast %c57_i32 : i32 to vector<5x64xi32>
    %3096 = arith.cmpi eq, %70, %3095 : vector<5x64xi32>
    %cst_593 = arith.constant 0.000000e+00 : f32
    %3097 = vector.broadcast %cst_593 : f32 to vector<5x64xf32>
    %3098 = arith.select %3096, %69, %3097 : vector<5x64xi1>, vector<5x64xf32>
    %cst_594 = arith.constant dense<0.000000e+00> : vector<5xf32>
    %3099 = vector.multi_reduction <add>, %3098, %cst_594 [1] : vector<5x64xf32> to vector<5xf32>
    %3100 = vector.shape_cast %3099 : vector<5xf32> to vector<5x1xf32>
    %3101 = vector.extract_strided_slice %3100 {offsets = [0, 0], sizes = [1, 1], strides = [1, 1]} : vector<5x1xf32> to vector<1x1xf32>
    %3102 = vector.extract_strided_slice %3100 {offsets = [1, 0], sizes = [1, 1], strides = [1, 1]} : vector<5x1xf32> to vector<1x1xf32>
    %3103 = vector.extract_strided_slice %3100 {offsets = [2, 0], sizes = [1, 1], strides = [1, 1]} : vector<5x1xf32> to vector<1x1xf32>
    %3104 = vector.extract_strided_slice %3100 {offsets = [3, 0], sizes = [1, 1], strides = [1, 1]} : vector<5x1xf32> to vector<1x1xf32>
    %3105 = vector.extract_strided_slice %3100 {offsets = [4, 0], sizes = [1, 1], strides = [1, 1]} : vector<5x1xf32> to vector<1x1xf32>
    %3106 = vector.broadcast %c57_i32 : i32 to vector<1x64xi32>
    %3107 = arith.cmpi eq, %68, %3106 : vector<1x64xi32>
    %cst_595 = arith.constant 1.000000e+00 : f32
    %3108 = vector.broadcast %cst_595 : f32 to vector<1x64xf32>
    %3109 = arith.subf %3108, %3094 : vector<1x64xf32>
    %cst_596 = arith.constant 0.000000e+00 : f32
    %3110 = vector.broadcast %cst_596 : f32 to vector<1x64xf32>
    %3111 = arith.select %3107, %3109, %3110 : vector<1x64xi1>, vector<1x64xf32>
    %cst_597 = arith.constant dense<0xFF800000> : vector<1xf32>
    %3112 = vector.multi_reduction <maximumf>, %3111, %cst_597 [1] : vector<1x64xf32> to vector<1xf32>
    %3113 = vector.shape_cast %3112 : vector<1xf32> to vector<1x1xf32>
    %3114 = vector.broadcast %3103 : vector<1x1xf32> to vector<1x64xf32>
    %3115 = arith.minimumf %3114, %55 : vector<1x64xf32>
    %3116 = vector.broadcast %3101 : vector<1x1xf32> to vector<1x64xf32>
    %3117 = arith.maximumf %3116, %41 : vector<1x64xf32>
    %3118 = arith.subf %3115, %3117 : vector<1x64xf32>
    %cst_598 = arith.constant 0.000000e+00 : f32
    %3119 = vector.broadcast %cst_598 : f32 to vector<1x64xf32>
    %3120 = arith.maximumf %3118, %3119 : vector<1x64xf32>
    %3121 = vector.broadcast %3104 : vector<1x1xf32> to vector<1x64xf32>
    %3122 = arith.minimumf %3121, %62 : vector<1x64xf32>
    %3123 = vector.broadcast %3102 : vector<1x1xf32> to vector<1x64xf32>
    %3124 = arith.maximumf %3123, %48 : vector<1x64xf32>
    %3125 = arith.subf %3122, %3124 : vector<1x64xf32>
    %cst_599 = arith.constant 0.000000e+00 : f32
    %3126 = vector.broadcast %cst_599 : f32 to vector<1x64xf32>
    %3127 = arith.maximumf %3125, %3126 : vector<1x64xf32>
    %3128 = arith.mulf %3120, %3127 : vector<1x64xf32>
    %3129 = vector.broadcast %3105 : vector<1x1xf32> to vector<1x64xf32>
    %3130 = arith.addf %3129, %65 : vector<1x64xf32>
    %3131 = arith.subf %3130, %3128 : vector<1x64xf32>
    %cst_600 = arith.constant 9.99999993E-9 : f32
    %3132 = vector.broadcast %cst_600 : f32 to vector<1x64xf32>
    %3133 = arith.addf %3131, %3132 : vector<1x64xf32>
    %3134 = tpu.reciprocal %3133 {approx = true} : vector<1x64xf32> -> vector<1x64xf32>
    %3135 = arith.mulf %3128, %3134 : vector<1x64xf32>
    %cst_601 = arith.constant 5.000000e-01 : f32
    %3136 = vector.broadcast %cst_601 : f32 to vector<1x1xf32>
    %3137 = arith.cmpf ogt, %3113, %3136 : vector<1x1xf32>
    %cst_602 = arith.constant 5.000000e-01 : f32
    %3138 = vector.broadcast %cst_602 : f32 to vector<1x64xf32>
    %3139 = arith.cmpf ogt, %3135, %3138 : vector<1x64xf32>
    %3140 = vector.broadcast %3137 : vector<1x1xi1> to vector<1x64xi1>
    %3141 = arith.andi %3140, %3139 : vector<1x64xi1>
    %3142 = vector.broadcast %c57_i32 : i32 to vector<1x64xi32>
    %3143 = arith.cmpi sgt, %68, %3142 : vector<1x64xi32>
    %3144 = arith.andi %3141, %3143 : vector<1x64xi1>
    %3145 = arith.extui %3144 : vector<1x64xi1> to vector<1x64xi32>
    %3146 = arith.sitofp %3145 : vector<1x64xi32> to vector<1x64xf32>
    %3147 = arith.maximumf %3094, %3146 : vector<1x64xf32>
    %c58_i32 = arith.constant 58 : i32
    %3148 = vector.broadcast %c58_i32 : i32 to vector<5x64xi32>
    %3149 = arith.cmpi eq, %70, %3148 : vector<5x64xi32>
    %cst_603 = arith.constant 0.000000e+00 : f32
    %3150 = vector.broadcast %cst_603 : f32 to vector<5x64xf32>
    %3151 = arith.select %3149, %69, %3150 : vector<5x64xi1>, vector<5x64xf32>
    %cst_604 = arith.constant dense<0.000000e+00> : vector<5xf32>
    %3152 = vector.multi_reduction <add>, %3151, %cst_604 [1] : vector<5x64xf32> to vector<5xf32>
    %3153 = vector.shape_cast %3152 : vector<5xf32> to vector<5x1xf32>
    %3154 = vector.extract_strided_slice %3153 {offsets = [0, 0], sizes = [1, 1], strides = [1, 1]} : vector<5x1xf32> to vector<1x1xf32>
    %3155 = vector.extract_strided_slice %3153 {offsets = [1, 0], sizes = [1, 1], strides = [1, 1]} : vector<5x1xf32> to vector<1x1xf32>
    %3156 = vector.extract_strided_slice %3153 {offsets = [2, 0], sizes = [1, 1], strides = [1, 1]} : vector<5x1xf32> to vector<1x1xf32>
    %3157 = vector.extract_strided_slice %3153 {offsets = [3, 0], sizes = [1, 1], strides = [1, 1]} : vector<5x1xf32> to vector<1x1xf32>
    %3158 = vector.extract_strided_slice %3153 {offsets = [4, 0], sizes = [1, 1], strides = [1, 1]} : vector<5x1xf32> to vector<1x1xf32>
    %3159 = vector.broadcast %c58_i32 : i32 to vector<1x64xi32>
    %3160 = arith.cmpi eq, %68, %3159 : vector<1x64xi32>
    %cst_605 = arith.constant 1.000000e+00 : f32
    %3161 = vector.broadcast %cst_605 : f32 to vector<1x64xf32>
    %3162 = arith.subf %3161, %3147 : vector<1x64xf32>
    %cst_606 = arith.constant 0.000000e+00 : f32
    %3163 = vector.broadcast %cst_606 : f32 to vector<1x64xf32>
    %3164 = arith.select %3160, %3162, %3163 : vector<1x64xi1>, vector<1x64xf32>
    %cst_607 = arith.constant dense<0xFF800000> : vector<1xf32>
    %3165 = vector.multi_reduction <maximumf>, %3164, %cst_607 [1] : vector<1x64xf32> to vector<1xf32>
    %3166 = vector.shape_cast %3165 : vector<1xf32> to vector<1x1xf32>
    %3167 = vector.broadcast %3156 : vector<1x1xf32> to vector<1x64xf32>
    %3168 = arith.minimumf %3167, %55 : vector<1x64xf32>
    %3169 = vector.broadcast %3154 : vector<1x1xf32> to vector<1x64xf32>
    %3170 = arith.maximumf %3169, %41 : vector<1x64xf32>
    %3171 = arith.subf %3168, %3170 : vector<1x64xf32>
    %cst_608 = arith.constant 0.000000e+00 : f32
    %3172 = vector.broadcast %cst_608 : f32 to vector<1x64xf32>
    %3173 = arith.maximumf %3171, %3172 : vector<1x64xf32>
    %3174 = vector.broadcast %3157 : vector<1x1xf32> to vector<1x64xf32>
    %3175 = arith.minimumf %3174, %62 : vector<1x64xf32>
    %3176 = vector.broadcast %3155 : vector<1x1xf32> to vector<1x64xf32>
    %3177 = arith.maximumf %3176, %48 : vector<1x64xf32>
    %3178 = arith.subf %3175, %3177 : vector<1x64xf32>
    %cst_609 = arith.constant 0.000000e+00 : f32
    %3179 = vector.broadcast %cst_609 : f32 to vector<1x64xf32>
    %3180 = arith.maximumf %3178, %3179 : vector<1x64xf32>
    %3181 = arith.mulf %3173, %3180 : vector<1x64xf32>
    %3182 = vector.broadcast %3158 : vector<1x1xf32> to vector<1x64xf32>
    %3183 = arith.addf %3182, %65 : vector<1x64xf32>
    %3184 = arith.subf %3183, %3181 : vector<1x64xf32>
    %cst_610 = arith.constant 9.99999993E-9 : f32
    %3185 = vector.broadcast %cst_610 : f32 to vector<1x64xf32>
    %3186 = arith.addf %3184, %3185 : vector<1x64xf32>
    %3187 = tpu.reciprocal %3186 {approx = true} : vector<1x64xf32> -> vector<1x64xf32>
    %3188 = arith.mulf %3181, %3187 : vector<1x64xf32>
    %cst_611 = arith.constant 5.000000e-01 : f32
    %3189 = vector.broadcast %cst_611 : f32 to vector<1x1xf32>
    %3190 = arith.cmpf ogt, %3166, %3189 : vector<1x1xf32>
    %cst_612 = arith.constant 5.000000e-01 : f32
    %3191 = vector.broadcast %cst_612 : f32 to vector<1x64xf32>
    %3192 = arith.cmpf ogt, %3188, %3191 : vector<1x64xf32>
    %3193 = vector.broadcast %3190 : vector<1x1xi1> to vector<1x64xi1>
    %3194 = arith.andi %3193, %3192 : vector<1x64xi1>
    %3195 = vector.broadcast %c58_i32 : i32 to vector<1x64xi32>
    %3196 = arith.cmpi sgt, %68, %3195 : vector<1x64xi32>
    %3197 = arith.andi %3194, %3196 : vector<1x64xi1>
    %3198 = arith.extui %3197 : vector<1x64xi1> to vector<1x64xi32>
    %3199 = arith.sitofp %3198 : vector<1x64xi32> to vector<1x64xf32>
    %3200 = arith.maximumf %3147, %3199 : vector<1x64xf32>
    %c59_i32 = arith.constant 59 : i32
    %3201 = vector.broadcast %c59_i32 : i32 to vector<5x64xi32>
    %3202 = arith.cmpi eq, %70, %3201 : vector<5x64xi32>
    %cst_613 = arith.constant 0.000000e+00 : f32
    %3203 = vector.broadcast %cst_613 : f32 to vector<5x64xf32>
    %3204 = arith.select %3202, %69, %3203 : vector<5x64xi1>, vector<5x64xf32>
    %cst_614 = arith.constant dense<0.000000e+00> : vector<5xf32>
    %3205 = vector.multi_reduction <add>, %3204, %cst_614 [1] : vector<5x64xf32> to vector<5xf32>
    %3206 = vector.shape_cast %3205 : vector<5xf32> to vector<5x1xf32>
    %3207 = vector.extract_strided_slice %3206 {offsets = [0, 0], sizes = [1, 1], strides = [1, 1]} : vector<5x1xf32> to vector<1x1xf32>
    %3208 = vector.extract_strided_slice %3206 {offsets = [1, 0], sizes = [1, 1], strides = [1, 1]} : vector<5x1xf32> to vector<1x1xf32>
    %3209 = vector.extract_strided_slice %3206 {offsets = [2, 0], sizes = [1, 1], strides = [1, 1]} : vector<5x1xf32> to vector<1x1xf32>
    %3210 = vector.extract_strided_slice %3206 {offsets = [3, 0], sizes = [1, 1], strides = [1, 1]} : vector<5x1xf32> to vector<1x1xf32>
    %3211 = vector.extract_strided_slice %3206 {offsets = [4, 0], sizes = [1, 1], strides = [1, 1]} : vector<5x1xf32> to vector<1x1xf32>
    %3212 = vector.broadcast %c59_i32 : i32 to vector<1x64xi32>
    %3213 = arith.cmpi eq, %68, %3212 : vector<1x64xi32>
    %cst_615 = arith.constant 1.000000e+00 : f32
    %3214 = vector.broadcast %cst_615 : f32 to vector<1x64xf32>
    %3215 = arith.subf %3214, %3200 : vector<1x64xf32>
    %cst_616 = arith.constant 0.000000e+00 : f32
    %3216 = vector.broadcast %cst_616 : f32 to vector<1x64xf32>
    %3217 = arith.select %3213, %3215, %3216 : vector<1x64xi1>, vector<1x64xf32>
    %cst_617 = arith.constant dense<0xFF800000> : vector<1xf32>
    %3218 = vector.multi_reduction <maximumf>, %3217, %cst_617 [1] : vector<1x64xf32> to vector<1xf32>
    %3219 = vector.shape_cast %3218 : vector<1xf32> to vector<1x1xf32>
    %3220 = vector.broadcast %3209 : vector<1x1xf32> to vector<1x64xf32>
    %3221 = arith.minimumf %3220, %55 : vector<1x64xf32>
    %3222 = vector.broadcast %3207 : vector<1x1xf32> to vector<1x64xf32>
    %3223 = arith.maximumf %3222, %41 : vector<1x64xf32>
    %3224 = arith.subf %3221, %3223 : vector<1x64xf32>
    %cst_618 = arith.constant 0.000000e+00 : f32
    %3225 = vector.broadcast %cst_618 : f32 to vector<1x64xf32>
    %3226 = arith.maximumf %3224, %3225 : vector<1x64xf32>
    %3227 = vector.broadcast %3210 : vector<1x1xf32> to vector<1x64xf32>
    %3228 = arith.minimumf %3227, %62 : vector<1x64xf32>
    %3229 = vector.broadcast %3208 : vector<1x1xf32> to vector<1x64xf32>
    %3230 = arith.maximumf %3229, %48 : vector<1x64xf32>
    %3231 = arith.subf %3228, %3230 : vector<1x64xf32>
    %cst_619 = arith.constant 0.000000e+00 : f32
    %3232 = vector.broadcast %cst_619 : f32 to vector<1x64xf32>
    %3233 = arith.maximumf %3231, %3232 : vector<1x64xf32>
    %3234 = arith.mulf %3226, %3233 : vector<1x64xf32>
    %3235 = vector.broadcast %3211 : vector<1x1xf32> to vector<1x64xf32>
    %3236 = arith.addf %3235, %65 : vector<1x64xf32>
    %3237 = arith.subf %3236, %3234 : vector<1x64xf32>
    %cst_620 = arith.constant 9.99999993E-9 : f32
    %3238 = vector.broadcast %cst_620 : f32 to vector<1x64xf32>
    %3239 = arith.addf %3237, %3238 : vector<1x64xf32>
    %3240 = tpu.reciprocal %3239 {approx = true} : vector<1x64xf32> -> vector<1x64xf32>
    %3241 = arith.mulf %3234, %3240 : vector<1x64xf32>
    %cst_621 = arith.constant 5.000000e-01 : f32
    %3242 = vector.broadcast %cst_621 : f32 to vector<1x1xf32>
    %3243 = arith.cmpf ogt, %3219, %3242 : vector<1x1xf32>
    %cst_622 = arith.constant 5.000000e-01 : f32
    %3244 = vector.broadcast %cst_622 : f32 to vector<1x64xf32>
    %3245 = arith.cmpf ogt, %3241, %3244 : vector<1x64xf32>
    %3246 = vector.broadcast %3243 : vector<1x1xi1> to vector<1x64xi1>
    %3247 = arith.andi %3246, %3245 : vector<1x64xi1>
    %3248 = vector.broadcast %c59_i32 : i32 to vector<1x64xi32>
    %3249 = arith.cmpi sgt, %68, %3248 : vector<1x64xi32>
    %3250 = arith.andi %3247, %3249 : vector<1x64xi1>
    %3251 = arith.extui %3250 : vector<1x64xi1> to vector<1x64xi32>
    %3252 = arith.sitofp %3251 : vector<1x64xi32> to vector<1x64xf32>
    %3253 = arith.maximumf %3200, %3252 : vector<1x64xf32>
    %c60_i32 = arith.constant 60 : i32
    %3254 = vector.broadcast %c60_i32 : i32 to vector<5x64xi32>
    %3255 = arith.cmpi eq, %70, %3254 : vector<5x64xi32>
    %cst_623 = arith.constant 0.000000e+00 : f32
    %3256 = vector.broadcast %cst_623 : f32 to vector<5x64xf32>
    %3257 = arith.select %3255, %69, %3256 : vector<5x64xi1>, vector<5x64xf32>
    %cst_624 = arith.constant dense<0.000000e+00> : vector<5xf32>
    %3258 = vector.multi_reduction <add>, %3257, %cst_624 [1] : vector<5x64xf32> to vector<5xf32>
    %3259 = vector.shape_cast %3258 : vector<5xf32> to vector<5x1xf32>
    %3260 = vector.extract_strided_slice %3259 {offsets = [0, 0], sizes = [1, 1], strides = [1, 1]} : vector<5x1xf32> to vector<1x1xf32>
    %3261 = vector.extract_strided_slice %3259 {offsets = [1, 0], sizes = [1, 1], strides = [1, 1]} : vector<5x1xf32> to vector<1x1xf32>
    %3262 = vector.extract_strided_slice %3259 {offsets = [2, 0], sizes = [1, 1], strides = [1, 1]} : vector<5x1xf32> to vector<1x1xf32>
    %3263 = vector.extract_strided_slice %3259 {offsets = [3, 0], sizes = [1, 1], strides = [1, 1]} : vector<5x1xf32> to vector<1x1xf32>
    %3264 = vector.extract_strided_slice %3259 {offsets = [4, 0], sizes = [1, 1], strides = [1, 1]} : vector<5x1xf32> to vector<1x1xf32>
    %3265 = vector.broadcast %c60_i32 : i32 to vector<1x64xi32>
    %3266 = arith.cmpi eq, %68, %3265 : vector<1x64xi32>
    %cst_625 = arith.constant 1.000000e+00 : f32
    %3267 = vector.broadcast %cst_625 : f32 to vector<1x64xf32>
    %3268 = arith.subf %3267, %3253 : vector<1x64xf32>
    %cst_626 = arith.constant 0.000000e+00 : f32
    %3269 = vector.broadcast %cst_626 : f32 to vector<1x64xf32>
    %3270 = arith.select %3266, %3268, %3269 : vector<1x64xi1>, vector<1x64xf32>
    %cst_627 = arith.constant dense<0xFF800000> : vector<1xf32>
    %3271 = vector.multi_reduction <maximumf>, %3270, %cst_627 [1] : vector<1x64xf32> to vector<1xf32>
    %3272 = vector.shape_cast %3271 : vector<1xf32> to vector<1x1xf32>
    %3273 = vector.broadcast %3262 : vector<1x1xf32> to vector<1x64xf32>
    %3274 = arith.minimumf %3273, %55 : vector<1x64xf32>
    %3275 = vector.broadcast %3260 : vector<1x1xf32> to vector<1x64xf32>
    %3276 = arith.maximumf %3275, %41 : vector<1x64xf32>
    %3277 = arith.subf %3274, %3276 : vector<1x64xf32>
    %cst_628 = arith.constant 0.000000e+00 : f32
    %3278 = vector.broadcast %cst_628 : f32 to vector<1x64xf32>
    %3279 = arith.maximumf %3277, %3278 : vector<1x64xf32>
    %3280 = vector.broadcast %3263 : vector<1x1xf32> to vector<1x64xf32>
    %3281 = arith.minimumf %3280, %62 : vector<1x64xf32>
    %3282 = vector.broadcast %3261 : vector<1x1xf32> to vector<1x64xf32>
    %3283 = arith.maximumf %3282, %48 : vector<1x64xf32>
    %3284 = arith.subf %3281, %3283 : vector<1x64xf32>
    %cst_629 = arith.constant 0.000000e+00 : f32
    %3285 = vector.broadcast %cst_629 : f32 to vector<1x64xf32>
    %3286 = arith.maximumf %3284, %3285 : vector<1x64xf32>
    %3287 = arith.mulf %3279, %3286 : vector<1x64xf32>
    %3288 = vector.broadcast %3264 : vector<1x1xf32> to vector<1x64xf32>
    %3289 = arith.addf %3288, %65 : vector<1x64xf32>
    %3290 = arith.subf %3289, %3287 : vector<1x64xf32>
    %cst_630 = arith.constant 9.99999993E-9 : f32
    %3291 = vector.broadcast %cst_630 : f32 to vector<1x64xf32>
    %3292 = arith.addf %3290, %3291 : vector<1x64xf32>
    %3293 = tpu.reciprocal %3292 {approx = true} : vector<1x64xf32> -> vector<1x64xf32>
    %3294 = arith.mulf %3287, %3293 : vector<1x64xf32>
    %cst_631 = arith.constant 5.000000e-01 : f32
    %3295 = vector.broadcast %cst_631 : f32 to vector<1x1xf32>
    %3296 = arith.cmpf ogt, %3272, %3295 : vector<1x1xf32>
    %cst_632 = arith.constant 5.000000e-01 : f32
    %3297 = vector.broadcast %cst_632 : f32 to vector<1x64xf32>
    %3298 = arith.cmpf ogt, %3294, %3297 : vector<1x64xf32>
    %3299 = vector.broadcast %3296 : vector<1x1xi1> to vector<1x64xi1>
    %3300 = arith.andi %3299, %3298 : vector<1x64xi1>
    %3301 = vector.broadcast %c60_i32 : i32 to vector<1x64xi32>
    %3302 = arith.cmpi sgt, %68, %3301 : vector<1x64xi32>
    %3303 = arith.andi %3300, %3302 : vector<1x64xi1>
    %3304 = arith.extui %3303 : vector<1x64xi1> to vector<1x64xi32>
    %3305 = arith.sitofp %3304 : vector<1x64xi32> to vector<1x64xf32>
    %3306 = arith.maximumf %3253, %3305 : vector<1x64xf32>
    %c61_i32 = arith.constant 61 : i32
    %3307 = vector.broadcast %c61_i32 : i32 to vector<5x64xi32>
    %3308 = arith.cmpi eq, %70, %3307 : vector<5x64xi32>
    %cst_633 = arith.constant 0.000000e+00 : f32
    %3309 = vector.broadcast %cst_633 : f32 to vector<5x64xf32>
    %3310 = arith.select %3308, %69, %3309 : vector<5x64xi1>, vector<5x64xf32>
    %cst_634 = arith.constant dense<0.000000e+00> : vector<5xf32>
    %3311 = vector.multi_reduction <add>, %3310, %cst_634 [1] : vector<5x64xf32> to vector<5xf32>
    %3312 = vector.shape_cast %3311 : vector<5xf32> to vector<5x1xf32>
    %3313 = vector.extract_strided_slice %3312 {offsets = [0, 0], sizes = [1, 1], strides = [1, 1]} : vector<5x1xf32> to vector<1x1xf32>
    %3314 = vector.extract_strided_slice %3312 {offsets = [1, 0], sizes = [1, 1], strides = [1, 1]} : vector<5x1xf32> to vector<1x1xf32>
    %3315 = vector.extract_strided_slice %3312 {offsets = [2, 0], sizes = [1, 1], strides = [1, 1]} : vector<5x1xf32> to vector<1x1xf32>
    %3316 = vector.extract_strided_slice %3312 {offsets = [3, 0], sizes = [1, 1], strides = [1, 1]} : vector<5x1xf32> to vector<1x1xf32>
    %3317 = vector.extract_strided_slice %3312 {offsets = [4, 0], sizes = [1, 1], strides = [1, 1]} : vector<5x1xf32> to vector<1x1xf32>
    %3318 = vector.broadcast %c61_i32 : i32 to vector<1x64xi32>
    %3319 = arith.cmpi eq, %68, %3318 : vector<1x64xi32>
    %cst_635 = arith.constant 1.000000e+00 : f32
    %3320 = vector.broadcast %cst_635 : f32 to vector<1x64xf32>
    %3321 = arith.subf %3320, %3306 : vector<1x64xf32>
    %cst_636 = arith.constant 0.000000e+00 : f32
    %3322 = vector.broadcast %cst_636 : f32 to vector<1x64xf32>
    %3323 = arith.select %3319, %3321, %3322 : vector<1x64xi1>, vector<1x64xf32>
    %cst_637 = arith.constant dense<0xFF800000> : vector<1xf32>
    %3324 = vector.multi_reduction <maximumf>, %3323, %cst_637 [1] : vector<1x64xf32> to vector<1xf32>
    %3325 = vector.shape_cast %3324 : vector<1xf32> to vector<1x1xf32>
    %3326 = vector.broadcast %3315 : vector<1x1xf32> to vector<1x64xf32>
    %3327 = arith.minimumf %3326, %55 : vector<1x64xf32>
    %3328 = vector.broadcast %3313 : vector<1x1xf32> to vector<1x64xf32>
    %3329 = arith.maximumf %3328, %41 : vector<1x64xf32>
    %3330 = arith.subf %3327, %3329 : vector<1x64xf32>
    %cst_638 = arith.constant 0.000000e+00 : f32
    %3331 = vector.broadcast %cst_638 : f32 to vector<1x64xf32>
    %3332 = arith.maximumf %3330, %3331 : vector<1x64xf32>
    %3333 = vector.broadcast %3316 : vector<1x1xf32> to vector<1x64xf32>
    %3334 = arith.minimumf %3333, %62 : vector<1x64xf32>
    %3335 = vector.broadcast %3314 : vector<1x1xf32> to vector<1x64xf32>
    %3336 = arith.maximumf %3335, %48 : vector<1x64xf32>
    %3337 = arith.subf %3334, %3336 : vector<1x64xf32>
    %cst_639 = arith.constant 0.000000e+00 : f32
    %3338 = vector.broadcast %cst_639 : f32 to vector<1x64xf32>
    %3339 = arith.maximumf %3337, %3338 : vector<1x64xf32>
    %3340 = arith.mulf %3332, %3339 : vector<1x64xf32>
    %3341 = vector.broadcast %3317 : vector<1x1xf32> to vector<1x64xf32>
    %3342 = arith.addf %3341, %65 : vector<1x64xf32>
    %3343 = arith.subf %3342, %3340 : vector<1x64xf32>
    %cst_640 = arith.constant 9.99999993E-9 : f32
    %3344 = vector.broadcast %cst_640 : f32 to vector<1x64xf32>
    %3345 = arith.addf %3343, %3344 : vector<1x64xf32>
    %3346 = tpu.reciprocal %3345 {approx = true} : vector<1x64xf32> -> vector<1x64xf32>
    %3347 = arith.mulf %3340, %3346 : vector<1x64xf32>
    %cst_641 = arith.constant 5.000000e-01 : f32
    %3348 = vector.broadcast %cst_641 : f32 to vector<1x1xf32>
    %3349 = arith.cmpf ogt, %3325, %3348 : vector<1x1xf32>
    %cst_642 = arith.constant 5.000000e-01 : f32
    %3350 = vector.broadcast %cst_642 : f32 to vector<1x64xf32>
    %3351 = arith.cmpf ogt, %3347, %3350 : vector<1x64xf32>
    %3352 = vector.broadcast %3349 : vector<1x1xi1> to vector<1x64xi1>
    %3353 = arith.andi %3352, %3351 : vector<1x64xi1>
    %3354 = vector.broadcast %c61_i32 : i32 to vector<1x64xi32>
    %3355 = arith.cmpi sgt, %68, %3354 : vector<1x64xi32>
    %3356 = arith.andi %3353, %3355 : vector<1x64xi1>
    %3357 = arith.extui %3356 : vector<1x64xi1> to vector<1x64xi32>
    %3358 = arith.sitofp %3357 : vector<1x64xi32> to vector<1x64xf32>
    %3359 = arith.maximumf %3306, %3358 : vector<1x64xf32>
    %c62_i32 = arith.constant 62 : i32
    %3360 = vector.broadcast %c62_i32 : i32 to vector<5x64xi32>
    %3361 = arith.cmpi eq, %70, %3360 : vector<5x64xi32>
    %cst_643 = arith.constant 0.000000e+00 : f32
    %3362 = vector.broadcast %cst_643 : f32 to vector<5x64xf32>
    %3363 = arith.select %3361, %69, %3362 : vector<5x64xi1>, vector<5x64xf32>
    %cst_644 = arith.constant dense<0.000000e+00> : vector<5xf32>
    %3364 = vector.multi_reduction <add>, %3363, %cst_644 [1] : vector<5x64xf32> to vector<5xf32>
    %3365 = vector.shape_cast %3364 : vector<5xf32> to vector<5x1xf32>
    %3366 = vector.extract_strided_slice %3365 {offsets = [0, 0], sizes = [1, 1], strides = [1, 1]} : vector<5x1xf32> to vector<1x1xf32>
    %3367 = vector.extract_strided_slice %3365 {offsets = [1, 0], sizes = [1, 1], strides = [1, 1]} : vector<5x1xf32> to vector<1x1xf32>
    %3368 = vector.extract_strided_slice %3365 {offsets = [2, 0], sizes = [1, 1], strides = [1, 1]} : vector<5x1xf32> to vector<1x1xf32>
    %3369 = vector.extract_strided_slice %3365 {offsets = [3, 0], sizes = [1, 1], strides = [1, 1]} : vector<5x1xf32> to vector<1x1xf32>
    %3370 = vector.extract_strided_slice %3365 {offsets = [4, 0], sizes = [1, 1], strides = [1, 1]} : vector<5x1xf32> to vector<1x1xf32>
    %3371 = vector.broadcast %c62_i32 : i32 to vector<1x64xi32>
    %3372 = arith.cmpi eq, %68, %3371 : vector<1x64xi32>
    %cst_645 = arith.constant 1.000000e+00 : f32
    %3373 = vector.broadcast %cst_645 : f32 to vector<1x64xf32>
    %3374 = arith.subf %3373, %3359 : vector<1x64xf32>
    %cst_646 = arith.constant 0.000000e+00 : f32
    %3375 = vector.broadcast %cst_646 : f32 to vector<1x64xf32>
    %3376 = arith.select %3372, %3374, %3375 : vector<1x64xi1>, vector<1x64xf32>
    %cst_647 = arith.constant dense<0xFF800000> : vector<1xf32>
    %3377 = vector.multi_reduction <maximumf>, %3376, %cst_647 [1] : vector<1x64xf32> to vector<1xf32>
    %3378 = vector.shape_cast %3377 : vector<1xf32> to vector<1x1xf32>
    %3379 = vector.broadcast %3368 : vector<1x1xf32> to vector<1x64xf32>
    %3380 = arith.minimumf %3379, %55 : vector<1x64xf32>
    %3381 = vector.broadcast %3366 : vector<1x1xf32> to vector<1x64xf32>
    %3382 = arith.maximumf %3381, %41 : vector<1x64xf32>
    %3383 = arith.subf %3380, %3382 : vector<1x64xf32>
    %cst_648 = arith.constant 0.000000e+00 : f32
    %3384 = vector.broadcast %cst_648 : f32 to vector<1x64xf32>
    %3385 = arith.maximumf %3383, %3384 : vector<1x64xf32>
    %3386 = vector.broadcast %3369 : vector<1x1xf32> to vector<1x64xf32>
    %3387 = arith.minimumf %3386, %62 : vector<1x64xf32>
    %3388 = vector.broadcast %3367 : vector<1x1xf32> to vector<1x64xf32>
    %3389 = arith.maximumf %3388, %48 : vector<1x64xf32>
    %3390 = arith.subf %3387, %3389 : vector<1x64xf32>
    %cst_649 = arith.constant 0.000000e+00 : f32
    %3391 = vector.broadcast %cst_649 : f32 to vector<1x64xf32>
    %3392 = arith.maximumf %3390, %3391 : vector<1x64xf32>
    %3393 = arith.mulf %3385, %3392 : vector<1x64xf32>
    %3394 = vector.broadcast %3370 : vector<1x1xf32> to vector<1x64xf32>
    %3395 = arith.addf %3394, %65 : vector<1x64xf32>
    %3396 = arith.subf %3395, %3393 : vector<1x64xf32>
    %cst_650 = arith.constant 9.99999993E-9 : f32
    %3397 = vector.broadcast %cst_650 : f32 to vector<1x64xf32>
    %3398 = arith.addf %3396, %3397 : vector<1x64xf32>
    %3399 = tpu.reciprocal %3398 {approx = true} : vector<1x64xf32> -> vector<1x64xf32>
    %3400 = arith.mulf %3393, %3399 : vector<1x64xf32>
    %cst_651 = arith.constant 5.000000e-01 : f32
    %3401 = vector.broadcast %cst_651 : f32 to vector<1x1xf32>
    %3402 = arith.cmpf ogt, %3378, %3401 : vector<1x1xf32>
    %cst_652 = arith.constant 5.000000e-01 : f32
    %3403 = vector.broadcast %cst_652 : f32 to vector<1x64xf32>
    %3404 = arith.cmpf ogt, %3400, %3403 : vector<1x64xf32>
    %3405 = vector.broadcast %3402 : vector<1x1xi1> to vector<1x64xi1>
    %3406 = arith.andi %3405, %3404 : vector<1x64xi1>
    %3407 = vector.broadcast %c62_i32 : i32 to vector<1x64xi32>
    %3408 = arith.cmpi sgt, %68, %3407 : vector<1x64xi32>
    %3409 = arith.andi %3406, %3408 : vector<1x64xi1>
    %3410 = arith.extui %3409 : vector<1x64xi1> to vector<1x64xi32>
    %3411 = arith.sitofp %3410 : vector<1x64xi32> to vector<1x64xf32>
    %3412 = arith.maximumf %3359, %3411 : vector<1x64xf32>
    %c63_i32_653 = arith.constant 63 : i32
    %3413 = vector.broadcast %c63_i32_653 : i32 to vector<5x64xi32>
    %3414 = arith.cmpi eq, %70, %3413 : vector<5x64xi32>
    %cst_654 = arith.constant 0.000000e+00 : f32
    %3415 = vector.broadcast %cst_654 : f32 to vector<5x64xf32>
    %3416 = arith.select %3414, %69, %3415 : vector<5x64xi1>, vector<5x64xf32>
    %cst_655 = arith.constant dense<0.000000e+00> : vector<5xf32>
    %3417 = vector.multi_reduction <add>, %3416, %cst_655 [1] : vector<5x64xf32> to vector<5xf32>
    %3418 = vector.shape_cast %3417 : vector<5xf32> to vector<5x1xf32>
    %3419 = vector.extract_strided_slice %3418 {offsets = [0, 0], sizes = [1, 1], strides = [1, 1]} : vector<5x1xf32> to vector<1x1xf32>
    %3420 = vector.extract_strided_slice %3418 {offsets = [1, 0], sizes = [1, 1], strides = [1, 1]} : vector<5x1xf32> to vector<1x1xf32>
    %3421 = vector.extract_strided_slice %3418 {offsets = [2, 0], sizes = [1, 1], strides = [1, 1]} : vector<5x1xf32> to vector<1x1xf32>
    %3422 = vector.extract_strided_slice %3418 {offsets = [3, 0], sizes = [1, 1], strides = [1, 1]} : vector<5x1xf32> to vector<1x1xf32>
    %3423 = vector.extract_strided_slice %3418 {offsets = [4, 0], sizes = [1, 1], strides = [1, 1]} : vector<5x1xf32> to vector<1x1xf32>
    %3424 = vector.broadcast %c63_i32_653 : i32 to vector<1x64xi32>
    %3425 = arith.cmpi eq, %68, %3424 : vector<1x64xi32>
    %cst_656 = arith.constant 1.000000e+00 : f32
    %3426 = vector.broadcast %cst_656 : f32 to vector<1x64xf32>
    %3427 = arith.subf %3426, %3412 : vector<1x64xf32>
    %cst_657 = arith.constant 0.000000e+00 : f32
    %3428 = vector.broadcast %cst_657 : f32 to vector<1x64xf32>
    %3429 = arith.select %3425, %3427, %3428 : vector<1x64xi1>, vector<1x64xf32>
    %cst_658 = arith.constant dense<0xFF800000> : vector<1xf32>
    %3430 = vector.multi_reduction <maximumf>, %3429, %cst_658 [1] : vector<1x64xf32> to vector<1xf32>
    %3431 = vector.shape_cast %3430 : vector<1xf32> to vector<1x1xf32>
    %3432 = vector.broadcast %3421 : vector<1x1xf32> to vector<1x64xf32>
    %3433 = arith.minimumf %3432, %55 : vector<1x64xf32>
    %3434 = vector.broadcast %3419 : vector<1x1xf32> to vector<1x64xf32>
    %3435 = arith.maximumf %3434, %41 : vector<1x64xf32>
    %3436 = arith.subf %3433, %3435 : vector<1x64xf32>
    %cst_659 = arith.constant 0.000000e+00 : f32
    %3437 = vector.broadcast %cst_659 : f32 to vector<1x64xf32>
    %3438 = arith.maximumf %3436, %3437 : vector<1x64xf32>
    %3439 = vector.broadcast %3422 : vector<1x1xf32> to vector<1x64xf32>
    %3440 = arith.minimumf %3439, %62 : vector<1x64xf32>
    %3441 = vector.broadcast %3420 : vector<1x1xf32> to vector<1x64xf32>
    %3442 = arith.maximumf %3441, %48 : vector<1x64xf32>
    %3443 = arith.subf %3440, %3442 : vector<1x64xf32>
    %cst_660 = arith.constant 0.000000e+00 : f32
    %3444 = vector.broadcast %cst_660 : f32 to vector<1x64xf32>
    %3445 = arith.maximumf %3443, %3444 : vector<1x64xf32>
    %3446 = arith.mulf %3438, %3445 : vector<1x64xf32>
    %3447 = vector.broadcast %3423 : vector<1x1xf32> to vector<1x64xf32>
    %3448 = arith.addf %3447, %65 : vector<1x64xf32>
    %3449 = arith.subf %3448, %3446 : vector<1x64xf32>
    %cst_661 = arith.constant 9.99999993E-9 : f32
    %3450 = vector.broadcast %cst_661 : f32 to vector<1x64xf32>
    %3451 = arith.addf %3449, %3450 : vector<1x64xf32>
    %3452 = tpu.reciprocal %3451 {approx = true} : vector<1x64xf32> -> vector<1x64xf32>
    %3453 = arith.mulf %3446, %3452 : vector<1x64xf32>
    %cst_662 = arith.constant 5.000000e-01 : f32
    %3454 = vector.broadcast %cst_662 : f32 to vector<1x1xf32>
    %3455 = arith.cmpf ogt, %3431, %3454 : vector<1x1xf32>
    %cst_663 = arith.constant 5.000000e-01 : f32
    %3456 = vector.broadcast %cst_663 : f32 to vector<1x64xf32>
    %3457 = arith.cmpf ogt, %3453, %3456 : vector<1x64xf32>
    %3458 = vector.broadcast %3455 : vector<1x1xi1> to vector<1x64xi1>
    %3459 = arith.andi %3458, %3457 : vector<1x64xi1>
    %3460 = vector.broadcast %c63_i32_653 : i32 to vector<1x64xi32>
    %3461 = arith.cmpi sgt, %68, %3460 : vector<1x64xi32>
    %3462 = arith.andi %3459, %3461 : vector<1x64xi1>
    %3463 = arith.extui %3462 : vector<1x64xi1> to vector<1x64xi32>
    %3464 = arith.sitofp %3463 : vector<1x64xi32> to vector<1x64xf32>
    %3465 = arith.maximumf %3412, %3464 : vector<1x64xf32>
    %c64_i32 = arith.constant 64 : i32
    %cst_664 = arith.constant 5.000000e-01 : f32
    %3466 = vector.broadcast %cst_664 : f32 to vector<1x64xf32>
    %3467 = arith.cmpf olt, %3465, %3466 : vector<1x64xf32>
    %3468 = arith.extui %3467 : vector<1x64xi1> to vector<1x64xi32>
    %3469 = arith.sitofp %3468 : vector<1x64xi32> to vector<1x64xf32>
    %3470 = tpu.iota {dimensions = array<i32: 0>} : vector<64x64xi32>
    %3471 = tpu.iota {dimensions = array<i32: 1>} : vector<64x64xi32>
    %3472 = arith.cmpi slt, %3470, %3471 : vector<64x64xi32>
    %3473 = arith.extui %3472 : vector<64x64xi1> to vector<64x64xi32>
    %3474 = arith.sitofp %3473 : vector<64x64xi32> to vector<64x64xf32>
    %3475 = vector.shape_cast %3469 : vector<1x64xf32> to vector<1x64xf32>
    %3476 = vector.broadcast %3475 : vector<1x64xf32> to vector<8x64xf32>
    %cst_665 = arith.constant dense<0.000000e+00> : vector<8x64xf32>
    %3477 = tpu.matmul %3476, %3474, %cst_665 {dimension_numbers = #tpu.dot_dimension_numbers<[1], [0], [0], [1], [0, 0, 1, 1], [], []>} : vector<8x64xf32>, vector<64x64xf32>, vector<8x64xf32> -> vector<8x64xf32>
    %3478 = vector.extract_strided_slice %3477 {offsets = [0, 0], sizes = [1, 64], strides = [1, 1]} : vector<8x64xf32> to vector<1x64xf32>
    %cst_666 = arith.constant 5.000000e-01 : f32
    %3479 = vector.broadcast %cst_666 : f32 to vector<1x64xf32>
    %3480 = arith.addf %3478, %3479 : vector<1x64xf32>
    %3481 = arith.fptosi %3480 : vector<1x64xf32> to vector<1x64xi32>
    %3482 = tpu.iota {dimensions = array<i32: 0>} : vector<16x64xi32>
    %3483 = vector.broadcast %3481 : vector<1x64xi32> to vector<16x64xi32>
    %3484 = arith.cmpi eq, %3483, %3482 : vector<16x64xi32>
    %3485 = vector.broadcast %3467 : vector<1x64xi1> to vector<16x64xi1>
    %3486 = arith.andi %3485, %3484 : vector<16x64xi1>
    %3487 = arith.extui %3486 : vector<16x64xi1> to vector<16x64xi32>
    %3488 = arith.sitofp %3487 : vector<16x64xi32> to vector<16x64xf32>
    %cst_667 = arith.constant dense<0xFF800000> : vector<16xf32>
    %3489 = vector.multi_reduction <maximumf>, %3488, %cst_667 [1] : vector<16x64xf32> to vector<16xf32>
    %3490 = vector.shape_cast %3489 : vector<16xf32> to vector<16x1xf32>
    %cst_668 = arith.constant 0.000000e+00 : f32
    %3491 = vector.broadcast %cst_668 : f32 to vector<16x1xf32>
    %3492 = arith.cmpf ogt, %3490, %3491 : vector<16x1xf32>
    %3493 = vector.broadcast %1 : vector<1x64xf32> to vector<16x64xf32>
    %3494 = arith.mulf %3488, %3493 : vector<16x64xf32>
    %cst_669 = arith.constant dense<0.000000e+00> : vector<16xf32>
    %3495 = vector.multi_reduction <add>, %3494, %cst_669 [1] : vector<16x64xf32> to vector<16xf32>
    %3496 = vector.shape_cast %3495 : vector<16xf32> to vector<16x1xf32>
    %cst_670 = arith.constant -1.000000e+00 : f32
    %3497 = vector.broadcast %cst_670 : f32 to vector<16x1xf32>
    %3498 = arith.select %3492, %3496, %3497 : vector<16x1xi1>, vector<16x1xf32>
    %c0_671 = arith.constant 0 : index
    %c0_672 = arith.constant 0 : index
    %c0_673 = arith.constant 0 : index
    %3499 = vector.load %arg5[%c0_671, %c0_672, %c0_673] : memref<1x16x1xf32, #tpu.memory_space<vmem>>, vector<1x16x1xf32>
    %3500 = vector.shape_cast %3499 : vector<1x16x1xf32> to vector<16x1xf32>
    %3501 = vector.shape_cast %3498 : vector<16x1xf32> to vector<1x16x1xf32>
    tpu.vector_store %arg5[%c0_671, %c0_672, %c0_673], %3501 {strides = array<i32>} : memref<1x16x1xf32, #tpu.memory_space<vmem>>, vector<1x16x1xf32>,
    %cst_674 = arith.constant 0.000000e+00 : f32
    %3502 = vector.broadcast %cst_674 : f32 to vector<16x1xf32>
    %3503 = arith.cmpf ogt, %3490, %3502 : vector<16x1xf32>
    %3504 = vector.broadcast %4 : vector<1x64xf32> to vector<16x64xf32>
    %3505 = arith.mulf %3488, %3504 : vector<16x64xf32>
    %cst_675 = arith.constant dense<0.000000e+00> : vector<16xf32>
    %3506 = vector.multi_reduction <add>, %3505, %cst_675 [1] : vector<16x64xf32> to vector<16xf32>
    %3507 = vector.shape_cast %3506 : vector<16xf32> to vector<16x1xf32>
    %cst_676 = arith.constant -1.000000e+00 : f32
    %3508 = vector.broadcast %cst_676 : f32 to vector<16x1xf32>
    %3509 = arith.select %3503, %3507, %3508 : vector<16x1xi1>, vector<16x1xf32>
    %c0_677 = arith.constant 0 : index
    %c0_678 = arith.constant 0 : index
    %c0_679 = arith.constant 0 : index
    %3510 = vector.load %arg6[%c0_677, %c0_678, %c0_679] : memref<1x16x1xf32, #tpu.memory_space<vmem>>, vector<1x16x1xf32>
    %3511 = vector.shape_cast %3510 : vector<1x16x1xf32> to vector<16x1xf32>
    %3512 = vector.shape_cast %3509 : vector<16x1xf32> to vector<1x16x1xf32>
    tpu.vector_store %arg6[%c0_677, %c0_678, %c0_679], %3512 {strides = array<i32>} : memref<1x16x1xf32, #tpu.memory_space<vmem>>, vector<1x16x1xf32>,
    %cst_680 = arith.constant 0.000000e+00 : f32
    %3513 = vector.broadcast %cst_680 : f32 to vector<16x1xf32>
    %3514 = arith.cmpf ogt, %3490, %3513 : vector<16x1xf32>
    %3515 = vector.broadcast %41 : vector<1x64xf32> to vector<16x64xf32>
    %3516 = arith.mulf %3488, %3515 : vector<16x64xf32>
    %cst_681 = arith.constant dense<0.000000e+00> : vector<16xf32>
    %3517 = vector.multi_reduction <add>, %3516, %cst_681 [1] : vector<16x64xf32> to vector<16xf32>
    %3518 = vector.shape_cast %3517 : vector<16xf32> to vector<16x1xf32>
    %cst_682 = arith.constant -1.000000e+00 : f32
    %3519 = vector.broadcast %cst_682 : f32 to vector<16x1xf32>
    %3520 = arith.select %3514, %3518, %3519 : vector<16x1xi1>, vector<16x1xf32>
    %cst_683 = arith.constant 0.000000e+00 : f32
    %3521 = vector.broadcast %cst_683 : f32 to vector<16x1xf32>
    %3522 = arith.cmpf ogt, %3490, %3521 : vector<16x1xf32>
    %3523 = vector.broadcast %48 : vector<1x64xf32> to vector<16x64xf32>
    %3524 = arith.mulf %3488, %3523 : vector<16x64xf32>
    %cst_684 = arith.constant dense<0.000000e+00> : vector<16xf32>
    %3525 = vector.multi_reduction <add>, %3524, %cst_684 [1] : vector<16x64xf32> to vector<16xf32>
    %3526 = vector.shape_cast %3525 : vector<16xf32> to vector<16x1xf32>
    %cst_685 = arith.constant -1.000000e+00 : f32
    %3527 = vector.broadcast %cst_685 : f32 to vector<16x1xf32>
    %3528 = arith.select %3522, %3526, %3527 : vector<16x1xi1>, vector<16x1xf32>
    %cst_686 = arith.constant 0.000000e+00 : f32
    %3529 = vector.broadcast %cst_686 : f32 to vector<16x1xf32>
    %3530 = arith.cmpf ogt, %3490, %3529 : vector<16x1xf32>
    %3531 = vector.broadcast %55 : vector<1x64xf32> to vector<16x64xf32>
    %3532 = arith.mulf %3488, %3531 : vector<16x64xf32>
    %cst_687 = arith.constant dense<0.000000e+00> : vector<16xf32>
    %3533 = vector.multi_reduction <add>, %3532, %cst_687 [1] : vector<16x64xf32> to vector<16xf32>
    %3534 = vector.shape_cast %3533 : vector<16xf32> to vector<16x1xf32>
    %cst_688 = arith.constant -1.000000e+00 : f32
    %3535 = vector.broadcast %cst_688 : f32 to vector<16x1xf32>
    %3536 = arith.select %3530, %3534, %3535 : vector<16x1xi1>, vector<16x1xf32>
    %cst_689 = arith.constant 0.000000e+00 : f32
    %3537 = vector.broadcast %cst_689 : f32 to vector<16x1xf32>
    %3538 = arith.cmpf ogt, %3490, %3537 : vector<16x1xf32>
    %3539 = vector.broadcast %62 : vector<1x64xf32> to vector<16x64xf32>
    %3540 = arith.mulf %3488, %3539 : vector<16x64xf32>
    %cst_690 = arith.constant dense<0.000000e+00> : vector<16xf32>
    %3541 = vector.multi_reduction <add>, %3540, %cst_690 [1] : vector<16x64xf32> to vector<16xf32>
    %3542 = vector.shape_cast %3541 : vector<16xf32> to vector<16x1xf32>
    %cst_691 = arith.constant -1.000000e+00 : f32
    %3543 = vector.broadcast %cst_691 : f32 to vector<16x1xf32>
    %3544 = arith.select %3538, %3542, %3543 : vector<16x1xi1>, vector<16x1xf32>
    %3545 = tpu.concatenate %3520, %3528, %3536, %3544 in 1 : vector<16x1xf32>, vector<16x1xf32>, vector<16x1xf32>, vector<16x1xf32> -> vector<16x4xf32>
    %c0_692 = arith.constant 0 : index
    %c0_693 = arith.constant 0 : index
    %c0_694 = arith.constant 0 : index
    %3546 = vector.load %arg7[%c0_692, %c0_693, %c0_694] : memref<1x16x4xf32, #tpu.memory_space<vmem>>, vector<1x16x4xf32>
    %3547 = vector.shape_cast %3546 : vector<1x16x4xf32> to vector<16x4xf32>
    %3548 = vector.shape_cast %3545 : vector<16x4xf32> to vector<1x16x4xf32>
    tpu.vector_store %arg7[%c0_692, %c0_693, %c0_694], %3548 {strides = array<i32>} : memref<1x16x4xf32, #tpu.memory_space<vmem>>, vector<1x16x4xf32>,
    return
  }
  func.func @transform_0(%arg0: i32) -> (i32, i32, i32) {
    %c0_i32 = arith.constant 0 : i32
    %c0_i32_0 = arith.constant 0 : i32
    %c0_i32_1 = arith.constant 0 : i32
    return %arg0, %c0_i32, %c0_i32_0 : i32, i32, i32
  }
  func.func @transform_1(%arg0: i32) -> (i32, i32, i32) {
    %c0_i32 = arith.constant 0 : i32
    %c0_i32_0 = arith.constant 0 : i32
    %c0_i32_1 = arith.constant 0 : i32
    return %arg0, %c0_i32, %c0_i32_0 : i32, i32, i32
  }
  func.func @transform_2(%arg0: i32) -> (i32, i32, i32) {
    %c0_i32 = arith.constant 0 : i32
    %c0_i32_0 = arith.constant 0 : i32
    %c0_i32_1 = arith.constant 0 : i32
    return %arg0, %c0_i32, %c0_i32_0 : i32, i32, i32
  }
  func.func @transform_3(%arg0: i32) -> (i32, i32, i32) {
    %c0_i32 = arith.constant 0 : i32
    %c0_i32_0 = arith.constant 0 : i32
    %c0_i32_1 = arith.constant 0 : i32
    return %arg0, %c0_i32, %c0_i32_0 : i32, i32, i32
  }
  func.func @transform_4(%arg0: i32) -> (i32, i32, i32) {
    %c0_i32 = arith.constant 0 : i32
    %c0_i32_0 = arith.constant 0 : i32
    %c0_i32_1 = arith.constant 0 : i32
    return %arg0, %c0_i32, %c0_i32_0 : i32, i32, i32
  }
  func.func @transform_5(%arg0: i32) -> (i32, i32, i32) {
    %c0_i32 = arith.constant 0 : i32
    %c0_i32_0 = arith.constant 0 : i32
    %c0_i32_1 = arith.constant 0 : i32
    return %arg0, %c0_i32, %c0_i32_0 : i32, i32, i32
  }
  func.func @transform_6(%arg0: i32) -> (i32, i32, i32) {
    %c0_i32 = arith.constant 0 : i32
    %c0_i32_0 = arith.constant 0 : i32
    %c0_i32_1 = arith.constant 0 : i32
    return %arg0, %c0_i32, %c0_i32_0 : i32, i32, i32
  }
}

</mosaic_0001>

<bundles_post_ra>
// kernel: decoder_forward.2
= control target key start
LH: loop header
LB: loop body
LE: loop exit
PB: predicated region body
PF: predicated region fallthrough
CT: control target
= control target key end

     0   :  { %v64_v5 = vmov 0   ;;  %s110_s0 = inlined_call_operand.vmem [shape: f32[8,2,128], index: 0, kind: input, shape index: {}]   ;;  %s111_s1 = inlined_call_operand.vmem [shape: f32[2,128], index: 1, kind: output, shape index: {0}]   ;;  %s112_s2 = inlined_call_operand.vmem [shape: s32[2,128], index: 2, kind: output, shape index: {1}]  }
   0x1   :  { %v10_v0 = vld [vmem:[%s110_s0] sm:$0x3]  ;;  %v56_v1 = vld [vmem:[%s110_s0 + $0x2] sm:$0x3]  ;;  %v57_v2 = vld [vmem:[%s110_s0 + $0x4] sm:$0x3] }
   0x2   :  { %vm13_vm0 = vcmp.gt.f32.partialorder %v56_v1, %v10_v0  ;;  %v58_v4 = vld [vmem:[%s110_s0 + $0x6] sm:$0x3]  ;;  %v59_v8 = vld [vmem:[%s110_s0 + $0x8] sm:$0x3]  ;;  %v60_v11 = vld [vmem:[%s110_s0 + $0xa] sm:$0x3] }
   0x3   :  { %v14_v3 = vsel %vm13_vm0, %v56_v1, %v10_v0  ;;  %v15_v6 = vsel %vm13_vm0, 1, %v64_v5  ;;  %v61_v14 = vld [vmem:[%s110_s0 + $0xc] sm:$0x3]  ;;  %v62_v17 = vld [vmem:[%s110_s0 + $0xe] sm:$0x3] }
   0x4   :  { %vm18_vm1 = vcmp.gt.f32.partialorder %v57_v2, %v14_v3 }
   0x5   :  { %v19_v7 = vsel %vm18_vm1, %v57_v2, %v14_v3  ;;  %v20_v9 = vsel %vm18_vm1, 2, %v15_v6 }
   0x6   :  { %vm23_vm2 = vcmp.gt.f32.partialorder %v58_v4, %v19_v7 }
   0x7   :  { %v24_v10 = vsel %vm23_vm2, %v58_v4, %v19_v7  ;;  %v25_v12 = vsel %vm23_vm2, 3, %v20_v9 }
   0x8   :  { %vm28_vm3 = vcmp.gt.f32.partialorder %v59_v8, %v24_v10 }
   0x9   :  { %v29_v13 = vsel %vm28_vm3, %v59_v8, %v24_v10  ;;  %v30_v15 = vsel %vm28_vm3, 4, %v25_v12 }
   0xa   :  { %vm33_vm4 = vcmp.gt.f32.partialorder %v60_v11, %v29_v13 }
   0xb   :  { %v34_v16 = vsel %vm33_vm4, %v60_v11, %v29_v13  ;;  %v35_v18 = vsel %vm33_vm4, 5, %v30_v15 }
   0xc   :  { %vm38_vm5 = vcmp.gt.f32.partialorder %v61_v14, %v34_v16 }
   0xd   :  { %v39_v19 = vsel %vm38_vm5, %v61_v14, %v34_v16  ;;  %v40_v20 = vsel %vm38_vm5, 6, %v35_v18 }
   0xe   :  { %vm43_vm6 = vcmp.gt.f32.partialorder %v62_v17, %v39_v19 }
   0xf   :  { %v44_v21 = vsel %vm43_vm6, %v62_v17, %v39_v19  ;;  %v45_v22 = vsel %vm43_vm6, 7, %v40_v20 }
  0x10   :  { %46 = vst [vmem:[%s111_s1] sm:$0x3] %v44_v21 }
  0x11   :  { %47 = vst [vmem:[%s112_s2] sm:$0x3] %v45_v22 }

// kernel: decoder_forward.3
= control target key start
LH: loop header
LB: loop body
LE: loop exit
PB: predicated region body
PF: predicated region fallthrough
CT: control target
= control target key end

     0   :  { %s3885_s21 = smov 0   ;;  %s4920_s0 = inlined_call_operand.vmem [shape: f32[2,1,64], index: 0, kind: input, shape index: {}]   ;;  %s4921_s1 = inlined_call_operand.vmem [shape: s32[2,1,64], index: 1, kind: input, shape index: {}]   ;;  %s4922_s2 = inlined_call_operand.vmem [shape: f32[2,4,64], index: 2, kind: input, shape index: {}]   ;;  %s4923_s3 = inlined_call_operand.vmem [shape: f32[2,4,64], index: 3, kind: input, shape index: {}]   ;;  %s4924_s4 = inlined_call_operand.vmem [shape: f32[2,16,1], index: 4, kind: output, shape index: {0}]   ;;  %s4925_s5 = inlined_call_operand.vmem [shape: f32[2,16,1], index: 5, kind: output, shape index: {1}]   ;;  %s4926_s6 = inlined_call_operand.vmem [shape: f32[2,16,4], index: 6, kind: output, shape index: {2}]  }
   0x1 LB: > { %s3578_s22 = sadd.s32 4294967295, %s3845_s21   ;;  %p3582_p0 = scmp.ge.s32.totalorder %s3845_s21, 1  ;;  %s3845_s21 = sphi %s3885_s21, %s17_s21  }
   0x2   : > { %p241_p1 = scmp.lt.s32.totalorder %s3845_s21, 3 }
   0x4   : > { %p242_p2 = pnand %p3582_p0, %p241_p1 }
   0x5   : > { %p290_p3 = scmp.lt.s32.totalorder (!%p242_p2), %s3578_s22, 1 }
   0x6   : > { %245 = sbr.rel (%p242_p2) target bundleno = 8442 (0x20fa), region = 36 }
   0xb   : > { %s4928_s22 = smov (!%p290_p3, %s3578_s22), 1  ;;  %v362_v30 = vlaneseq  ;;  %vm370_vm4 = vcmask 1041408   ;;  %vm372_vm5 = vcmask 1042432   ;;  %vm374_vm7 = vcmask 1043456  }
   0xc   : > { %s3583_s23 = sshll.u32 %s4928_s22, 2  ;;  %s3908_s8 = scalar_lea.vmem %s4920_s0, %s4928_s22  ;;  %v3847_v40 = vmov 1.0   ;;  %vm379_vm10 = vcmask 520192   ;;  %vm385_vm11 = vcmask 516096  }
   0xd   : > { %s299_s26 = scalar_lea.vmem %s4922_s2, %s3583_s23  ;;  %s303_s29 = scalar_lea.vmem %s4923_s3, %s3583_s23  ;;  %v319_v33 = vld [vmem:[%s3908_s8] sm:$0x1]  ;;  %v3919_v35 = vand.u32 127, %v362_v30 }
   0xe   : > { %v322_v0 = vld [vmem:[%s299_s26] sm:$0xf]  ;;  %vm361_vm6 = vcmp.gt.f32.partialorder %v319_v33, 0.05  ;;  %s295_s11 = scalar_lea.vmem %s4921_s1, %s4928_s22  ;;  %s4880_s12 = sshll.u32 %s4928_s22, 4 }
   0xf   : > { %v323_v1 = vld [vmem:[%s303_s29] sm:$0xf]  ;;  %v324_v2 = vmul.f32 0.2, %v322_v0  ;;  %vm377_vm8 = vcmp.eq.s32.totalorder %v3919_v35, 0  ;;  %v376_v41 = vsel %vm361_vm6, 0.0, %v3847_v40  ;;  %s318_s15 = scalar_lea.vmem %s4926_s6, %s4880_s12  ;;  %s308_s18 = scalar_lea.vmem %s4924_s4, %s4880_s12 }
  0x10   : > { %v326_v3 = vrot.slane %v323_v1, 6  ;;  %vm424_vm9 = vcmp.eq.s32.totalorder %v3919_v35, 1  ;;  %v383_v44 = vsub.f32 1.0, %v376_v41  ;;  %vm469_vm12 = vcmp.eq.s32.totalorder %v3919_v35, 2  ;;  %s313_s22 = scalar_lea.vmem %s4925_s5, %s4880_s12 }
  0x11   : > { %v334_v5 = vmul.f32 1.442695, %v324_v2  ;;  %vm419_vm15 = vcmp.gt.s32.totalorder %v3919_v35, 0 }
  0x12   : > { %v328_v4 = vsub.f32 %v323_v1, %v326_v3  ;;  %v384_v48 = vsel %vm377_vm8, %v383_v44, 0.0 }
  0x13   : > { %3709 = vpow2.f32 %v334_v5  ;;  %v386_v49 = vsel %vm385_vm11, %v384_v48, -inf }
  0x14   : > { %v329_v6 = vmul.f32 0.5, %v328_v4  ;;  %v338_v7 = vrot.slane %v328_v4, 2 }
  0x16   : > { %v331_v8 = vrot.slane %v329_v6, 2  ;;  %v340_v10 = vmul.f32 %v338_v7, %v324_v2  ;;  %v3849_v7 = vmov 0.0  }
  0x18   : > { %v333_v9 = vadd.f32 %v331_v8, %v323_v1 }
  0x19   : > { %v3710_v11 = vpop.eup %3709 }
  0x1a   : > { %v336_v12 = vmul.f32 %v3710_v11, %v328_v4  ;;  %v341_v13 = vadd.f32 %v340_v10, %v333_v9  ;;  %v3848_v4 = vmov 0  }
  0x1c   : > { %v342_v14 = vmul.f32 0.5, %v336_v12 }
  0x1e   : > { %v344_v15 = vrot.slane %v342_v14, 2 }
  0x20   : > { %v346_v16 = vsub.f32 %v341_v13, %v344_v15  ;;  %v351_v17 = vadd.f32 %v344_v15, %v341_v13 }
  0x22   : > { %vm3682_vm0 = vcmp.lt.s32.totalorder %v346_v16, 0  ;;  %v3683_v18 = vceil.f32 %v346_v16  ;;  %v3684_v19 = vfloor.f32 %v346_v16  ;;  %vm3687_vm1 = vcmp.lt.s32.totalorder %v351_v17, 0 }
  0x23   : > { %v3688_v20 = vceil.f32 %v351_v17  ;;  %v3689_v21 = vfloor.f32 %v351_v17 }
  0x24   : > { %v3685_v22 = vsel %vm3682_vm0, %v3683_v18, %v3684_v19 }
  0x25   : > { %v3686_v23 = vcvt.f32.s32 %v3685_v22  ;;  %v3690_v24 = vsel %vm3687_vm1, %v3688_v20, %v3689_v21 }
  0x26   : > { %v3691_v25 = vcvt.f32.s32 %v3690_v24 }
  0x27   : > { %vm348_vm2 = vcmp.gt.s32.totalorder %v3686_v23, 0  ;;  %v3591_v26 = vcvt.s32.f32 %v3686_v23 }
  0x28   : > { %vm353_vm3 = vcmp.lt.s32.totalorder %v3691_v25, 63 }
  0x29   : > { %v3902_v27 = vsel %vm348_vm2, %v3591_v26, 0.0  ;;  %v354_v28 = vsel %vm353_vm3, %v3691_v25, 63  ;;  %vm514_vm3 = vcmp.eq.s32.totalorder %v3919_v35, 3 }
  0x2a   : > { %v3910_v29 = vcvt.s32.f32 %v354_v28 }
  0x2c   : > { %v356_v31 = vsub.f32 %v3910_v29, %v3902_v27  ;;  %v3915_v32 = vrot.slane %v3910_v29, 6 }
  0x2e   : > { %v358_v34 = vrot.slane %v356_v31, 1  ;;  %v371_v36 = vsel %vm370_vm4, %v3902_v27, %v3915_v32 }
  0x2f   : > { %v373_v38 = vsel %vm372_vm5, %v371_v36, %v3915_v32  ;;  %vm464_vm5 = vcmp.gt.s32.totalorder %v3919_v35, 1 }
  0x30   : > { %v360_v37 = vmul.f32 %v358_v34, %v356_v31 }
  0x32   : > { %v3924_v39 = vrot.slane %v360_v37, 4 }
  0x34   : > { %v3930_v42 = vsel %vm374_vm7, %v373_v38, %v3924_v39 }
  0x35   : > { %v378_v43 = vsel %vm377_vm8, %v3930_v42, 0.0  ;;  %v425_v45 = vsel %vm424_vm9, %v3930_v42, 0.0  ;;  %v470_v60 = vsel %vm469_vm12, %v3930_v42, 0.0  ;;  %v515_v26 = vsel %vm514_vm3, %v3930_v42, 0.0 }
  0x36   : > { %v380_v46 = vsel %vm379_vm10, %v378_v43, 0.0  ;;  %v426_v47 = vsel %vm379_vm10, %v425_v45, 0.0  ;;  %v471_v62 = vsel %vm379_vm10, %v470_v60, 0.0  ;;  %v516_v28 = vsel %vm379_vm10, %v515_v26, 0.0 }
  0x37   : > { %381 = vadd.xlane.f32.xlu0 %v380_v46  ;;  %427 = vadd.xlane.f32.xlu1 %v426_v47 }
  0x38   : > { %472 = vadd.xlane.f32.xlu2 %v471_v62 }
  0x3f   : > { %387 = vmax.xlane.f32.xlu0 %v386_v49 }
  0x47   : > { %517 = vadd.xlane.f32.xlu0 %v516_v28 }
  0xaa   : > { %v382_v50 = vpop.xlane.xlu0 %381  ;;  %v428_v13 = vpop.xlane.xlu1 %427 }
  0xab   : > { %v390_v51 = vmax.f32 %v382_v50, %v3902_v27  ;;  %v389_v52 = vmin.f32 %v382_v50, %v3915_v32  ;;  %v400_v58 = vadd.f32 %v382_v50, %v3924_v39  ;;  %v435_v14 = vmax.f32 %v428_v13, %v3902_v27  ;;  %v473_v46 = vpop.xlane.xlu2 %472 }
  0xac   : > { %v434_v15 = vmin.f32 %v428_v13, %v3915_v32  ;;  %v445_v21 = vadd.f32 %v428_v13, %v3924_v39  ;;  %v480_v47 = vmax.f32 %v473_v46, %v3902_v27  ;;  %v479_v48 = vmin.f32 %v473_v46, %v3915_v32 }
  0xad   : > { %v392_v53 = vrot.slane %v390_v51, 6  ;;  %v437_v16 = vrot.slane %v435_v14, 6 }
  0xae   : > { %v482_v49 = vrot.slane %v480_v47, 6 }
  0xaf   : > { %v394_v54 = vsub.f32 %v389_v52, %v392_v53  ;;  %v439_v17 = vsub.f32 %v434_v15, %v437_v16 }
  0xb0   : > { %v484_v50 = vsub.f32 %v479_v48, %v482_v49 }
  0xb1   : > { %v395_v55 = vmax.f32 %v394_v54, 0.0  ;;  %v440_v18 = vmax.f32 %v439_v17, 0.0  ;;  %v490_v54 = vadd.f32 %v473_v46, %v3924_v39 }
  0xb2   : > { %v388_v3 = vpop.xlane.xlu0 %387  ;;  %v485_v51 = vmax.f32 %v484_v50, 0.0 }
  0xb3   : > { %v397_v56 = vrot.slane %v395_v55, 1  ;;  %vm411_vm14 = vcmp.gt.f32.partialorder %v388_v3, 0.5  ;;  %v442_v19 = vrot.slane %v440_v18, 1 }
  0xb4   : > { %v487_v52 = vrot.slane %v485_v51, 1 }
  0xb5   : > { %v399_v57 = vmul.f32 %v397_v56, %v395_v55  ;;  %v444_v20 = vmul.f32 %v442_v19, %v440_v18 }
  0xb6   : > { %v489_v53 = vmul.f32 %v487_v52, %v485_v51 }
  0xb7   : > { %v402_v59 = vrot.slane %v399_v57, 6  ;;  %v447_v22 = vrot.slane %v444_v20, 6 }
  0xb8   : > { %v492_v55 = vrot.slane %v489_v53, 6 }
  0xb9   : > { %v404_v61 = vsub.f32 %v400_v58, %v402_v59  ;;  %v449_v23 = vsub.f32 %v445_v21, %v447_v22 }
  0xba   : > { %v494_v56 = vsub.f32 %v490_v54, %v492_v55 }
  0xbb   : > { %v405_v63 = vadd.f32 1e-08, %v404_v61  ;;  %v450_v24 = vadd.f32 1e-08, %v449_v23 }
  0xbd   : > { %3711 = vrcp.f32 %v405_v63 }
  0xbe   : > { %3713 = vrcp.f32 %v450_v24 }
  0xc3   : > { %v3712_v0 = vpop.eup %3711 }
  0xc4   : > { %v408_v1 = vrot.slane %v3712_v0, 2  ;;  %v3714_v25 = vpop.eup %3713 }
  0xc5   : > { %v453_v31 = vrot.slane %v3714_v25, 2 }
  0xc6   : > { %v410_v2 = vmul.f32 %v408_v1, %v399_v57  ;;  %v495_v57 = vadd.f32 1e-08, %v494_v56 }
  0xc7   : > { %v455_v33 = vmul.f32 %v453_v31, %v444_v20 }
  0xc8   : > { %vm412_vm13 = vcmp.gt.f32.partialorder %v410_v2, 0.5  ;;  %3715 = vrcp.f32 %v495_v57 }
  0xc9   : > { %v415_v5 = vsel %vm412_vm13, 1, %v3848_v4  ;;  %vm457_vm4 = vcmp.gt.f32.partialorder %v455_v33, 0.5 }
  0xca   : > { %v416_v6 = vrot.slane %v415_v5, 2  ;;  %v460_v34 = vsel %vm457_vm4, 1, %v3848_v4 }
  0xcb   : > { %v461_v36 = vrot.slane %v460_v34, 2 }
  0xcc   : > { %vm417_vm0 = vcmp.ne.s32.totalorder %v416_v6, 0 }
  0xcd   : > { %vm418_vm1 = vmand %vm411_vm14, %vm417_vm0  ;;  %vm462_vm6 = vcmp.ne.s32.totalorder %v461_v36, 0  ;;  %vm509_vm14 = vcmp.gt.s32.totalorder %v3919_v35, 2 }
  0xce   : > { %vm420_vm2 = vmand %vm418_vm1, %vm419_vm15  ;;  %v3716_v58 = vpop.eup %3715 }
  0xcf   : > { %v3593_v8 = vsel %vm420_vm2, 1.0, %v3849_v7  ;;  %v498_v61 = vrot.slane %v3716_v58, 2 }
  0xd0   : > { %v423_v9 = vmax.f32 %v376_v41, %v3593_v8 }
  0xd1   : > { %v500_v62 = vmul.f32 %v498_v61, %v489_v53 }
  0xd2   : > { %v429_v10 = vsub.f32 1.0, %v423_v9 }
  0xd3   : > { %vm502_vm13 = vcmp.gt.f32.partialorder %v500_v62, 0.5 }
  0xd4   : > { %v430_v11 = vsel %vm424_vm9, %v429_v10, 0.0  ;;  %v505_v63 = vsel %vm502_vm13, 1, %v3848_v4 }
  0xd5   : > { %v431_v12 = vsel %vm385_vm11, %v430_v11, -inf  ;;  %v506_v0 = vrot.slane %v505_v63, 2 }
  0xd6   : > { %432 = vmax.xlane.f32.xlu1 %v431_v12 }
  0xd7   : > { %vm507_vm15 = vcmp.ne.s32.totalorder %v506_v0, 0 }
 0x149   : > { %v433_v37 = vpop.xlane.xlu1 %432 }
 0x14a   : > { %vm456_vm7 = vcmp.gt.f32.partialorder %v433_v37, 0.5 }
 0x14b   : > { %vm463_vm8 = vmand %vm456_vm7, %vm462_vm6 }
 0x14c   : > { %vm465_vm9 = vmand %vm463_vm8, %vm464_vm5  ;;  %vm554_vm5 = vcmp.gt.s32.totalorder %v3919_v35, 3 }
 0x14d   : > { %v3594_v38 = vsel %vm465_vm9, 1.0, %v3849_v7 }
 0x14e   : > { %v468_v41 = vmax.f32 %v423_v9, %v3594_v38  ;;  %v518_v9 = vpop.xlane.xlu0 %517 }
 0x14f   : > { %v525_v10 = vmax.f32 %v518_v9, %v3902_v27  ;;  %v524_v11 = vmin.f32 %v518_v9, %v3915_v32  ;;  %v535_v17 = vadd.f32 %v518_v9, %v3924_v39 }
 0x150   : > { %v474_v43 = vsub.f32 1.0, %v468_v41 }
 0x151   : > { %v527_v12 = vrot.slane %v525_v10, 6 }
 0x152   : > { %v475_v44 = vsel %vm469_vm12, %v474_v43, 0.0  ;;  %vm559_vm12 = vcmp.eq.s32.totalorder %v3919_v35, 4 }
 0x153   : > { %v476_v45 = vsel %vm385_vm11, %v475_v44, -inf  ;;  %v560_v59 = vsel %vm559_vm12, %v3930_v42, 0.0  ;;  %v529_v13 = vsub.f32 %v524_v11, %v527_v12 }
 0x154   : > { %477 = vmax.xlane.f32.xlu2 %v476_v45  ;;  %v561_v60 = vsel %vm379_vm10, %v560_v59, 0.0 }
 0x155   : > { %v530_v14 = vmax.f32 %v529_v13, 0.0 }
 0x157   : > { %v532_v15 = vrot.slane %v530_v14, 1 }
 0x159   : > { %v534_v16 = vmul.f32 %v532_v15, %v530_v14 }
 0x15b   : > { %v537_v18 = vrot.slane %v534_v16, 6 }
 0x15c   : > { %562 = vadd.xlane.f32.xlu2 %v561_v60 }
 0x15d   : > { %v539_v19 = vsub.f32 %v535_v17, %v537_v18 }
 0x15f   : > { %v540_v20 = vadd.f32 1e-08, %v539_v19 }
 0x161   : > { %3717 = vrcp.f32 %v540_v20 }
 0x167   : > { %v3718_v21 = vpop.eup %3717 }
 0x168   : > { %v543_v24 = vrot.slane %v3718_v21, 2 }
 0x16a   : > { %v545_v25 = vmul.f32 %v543_v24, %v534_v16 }
 0x16c   : > { %vm547_vm4 = vcmp.gt.f32.partialorder %v545_v25, 0.5 }
 0x16d   : > { %v550_v26 = vsel %vm547_vm4, 1, %v3848_v4 }
 0x16e   : > { %v551_v28 = vrot.slane %v550_v26, 2 }
 0x170   : > { %vm552_vm7 = vcmp.ne.s32.totalorder %v551_v28, 0 }
 0x1c7   : > { %v478_v1 = vpop.xlane.xlu2 %477 }
 0x1c8   : > { %vm501_vm0 = vcmp.gt.f32.partialorder %v478_v1, 0.5 }
 0x1c9   : > { %vm508_vm1 = vmand %vm501_vm0, %vm507_vm15 }
 0x1ca   : > { %vm510_vm2 = vmand %vm508_vm1, %vm509_vm14  ;;  %vm599_vm14 = vcmp.gt.s32.totalorder %v3919_v35, 4 }
 0x1cb   : > { %v3595_v2 = vsel %vm510_vm2, 1.0, %v3849_v7 }
 0x1cc   : > { %v513_v3 = vmax.f32 %v468_v41, %v3595_v2 }
 0x1ce   : > { %v519_v5 = vsub.f32 1.0, %v513_v3 }
 0x1cf   : > { %v563_v41 = vpop.xlane.xlu2 %562 }
 0x1d0   : > { %v520_v6 = vsel %vm514_vm3, %v519_v5, 0.0  ;;  %vm604_vm3 = vcmp.eq.s32.totalorder %v3919_v35, 5  ;;  %v570_v43 = vmax.f32 %v563_v41, %v3902_v27  ;;  %v569_v44 = vmin.f32 %v563_v41, %v3915_v32 }
 0x1d1   : > { %v521_v8 = vsel %vm385_vm11, %v520_v6, -inf  ;;  %v605_v22 = vsel %vm604_vm3, %v3930_v42, 0.0  ;;  %v580_v50 = vadd.f32 %v563_v41, %v3924_v39 }
 0x1d2   : > { %522 = vmax.xlane.f32.xlu1 %v521_v8  ;;  %v606_v23 = vsel %vm379_vm10, %v605_v22, 0.0  ;;  %v572_v45 = vrot.slane %v570_v43, 6 }
 0x1d4   : > { %v574_v46 = vsub.f32 %v569_v44, %v572_v45 }
 0x1d6   : > { %v575_v47 = vmax.f32 %v574_v46, 0.0 }
 0x1d8   : > { %v577_v48 = vrot.slane %v575_v47, 1 }
 0x1da   : > { %607 = vadd.xlane.f32.xlu1 %v606_v23  ;;  %v579_v49 = vmul.f32 %v577_v48, %v575_v47 }
 0x1dc   : > { %v582_v51 = vrot.slane %v579_v49, 6 }
 0x1de   : > { %v584_v52 = vsub.f32 %v580_v50, %v582_v51 }
 0x1e0   : > { %v585_v53 = vadd.f32 1e-08, %v584_v52 }
 0x1e2   : > { %3719 = vrcp.f32 %v585_v53 }
 0x1e8   : > { %v3720_v54 = vpop.eup %3719 }
 0x1e9   : > { %v588_v57 = vrot.slane %v3720_v54, 2 }
 0x1eb   : > { %v590_v58 = vmul.f32 %v588_v57, %v579_v49 }
 0x1ed   : > { %vm592_vm13 = vcmp.gt.f32.partialorder %v590_v58, 0.5 }
 0x1ee   : > { %v595_v59 = vsel %vm592_vm13, 1, %v3848_v4 }
 0x1ef   : > { %v596_v60 = vrot.slane %v595_v59, 2 }
 0x1f1   : > { %vm597_vm15 = vcmp.ne.s32.totalorder %v596_v60, 0 }
 0x245   : > { %v523_v31 = vpop.xlane.xlu1 %522 }
 0x246   : > { %vm546_vm6 = vcmp.gt.f32.partialorder %v523_v31, 0.5 }
 0x247   : > { %vm553_vm8 = vmand %vm546_vm6, %vm552_vm7 }
 0x248   : > { %vm555_vm9 = vmand %vm553_vm8, %vm554_vm5  ;;  %vm644_vm5 = vcmp.gt.s32.totalorder %v3919_v35, 5 }
 0x249   : > { %v3596_v33 = vsel %vm555_vm9, 1.0, %v3849_v7 }
 0x24a   : > { %v558_v34 = vmax.f32 %v513_v3, %v3596_v33 }
 0x24c   : > { %v564_v36 = vsub.f32 1.0, %v558_v34 }
 0x24d   : > { %v608_v3 = vpop.xlane.xlu1 %607 }
 0x24e   : > { %v565_v37 = vsel %vm559_vm12, %v564_v36, 0.0  ;;  %vm649_vm12 = vcmp.eq.s32.totalorder %v3919_v35, 6  ;;  %v615_v5 = vmax.f32 %v608_v3, %v3902_v27  ;;  %v614_v6 = vmin.f32 %v608_v3, %v3915_v32 }
 0x24f   : > { %v566_v38 = vsel %vm385_vm11, %v565_v37, -inf  ;;  %v650_v55 = vsel %vm649_vm12, %v3930_v42, 0.0  ;;  %v625_v13 = vadd.f32 %v608_v3, %v3924_v39 }
 0x250   : > { %567 = vmax.xlane.f32.xlu0 %v566_v38  ;;  %v651_v56 = vsel %vm379_vm10, %v650_v55, 0.0  ;;  %v617_v8 = vrot.slane %v615_v5, 6 }
 0x252   : > { %v619_v9 = vsub.f32 %v614_v6, %v617_v8 }
 0x254   : > { %v620_v10 = vmax.f32 %v619_v9, 0.0 }
 0x256   : > { %v622_v11 = vrot.slane %v620_v10, 1 }
 0x258   : > { %652 = vadd.xlane.f32.xlu0 %v651_v56  ;;  %v624_v12 = vmul.f32 %v622_v11, %v620_v10 }
 0x25a   : > { %v627_v14 = vrot.slane %v624_v12, 6 }
 0x25c   : > { %v629_v15 = vsub.f32 %v625_v13, %v627_v14 }
 0x25e   : > { %v630_v16 = vadd.f32 1e-08, %v629_v15 }
 0x260   : > { %3721 = vrcp.f32 %v630_v16 }
 0x266   : > { %v3722_v17 = vpop.eup %3721 }
 0x267   : > { %v633_v20 = vrot.slane %v3722_v17, 2 }
 0x269   : > { %v635_v21 = vmul.f32 %v633_v20, %v624_v12 }
 0x26b   : > { %vm637_vm4 = vcmp.gt.f32.partialorder %v635_v21, 0.5 }
 0x26c   : > { %v640_v22 = vsel %vm637_vm4, 1, %v3848_v4 }
 0x26d   : > { %v641_v23 = vrot.slane %v640_v22, 2 }
 0x26f   : > { %vm642_vm6 = vcmp.ne.s32.totalorder %v641_v23, 0 }
 0x2c3   : > { %v568_v61 = vpop.xlane.xlu0 %567 }
 0x2c4   : > { %vm591_vm0 = vcmp.gt.f32.partialorder %v568_v61, 0.5 }
 0x2c5   : > { %vm598_vm1 = vmand %vm591_vm0, %vm597_vm15 }
 0x2c6   : > { %vm600_vm2 = vmand %vm598_vm1, %vm599_vm14  ;;  %vm689_vm14 = vcmp.gt.s32.totalorder %v3919_v35, 6 }
 0x2c7   : > { %v3597_v62 = vsel %vm600_vm2, 1.0, %v3849_v7 }
 0x2c8   : > { %v603_v63 = vmax.f32 %v558_v34, %v3597_v62 }
 0x2ca   : > { %v609_v0 = vsub.f32 1.0, %v603_v63 }
 0x2cb   : > { %v653_v34 = vpop.xlane.xlu0 %652 }
 0x2cc   : > { %v610_v1 = vsel %vm604_vm3, %v609_v0, 0.0  ;;  %vm694_vm3 = vcmp.eq.s32.totalorder %v3919_v35, 7  ;;  %v660_v36 = vmax.f32 %v653_v34, %v3902_v27  ;;  %v659_v37 = vmin.f32 %v653_v34, %v3915_v32 }
 0x2cd   : > { %v611_v2 = vsel %vm385_vm11, %v610_v1, -inf  ;;  %v695_v18 = vsel %vm694_vm3, %v3930_v42, 0.0  ;;  %v670_v46 = vadd.f32 %v653_v34, %v3924_v39 }
 0x2ce   : > { %612 = vmax.xlane.f32.xlu2 %v611_v2  ;;  %v696_v19 = vsel %vm379_vm10, %v695_v18, 0.0  ;;  %v662_v38 = vrot.slane %v660_v36, 6 }
 0x2d0   : > { %v664_v41 = vsub.f32 %v659_v37, %v662_v38 }
 0x2d2   : > { %v665_v43 = vmax.f32 %v664_v41, 0.0 }
 0x2d4   : > { %v667_v44 = vrot.slane %v665_v43, 1 }
 0x2d6   : > { %697 = vadd.xlane.f32.xlu2 %v696_v19  ;;  %v669_v45 = vmul.f32 %v667_v44, %v665_v43 }
 0x2d8   : > { %v672_v47 = vrot.slane %v669_v45, 6 }
 0x2da   : > { %v674_v48 = vsub.f32 %v670_v46, %v672_v47 }
 0x2dc   : > { %v675_v49 = vadd.f32 1e-08, %v674_v48 }
 0x2de   : > { %3723 = vrcp.f32 %v675_v49 }
 0x2e4   : > { %v3724_v50 = vpop.eup %3723 }
 0x2e5   : > { %v678_v53 = vrot.slane %v3724_v50, 2 }
 0x2e7   : > { %v680_v54 = vmul.f32 %v678_v53, %v669_v45 }
 0x2e9   : > { %vm682_vm13 = vcmp.gt.f32.partialorder %v680_v54, 0.5 }
 0x2ea   : > { %v685_v55 = vsel %vm682_vm13, 1, %v3848_v4 }
 0x2eb   : > { %v686_v56 = vrot.slane %v685_v55, 2 }
 0x2ed   : > { %vm687_vm0 = vcmp.ne.s32.totalorder %v686_v56, 0 }
 0x341   : > { %v613_v24 = vpop.xlane.xlu2 %612 }
 0x342   : > { %vm636_vm7 = vcmp.gt.f32.partialorder %v613_v24, 0.5 }
 0x343   : > { %vm643_vm8 = vmand %vm636_vm7, %vm642_vm6 }
 0x344   : > { %vm645_vm9 = vmand %vm643_vm8, %vm644_vm5  ;;  %vm734_vm5 = vcmp.gt.s32.totalorder %v3919_v35, 7 }
 0x345   : > { %v3598_v25 = vsel %vm645_vm9, 1.0, %v3849_v7 }
 0x346   : > { %v648_v26 = vmax.f32 %v603_v63, %v3598_v25 }
 0x348   : > { %v654_v28 = vsub.f32 1.0, %v648_v26 }
 0x349   : > { %v698_v63 = vpop.xlane.xlu2 %697 }
 0x34a   : > { %v655_v31 = vsel %vm649_vm12, %v654_v28, 0.0  ;;  %vm739_vm12 = vcmp.eq.s32.totalorder %v3919_v35, 8  ;;  %v705_v0 = vmax.f32 %v698_v63, %v3902_v27  ;;  %v704_v1 = vmin.f32 %v698_v63, %v3915_v32 }
 0x34b   : > { %v656_v33 = vsel %vm385_vm11, %v655_v31, -inf  ;;  %v740_v51 = vsel %vm739_vm12, %v3930_v42, 0.0  ;;  %v715_v9 = vadd.f32 %v698_v63, %v3924_v39 }
 0x34c   : > { %657 = vmax.xlane.f32.xlu1 %v656_v33  ;;  %v741_v52 = vsel %vm379_vm10, %v740_v51, 0.0  ;;  %v707_v2 = vrot.slane %v705_v0, 6 }
 0x34e   : > { %v709_v3 = vsub.f32 %v704_v1, %v707_v2 }
 0x350   : > { %v710_v5 = vmax.f32 %v709_v3, 0.0 }
 0x352   : > { %v712_v6 = vrot.slane %v710_v5, 1 }
 0x354   : > { %742 = vadd.xlane.f32.xlu1 %v741_v52  ;;  %v714_v8 = vmul.f32 %v712_v6, %v710_v5 }
 0x356   : > { %v717_v10 = vrot.slane %v714_v8, 6 }
 0x358   : > { %v719_v11 = vsub.f32 %v715_v9, %v717_v10 }
 0x35a   : > { %v720_v12 = vadd.f32 1e-08, %v719_v11 }
 0x35c   : > { %3725 = vrcp.f32 %v720_v12 }
 0x362   : > { %v3726_v13 = vpop.eup %3725 }
 0x363   : > { %v723_v16 = vrot.slane %v3726_v13, 2 }
 0x365   : > { %v725_v17 = vmul.f32 %v723_v16, %v714_v8 }
 0x367   : > { %vm727_vm4 = vcmp.gt.f32.partialorder %v725_v17, 0.5 }
 0x368   : > { %v730_v18 = vsel %vm727_vm4, 1, %v3848_v4 }
 0x369   : > { %v731_v19 = vrot.slane %v730_v18, 2 }
 0x36b   : > { %vm732_vm6 = vcmp.ne.s32.totalorder %v731_v19, 0 }
 0x3bf   : > { %v658_v57 = vpop.xlane.xlu1 %657 }
 0x3c0   : > { %vm681_vm15 = vcmp.gt.f32.partialorder %v658_v57, 0.5 }
 0x3c1   : > { %vm688_vm1 = vmand %vm681_vm15, %vm687_vm0 }
 0x3c2   : > { %vm690_vm2 = vmand %vm688_vm1, %vm689_vm14  ;;  %vm779_vm14 = vcmp.gt.s32.totalorder %v3919_v35, 8 }
 0x3c3   : > { %v3599_v58 = vsel %vm690_vm2, 1.0, %v3849_v7 }
 0x3c4   : > { %v693_v59 = vmax.f32 %v648_v26, %v3599_v58 }
 0x3c6   : > { %v699_v60 = vsub.f32 1.0, %v693_v59 }
 0x3c7   : > { %v743_v26 = vpop.xlane.xlu1 %742 }
 0x3c8   : > { %v700_v61 = vsel %vm694_vm3, %v699_v60, 0.0  ;;  %vm784_vm3 = vcmp.eq.s32.totalorder %v3919_v35, 9  ;;  %v750_v28 = vmax.f32 %v743_v26, %v3902_v27  ;;  %v749_v31 = vmin.f32 %v743_v26, %v3915_v32 }
 0x3c9   : > { %v701_v62 = vsel %vm385_vm11, %v700_v61, -inf  ;;  %v785_v14 = vsel %vm784_vm3, %v3930_v42, 0.0  ;;  %v760_v41 = vadd.f32 %v743_v26, %v3924_v39 }
 0x3ca   : > { %702 = vmax.xlane.f32.xlu0 %v701_v62  ;;  %v786_v15 = vsel %vm379_vm10, %v785_v14, 0.0  ;;  %v752_v33 = vrot.slane %v750_v28, 6 }
 0x3cc   : > { %v754_v34 = vsub.f32 %v749_v31, %v752_v33 }
 0x3ce   : > { %v755_v36 = vmax.f32 %v754_v34, 0.0 }
 0x3d0   : > { %v757_v37 = vrot.slane %v755_v36, 1 }
 0x3d2   : > { %787 = vadd.xlane.f32.xlu0 %v786_v15  ;;  %v759_v38 = vmul.f32 %v757_v37, %v755_v36 }
 0x3d4   : > { %v762_v43 = vrot.slane %v759_v38, 6 }
 0x3d6   : > { %v764_v44 = vsub.f32 %v760_v41, %v762_v43 }
 0x3d8   : > { %v765_v45 = vadd.f32 1e-08, %v764_v44 }
 0x3da   : > { %3727 = vrcp.f32 %v765_v45 }
 0x3e0   : > { %v3728_v46 = vpop.eup %3727 }
 0x3e1   : > { %v768_v49 = vrot.slane %v3728_v46, 2 }
 0x3e3   : > { %v770_v50 = vmul.f32 %v768_v49, %v759_v38 }
 0x3e5   : > { %vm772_vm13 = vcmp.gt.f32.partialorder %v770_v50, 0.5 }
 0x3e6   : > { %v775_v51 = vsel %vm772_vm13, 1, %v3848_v4 }
 0x3e7   : > { %v776_v52 = vrot.slane %v775_v51, 2 }
 0x3e9   : > { %vm777_vm15 = vcmp.ne.s32.totalorder %v776_v52, 0 }
 0x43d   : > { %v703_v20 = vpop.xlane.xlu0 %702 }
 0x43e   : > { %vm726_vm7 = vcmp.gt.f32.partialorder %v703_v20, 0.5 }
 0x43f   : > { %vm733_vm8 = vmand %vm726_vm7, %vm732_vm6 }
 0x440   : > { %vm735_vm9 = vmand %vm733_vm8, %vm734_vm5  ;;  %vm824_vm5 = vcmp.gt.s32.totalorder %v3919_v35, 9 }
 0x441   : > { %v3600_v21 = vsel %vm735_vm9, 1.0, %v3849_v7 }
 0x442   : > { %v738_v22 = vmax.f32 %v693_v59, %v3600_v21 }
 0x444   : > { %v744_v23 = vsub.f32 1.0, %v738_v22 }
 0x445   : > { %v788_v59 = vpop.xlane.xlu0 %787 }
 0x446   : > { %v745_v24 = vsel %vm739_vm12, %v744_v23, 0.0  ;;  %vm829_vm12 = vcmp.eq.s32.totalorder %v3919_v35, 10  ;;  %v795_v60 = vmax.f32 %v788_v59, %v3902_v27  ;;  %v794_v61 = vmin.f32 %v788_v59, %v3915_v32 }
 0x447   : > { %v746_v25 = vsel %vm385_vm11, %v745_v24, -inf  ;;  %v830_v47 = vsel %vm829_vm12, %v3930_v42, 0.0  ;;  %v805_v3 = vadd.f32 %v788_v59, %v3924_v39 }
 0x448   : > { %747 = vmax.xlane.f32.xlu2 %v746_v25  ;;  %v831_v48 = vsel %vm379_vm10, %v830_v47, 0.0  ;;  %v797_v62 = vrot.slane %v795_v60, 6 }
 0x44a   : > { %v799_v63 = vsub.f32 %v794_v61, %v797_v62 }
 0x44c   : > { %v800_v0 = vmax.f32 %v799_v63, 0.0 }
 0x44e   : > { %v802_v1 = vrot.slane %v800_v0, 1 }
 0x450   : > { %832 = vadd.xlane.f32.xlu2 %v831_v48  ;;  %v804_v2 = vmul.f32 %v802_v1, %v800_v0 }
 0x452   : > { %v807_v5 = vrot.slane %v804_v2, 6 }
 0x454   : > { %v809_v6 = vsub.f32 %v805_v3, %v807_v5 }
 0x456   : > { %v810_v8 = vadd.f32 1e-08, %v809_v6 }
 0x458   : > { %3729 = vrcp.f32 %v810_v8 }
 0x45e   : > { %v3730_v9 = vpop.eup %3729 }
 0x45f   : > { %v813_v12 = vrot.slane %v3730_v9, 2 }
 0x461   : > { %v815_v13 = vmul.f32 %v813_v12, %v804_v2 }
 0x463   : > { %vm817_vm4 = vcmp.gt.f32.partialorder %v815_v13, 0.5 }
 0x464   : > { %v820_v14 = vsel %vm817_vm4, 1, %v3848_v4 }
 0x465   : > { %v821_v15 = vrot.slane %v820_v14, 2 }
 0x467   : > { %vm822_vm7 = vcmp.ne.s32.totalorder %v821_v15, 0 }
 0x4bb   : > { %v748_v53 = vpop.xlane.xlu2 %747 }
 0x4bc   : > { %vm771_vm0 = vcmp.gt.f32.partialorder %v748_v53, 0.5 }
 0x4bd   : > { %vm778_vm1 = vmand %vm771_vm0, %vm777_vm15 }
 0x4be   : > { %vm780_vm2 = vmand %vm778_vm1, %vm779_vm14  ;;  %vm869_vm14 = vcmp.gt.s32.totalorder %v3919_v35, 10 }
 0x4bf   : > { %v3601_v54 = vsel %vm780_vm2, 1.0, %v3849_v7 }
 0x4c0   : > { %v783_v55 = vmax.f32 %v738_v22, %v3601_v54 }
 0x4c2   : > { %v789_v56 = vsub.f32 1.0, %v783_v55 }
 0x4c3   : > { %v833_v22 = vpop.xlane.xlu2 %832 }
 0x4c4   : > { %v790_v57 = vsel %vm784_vm3, %v789_v56, 0.0  ;;  %vm874_vm3 = vcmp.eq.s32.totalorder %v3919_v35, 11  ;;  %v840_v23 = vmax.f32 %v833_v22, %v3902_v27  ;;  %v839_v24 = vmin.f32 %v833_v22, %v3915_v32 }
 0x4c5   : > { %v791_v58 = vsel %vm385_vm11, %v790_v57, -inf  ;;  %v875_v10 = vsel %vm874_vm3, %v3930_v42, 0.0  ;;  %v850_v34 = vadd.f32 %v833_v22, %v3924_v39 }
 0x4c6   : > { %792 = vmax.xlane.f32.xlu1 %v791_v58  ;;  %v876_v11 = vsel %vm379_vm10, %v875_v10, 0.0  ;;  %v842_v25 = vrot.slane %v840_v23, 6 }
 0x4c8   : > { %v844_v26 = vsub.f32 %v839_v24, %v842_v25 }
 0x4ca   : > { %v845_v28 = vmax.f32 %v844_v26, 0.0 }
 0x4cc   : > { %v847_v31 = vrot.slane %v845_v28, 1 }
 0x4ce   : > { %877 = vadd.xlane.f32.xlu1 %v876_v11  ;;  %v849_v33 = vmul.f32 %v847_v31, %v845_v28 }
 0x4d0   : > { %v852_v36 = vrot.slane %v849_v33, 6 }
 0x4d2   : > { %v854_v37 = vsub.f32 %v850_v34, %v852_v36 }
 0x4d4   : > { %v855_v38 = vadd.f32 1e-08, %v854_v37 }
 0x4d6   : > { %3731 = vrcp.f32 %v855_v38 }
 0x4dc   : > { %v3732_v41 = vpop.eup %3731 }
 0x4dd   : > { %v858_v45 = vrot.slane %v3732_v41, 2 }
 0x4df   : > { %v860_v46 = vmul.f32 %v858_v45, %v849_v33 }
 0x4e1   : > { %vm862_vm13 = vcmp.gt.f32.partialorder %v860_v46, 0.5 }
 0x4e2   : > { %v865_v47 = vsel %vm862_vm13, 1, %v3848_v4 }
 0x4e3   : > { %v866_v48 = vrot.slane %v865_v47, 2 }
 0x4e5   : > { %vm867_vm15 = vcmp.ne.s32.totalorder %v866_v48, 0 }
 0x539   : > { %v793_v16 = vpop.xlane.xlu1 %792 }
 0x53a   : > { %vm816_vm6 = vcmp.gt.f32.partialorder %v793_v16, 0.5 }
 0x53b   : > { %vm823_vm8 = vmand %vm816_vm6, %vm822_vm7 }
 0x53c   : > { %vm825_vm9 = vmand %vm823_vm8, %vm824_vm5  ;;  %vm914_vm5 = vcmp.gt.s32.totalorder %v3919_v35, 11 }
 0x53d   : > { %v3602_v17 = vsel %vm825_vm9, 1.0, %v3849_v7 }
 0x53e   : > { %v828_v18 = vmax.f32 %v783_v55, %v3602_v17 }
 0x540   : > { %v834_v19 = vsub.f32 1.0, %v828_v18 }
 0x541   : > { %v878_v55 = vpop.xlane.xlu1 %877 }
 0x542   : > { %v835_v20 = vsel %vm829_vm12, %v834_v19, 0.0  ;;  %vm919_vm12 = vcmp.eq.s32.totalorder %v3919_v35, 12  ;;  %v885_v56 = vmax.f32 %v878_v55, %v3902_v27  ;;  %v884_v57 = vmin.f32 %v878_v55, %v3915_v32 }
 0x543   : > { %v836_v21 = vsel %vm385_vm11, %v835_v20, -inf  ;;  %v920_v43 = vsel %vm919_vm12, %v3930_v42, 0.0  ;;  %v895_v63 = vadd.f32 %v878_v55, %v3924_v39 }
 0x544   : > { %837 = vmax.xlane.f32.xlu0 %v836_v21  ;;  %v921_v44 = vsel %vm379_vm10, %v920_v43, 0.0  ;;  %v887_v58 = vrot.slane %v885_v56, 6 }
 0x546   : > { %v889_v59 = vsub.f32 %v884_v57, %v887_v58 }
 0x548   : > { %v890_v60 = vmax.f32 %v889_v59, 0.0 }
 0x54a   : > { %v892_v61 = vrot.slane %v890_v60, 1 }
 0x54c   : > { %922 = vadd.xlane.f32.xlu0 %v921_v44  ;;  %v894_v62 = vmul.f32 %v892_v61, %v890_v60 }
 0x54e   : > { %v897_v0 = vrot.slane %v894_v62, 6 }
 0x550   : > { %v899_v1 = vsub.f32 %v895_v63, %v897_v0 }
 0x552   : > { %v900_v2 = vadd.f32 1e-08, %v899_v1 }
 0x554   : > { %3733 = vrcp.f32 %v900_v2 }
 0x55a   : > { %v3734_v3 = vpop.eup %3733 }
 0x55b   : > { %v903_v8 = vrot.slane %v3734_v3, 2 }
 0x55d   : > { %v905_v9 = vmul.f32 %v903_v8, %v894_v62 }
 0x55f   : > { %vm907_vm4 = vcmp.gt.f32.partialorder %v905_v9, 0.5 }
 0x560   : > { %v910_v10 = vsel %vm907_vm4, 1, %v3848_v4 }
 0x561   : > { %v911_v11 = vrot.slane %v910_v10, 2 }
 0x563   : > { %vm912_vm6 = vcmp.ne.s32.totalorder %v911_v11, 0 }
 0x5b7   : > { %v838_v49 = vpop.xlane.xlu0 %837 }
 0x5b8   : > { %vm861_vm0 = vcmp.gt.f32.partialorder %v838_v49, 0.5 }
 0x5b9   : > { %vm868_vm1 = vmand %vm861_vm0, %vm867_vm15 }
 0x5ba   : > { %vm870_vm2 = vmand %vm868_vm1, %vm869_vm14  ;;  %vm959_vm14 = vcmp.gt.s32.totalorder %v3919_v35, 12 }
 0x5bb   : > { %v3603_v50 = vsel %vm870_vm2, 1.0, %v3849_v7 }
 0x5bc   : > { %v873_v51 = vmax.f32 %v828_v18, %v3603_v50 }
 0x5be   : > { %v879_v52 = vsub.f32 1.0, %v873_v51 }
 0x5bf   : > { %v923_v18 = vpop.xlane.xlu0 %922 }
 0x5c0   : > { %v880_v53 = vsel %vm874_vm3, %v879_v52, 0.0  ;;  %vm964_vm3 = vcmp.eq.s32.totalorder %v3919_v35, 13  ;;  %v930_v19 = vmax.f32 %v923_v18, %v3902_v27  ;;  %v929_v20 = vmin.f32 %v923_v18, %v3915_v32 }
 0x5c1   : > { %v881_v54 = vsel %vm385_vm11, %v880_v53, -inf  ;;  %v965_v5 = vsel %vm964_vm3, %v3930_v42, 0.0  ;;  %v940_v26 = vadd.f32 %v923_v18, %v3924_v39 }
 0x5c2   : > { %882 = vmax.xlane.f32.xlu2 %v881_v54  ;;  %v966_v6 = vsel %vm379_vm10, %v965_v5, 0.0  ;;  %v932_v21 = vrot.slane %v930_v19, 6 }
 0x5c4   : > { %v934_v22 = vsub.f32 %v929_v20, %v932_v21 }
 0x5c6   : > { %v935_v23 = vmax.f32 %v934_v22, 0.0 }
 0x5c8   : > { %v937_v24 = vrot.slane %v935_v23, 1 }
 0x5ca   : > { %967 = vadd.xlane.f32.xlu2 %v966_v6  ;;  %v939_v25 = vmul.f32 %v937_v24, %v935_v23 }
 0x5cc   : > { %v942_v28 = vrot.slane %v939_v25, 6 }
 0x5ce   : > { %v944_v31 = vsub.f32 %v940_v26, %v942_v28 }
 0x5d0   : > { %v945_v33 = vadd.f32 1e-08, %v944_v31 }
 0x5d2   : > { %3735 = vrcp.f32 %v945_v33 }
 0x5d8   : > { %v3736_v34 = vpop.eup %3735 }
 0x5d9   : > { %v948_v38 = vrot.slane %v3736_v34, 2 }
 0x5db   : > { %v950_v41 = vmul.f32 %v948_v38, %v939_v25 }
 0x5dd   : > { %vm952_vm13 = vcmp.gt.f32.partialorder %v950_v41, 0.5 }
 0x5de   : > { %v955_v43 = vsel %vm952_vm13, 1, %v3848_v4 }
 0x5df   : > { %v956_v44 = vrot.slane %v955_v43, 2 }
 0x5e1   : > { %vm957_vm0 = vcmp.ne.s32.totalorder %v956_v44, 0 }
 0x635   : > { %v883_v12 = vpop.xlane.xlu2 %882 }
 0x636   : > { %vm906_vm7 = vcmp.gt.f32.partialorder %v883_v12, 0.5 }
 0x637   : > { %vm913_vm8 = vmand %vm906_vm7, %vm912_vm6 }
 0x638   : > { %vm915_vm9 = vmand %vm913_vm8, %vm914_vm5  ;;  %vm1004_vm5 = vcmp.gt.s32.totalorder %v3919_v35, 13 }
 0x639   : > { %v3604_v13 = vsel %vm915_vm9, 1.0, %v3849_v7 }
 0x63a   : > { %v918_v14 = vmax.f32 %v873_v51, %v3604_v13 }
 0x63c   : > { %v924_v15 = vsub.f32 1.0, %v918_v14 }
 0x63d   : > { %v968_v51 = vpop.xlane.xlu2 %967 }
 0x63e   : > { %v925_v16 = vsel %vm919_vm12, %v924_v15, 0.0  ;;  %vm1009_vm12 = vcmp.eq.s32.totalorder %v3919_v35, 14  ;;  %v975_v52 = vmax.f32 %v968_v51, %v3902_v27  ;;  %v974_v53 = vmin.f32 %v968_v51, %v3915_v32 }
 0x63f   : > { %v926_v17 = vsel %vm385_vm11, %v925_v16, -inf  ;;  %v1010_v36 = vsel %vm1009_vm12, %v3930_v42, 0.0  ;;  %v985_v59 = vadd.f32 %v968_v51, %v3924_v39 }
 0x640   : > { %927 = vmax.xlane.f32.xlu1 %v926_v17  ;;  %v1011_v37 = vsel %vm379_vm10, %v1010_v36, 0.0  ;;  %v977_v54 = vrot.slane %v975_v52, 6 }
 0x642   : > { %v979_v55 = vsub.f32 %v974_v53, %v977_v54 }
 0x644   : > { %v980_v56 = vmax.f32 %v979_v55, 0.0 }
 0x646   : > { %v982_v57 = vrot.slane %v980_v56, 1 }
 0x648   : > { %1012 = vadd.xlane.f32.xlu1 %v1011_v37  ;;  %v984_v58 = vmul.f32 %v982_v57, %v980_v56 }
 0x64a   : > { %v987_v60 = vrot.slane %v984_v58, 6 }
 0x64c   : > { %v989_v61 = vsub.f32 %v985_v59, %v987_v60 }
 0x64e   : > { %v990_v62 = vadd.f32 1e-08, %v989_v61 }
 0x650   : > { %3737 = vrcp.f32 %v990_v62 }
 0x656   : > { %v3738_v63 = vpop.eup %3737 }
 0x657   : > { %v993_v2 = vrot.slane %v3738_v63, 2 }
 0x659   : > { %v995_v3 = vmul.f32 %v993_v2, %v984_v58 }
 0x65b   : > { %vm997_vm4 = vcmp.gt.f32.partialorder %v995_v3, 0.5 }
 0x65c   : > { %v1000_v5 = vsel %vm997_vm4, 1, %v3848_v4 }
 0x65d   : > { %v1001_v6 = vrot.slane %v1000_v5, 2 }
 0x65f   : > { %vm1002_vm6 = vcmp.ne.s32.totalorder %v1001_v6, 0 }
 0x6b3   : > { %v928_v45 = vpop.xlane.xlu1 %927 }
 0x6b4   : > { %vm951_vm15 = vcmp.gt.f32.partialorder %v928_v45, 0.5 }
 0x6b5   : > { %vm958_vm1 = vmand %vm951_vm15, %vm957_vm0 }
 0x6b6   : > { %vm960_vm2 = vmand %vm958_vm1, %vm959_vm14  ;;  %vm1049_vm14 = vcmp.gt.s32.totalorder %v3919_v35, 14 }
 0x6b7   : > { %v3605_v46 = vsel %vm960_vm2, 1.0, %v3849_v7 }
 0x6b8   : > { %v963_v47 = vmax.f32 %v918_v14, %v3605_v46 }
 0x6ba   : > { %v969_v48 = vsub.f32 1.0, %v963_v47 }
 0x6bb   : > { %v1013_v14 = vpop.xlane.xlu1 %1012 }
 0x6bc   : > { %v970_v49 = vsel %vm964_vm3, %v969_v48, 0.0  ;;  %vm1054_vm3 = vcmp.eq.s32.totalorder %v3919_v35, 15  ;;  %v1020_v15 = vmax.f32 %v1013_v14, %v3902_v27  ;;  %v1019_v16 = vmin.f32 %v1013_v14, %v3915_v32 }
 0x6bd   : > { %v971_v50 = vsel %vm385_vm11, %v970_v49, -inf  ;;  %v1055_v0 = vsel %vm1054_vm3, %v3930_v42, 0.0  ;;  %v1030_v22 = vadd.f32 %v1013_v14, %v3924_v39 }
 0x6be   : > { %972 = vmax.xlane.f32.xlu0 %v971_v50  ;;  %v1056_v1 = vsel %vm379_vm10, %v1055_v0, 0.0  ;;  %v1022_v17 = vrot.slane %v1020_v15, 6 }
 0x6c0   : > { %v1024_v18 = vsub.f32 %v1019_v16, %v1022_v17 }
 0x6c2   : > { %v1025_v19 = vmax.f32 %v1024_v18, 0.0 }
 0x6c4   : > { %v1027_v20 = vrot.slane %v1025_v19, 1 }
 0x6c6   : > { %1057 = vadd.xlane.f32.xlu0 %v1056_v1  ;;  %v1029_v21 = vmul.f32 %v1027_v20, %v1025_v19 }
 0x6c8   : > { %v1032_v23 = vrot.slane %v1029_v21, 6 }
 0x6ca   : > { %v1034_v24 = vsub.f32 %v1030_v22, %v1032_v23 }
 0x6cc   : > { %v1035_v25 = vadd.f32 1e-08, %v1034_v24 }
 0x6ce   : > { %3739 = vrcp.f32 %v1035_v25 }
 0x6d4   : > { %v3740_v26 = vpop.eup %3739 }
 0x6d5   : > { %v1038_v33 = vrot.slane %v3740_v26, 2 }
 0x6d7   : > { %v1040_v34 = vmul.f32 %v1038_v33, %v1029_v21 }
 0x6d9   : > { %vm1042_vm13 = vcmp.gt.f32.partialorder %v1040_v34, 0.5 }
 0x6da   : > { %v1045_v36 = vsel %vm1042_vm13, 1, %v3848_v4 }
 0x6db   : > { %v1046_v37 = vrot.slane %v1045_v36, 2 }
 0x6dd   : > { %vm1047_vm15 = vcmp.ne.s32.totalorder %v1046_v37, 0 }
 0x731   : > { %v973_v8 = vpop.xlane.xlu0 %972 }
 0x732   : > { %vm996_vm7 = vcmp.gt.f32.partialorder %v973_v8, 0.5 }
 0x733   : > { %vm1003_vm8 = vmand %vm996_vm7, %vm1002_vm6 }
 0x734   : > { %vm1005_vm9 = vmand %vm1003_vm8, %vm1004_vm5  ;;  %vm1094_vm5 = vcmp.gt.s32.totalorder %v3919_v35, 15 }
 0x735   : > { %v3606_v9 = vsel %vm1005_vm9, 1.0, %v3849_v7 }
 0x736   : > { %v1008_v10 = vmax.f32 %v963_v47, %v3606_v9 }
 0x738   : > { %v1014_v11 = vsub.f32 1.0, %v1008_v10 }
 0x739   : > { %v1058_v47 = vpop.xlane.xlu0 %1057 }
 0x73a   : > { %v1015_v12 = vsel %vm1009_vm12, %v1014_v11, 0.0  ;;  %vm1099_vm12 = vcmp.eq.s32.totalorder %v3919_v35, 16  ;;  %v1065_v48 = vmax.f32 %v1058_v47, %v3902_v27  ;;  %v1064_v49 = vmin.f32 %v1058_v47, %v3915_v32 }
 0x73b   : > { %v1016_v13 = vsel %vm385_vm11, %v1015_v12, -inf  ;;  %v1100_v28 = vsel %vm1099_vm12, %v3930_v42, 0.0  ;;  %v1075_v55 = vadd.f32 %v1058_v47, %v3924_v39 }
 0x73c   : > { %1017 = vmax.xlane.f32.xlu2 %v1016_v13  ;;  %v1101_v31 = vsel %vm379_vm10, %v1100_v28, 0.0  ;;  %v1067_v50 = vrot.slane %v1065_v48, 6 }
 0x73e   : > { %v1069_v51 = vsub.f32 %v1064_v49, %v1067_v50 }
 0x740   : > { %v1070_v52 = vmax.f32 %v1069_v51, 0.0 }
 0x742   : > { %v1072_v53 = vrot.slane %v1070_v52, 1 }
 0x744   : > { %1102 = vadd.xlane.f32.xlu2 %v1101_v31  ;;  %v1074_v54 = vmul.f32 %v1072_v53, %v1070_v52 }
 0x746   : > { %v1077_v56 = vrot.slane %v1074_v54, 6 }
 0x748   : > { %v1079_v57 = vsub.f32 %v1075_v55, %v1077_v56 }
 0x74a   : > { %v1080_v58 = vadd.f32 1e-08, %v1079_v57 }
 0x74c   : > { %3741 = vrcp.f32 %v1080_v58 }
 0x752   : > { %v3742_v59 = vpop.eup %3741 }
 0x753   : > { %v1083_v62 = vrot.slane %v3742_v59, 2 }
 0x755   : > { %v1085_v63 = vmul.f32 %v1083_v62, %v1074_v54 }
 0x757   : > { %vm1087_vm4 = vcmp.gt.f32.partialorder %v1085_v63, 0.5 }
 0x758   : > { %v1090_v0 = vsel %vm1087_vm4, 1, %v3848_v4 }
 0x759   : > { %v1091_v1 = vrot.slane %v1090_v0, 2 }
 0x75b   : > { %vm1092_vm7 = vcmp.ne.s32.totalorder %v1091_v1, 0 }
 0x7af   : > { %v1018_v38 = vpop.xlane.xlu2 %1017 }
 0x7b0   : > { %vm1041_vm0 = vcmp.gt.f32.partialorder %v1018_v38, 0.5 }
 0x7b1   : > { %vm1048_vm1 = vmand %vm1041_vm0, %vm1047_vm15 }
 0x7b2   : > { %vm1050_vm2 = vmand %vm1048_vm1, %vm1049_vm14  ;;  %vm1139_vm14 = vcmp.gt.s32.totalorder %v3919_v35, 16 }
 0x7b3   : > { %v3607_v41 = vsel %vm1050_vm2, 1.0, %v3849_v7 }
 0x7b4   : > { %v1053_v43 = vmax.f32 %v1008_v10, %v3607_v41 }
 0x7b6   : > { %v1059_v44 = vsub.f32 1.0, %v1053_v43 }
 0x7b7   : > { %v1103_v10 = vpop.xlane.xlu2 %1102 }
 0x7b8   : > { %v1060_v45 = vsel %vm1054_vm3, %v1059_v44, 0.0  ;;  %vm1144_vm3 = vcmp.eq.s32.totalorder %v3919_v35, 17  ;;  %v1110_v11 = vmax.f32 %v1103_v10, %v3902_v27  ;;  %v1109_v12 = vmin.f32 %v1103_v10, %v3915_v32 }
 0x7b9   : > { %v1061_v46 = vsel %vm385_vm11, %v1060_v45, -inf  ;;  %v1145_v60 = vsel %vm1144_vm3, %v3930_v42, 0.0  ;;  %v1120_v18 = vadd.f32 %v1103_v10, %v3924_v39 }
 0x7ba   : > { %1062 = vmax.xlane.f32.xlu1 %v1061_v46  ;;  %v1146_v61 = vsel %vm379_vm10, %v1145_v60, 0.0  ;;  %v1112_v13 = vrot.slane %v1110_v11, 6 }
 0x7bc   : > { %v1114_v14 = vsub.f32 %v1109_v12, %v1112_v13 }
 0x7be   : > { %v1115_v15 = vmax.f32 %v1114_v14, 0.0 }
 0x7c0   : > { %v1117_v16 = vrot.slane %v1115_v15, 1 }
 0x7c2   : > { %1147 = vadd.xlane.f32.xlu1 %v1146_v61  ;;  %v1119_v17 = vmul.f32 %v1117_v16, %v1115_v15 }
 0x7c4   : > { %v1122_v19 = vrot.slane %v1119_v17, 6 }
 0x7c6   : > { %v1124_v20 = vsub.f32 %v1120_v18, %v1122_v19 }
 0x7c8   : > { %v1125_v21 = vadd.f32 1e-08, %v1124_v20 }
 0x7ca   : > { %3743 = vrcp.f32 %v1125_v21 }
 0x7d0   : > { %v3744_v22 = vpop.eup %3743 }
 0x7d1   : > { %v1128_v25 = vrot.slane %v3744_v22, 2 }
 0x7d3   : > { %v1130_v26 = vmul.f32 %v1128_v25, %v1119_v17 }
 0x7d5   : > { %vm1132_vm13 = vcmp.gt.f32.partialorder %v1130_v26, 0.5 }
 0x7d6   : > { %v1135_v28 = vsel %vm1132_vm13, 1, %v3848_v4 }
 0x7d7   : > { %v1136_v31 = vrot.slane %v1135_v28, 2 }
 0x7d9   : > { %vm1137_vm15 = vcmp.ne.s32.totalorder %v1136_v31, 0 }
 0x82d   : > { %v1063_v2 = vpop.xlane.xlu1 %1062 }
 0x82e   : > { %vm1086_vm6 = vcmp.gt.f32.partialorder %v1063_v2, 0.5 }
 0x82f   : > { %vm1093_vm8 = vmand %vm1086_vm6, %vm1092_vm7 }
 0x830   : > { %vm1095_vm9 = vmand %vm1093_vm8, %vm1094_vm5  ;;  %vm1184_vm5 = vcmp.gt.s32.totalorder %v3919_v35, 17 }
 0x831   : > { %v3608_v3 = vsel %vm1095_vm9, 1.0, %v3849_v7 }
 0x832   : > { %v1098_v5 = vmax.f32 %v1053_v43, %v3608_v3 }
 0x834   : > { %v1104_v6 = vsub.f32 1.0, %v1098_v5 }
 0x835   : > { %v1148_v43 = vpop.xlane.xlu1 %1147 }
 0x836   : > { %v1105_v8 = vsel %vm1099_vm12, %v1104_v6, 0.0  ;;  %vm1189_vm12 = vcmp.eq.s32.totalorder %v3919_v35, 18  ;;  %v1155_v44 = vmax.f32 %v1148_v43, %v3902_v27  ;;  %v1154_v45 = vmin.f32 %v1148_v43, %v3915_v32 }
 0x837   : > { %v1106_v9 = vsel %vm385_vm11, %v1105_v8, -inf  ;;  %v1190_v23 = vsel %vm1189_vm12, %v3930_v42, 0.0  ;;  %v1165_v51 = vadd.f32 %v1148_v43, %v3924_v39 }
 0x838   : > { %1107 = vmax.xlane.f32.xlu0 %v1106_v9  ;;  %v1191_v24 = vsel %vm379_vm10, %v1190_v23, 0.0  ;;  %v1157_v46 = vrot.slane %v1155_v44, 6 }
 0x83a   : > { %v1159_v47 = vsub.f32 %v1154_v45, %v1157_v46 }
 0x83c   : > { %v1160_v48 = vmax.f32 %v1159_v47, 0.0 }
 0x83e   : > { %v1162_v49 = vrot.slane %v1160_v48, 1 }
 0x840   : > { %1192 = vadd.xlane.f32.xlu0 %v1191_v24  ;;  %v1164_v50 = vmul.f32 %v1162_v49, %v1160_v48 }
 0x842   : > { %v1167_v52 = vrot.slane %v1164_v50, 6 }
 0x844   : > { %v1169_v53 = vsub.f32 %v1165_v51, %v1167_v52 }
 0x846   : > { %v1170_v54 = vadd.f32 1e-08, %v1169_v53 }
 0x848   : > { %3745 = vrcp.f32 %v1170_v54 }
 0x84e   : > { %v3746_v55 = vpop.eup %3745 }
 0x84f   : > { %v1173_v58 = vrot.slane %v3746_v55, 2 }
 0x851   : > { %v1175_v59 = vmul.f32 %v1173_v58, %v1164_v50 }
 0x853   : > { %vm1177_vm4 = vcmp.gt.f32.partialorder %v1175_v59, 0.5 }
 0x854   : > { %v1180_v60 = vsel %vm1177_vm4, 1, %v3848_v4 }
 0x855   : > { %v1181_v61 = vrot.slane %v1180_v60, 2 }
 0x857   : > { %vm1182_vm6 = vcmp.ne.s32.totalorder %v1181_v61, 0 }
 0x8ab   : > { %v1108_v33 = vpop.xlane.xlu0 %1107 }
 0x8ac   : > { %vm1131_vm0 = vcmp.gt.f32.partialorder %v1108_v33, 0.5 }
 0x8ad   : > { %vm1138_vm1 = vmand %vm1131_vm0, %vm1137_vm15 }
 0x8ae   : > { %vm1140_vm2 = vmand %vm1138_vm1, %vm1139_vm14  ;;  %vm1229_vm14 = vcmp.gt.s32.totalorder %v3919_v35, 18 }
 0x8af   : > { %v3609_v34 = vsel %vm1140_vm2, 1.0, %v3849_v7 }
 0x8b0   : > { %v1143_v36 = vmax.f32 %v1098_v5, %v3609_v34 }
 0x8b2   : > { %v1149_v37 = vsub.f32 1.0, %v1143_v36 }
 0x8b3   : > { %v1193_v5 = vpop.xlane.xlu0 %1192 }
 0x8b4   : > { %v1150_v38 = vsel %vm1144_vm3, %v1149_v37, 0.0  ;;  %vm1234_vm3 = vcmp.eq.s32.totalorder %v3919_v35, 19  ;;  %v1200_v6 = vmax.f32 %v1193_v5, %v3902_v27  ;;  %v1199_v8 = vmin.f32 %v1193_v5, %v3915_v32 }
 0x8b5   : > { %v1151_v41 = vsel %vm385_vm11, %v1150_v38, -inf  ;;  %v1235_v56 = vsel %vm1234_vm3, %v3930_v42, 0.0  ;;  %v1210_v14 = vadd.f32 %v1193_v5, %v3924_v39 }
 0x8b6   : > { %1152 = vmax.xlane.f32.xlu2 %v1151_v41  ;;  %v1236_v57 = vsel %vm379_vm10, %v1235_v56, 0.0  ;;  %v1202_v9 = vrot.slane %v1200_v6, 6 }
 0x8b8   : > { %v1204_v10 = vsub.f32 %v1199_v8, %v1202_v9 }
 0x8ba   : > { %v1205_v11 = vmax.f32 %v1204_v10, 0.0 }
 0x8bc   : > { %v1207_v12 = vrot.slane %v1205_v11, 1 }
 0x8be   : > { %1237 = vadd.xlane.f32.xlu2 %v1236_v57  ;;  %v1209_v13 = vmul.f32 %v1207_v12, %v1205_v11 }
 0x8c0   : > { %v1212_v15 = vrot.slane %v1209_v13, 6 }
 0x8c2   : > { %v1214_v16 = vsub.f32 %v1210_v14, %v1212_v15 }
 0x8c4   : > { %v1215_v17 = vadd.f32 1e-08, %v1214_v16 }
 0x8c6   : > { %3747 = vrcp.f32 %v1215_v17 }
 0x8cc   : > { %v3748_v18 = vpop.eup %3747 }
 0x8cd   : > { %v1218_v21 = vrot.slane %v3748_v18, 2 }
 0x8cf   : > { %v1220_v22 = vmul.f32 %v1218_v21, %v1209_v13 }
 0x8d1   : > { %vm1222_vm13 = vcmp.gt.f32.partialorder %v1220_v22, 0.5 }
 0x8d2   : > { %v1225_v23 = vsel %vm1222_vm13, 1, %v3848_v4 }
 0x8d3   : > { %v1226_v24 = vrot.slane %v1225_v23, 2 }
 0x8d5   : > { %vm1227_vm0 = vcmp.ne.s32.totalorder %v1226_v24, 0 }
 0x929   : > { %v1153_v62 = vpop.xlane.xlu2 %1152 }
 0x92a   : > { %vm1176_vm7 = vcmp.gt.f32.partialorder %v1153_v62, 0.5 }
 0x92b   : > { %vm1183_vm8 = vmand %vm1176_vm7, %vm1182_vm6 }
 0x92c   : > { %vm1185_vm9 = vmand %vm1183_vm8, %vm1184_vm5  ;;  %vm1274_vm5 = vcmp.gt.s32.totalorder %v3919_v35, 19 }
 0x92d   : > { %v3610_v63 = vsel %vm1185_vm9, 1.0, %v3849_v7 }
 0x92e   : > { %v1188_v0 = vmax.f32 %v1143_v36, %v3610_v63 }
 0x930   : > { %v1194_v1 = vsub.f32 1.0, %v1188_v0 }
 0x931   : > { %v1238_v36 = vpop.xlane.xlu2 %1237 }
 0x932   : > { %v1195_v2 = vsel %vm1189_vm12, %v1194_v1, 0.0  ;;  %vm1279_vm12 = vcmp.eq.s32.totalorder %v3919_v35, 20  ;;  %v1245_v37 = vmax.f32 %v1238_v36, %v3902_v27  ;;  %v1244_v38 = vmin.f32 %v1238_v36, %v3915_v32 }
 0x933   : > { %v1196_v3 = vsel %vm385_vm11, %v1195_v2, -inf  ;;  %v1280_v19 = vsel %vm1279_vm12, %v3930_v42, 0.0  ;;  %v1255_v47 = vadd.f32 %v1238_v36, %v3924_v39 }
 0x934   : > { %1197 = vmax.xlane.f32.xlu1 %v1196_v3  ;;  %v1281_v20 = vsel %vm379_vm10, %v1280_v19, 0.0  ;;  %v1247_v41 = vrot.slane %v1245_v37, 6 }
 0x936   : > { %v1249_v43 = vsub.f32 %v1244_v38, %v1247_v41 }
 0x938   : > { %v1250_v44 = vmax.f32 %v1249_v43, 0.0 }
 0x93a   : > { %v1252_v45 = vrot.slane %v1250_v44, 1 }
 0x93c   : > { %1282 = vadd.xlane.f32.xlu1 %v1281_v20  ;;  %v1254_v46 = vmul.f32 %v1252_v45, %v1250_v44 }
 0x93e   : > { %v1257_v48 = vrot.slane %v1254_v46, 6 }
 0x940   : > { %v1259_v49 = vsub.f32 %v1255_v47, %v1257_v48 }
 0x942   : > { %v1260_v50 = vadd.f32 1e-08, %v1259_v49 }
 0x944   : > { %3749 = vrcp.f32 %v1260_v50 }
 0x94a   : > { %v3750_v51 = vpop.eup %3749 }
 0x94b   : > { %v1263_v54 = vrot.slane %v3750_v51, 2 }
 0x94d   : > { %v1265_v55 = vmul.f32 %v1263_v54, %v1254_v46 }
 0x94f   : > { %vm1267_vm4 = vcmp.gt.f32.partialorder %v1265_v55, 0.5 }
 0x950   : > { %v1270_v56 = vsel %vm1267_vm4, 1, %v3848_v4 }
 0x951   : > { %v1271_v57 = vrot.slane %v1270_v56, 2 }
 0x953   : > { %vm1272_vm6 = vcmp.ne.s32.totalorder %v1271_v57, 0 }
 0x9a7   : > { %v1198_v25 = vpop.xlane.xlu1 %1197 }
 0x9a8   : > { %vm1221_vm15 = vcmp.gt.f32.partialorder %v1198_v25, 0.5 }
 0x9a9   : > { %vm1228_vm1 = vmand %vm1221_vm15, %vm1227_vm0 }
 0x9aa   : > { %vm1230_vm2 = vmand %vm1228_vm1, %vm1229_vm14  ;;  %vm1319_vm14 = vcmp.gt.s32.totalorder %v3919_v35, 20 }
 0x9ab   : > { %v3611_v26 = vsel %vm1230_vm2, 1.0, %v3849_v7 }
 0x9ac   : > { %v1233_v28 = vmax.f32 %v1188_v0, %v3611_v26 }
 0x9ae   : > { %v1239_v31 = vsub.f32 1.0, %v1233_v28 }
 0x9af   : > { %v1283_v0 = vpop.xlane.xlu1 %1282 }
 0x9b0   : > { %v1240_v33 = vsel %vm1234_vm3, %v1239_v31, 0.0  ;;  %vm1324_vm3 = vcmp.eq.s32.totalorder %v3919_v35, 21  ;;  %v1290_v1 = vmax.f32 %v1283_v0, %v3902_v27  ;;  %v1289_v2 = vmin.f32 %v1283_v0, %v3915_v32 }
 0x9b1   : > { %v1241_v34 = vsel %vm385_vm11, %v1240_v33, -inf  ;;  %v1325_v52 = vsel %vm1324_vm3, %v3930_v42, 0.0  ;;  %v1300_v10 = vadd.f32 %v1283_v0, %v3924_v39 }
 0x9b2   : > { %1242 = vmax.xlane.f32.xlu0 %v1241_v34  ;;  %v1326_v53 = vsel %vm379_vm10, %v1325_v52, 0.0  ;;  %v1292_v3 = vrot.slane %v1290_v1, 6 }
 0x9b4   : > { %v1294_v5 = vsub.f32 %v1289_v2, %v1292_v3 }
 0x9b6   : > { %v1295_v6 = vmax.f32 %v1294_v5, 0.0 }
 0x9b8   : > { %v1297_v8 = vrot.slane %v1295_v6, 1 }
 0x9ba   : > { %1327 = vadd.xlane.f32.xlu0 %v1326_v53  ;;  %v1299_v9 = vmul.f32 %v1297_v8, %v1295_v6 }
 0x9bc   : > { %v1302_v11 = vrot.slane %v1299_v9, 6 }
 0x9be   : > { %v1304_v12 = vsub.f32 %v1300_v10, %v1302_v11 }
 0x9c0   : > { %v1305_v13 = vadd.f32 1e-08, %v1304_v12 }
 0x9c2   : > { %3751 = vrcp.f32 %v1305_v13 }
 0x9c8   : > { %v3752_v14 = vpop.eup %3751 }
 0x9c9   : > { %v1308_v17 = vrot.slane %v3752_v14, 2 }
 0x9cb   : > { %v1310_v18 = vmul.f32 %v1308_v17, %v1299_v9 }
 0x9cd   : > { %vm1312_vm13 = vcmp.gt.f32.partialorder %v1310_v18, 0.5 }
 0x9ce   : > { %v1315_v19 = vsel %vm1312_vm13, 1, %v3848_v4 }
 0x9cf   : > { %v1316_v20 = vrot.slane %v1315_v19, 2 }
 0x9d1   : > { %vm1317_vm15 = vcmp.ne.s32.totalorder %v1316_v20, 0 }
 0xa25   : > { %v1243_v58 = vpop.xlane.xlu0 %1242 }
 0xa26   : > { %vm1266_vm7 = vcmp.gt.f32.partialorder %v1243_v58, 0.5 }
 0xa27   : > { %vm1273_vm8 = vmand %vm1266_vm7, %vm1272_vm6 }
 0xa28   : > { %vm1275_vm9 = vmand %vm1273_vm8, %vm1274_vm5  ;;  %vm1364_vm5 = vcmp.gt.s32.totalorder %v3919_v35, 21 }
 0xa29   : > { %v3612_v59 = vsel %vm1275_vm9, 1.0, %v3849_v7 }
 0xa2a   : > { %v1278_v60 = vmax.f32 %v1233_v28, %v3612_v59 }
 0xa2c   : > { %v1284_v61 = vsub.f32 1.0, %v1278_v60 }
 0xa2d   : > { %v1328_v28 = vpop.xlane.xlu0 %1327 }
 0xa2e   : > { %v1285_v62 = vsel %vm1279_vm12, %v1284_v61, 0.0  ;;  %vm1369_vm12 = vcmp.eq.s32.totalorder %v3919_v35, 22  ;;  %v1335_v31 = vmax.f32 %v1328_v28, %v3902_v27  ;;  %v1334_v33 = vmin.f32 %v1328_v28, %v3915_v32 }
 0xa2f   : > { %v1286_v63 = vsel %vm385_vm11, %v1285_v62, -inf  ;;  %v1370_v15 = vsel %vm1369_vm12, %v3930_v42, 0.0  ;;  %v1345_v43 = vadd.f32 %v1328_v28, %v3924_v39 }
 0xa30   : > { %1287 = vmax.xlane.f32.xlu2 %v1286_v63  ;;  %v1371_v16 = vsel %vm379_vm10, %v1370_v15, 0.0  ;;  %v1337_v34 = vrot.slane %v1335_v31, 6 }
 0xa32   : > { %v1339_v36 = vsub.f32 %v1334_v33, %v1337_v34 }
 0xa34   : > { %v1340_v37 = vmax.f32 %v1339_v36, 0.0 }
 0xa36   : > { %v1342_v38 = vrot.slane %v1340_v37, 1 }
 0xa38   : > { %1372 = vadd.xlane.f32.xlu2 %v1371_v16  ;;  %v1344_v41 = vmul.f32 %v1342_v38, %v1340_v37 }
 0xa3a   : > { %v1347_v44 = vrot.slane %v1344_v41, 6 }
 0xa3c   : > { %v1349_v45 = vsub.f32 %v1345_v43, %v1347_v44 }
 0xa3e   : > { %v1350_v46 = vadd.f32 1e-08, %v1349_v45 }
 0xa40   : > { %3753 = vrcp.f32 %v1350_v46 }
 0xa46   : > { %v3754_v47 = vpop.eup %3753 }
 0xa47   : > { %v1353_v50 = vrot.slane %v3754_v47, 2 }
 0xa49   : > { %v1355_v51 = vmul.f32 %v1353_v50, %v1344_v41 }
 0xa4b   : > { %vm1357_vm4 = vcmp.gt.f32.partialorder %v1355_v51, 0.5 }
 0xa4c   : > { %v1360_v52 = vsel %vm1357_vm4, 1, %v3848_v4 }
 0xa4d   : > { %v1361_v53 = vrot.slane %v1360_v52, 2 }
 0xa4f   : > { %vm1362_vm7 = vcmp.ne.s32.totalorder %v1361_v53, 0 }
 0xaa3   : > { %v1288_v21 = vpop.xlane.xlu2 %1287 }
 0xaa4   : > { %vm1311_vm0 = vcmp.gt.f32.partialorder %v1288_v21, 0.5 }
 0xaa5   : > { %vm1318_vm1 = vmand %vm1311_vm0, %vm1317_vm15 }
 0xaa6   : > { %vm1320_vm2 = vmand %vm1318_vm1, %vm1319_vm14  ;;  %vm1409_vm14 = vcmp.gt.s32.totalorder %v3919_v35, 22 }
 0xaa7   : > { %v3613_v22 = vsel %vm1320_vm2, 1.0, %v3849_v7 }
 0xaa8   : > { %v1323_v23 = vmax.f32 %v1278_v60, %v3613_v22 }
 0xaaa   : > { %v1329_v24 = vsub.f32 1.0, %v1323_v23 }
 0xaab   : > { %v1373_v60 = vpop.xlane.xlu2 %1372 }
 0xaac   : > { %v1330_v25 = vsel %vm1324_vm3, %v1329_v24, 0.0  ;;  %vm1414_vm3 = vcmp.eq.s32.totalorder %v3919_v35, 23  ;;  %v1380_v61 = vmax.f32 %v1373_v60, %v3902_v27  ;;  %v1379_v62 = vmin.f32 %v1373_v60, %v3915_v32 }
 0xaad   : > { %v1331_v26 = vsel %vm385_vm11, %v1330_v25, -inf  ;;  %v1415_v48 = vsel %vm1414_vm3, %v3930_v42, 0.0  ;;  %v1390_v5 = vadd.f32 %v1373_v60, %v3924_v39 }
 0xaae   : > { %1332 = vmax.xlane.f32.xlu1 %v1331_v26  ;;  %v1416_v49 = vsel %vm379_vm10, %v1415_v48, 0.0  ;;  %v1382_v63 = vrot.slane %v1380_v61, 6 }
 0xab0   : > { %v1384_v0 = vsub.f32 %v1379_v62, %v1382_v63 }
 0xab2   : > { %v1385_v1 = vmax.f32 %v1384_v0, 0.0 }
 0xab4   : > { %v1387_v2 = vrot.slane %v1385_v1, 1 }
 0xab6   : > { %1417 = vadd.xlane.f32.xlu1 %v1416_v49  ;;  %v1389_v3 = vmul.f32 %v1387_v2, %v1385_v1 }
 0xab8   : > { %v1392_v6 = vrot.slane %v1389_v3, 6 }
 0xaba   : > { %v1394_v8 = vsub.f32 %v1390_v5, %v1392_v6 }
 0xabc   : > { %v1395_v9 = vadd.f32 1e-08, %v1394_v8 }
 0xabe   : > { %3755 = vrcp.f32 %v1395_v9 }
 0xac4   : > { %v3756_v10 = vpop.eup %3755 }
 0xac5   : > { %v1398_v13 = vrot.slane %v3756_v10, 2 }
 0xac7   : > { %v1400_v14 = vmul.f32 %v1398_v13, %v1389_v3 }
 0xac9   : > { %vm1402_vm13 = vcmp.gt.f32.partialorder %v1400_v14, 0.5 }
 0xaca   : > { %v1405_v15 = vsel %vm1402_vm13, 1, %v3848_v4 }
 0xacb   : > { %v1406_v16 = vrot.slane %v1405_v15, 2 }
 0xacd   : > { %vm1407_vm15 = vcmp.ne.s32.totalorder %v1406_v16, 0 }
 0xb21   : > { %v1333_v54 = vpop.xlane.xlu1 %1332 }
 0xb22   : > { %vm1356_vm6 = vcmp.gt.f32.partialorder %v1333_v54, 0.5 }
 0xb23   : > { %vm1363_vm8 = vmand %vm1356_vm6, %vm1362_vm7 }
 0xb24   : > { %vm1365_vm9 = vmand %vm1363_vm8, %vm1364_vm5  ;;  %vm1454_vm5 = vcmp.gt.s32.totalorder %v3919_v35, 23 }
 0xb25   : > { %v3614_v55 = vsel %vm1365_vm9, 1.0, %v3849_v7 }
 0xb26   : > { %v1368_v56 = vmax.f32 %v1323_v23, %v3614_v55 }
 0xb28   : > { %v1374_v57 = vsub.f32 1.0, %v1368_v56 }
 0xb29   : > { %v1418_v23 = vpop.xlane.xlu1 %1417 }
 0xb2a   : > { %v1375_v58 = vsel %vm1369_vm12, %v1374_v57, 0.0  ;;  %vm1459_vm12 = vcmp.eq.s32.totalorder %v3919_v35, 24  ;;  %v1425_v24 = vmax.f32 %v1418_v23, %v3902_v27  ;;  %v1424_v25 = vmin.f32 %v1418_v23, %v3915_v32 }
 0xb2b   : > { %v1376_v59 = vsel %vm385_vm11, %v1375_v58, -inf  ;;  %v1460_v11 = vsel %vm1459_vm12, %v3930_v42, 0.0  ;;  %v1435_v36 = vadd.f32 %v1418_v23, %v3924_v39 }
 0xb2c   : > { %1377 = vmax.xlane.f32.xlu0 %v1376_v59  ;;  %v1461_v12 = vsel %vm379_vm10, %v1460_v11, 0.0  ;;  %v1427_v26 = vrot.slane %v1425_v24, 6 }
 0xb2e   : > { %v1429_v28 = vsub.f32 %v1424_v25, %v1427_v26 }
 0xb30   : > { %v1430_v31 = vmax.f32 %v1429_v28, 0.0 }
 0xb32   : > { %v1432_v33 = vrot.slane %v1430_v31, 1 }
 0xb34   : > { %1462 = vadd.xlane.f32.xlu0 %v1461_v12  ;;  %v1434_v34 = vmul.f32 %v1432_v33, %v1430_v31 }
 0xb36   : > { %v1437_v37 = vrot.slane %v1434_v34, 6 }
 0xb38   : > { %v1439_v38 = vsub.f32 %v1435_v36, %v1437_v37 }
 0xb3a   : > { %v1440_v41 = vadd.f32 1e-08, %v1439_v38 }
 0xb3c   : > { %3757 = vrcp.f32 %v1440_v41 }
 0xb42   : > { %v3758_v43 = vpop.eup %3757 }
 0xb43   : > { %v1443_v46 = vrot.slane %v3758_v43, 2 }
 0xb45   : > { %v1445_v47 = vmul.f32 %v1443_v46, %v1434_v34 }
 0xb47   : > { %vm1447_vm4 = vcmp.gt.f32.partialorder %v1445_v47, 0.5 }
 0xb48   : > { %v1450_v48 = vsel %vm1447_vm4, 1, %v3848_v4 }
 0xb49   : > { %v1451_v49 = vrot.slane %v1450_v48, 2 }
 0xb4b   : > { %vm1452_vm6 = vcmp.ne.s32.totalorder %v1451_v49, 0 }
 0xb9f   : > { %v1378_v17 = vpop.xlane.xlu0 %1377 }
 0xba0   : > { %vm1401_vm0 = vcmp.gt.f32.partialorder %v1378_v17, 0.5 }
 0xba1   : > { %vm1408_vm1 = vmand %vm1401_vm0, %vm1407_vm15 }
 0xba2   : > { %vm1410_vm2 = vmand %vm1408_vm1, %vm1409_vm14  ;;  %vm1499_vm14 = vcmp.gt.s32.totalorder %v3919_v35, 24 }
 0xba3   : > { %v3615_v18 = vsel %vm1410_vm2, 1.0, %v3849_v7 }
 0xba4   : > { %v1413_v19 = vmax.f32 %v1368_v56, %v3615_v18 }
 0xba6   : > { %v1419_v20 = vsub.f32 1.0, %v1413_v19 }
 0xba7   : > { %v1463_v56 = vpop.xlane.xlu0 %1462 }
 0xba8   : > { %v1420_v21 = vsel %vm1414_vm3, %v1419_v20, 0.0  ;;  %vm1504_vm3 = vcmp.eq.s32.totalorder %v3919_v35, 25  ;;  %v1470_v57 = vmax.f32 %v1463_v56, %v3902_v27  ;;  %v1469_v58 = vmin.f32 %v1463_v56, %v3915_v32 }
 0xba9   : > { %v1421_v22 = vsel %vm385_vm11, %v1420_v21, -inf  ;;  %v1505_v44 = vsel %vm1504_vm3, %v3930_v42, 0.0  ;;  %v1480_v0 = vadd.f32 %v1463_v56, %v3924_v39 }
 0xbaa   : > { %1422 = vmax.xlane.f32.xlu2 %v1421_v22  ;;  %v1506_v45 = vsel %vm379_vm10, %v1505_v44, 0.0  ;;  %v1472_v59 = vrot.slane %v1470_v57, 6 }
 0xbac   : > { %v1474_v60 = vsub.f32 %v1469_v58, %v1472_v59 }
 0xbae   : > { %v1475_v61 = vmax.f32 %v1474_v60, 0.0 }
 0xbb0   : > { %v1477_v62 = vrot.slane %v1475_v61, 1 }
 0xbb2   : > { %1507 = vadd.xlane.f32.xlu2 %v1506_v45  ;;  %v1479_v63 = vmul.f32 %v1477_v62, %v1475_v61 }
 0xbb4   : > { %v1482_v1 = vrot.slane %v1479_v63, 6 }
 0xbb6   : > { %v1484_v2 = vsub.f32 %v1480_v0, %v1482_v1 }
 0xbb8   : > { %v1485_v3 = vadd.f32 1e-08, %v1484_v2 }
 0xbba   : > { %3759 = vrcp.f32 %v1485_v3 }
 0xbc0   : > { %v3760_v5 = vpop.eup %3759 }
 0xbc1   : > { %v1488_v9 = vrot.slane %v3760_v5, 2 }
 0xbc3   : > { %v1490_v10 = vmul.f32 %v1488_v9, %v1479_v63 }
 0xbc5   : > { %vm1492_vm13 = vcmp.gt.f32.partialorder %v1490_v10, 0.5 }
 0xbc6   : > { %v1495_v11 = vsel %vm1492_vm13, 1, %v3848_v4 }
 0xbc7   : > { %v1496_v12 = vrot.slane %v1495_v11, 2 }
 0xbc9   : > { %vm1497_vm0 = vcmp.ne.s32.totalorder %v1496_v12, 0 }
 0xc1d   : > { %v1423_v50 = vpop.xlane.xlu2 %1422 }
 0xc1e   : > { %vm1446_vm7 = vcmp.gt.f32.partialorder %v1423_v50, 0.5 }
 0xc1f   : > { %vm1453_vm8 = vmand %vm1446_vm7, %vm1452_vm6 }
 0xc20   : > { %vm1455_vm9 = vmand %vm1453_vm8, %vm1454_vm5  ;;  %vm1544_vm5 = vcmp.gt.s32.totalorder %v3919_v35, 25 }
 0xc21   : > { %v3616_v51 = vsel %vm1455_vm9, 1.0, %v3849_v7 }
 0xc22   : > { %v1458_v52 = vmax.f32 %v1413_v19, %v3616_v51 }
 0xc24   : > { %v1464_v53 = vsub.f32 1.0, %v1458_v52 }
 0xc25   : > { %v1508_v19 = vpop.xlane.xlu2 %1507 }
 0xc26   : > { %v1465_v54 = vsel %vm1459_vm12, %v1464_v53, 0.0  ;;  %vm1549_vm12 = vcmp.eq.s32.totalorder %v3919_v35, 26  ;;  %v1515_v20 = vmax.f32 %v1508_v19, %v3902_v27  ;;  %v1514_v21 = vmin.f32 %v1508_v19, %v3915_v32 }
 0xc27   : > { %v1466_v55 = vsel %vm385_vm11, %v1465_v54, -inf  ;;  %v1550_v6 = vsel %vm1549_vm12, %v3930_v42, 0.0  ;;  %v1525_v28 = vadd.f32 %v1508_v19, %v3924_v39 }
 0xc28   : > { %1467 = vmax.xlane.f32.xlu1 %v1466_v55  ;;  %v1551_v8 = vsel %vm379_vm10, %v1550_v6, 0.0  ;;  %v1517_v22 = vrot.slane %v1515_v20, 6 }
 0xc2a   : > { %v1519_v23 = vsub.f32 %v1514_v21, %v1517_v22 }
 0xc2c   : > { %v1520_v24 = vmax.f32 %v1519_v23, 0.0 }
 0xc2e   : > { %v1522_v25 = vrot.slane %v1520_v24, 1 }
 0xc30   : > { %1552 = vadd.xlane.f32.xlu1 %v1551_v8  ;;  %v1524_v26 = vmul.f32 %v1522_v25, %v1520_v24 }
 0xc32   : > { %v1527_v31 = vrot.slane %v1524_v26, 6 }
 0xc34   : > { %v1529_v33 = vsub.f32 %v1525_v28, %v1527_v31 }
 0xc36   : > { %v1530_v34 = vadd.f32 1e-08, %v1529_v33 }
 0xc38   : > { %3761 = vrcp.f32 %v1530_v34 }
 0xc3e   : > { %v3762_v36 = vpop.eup %3761 }
 0xc3f   : > { %v1533_v41 = vrot.slane %v3762_v36, 2 }
 0xc41   : > { %v1535_v43 = vmul.f32 %v1533_v41, %v1524_v26 }
 0xc43   : > { %vm1537_vm4 = vcmp.gt.f32.partialorder %v1535_v43, 0.5 }
 0xc44   : > { %v1540_v44 = vsel %vm1537_vm4, 1, %v3848_v4 }
 0xc45   : > { %v1541_v45 = vrot.slane %v1540_v44, 2 }
 0xc47   : > { %vm1542_vm6 = vcmp.ne.s32.totalorder %v1541_v45, 0 }
 0xc9b   : > { %v1468_v13 = vpop.xlane.xlu1 %1467 }
 0xc9c   : > { %vm1491_vm15 = vcmp.gt.f32.partialorder %v1468_v13, 0.5 }
 0xc9d   : > { %vm1498_vm1 = vmand %vm1491_vm15, %vm1497_vm0 }
 0xc9e   : > { %vm1500_vm2 = vmand %vm1498_vm1, %vm1499_vm14  ;;  %vm1589_vm14 = vcmp.gt.s32.totalorder %v3919_v35, 26 }
 0xc9f   : > { %v3617_v14 = vsel %vm1500_vm2, 1.0, %v3849_v7 }
 0xca0   : > { %v1503_v15 = vmax.f32 %v1458_v52, %v3617_v14 }
 0xca2   : > { %v1509_v16 = vsub.f32 1.0, %v1503_v15 }
 0xca3   : > { %v1553_v52 = vpop.xlane.xlu1 %1552 }
 0xca4   : > { %v1510_v17 = vsel %vm1504_vm3, %v1509_v16, 0.0  ;;  %vm1594_vm3 = vcmp.eq.s32.totalorder %v3919_v35, 27  ;;  %v1560_v53 = vmax.f32 %v1553_v52, %v3902_v27  ;;  %v1559_v54 = vmin.f32 %v1553_v52, %v3915_v32 }
 0xca5   : > { %v1511_v18 = vsel %vm385_vm11, %v1510_v17, -inf  ;;  %v1595_v37 = vsel %vm1594_vm3, %v3930_v42, 0.0  ;;  %v1570_v60 = vadd.f32 %v1553_v52, %v3924_v39 }
 0xca6   : > { %1512 = vmax.xlane.f32.xlu0 %v1511_v18  ;;  %v1596_v38 = vsel %vm379_vm10, %v1595_v37, 0.0  ;;  %v1562_v55 = vrot.slane %v1560_v53, 6 }
 0xca8   : > { %v1564_v56 = vsub.f32 %v1559_v54, %v1562_v55 }
 0xcaa   : > { %v1565_v57 = vmax.f32 %v1564_v56, 0.0 }
 0xcac   : > { %v1567_v58 = vrot.slane %v1565_v57, 1 }
 0xcae   : > { %1597 = vadd.xlane.f32.xlu0 %v1596_v38  ;;  %v1569_v59 = vmul.f32 %v1567_v58, %v1565_v57 }
 0xcb0   : > { %v1572_v61 = vrot.slane %v1569_v59, 6 }
 0xcb2   : > { %v1574_v62 = vsub.f32 %v1570_v60, %v1572_v61 }
 0xcb4   : > { %v1575_v63 = vadd.f32 1e-08, %v1574_v62 }
 0xcb6   : > { %3763 = vrcp.f32 %v1575_v63 }
 0xcbc   : > { %v3764_v0 = vpop.eup %3763 }
 0xcbd   : > { %v1578_v3 = vrot.slane %v3764_v0, 2 }
 0xcbf   : > { %v1580_v5 = vmul.f32 %v1578_v3, %v1569_v59 }
 0xcc1   : > { %vm1582_vm13 = vcmp.gt.f32.partialorder %v1580_v5, 0.5 }
 0xcc2   : > { %v1585_v6 = vsel %vm1582_vm13, 1, %v3848_v4 }
 0xcc3   : > { %v1586_v8 = vrot.slane %v1585_v6, 2 }
 0xcc5   : > { %vm1587_vm15 = vcmp.ne.s32.totalorder %v1586_v8, 0 }
 0xd19   : > { %v1513_v46 = vpop.xlane.xlu0 %1512 }
 0xd1a   : > { %vm1536_vm7 = vcmp.gt.f32.partialorder %v1513_v46, 0.5 }
 0xd1b   : > { %vm1543_vm8 = vmand %vm1536_vm7, %vm1542_vm6 }
 0xd1c   : > { %vm1545_vm9 = vmand %vm1543_vm8, %vm1544_vm5  ;;  %vm1634_vm5 = vcmp.gt.s32.totalorder %v3919_v35, 27 }
 0xd1d   : > { %v3618_v47 = vsel %vm1545_vm9, 1.0, %v3849_v7 }
 0xd1e   : > { %v1548_v48 = vmax.f32 %v1503_v15, %v3618_v47 }
 0xd20   : > { %v1554_v49 = vsub.f32 1.0, %v1548_v48 }
 0xd21   : > { %v1598_v15 = vpop.xlane.xlu0 %1597 }
 0xd22   : > { %v1555_v50 = vsel %vm1549_vm12, %v1554_v49, 0.0  ;;  %vm1639_vm12 = vcmp.eq.s32.totalorder %v3919_v35, 28  ;;  %v1605_v16 = vmax.f32 %v1598_v15, %v3902_v27  ;;  %v1604_v17 = vmin.f32 %v1598_v15, %v3915_v32 }
 0xd23   : > { %v1556_v51 = vsel %vm385_vm11, %v1555_v50, -inf  ;;  %v1640_v1 = vsel %vm1639_vm12, %v3930_v42, 0.0  ;;  %v1615_v23 = vadd.f32 %v1598_v15, %v3924_v39 }
 0xd24   : > { %1557 = vmax.xlane.f32.xlu2 %v1556_v51  ;;  %v1641_v2 = vsel %vm379_vm10, %v1640_v1, 0.0  ;;  %v1607_v18 = vrot.slane %v1605_v16, 6 }
 0xd26   : > { %v1609_v19 = vsub.f32 %v1604_v17, %v1607_v18 }
 0xd28   : > { %v1610_v20 = vmax.f32 %v1609_v19, 0.0 }
 0xd2a   : > { %v1612_v21 = vrot.slane %v1610_v20, 1 }
 0xd2c   : > { %1642 = vadd.xlane.f32.xlu2 %v1641_v2  ;;  %v1614_v22 = vmul.f32 %v1612_v21, %v1610_v20 }
 0xd2e   : > { %v1617_v24 = vrot.slane %v1614_v22, 6 }
 0xd30   : > { %v1619_v25 = vsub.f32 %v1615_v23, %v1617_v24 }
 0xd32   : > { %v1620_v26 = vadd.f32 1e-08, %v1619_v25 }
 0xd34   : > { %3765 = vrcp.f32 %v1620_v26 }
 0xd3a   : > { %v3766_v28 = vpop.eup %3765 }
 0xd3b   : > { %v1623_v34 = vrot.slane %v3766_v28, 2 }
 0xd3d   : > { %v1625_v36 = vmul.f32 %v1623_v34, %v1614_v22 }
 0xd3f   : > { %vm1627_vm4 = vcmp.gt.f32.partialorder %v1625_v36, 0.5 }
 0xd40   : > { %v1630_v37 = vsel %vm1627_vm4, 1, %v3848_v4 }
 0xd41   : > { %v1631_v38 = vrot.slane %v1630_v37, 2 }
 0xd43   : > { %vm1632_vm7 = vcmp.ne.s32.totalorder %v1631_v38, 0 }
 0xd97   : > { %v1558_v9 = vpop.xlane.xlu2 %1557 }
 0xd98   : > { %vm1581_vm0 = vcmp.gt.f32.partialorder %v1558_v9, 0.5 }
 0xd99   : > { %vm1588_vm1 = vmand %vm1581_vm0, %vm1587_vm15 }
 0xd9a   : > { %vm1590_vm2 = vmand %vm1588_vm1, %vm1589_vm14  ;;  %vm1679_vm14 = vcmp.gt.s32.totalorder %v3919_v35, 28 }
 0xd9b   : > { %v3619_v10 = vsel %vm1590_vm2, 1.0, %v3849_v7 }
 0xd9c   : > { %v1593_v11 = vmax.f32 %v1548_v48, %v3619_v10 }
 0xd9e   : > { %v1599_v12 = vsub.f32 1.0, %v1593_v11 }
 0xd9f   : > { %v1643_v48 = vpop.xlane.xlu2 %1642 }
 0xda0   : > { %v1600_v13 = vsel %vm1594_vm3, %v1599_v12, 0.0  ;;  %vm1684_vm3 = vcmp.eq.s32.totalorder %v3919_v35, 29  ;;  %v1650_v49 = vmax.f32 %v1643_v48, %v3902_v27  ;;  %v1649_v50 = vmin.f32 %v1643_v48, %v3915_v32 }
 0xda1   : > { %v1601_v14 = vsel %vm385_vm11, %v1600_v13, -inf  ;;  %v1685_v31 = vsel %vm1684_vm3, %v3930_v42, 0.0  ;;  %v1660_v56 = vadd.f32 %v1643_v48, %v3924_v39 }
 0xda2   : > { %1602 = vmax.xlane.f32.xlu1 %v1601_v14  ;;  %v1686_v33 = vsel %vm379_vm10, %v1685_v31, 0.0  ;;  %v1652_v51 = vrot.slane %v1650_v49, 6 }
 0xda4   : > { %v1654_v52 = vsub.f32 %v1649_v50, %v1652_v51 }
 0xda6   : > { %v1655_v53 = vmax.f32 %v1654_v52, 0.0 }
 0xda8   : > { %v1657_v54 = vrot.slane %v1655_v53, 1 }
 0xdaa   : > { %1687 = vadd.xlane.f32.xlu1 %v1686_v33  ;;  %v1659_v55 = vmul.f32 %v1657_v54, %v1655_v53 }
 0xdac   : > { %v1662_v57 = vrot.slane %v1659_v55, 6 }
 0xdae   : > { %v1664_v58 = vsub.f32 %v1660_v56, %v1662_v57 }
 0xdb0   : > { %v1665_v59 = vadd.f32 1e-08, %v1664_v58 }
 0xdb2   : > { %3767 = vrcp.f32 %v1665_v59 }
 0xdb8   : > { %v3768_v60 = vpop.eup %3767 }
 0xdb9   : > { %v1668_v63 = vrot.slane %v3768_v60, 2 }
 0xdbb   : > { %v1670_v0 = vmul.f32 %v1668_v63, %v1659_v55 }
 0xdbd   : > { %vm1672_vm13 = vcmp.gt.f32.partialorder %v1670_v0, 0.5 }
 0xdbe   : > { %v1675_v1 = vsel %vm1672_vm13, 1, %v3848_v4 }
 0xdbf   : > { %v1676_v2 = vrot.slane %v1675_v1, 2 }
 0xdc1   : > { %vm1677_vm15 = vcmp.ne.s32.totalorder %v1676_v2, 0 }
 0xe15   : > { %v1603_v41 = vpop.xlane.xlu1 %1602 }
 0xe16   : > { %vm1626_vm6 = vcmp.gt.f32.partialorder %v1603_v41, 0.5 }
 0xe17   : > { %vm1633_vm8 = vmand %vm1626_vm6, %vm1632_vm7 }
 0xe18   : > { %vm1635_vm9 = vmand %vm1633_vm8, %vm1634_vm5  ;;  %vm1724_vm5 = vcmp.gt.s32.totalorder %v3919_v35, 29 }
 0xe19   : > { %v3620_v43 = vsel %vm1635_vm9, 1.0, %v3849_v7 }
 0xe1a   : > { %v1638_v44 = vmax.f32 %v1593_v11, %v3620_v43 }
 0xe1c   : > { %v1644_v45 = vsub.f32 1.0, %v1638_v44 }
 0xe1d   : > { %v1688_v11 = vpop.xlane.xlu1 %1687 }
 0xe1e   : > { %v1645_v46 = vsel %vm1639_vm12, %v1644_v45, 0.0  ;;  %vm1729_vm12 = vcmp.eq.s32.totalorder %v3919_v35, 30  ;;  %v1695_v12 = vmax.f32 %v1688_v11, %v3902_v27  ;;  %v1694_v13 = vmin.f32 %v1688_v11, %v3915_v32 }
 0xe1f   : > { %v1646_v47 = vsel %vm385_vm11, %v1645_v46, -inf  ;;  %v1730_v61 = vsel %vm1729_vm12, %v3930_v42, 0.0  ;;  %v1705_v19 = vadd.f32 %v1688_v11, %v3924_v39 }
 0xe20   : > { %1647 = vmax.xlane.f32.xlu0 %v1646_v47  ;;  %v1731_v62 = vsel %vm379_vm10, %v1730_v61, 0.0  ;;  %v1697_v14 = vrot.slane %v1695_v12, 6 }
 0xe22   : > { %v1699_v15 = vsub.f32 %v1694_v13, %v1697_v14 }
 0xe24   : > { %v1700_v16 = vmax.f32 %v1699_v15, 0.0 }
 0xe26   : > { %v1702_v17 = vrot.slane %v1700_v16, 1 }
 0xe28   : > { %1732 = vadd.xlane.f32.xlu0 %v1731_v62  ;;  %v1704_v18 = vmul.f32 %v1702_v17, %v1700_v16 }
 0xe2a   : > { %v1707_v20 = vrot.slane %v1704_v18, 6 }
 0xe2c   : > { %v1709_v21 = vsub.f32 %v1705_v19, %v1707_v20 }
 0xe2e   : > { %v1710_v22 = vadd.f32 1e-08, %v1709_v21 }
 0xe30   : > { %3769 = vrcp.f32 %v1710_v22 }
 0xe36   : > { %v3770_v23 = vpop.eup %3769 }
 0xe37   : > { %v1713_v26 = vrot.slane %v3770_v23, 2 }
 0xe39   : > { %v1715_v28 = vmul.f32 %v1713_v26, %v1704_v18 }
 0xe3b   : > { %vm1717_vm4 = vcmp.gt.f32.partialorder %v1715_v28, 0.5 }
 0xe3c   : > { %v1720_v31 = vsel %vm1717_vm4, 1, %v3848_v4 }
 0xe3d   : > { %v1721_v33 = vrot.slane %v1720_v31, 2 }
 0xe3f   : > { %vm1722_vm6 = vcmp.ne.s32.totalorder %v1721_v33, 0 }
 0xe93   : > { %v1648_v3 = vpop.xlane.xlu0 %1647 }
 0xe94   : > { %vm1671_vm0 = vcmp.gt.f32.partialorder %v1648_v3, 0.5 }
 0xe95   : > { %vm1678_vm1 = vmand %vm1671_vm0, %vm1677_vm15 }
 0xe96   : > { %vm1680_vm2 = vmand %vm1678_vm1, %vm1679_vm14  ;;  %vm1769_vm14 = vcmp.gt.s32.totalorder %v3919_v35, 30 }
 0xe97   : > { %v3621_v5 = vsel %vm1680_vm2, 1.0, %v3849_v7 }
 0xe98   : > { %v1683_v6 = vmax.f32 %v1638_v44, %v3621_v5 }
 0xe9a   : > { %v1689_v8 = vsub.f32 1.0, %v1683_v6 }
 0xe9b   : > { %v1733_v44 = vpop.xlane.xlu0 %1732 }
 0xe9c   : > { %v1690_v9 = vsel %vm1684_vm3, %v1689_v8, 0.0  ;;  %vm1774_vm3 = vcmp.eq.s32.totalorder %v3919_v35, 31  ;;  %v1740_v45 = vmax.f32 %v1733_v44, %v3902_v27  ;;  %v1739_v46 = vmin.f32 %v1733_v44, %v3915_v32 }
 0xe9d   : > { %v1691_v10 = vsel %vm385_vm11, %v1690_v9, -inf  ;;  %v1775_v24 = vsel %vm1774_vm3, %v3930_v42, 0.0  ;;  %v1750_v52 = vadd.f32 %v1733_v44, %v3924_v39 }
 0xe9e   : > { %1692 = vmax.xlane.f32.xlu2 %v1691_v10  ;;  %v1776_v25 = vsel %vm379_vm10, %v1775_v24, 0.0  ;;  %v1742_v47 = vrot.slane %v1740_v45, 6 }
 0xea0   : > { %v1744_v48 = vsub.f32 %v1739_v46, %v1742_v47 }
 0xea2   : > { %v1745_v49 = vmax.f32 %v1744_v48, 0.0 }
 0xea4   : > { %v1747_v50 = vrot.slane %v1745_v49, 1 }
 0xea6   : > { %1777 = vadd.xlane.f32.xlu2 %v1776_v25  ;;  %v1749_v51 = vmul.f32 %v1747_v50, %v1745_v49 }
 0xea8   : > { %v1752_v53 = vrot.slane %v1749_v51, 6 }
 0xeaa   : > { %v1754_v54 = vsub.f32 %v1750_v52, %v1752_v53 }
 0xeac   : > { %v1755_v55 = vadd.f32 1e-08, %v1754_v54 }
 0xeae   : > { %3771 = vrcp.f32 %v1755_v55 }
 0xeb4   : > { %v3772_v56 = vpop.eup %3771 }
 0xeb5   : > { %v1758_v59 = vrot.slane %v3772_v56, 2 }
 0xeb7   : > { %v1760_v60 = vmul.f32 %v1758_v59, %v1749_v51 }
 0xeb9   : > { %vm1762_vm13 = vcmp.gt.f32.partialorder %v1760_v60, 0.5 }
 0xeba   : > { %v1765_v61 = vsel %vm1762_vm13, 1, %v3848_v4 }
 0xebb   : > { %v1766_v62 = vrot.slane %v1765_v61, 2 }
 0xebd   : > { %vm1767_vm0 = vcmp.ne.s32.totalorder %v1766_v62, 0 }
 0xf11   : > { %v1693_v34 = vpop.xlane.xlu2 %1692 }
 0xf12   : > { %vm1716_vm7 = vcmp.gt.f32.partialorder %v1693_v34, 0.5 }
 0xf13   : > { %vm1723_vm8 = vmand %vm1716_vm7, %vm1722_vm6 }
 0xf14   : > { %vm1725_vm9 = vmand %vm1723_vm8, %vm1724_vm5  ;;  %vm1814_vm5 = vcmp.gt.s32.totalorder %v3919_v35, 31 }
 0xf15   : > { %v3622_v36 = vsel %vm1725_vm9, 1.0, %v3849_v7 }
 0xf16   : > { %v1728_v37 = vmax.f32 %v1683_v6, %v3622_v36 }
 0xf18   : > { %v1734_v38 = vsub.f32 1.0, %v1728_v37 }
 0xf19   : > { %v1778_v6 = vpop.xlane.xlu2 %1777 }
 0xf1a   : > { %v1735_v41 = vsel %vm1729_vm12, %v1734_v38, 0.0  ;;  %vm1819_vm12 = vcmp.eq.s32.totalorder %v3919_v35, 32  ;;  %v1785_v8 = vmax.f32 %v1778_v6, %v3902_v27  ;;  %v1784_v9 = vmin.f32 %v1778_v6, %v3915_v32 }
 0xf1b   : > { %v1736_v43 = vsel %vm385_vm11, %v1735_v41, -inf  ;;  %v1820_v57 = vsel %vm1819_vm12, %v3930_v42, 0.0  ;;  %v1795_v15 = vadd.f32 %v1778_v6, %v3924_v39 }
 0xf1c   : > { %1737 = vmax.xlane.f32.xlu1 %v1736_v43  ;;  %v1821_v58 = vsel %vm379_vm10, %v1820_v57, 0.0  ;;  %v1787_v10 = vrot.slane %v1785_v8, 6 }
 0xf1e   : > { %v1789_v11 = vsub.f32 %v1784_v9, %v1787_v10 }
 0xf20   : > { %v1790_v12 = vmax.f32 %v1789_v11, 0.0 }
 0xf22   : > { %v1792_v13 = vrot.slane %v1790_v12, 1 }
 0xf24   : > { %1822 = vadd.xlane.f32.xlu1 %v1821_v58  ;;  %v1794_v14 = vmul.f32 %v1792_v13, %v1790_v12 }
 0xf26   : > { %v1797_v16 = vrot.slane %v1794_v14, 6 }
 0xf28   : > { %v1799_v17 = vsub.f32 %v1795_v15, %v1797_v16 }
 0xf2a   : > { %v1800_v18 = vadd.f32 1e-08, %v1799_v17 }
 0xf2c   : > { %3773 = vrcp.f32 %v1800_v18 }
 0xf32   : > { %v3774_v19 = vpop.eup %3773 }
 0xf33   : > { %v1803_v22 = vrot.slane %v3774_v19, 2 }
 0xf35   : > { %v1805_v23 = vmul.f32 %v1803_v22, %v1794_v14 }
 0xf37   : > { %vm1807_vm4 = vcmp.gt.f32.partialorder %v1805_v23, 0.5 }
 0xf38   : > { %v1810_v24 = vsel %vm1807_vm4, 1, %v3848_v4 }
 0xf39   : > { %v1811_v25 = vrot.slane %v1810_v24, 2 }
 0xf3b   : > { %vm1812_vm6 = vcmp.ne.s32.totalorder %v1811_v25, 0 }
 0xf8f   : > { %v1738_v63 = vpop.xlane.xlu1 %1737 }
 0xf90   : > { %vm1761_vm15 = vcmp.gt.f32.partialorder %v1738_v63, 0.5 }
 0xf91   : > { %vm1768_vm1 = vmand %vm1761_vm15, %vm1767_vm0 }
 0xf92   : > { %vm1770_vm2 = vmand %vm1768_vm1, %vm1769_vm14  ;;  %vm1859_vm14 = vcmp.gt.s32.totalorder %v3919_v35, 32 }
 0xf93   : > { %v3623_v0 = vsel %vm1770_vm2, 1.0, %v3849_v7 }
 0xf94   : > { %v1773_v1 = vmax.f32 %v1728_v37, %v3623_v0 }
 0xf96   : > { %v1779_v2 = vsub.f32 1.0, %v1773_v1 }
 0xf97   : > { %v1823_v37 = vpop.xlane.xlu1 %1822 }
 0xf98   : > { %v1780_v3 = vsel %vm1774_vm3, %v1779_v2, 0.0  ;;  %vm1864_vm3 = vcmp.eq.s32.totalorder %v3919_v35, 33  ;;  %v1830_v38 = vmax.f32 %v1823_v37, %v3902_v27  ;;  %v1829_v41 = vmin.f32 %v1823_v37, %v3915_v32 }
 0xf99   : > { %v1781_v5 = vsel %vm385_vm11, %v1780_v3, -inf  ;;  %v1865_v20 = vsel %vm1864_vm3, %v3930_v42, 0.0  ;;  %v1840_v48 = vadd.f32 %v1823_v37, %v3924_v39 }
 0xf9a   : > { %1782 = vmax.xlane.f32.xlu0 %v1781_v5  ;;  %v1866_v21 = vsel %vm379_vm10, %v1865_v20, 0.0  ;;  %v1832_v43 = vrot.slane %v1830_v38, 6 }
 0xf9c   : > { %v1834_v44 = vsub.f32 %v1829_v41, %v1832_v43 }
 0xf9e   : > { %v1835_v45 = vmax.f32 %v1834_v44, 0.0 }
 0xfa0   : > { %v1837_v46 = vrot.slane %v1835_v45, 1 }
 0xfa2   : > { %1867 = vadd.xlane.f32.xlu0 %v1866_v21  ;;  %v1839_v47 = vmul.f32 %v1837_v46, %v1835_v45 }
 0xfa4   : > { %v1842_v49 = vrot.slane %v1839_v47, 6 }
 0xfa6   : > { %v1844_v50 = vsub.f32 %v1840_v48, %v1842_v49 }
 0xfa8   : > { %v1845_v51 = vadd.f32 1e-08, %v1844_v50 }
 0xfaa   : > { %3775 = vrcp.f32 %v1845_v51 }
 0xfb0   : > { %v3776_v52 = vpop.eup %3775 }
 0xfb1   : > { %v1848_v55 = vrot.slane %v3776_v52, 2 }
 0xfb3   : > { %v1850_v56 = vmul.f32 %v1848_v55, %v1839_v47 }
 0xfb5   : > { %vm1852_vm13 = vcmp.gt.f32.partialorder %v1850_v56, 0.5 }
 0xfb6   : > { %v1855_v57 = vsel %vm1852_vm13, 1, %v3848_v4 }
 0xfb7   : > { %v1856_v58 = vrot.slane %v1855_v57, 2 }
 0xfb9   : > { %vm1857_vm15 = vcmp.ne.s32.totalorder %v1856_v58, 0 }
0x100d   : > { %v1783_v26 = vpop.xlane.xlu0 %1782 }
0x100e   : > { %vm1806_vm7 = vcmp.gt.f32.partialorder %v1783_v26, 0.5 }
0x100f   : > { %vm1813_vm8 = vmand %vm1806_vm7, %vm1812_vm6 }
0x1010   : > { %vm1815_vm9 = vmand %vm1813_vm8, %vm1814_vm5  ;;  %vm1904_vm5 = vcmp.gt.s32.totalorder %v3919_v35, 33 }
0x1011   : > { %v3624_v28 = vsel %vm1815_vm9, 1.0, %v3849_v7 }
0x1012   : > { %v1818_v31 = vmax.f32 %v1773_v1, %v3624_v28 }
0x1014   : > { %v1824_v33 = vsub.f32 1.0, %v1818_v31 }
0x1015   : > { %v1868_v1 = vpop.xlane.xlu0 %1867 }
0x1016   : > { %v1825_v34 = vsel %vm1819_vm12, %v1824_v33, 0.0  ;;  %vm1909_vm12 = vcmp.eq.s32.totalorder %v3919_v35, 34  ;;  %v1875_v2 = vmax.f32 %v1868_v1, %v3902_v27  ;;  %v1874_v3 = vmin.f32 %v1868_v1, %v3915_v32 }
0x1017   : > { %v1826_v36 = vsel %vm385_vm11, %v1825_v34, -inf  ;;  %v1910_v53 = vsel %vm1909_vm12, %v3930_v42, 0.0  ;;  %v1885_v11 = vadd.f32 %v1868_v1, %v3924_v39 }
0x1018   : > { %1827 = vmax.xlane.f32.xlu2 %v1826_v36  ;;  %v1911_v54 = vsel %vm379_vm10, %v1910_v53, 0.0  ;;  %v1877_v5 = vrot.slane %v1875_v2, 6 }
0x101a   : > { %v1879_v6 = vsub.f32 %v1874_v3, %v1877_v5 }
0x101c   : > { %v1880_v8 = vmax.f32 %v1879_v6, 0.0 }
0x101e   : > { %v1882_v9 = vrot.slane %v1880_v8, 1 }
0x1020   : > { %1912 = vadd.xlane.f32.xlu2 %v1911_v54  ;;  %v1884_v10 = vmul.f32 %v1882_v9, %v1880_v8 }
0x1022   : > { %v1887_v12 = vrot.slane %v1884_v10, 6 }
0x1024   : > { %v1889_v13 = vsub.f32 %v1885_v11, %v1887_v12 }
0x1026   : > { %v1890_v14 = vadd.f32 1e-08, %v1889_v13 }
0x1028   : > { %3777 = vrcp.f32 %v1890_v14 }
0x102e   : > { %v3778_v15 = vpop.eup %3777 }
0x102f   : > { %v1893_v18 = vrot.slane %v3778_v15, 2 }
0x1031   : > { %v1895_v19 = vmul.f32 %v1893_v18, %v1884_v10 }
0x1033   : > { %vm1897_vm4 = vcmp.gt.f32.partialorder %v1895_v19, 0.5 }
0x1034   : > { %v1900_v20 = vsel %vm1897_vm4, 1, %v3848_v4 }
0x1035   : > { %v1901_v21 = vrot.slane %v1900_v20, 2 }
0x1037   : > { %vm1902_vm7 = vcmp.ne.s32.totalorder %v1901_v21, 0 }
0x108b   : > { %v1828_v59 = vpop.xlane.xlu2 %1827 }
0x108c   : > { %vm1851_vm0 = vcmp.gt.f32.partialorder %v1828_v59, 0.5 }
0x108d   : > { %vm1858_vm1 = vmand %vm1851_vm0, %vm1857_vm15 }
0x108e   : > { %vm1860_vm2 = vmand %vm1858_vm1, %vm1859_vm14  ;;  %vm1949_vm14 = vcmp.gt.s32.totalorder %v3919_v35, 34 }
0x108f   : > { %v3625_v60 = vsel %vm1860_vm2, 1.0, %v3849_v7 }
0x1090   : > { %v1863_v61 = vmax.f32 %v1818_v31, %v3625_v60 }
0x1092   : > { %v1869_v62 = vsub.f32 1.0, %v1863_v61 }
0x1093   : > { %v1913_v31 = vpop.xlane.xlu2 %1912 }
0x1094   : > { %v1870_v63 = vsel %vm1864_vm3, %v1869_v62, 0.0  ;;  %vm1954_vm3 = vcmp.eq.s32.totalorder %v3919_v35, 35  ;;  %v1920_v33 = vmax.f32 %v1913_v31, %v3902_v27  ;;  %v1919_v34 = vmin.f32 %v1913_v31, %v3915_v32 }
0x1095   : > { %v1871_v0 = vsel %vm385_vm11, %v1870_v63, -inf  ;;  %v1955_v16 = vsel %vm1954_vm3, %v3930_v42, 0.0  ;;  %v1930_v44 = vadd.f32 %v1913_v31, %v3924_v39 }
0x1096   : > { %1872 = vmax.xlane.f32.xlu1 %v1871_v0  ;;  %v1956_v17 = vsel %vm379_vm10, %v1955_v16, 0.0  ;;  %v1922_v36 = vrot.slane %v1920_v33, 6 }
0x1098   : > { %v1924_v37 = vsub.f32 %v1919_v34, %v1922_v36 }
0x109a   : > { %v1925_v38 = vmax.f32 %v1924_v37, 0.0 }
0x109c   : > { %v1927_v41 = vrot.slane %v1925_v38, 1 }
0x109e   : > { %1957 = vadd.xlane.f32.xlu1 %v1956_v17  ;;  %v1929_v43 = vmul.f32 %v1927_v41, %v1925_v38 }
0x10a0   : > { %v1932_v45 = vrot.slane %v1929_v43, 6 }
0x10a2   : > { %v1934_v46 = vsub.f32 %v1930_v44, %v1932_v45 }
0x10a4   : > { %v1935_v47 = vadd.f32 1e-08, %v1934_v46 }
0x10a6   : > { %3779 = vrcp.f32 %v1935_v47 }
0x10ac   : > { %v3780_v48 = vpop.eup %3779 }
0x10ad   : > { %v1938_v51 = vrot.slane %v3780_v48, 2 }
0x10af   : > { %v1940_v52 = vmul.f32 %v1938_v51, %v1929_v43 }
0x10b1   : > { %vm1942_vm13 = vcmp.gt.f32.partialorder %v1940_v52, 0.5 }
0x10b2   : > { %v1945_v53 = vsel %vm1942_vm13, 1, %v3848_v4 }
0x10b3   : > { %v1946_v54 = vrot.slane %v1945_v53, 2 }
0x10b5   : > { %vm1947_vm15 = vcmp.ne.s32.totalorder %v1946_v54, 0 }
0x1109   : > { %v1873_v22 = vpop.xlane.xlu1 %1872 }
0x110a   : > { %vm1896_vm6 = vcmp.gt.f32.partialorder %v1873_v22, 0.5 }
0x110b   : > { %vm1903_vm8 = vmand %vm1896_vm6, %vm1902_vm7 }
0x110c   : > { %vm1905_vm9 = vmand %vm1903_vm8, %vm1904_vm5  ;;  %vm1994_vm5 = vcmp.gt.s32.totalorder %v3919_v35, 35 }
0x110d   : > { %v3626_v23 = vsel %vm1905_vm9, 1.0, %v3849_v7 }
0x110e   : > { %v1908_v24 = vmax.f32 %v1863_v61, %v3626_v23 }
0x1110   : > { %v1914_v25 = vsub.f32 1.0, %v1908_v24 }
0x1111   : > { %v1958_v61 = vpop.xlane.xlu1 %1957 }
0x1112   : > { %v1915_v26 = vsel %vm1909_vm12, %v1914_v25, 0.0  ;;  %vm1999_vm12 = vcmp.eq.s32.totalorder %v3919_v35, 36  ;;  %v1965_v62 = vmax.f32 %v1958_v61, %v3902_v27  ;;  %v1964_v63 = vmin.f32 %v1958_v61, %v3915_v32 }
0x1113   : > { %v1916_v28 = vsel %vm385_vm11, %v1915_v26, -inf  ;;  %v2000_v49 = vsel %vm1999_vm12, %v3930_v42, 0.0  ;;  %v1975_v6 = vadd.f32 %v1958_v61, %v3924_v39 }
0x1114   : > { %1917 = vmax.xlane.f32.xlu0 %v1916_v28  ;;  %v2001_v50 = vsel %vm379_vm10, %v2000_v49, 0.0  ;;  %v1967_v0 = vrot.slane %v1965_v62, 6 }
0x1116   : > { %v1969_v1 = vsub.f32 %v1964_v63, %v1967_v0 }
0x1118   : > { %v1970_v2 = vmax.f32 %v1969_v1, 0.0 }
0x111a   : > { %v1972_v3 = vrot.slane %v1970_v2, 1 }
0x111c   : > { %2002 = vadd.xlane.f32.xlu0 %v2001_v50  ;;  %v1974_v5 = vmul.f32 %v1972_v3, %v1970_v2 }
0x111e   : > { %v1977_v8 = vrot.slane %v1974_v5, 6 }
0x1120   : > { %v1979_v9 = vsub.f32 %v1975_v6, %v1977_v8 }
0x1122   : > { %v1980_v10 = vadd.f32 1e-08, %v1979_v9 }
0x1124   : > { %3781 = vrcp.f32 %v1980_v10 }
0x112a   : > { %v3782_v11 = vpop.eup %3781 }
0x112b   : > { %v1983_v14 = vrot.slane %v3782_v11, 2 }
0x112d   : > { %v1985_v15 = vmul.f32 %v1983_v14, %v1974_v5 }
0x112f   : > { %vm1987_vm4 = vcmp.gt.f32.partialorder %v1985_v15, 0.5 }
0x1130   : > { %v1990_v16 = vsel %vm1987_vm4, 1, %v3848_v4 }
0x1131   : > { %v1991_v17 = vrot.slane %v1990_v16, 2 }
0x1133   : > { %vm1992_vm6 = vcmp.ne.s32.totalorder %v1991_v17, 0 }
0x1187   : > { %v1918_v55 = vpop.xlane.xlu0 %1917 }
0x1188   : > { %vm1941_vm0 = vcmp.gt.f32.partialorder %v1918_v55, 0.5 }
0x1189   : > { %vm1948_vm1 = vmand %vm1941_vm0, %vm1947_vm15 }
0x118a   : > { %vm1950_vm2 = vmand %vm1948_vm1, %vm1949_vm14  ;;  %vm2039_vm14 = vcmp.gt.s32.totalorder %v3919_v35, 36 }
0x118b   : > { %v3627_v56 = vsel %vm1950_vm2, 1.0, %v3849_v7 }
0x118c   : > { %v1953_v57 = vmax.f32 %v1908_v24, %v3627_v56 }
0x118e   : > { %v1959_v58 = vsub.f32 1.0, %v1953_v57 }
0x118f   : > { %v2003_v24 = vpop.xlane.xlu0 %2002 }
0x1190   : > { %v1960_v59 = vsel %vm1954_vm3, %v1959_v58, 0.0  ;;  %vm2044_vm3 = vcmp.eq.s32.totalorder %v3919_v35, 37  ;;  %v2010_v25 = vmax.f32 %v2003_v24, %v3902_v27  ;;  %v2009_v26 = vmin.f32 %v2003_v24, %v3915_v32 }
0x1191   : > { %v1961_v60 = vsel %vm385_vm11, %v1960_v59, -inf  ;;  %v2045_v12 = vsel %vm2044_vm3, %v3930_v42, 0.0  ;;  %v2020_v37 = vadd.f32 %v2003_v24, %v3924_v39 }
0x1192   : > { %1962 = vmax.xlane.f32.xlu2 %v1961_v60  ;;  %v2046_v13 = vsel %vm379_vm10, %v2045_v12, 0.0  ;;  %v2012_v28 = vrot.slane %v2010_v25, 6 }
0x1194   : > { %v2014_v31 = vsub.f32 %v2009_v26, %v2012_v28 }
0x1196   : > { %v2015_v33 = vmax.f32 %v2014_v31, 0.0 }
0x1198   : > { %v2017_v34 = vrot.slane %v2015_v33, 1 }
0x119a   : > { %2047 = vadd.xlane.f32.xlu2 %v2046_v13  ;;  %v2019_v36 = vmul.f32 %v2017_v34, %v2015_v33 }
0x119c   : > { %v2022_v38 = vrot.slane %v2019_v36, 6 }
0x119e   : > { %v2024_v41 = vsub.f32 %v2020_v37, %v2022_v38 }
0x11a0   : > { %v2025_v43 = vadd.f32 1e-08, %v2024_v41 }
0x11a2   : > { %3783 = vrcp.f32 %v2025_v43 }
0x11a8   : > { %v3784_v44 = vpop.eup %3783 }
0x11a9   : > { %v2028_v47 = vrot.slane %v3784_v44, 2 }
0x11ab   : > { %v2030_v48 = vmul.f32 %v2028_v47, %v2019_v36 }
0x11ad   : > { %vm2032_vm13 = vcmp.gt.f32.partialorder %v2030_v48, 0.5 }
0x11ae   : > { %v2035_v49 = vsel %vm2032_vm13, 1, %v3848_v4 }
0x11af   : > { %v2036_v50 = vrot.slane %v2035_v49, 2 }
0x11b1   : > { %vm2037_vm0 = vcmp.ne.s32.totalorder %v2036_v50, 0 }
0x1205   : > { %v1963_v18 = vpop.xlane.xlu2 %1962 }
0x1206   : > { %vm1986_vm7 = vcmp.gt.f32.partialorder %v1963_v18, 0.5 }
0x1207   : > { %vm1993_vm8 = vmand %vm1986_vm7, %vm1992_vm6 }
0x1208   : > { %vm1995_vm9 = vmand %vm1993_vm8, %vm1994_vm5  ;;  %vm2084_vm5 = vcmp.gt.s32.totalorder %v3919_v35, 37 }
0x1209   : > { %v3628_v19 = vsel %vm1995_vm9, 1.0, %v3849_v7 }
0x120a   : > { %v1998_v20 = vmax.f32 %v1953_v57, %v3628_v19 }
0x120c   : > { %v2004_v21 = vsub.f32 1.0, %v1998_v20 }
0x120d   : > { %v2048_v57 = vpop.xlane.xlu2 %2047 }
0x120e   : > { %v2005_v22 = vsel %vm1999_vm12, %v2004_v21, 0.0  ;;  %vm2089_vm12 = vcmp.eq.s32.totalorder %v3919_v35, 38  ;;  %v2055_v58 = vmax.f32 %v2048_v57, %v3902_v27  ;;  %v2054_v59 = vmin.f32 %v2048_v57, %v3915_v32 }
0x120f   : > { %v2006_v23 = vsel %vm385_vm11, %v2005_v22, -inf  ;;  %v2090_v45 = vsel %vm2089_vm12, %v3930_v42, 0.0  ;;  %v2065_v1 = vadd.f32 %v2048_v57, %v3924_v39 }
0x1210   : > { %2007 = vmax.xlane.f32.xlu1 %v2006_v23  ;;  %v2091_v46 = vsel %vm379_vm10, %v2090_v45, 0.0  ;;  %v2057_v60 = vrot.slane %v2055_v58, 6 }
0x1212   : > { %v2059_v61 = vsub.f32 %v2054_v59, %v2057_v60 }
0x1214   : > { %v2060_v62 = vmax.f32 %v2059_v61, 0.0 }
0x1216   : > { %v2062_v63 = vrot.slane %v2060_v62, 1 }
0x1218   : > { %2092 = vadd.xlane.f32.xlu1 %v2091_v46  ;;  %v2064_v0 = vmul.f32 %v2062_v63, %v2060_v62 }
0x121a   : > { %v2067_v2 = vrot.slane %v2064_v0, 6 }
0x121c   : > { %v2069_v3 = vsub.f32 %v2065_v1, %v2067_v2 }
0x121e   : > { %v2070_v5 = vadd.f32 1e-08, %v2069_v3 }
0x1220   : > { %3785 = vrcp.f32 %v2070_v5 }
0x1226   : > { %v3786_v6 = vpop.eup %3785 }
0x1227   : > { %v2073_v10 = vrot.slane %v3786_v6, 2 }
0x1229   : > { %v2075_v11 = vmul.f32 %v2073_v10, %v2064_v0 }
0x122b   : > { %vm2077_vm4 = vcmp.gt.f32.partialorder %v2075_v11, 0.5 }
0x122c   : > { %v2080_v12 = vsel %vm2077_vm4, 1, %v3848_v4 }
0x122d   : > { %v2081_v13 = vrot.slane %v2080_v12, 2 }
0x122f   : > { %vm2082_vm6 = vcmp.ne.s32.totalorder %v2081_v13, 0 }
0x1283   : > { %v2008_v51 = vpop.xlane.xlu1 %2007 }
0x1284   : > { %vm2031_vm15 = vcmp.gt.f32.partialorder %v2008_v51, 0.5 }
0x1285   : > { %vm2038_vm1 = vmand %vm2031_vm15, %vm2037_vm0 }
0x1286   : > { %vm2040_vm2 = vmand %vm2038_vm1, %vm2039_vm14  ;;  %vm2129_vm14 = vcmp.gt.s32.totalorder %v3919_v35, 38 }
0x1287   : > { %v3629_v52 = vsel %vm2040_vm2, 1.0, %v3849_v7 }
0x1288   : > { %v2043_v53 = vmax.f32 %v1998_v20, %v3629_v52 }
0x128a   : > { %v2049_v54 = vsub.f32 1.0, %v2043_v53 }
0x128b   : > { %v2093_v20 = vpop.xlane.xlu1 %2092 }
0x128c   : > { %v2050_v55 = vsel %vm2044_vm3, %v2049_v54, 0.0  ;;  %vm2134_vm3 = vcmp.eq.s32.totalorder %v3919_v35, 39  ;;  %v2100_v21 = vmax.f32 %v2093_v20, %v3902_v27  ;;  %v2099_v22 = vmin.f32 %v2093_v20, %v3915_v32 }
0x128d   : > { %v2051_v56 = vsel %vm385_vm11, %v2050_v55, -inf  ;;  %v2135_v8 = vsel %vm2134_vm3, %v3930_v42, 0.0  ;;  %v2110_v31 = vadd.f32 %v2093_v20, %v3924_v39 }
0x128e   : > { %2052 = vmax.xlane.f32.xlu0 %v2051_v56  ;;  %v2136_v9 = vsel %vm379_vm10, %v2135_v8, 0.0  ;;  %v2102_v23 = vrot.slane %v2100_v21, 6 }
0x1290   : > { %v2104_v24 = vsub.f32 %v2099_v22, %v2102_v23 }
0x1292   : > { %v2105_v25 = vmax.f32 %v2104_v24, 0.0 }
0x1294   : > { %v2107_v26 = vrot.slane %v2105_v25, 1 }
0x1296   : > { %2137 = vadd.xlane.f32.xlu0 %v2136_v9  ;;  %v2109_v28 = vmul.f32 %v2107_v26, %v2105_v25 }
0x1298   : > { %v2112_v33 = vrot.slane %v2109_v28, 6 }
0x129a   : > { %v2114_v34 = vsub.f32 %v2110_v31, %v2112_v33 }
0x129c   : > { %v2115_v36 = vadd.f32 1e-08, %v2114_v34 }
0x129e   : > { %3787 = vrcp.f32 %v2115_v36 }
0x12a4   : > { %v3788_v37 = vpop.eup %3787 }
0x12a5   : > { %v2118_v43 = vrot.slane %v3788_v37, 2 }
0x12a7   : > { %v2120_v44 = vmul.f32 %v2118_v43, %v2109_v28 }
0x12a9   : > { %vm2122_vm13 = vcmp.gt.f32.partialorder %v2120_v44, 0.5 }
0x12aa   : > { %v2125_v45 = vsel %vm2122_vm13, 1, %v3848_v4 }
0x12ab   : > { %v2126_v46 = vrot.slane %v2125_v45, 2 }
0x12ad   : > { %vm2127_vm15 = vcmp.ne.s32.totalorder %v2126_v46, 0 }
0x1301   : > { %v2053_v14 = vpop.xlane.xlu0 %2052 }
0x1302   : > { %vm2076_vm7 = vcmp.gt.f32.partialorder %v2053_v14, 0.5 }
0x1303   : > { %vm2083_vm8 = vmand %vm2076_vm7, %vm2082_vm6 }
0x1304   : > { %vm2085_vm9 = vmand %vm2083_vm8, %vm2084_vm5  ;;  %vm2174_vm5 = vcmp.gt.s32.totalorder %v3919_v35, 39 }
0x1305   : > { %v3630_v15 = vsel %vm2085_vm9, 1.0, %v3849_v7 }
0x1306   : > { %v2088_v16 = vmax.f32 %v2043_v53, %v3630_v15 }
0x1308   : > { %v2094_v17 = vsub.f32 1.0, %v2088_v16 }
0x1309   : > { %v2138_v53 = vpop.xlane.xlu0 %2137 }
0x130a   : > { %v2095_v18 = vsel %vm2089_vm12, %v2094_v17, 0.0  ;;  %vm2179_vm12 = vcmp.eq.s32.totalorder %v3919_v35, 40  ;;  %v2145_v54 = vmax.f32 %v2138_v53, %v3902_v27  ;;  %v2144_v55 = vmin.f32 %v2138_v53, %v3915_v32 }
0x130b   : > { %v2096_v19 = vsel %vm385_vm11, %v2095_v18, -inf  ;;  %v2180_v38 = vsel %vm2179_vm12, %v3930_v42, 0.0  ;;  %v2155_v61 = vadd.f32 %v2138_v53, %v3924_v39 }
0x130c   : > { %2097 = vmax.xlane.f32.xlu2 %v2096_v19  ;;  %v2181_v41 = vsel %vm379_vm10, %v2180_v38, 0.0  ;;  %v2147_v56 = vrot.slane %v2145_v54, 6 }
0x130e   : > { %v2149_v57 = vsub.f32 %v2144_v55, %v2147_v56 }
0x1310   : > { %v2150_v58 = vmax.f32 %v2149_v57, 0.0 }
0x1312   : > { %v2152_v59 = vrot.slane %v2150_v58, 1 }
0x1314   : > { %2182 = vadd.xlane.f32.xlu2 %v2181_v41  ;;  %v2154_v60 = vmul.f32 %v2152_v59, %v2150_v58 }
0x1316   : > { %v2157_v62 = vrot.slane %v2154_v60, 6 }
0x1318   : > { %v2159_v63 = vsub.f32 %v2155_v61, %v2157_v62 }
0x131a   : > { %v2160_v0 = vadd.f32 1e-08, %v2159_v63 }
0x131c   : > { %3789 = vrcp.f32 %v2160_v0 }
0x1322   : > { %v3790_v1 = vpop.eup %3789 }
0x1323   : > { %v2163_v5 = vrot.slane %v3790_v1, 2 }
0x1325   : > { %v2165_v6 = vmul.f32 %v2163_v5, %v2154_v60 }
0x1327   : > { %vm2167_vm4 = vcmp.gt.f32.partialorder %v2165_v6, 0.5 }
0x1328   : > { %v2170_v8 = vsel %vm2167_vm4, 1, %v3848_v4 }
0x1329   : > { %v2171_v9 = vrot.slane %v2170_v8, 2 }
0x132b   : > { %vm2172_vm7 = vcmp.ne.s32.totalorder %v2171_v9, 0 }
0x137f   : > { %v2098_v47 = vpop.xlane.xlu2 %2097 }
0x1380   : > { %vm2121_vm0 = vcmp.gt.f32.partialorder %v2098_v47, 0.5 }
0x1381   : > { %vm2128_vm1 = vmand %vm2121_vm0, %vm2127_vm15 }
0x1382   : > { %vm2130_vm2 = vmand %vm2128_vm1, %vm2129_vm14  ;;  %vm2219_vm14 = vcmp.gt.s32.totalorder %v3919_v35, 40 }
0x1383   : > { %v3631_v48 = vsel %vm2130_vm2, 1.0, %v3849_v7 }
0x1384   : > { %v2133_v49 = vmax.f32 %v2088_v16, %v3631_v48 }
0x1386   : > { %v2139_v50 = vsub.f32 1.0, %v2133_v49 }
0x1387   : > { %v2183_v16 = vpop.xlane.xlu2 %2182 }
0x1388   : > { %v2140_v51 = vsel %vm2134_vm3, %v2139_v50, 0.0  ;;  %vm2224_vm3 = vcmp.eq.s32.totalorder %v3919_v35, 41  ;;  %v2190_v17 = vmax.f32 %v2183_v16, %v3902_v27  ;;  %v2189_v18 = vmin.f32 %v2183_v16, %v3915_v32 }
0x1389   : > { %v2141_v52 = vsel %vm385_vm11, %v2140_v51, -inf  ;;  %v2225_v2 = vsel %vm2224_vm3, %v3930_v42, 0.0  ;;  %v2200_v24 = vadd.f32 %v2183_v16, %v3924_v39 }
0x138a   : > { %2142 = vmax.xlane.f32.xlu1 %v2141_v52  ;;  %v2226_v3 = vsel %vm379_vm10, %v2225_v2, 0.0  ;;  %v2192_v19 = vrot.slane %v2190_v17, 6 }
0x138c   : > { %v2194_v20 = vsub.f32 %v2189_v18, %v2192_v19 }
0x138e   : > { %v2195_v21 = vmax.f32 %v2194_v20, 0.0 }
0x1390   : > { %v2197_v22 = vrot.slane %v2195_v21, 1 }
0x1392   : > { %2227 = vadd.xlane.f32.xlu1 %v2226_v3  ;;  %v2199_v23 = vmul.f32 %v2197_v22, %v2195_v21 }
0x1394   : > { %v2202_v25 = vrot.slane %v2199_v23, 6 }
0x1396   : > { %v2204_v26 = vsub.f32 %v2200_v24, %v2202_v25 }
0x1398   : > { %v2205_v28 = vadd.f32 1e-08, %v2204_v26 }
0x139a   : > { %3791 = vrcp.f32 %v2205_v28 }
0x13a0   : > { %v3792_v31 = vpop.eup %3791 }
0x13a1   : > { %v2208_v36 = vrot.slane %v3792_v31, 2 }
0x13a3   : > { %v2210_v37 = vmul.f32 %v2208_v36, %v2199_v23 }
0x13a5   : > { %vm2212_vm13 = vcmp.gt.f32.partialorder %v2210_v37, 0.5 }
0x13a6   : > { %v2215_v38 = vsel %vm2212_vm13, 1, %v3848_v4 }
0x13a7   : > { %v2216_v41 = vrot.slane %v2215_v38, 2 }
0x13a9   : > { %vm2217_vm15 = vcmp.ne.s32.totalorder %v2216_v41, 0 }
0x13fd   : > { %v2143_v10 = vpop.xlane.xlu1 %2142 }
0x13fe   : > { %vm2166_vm6 = vcmp.gt.f32.partialorder %v2143_v10, 0.5 }
0x13ff   : > { %vm2173_vm8 = vmand %vm2166_vm6, %vm2172_vm7 }
0x1400   : > { %vm2175_vm9 = vmand %vm2173_vm8, %vm2174_vm5  ;;  %vm2264_vm5 = vcmp.gt.s32.totalorder %v3919_v35, 41 }
0x1401   : > { %v3632_v11 = vsel %vm2175_vm9, 1.0, %v3849_v7 }
0x1402   : > { %v2178_v12 = vmax.f32 %v2133_v49, %v3632_v11 }
0x1404   : > { %v2184_v13 = vsub.f32 1.0, %v2178_v12 }
0x1405   : > { %v2228_v49 = vpop.xlane.xlu1 %2227 }
0x1406   : > { %v2185_v14 = vsel %vm2179_vm12, %v2184_v13, 0.0  ;;  %vm2269_vm12 = vcmp.eq.s32.totalorder %v3919_v35, 42  ;;  %v2235_v50 = vmax.f32 %v2228_v49, %v3902_v27  ;;  %v2234_v51 = vmin.f32 %v2228_v49, %v3915_v32 }
0x1407   : > { %v2186_v15 = vsel %vm385_vm11, %v2185_v14, -inf  ;;  %v2270_v33 = vsel %vm2269_vm12, %v3930_v42, 0.0  ;;  %v2245_v57 = vadd.f32 %v2228_v49, %v3924_v39 }
0x1408   : > { %2187 = vmax.xlane.f32.xlu0 %v2186_v15  ;;  %v2271_v34 = vsel %vm379_vm10, %v2270_v33, 0.0  ;;  %v2237_v52 = vrot.slane %v2235_v50, 6 }
0x140a   : > { %v2239_v53 = vsub.f32 %v2234_v51, %v2237_v52 }
0x140c   : > { %v2240_v54 = vmax.f32 %v2239_v53, 0.0 }
0x140e   : > { %v2242_v55 = vrot.slane %v2240_v54, 1 }
0x1410   : > { %2272 = vadd.xlane.f32.xlu0 %v2271_v34  ;;  %v2244_v56 = vmul.f32 %v2242_v55, %v2240_v54 }
0x1412   : > { %v2247_v58 = vrot.slane %v2244_v56, 6 }
0x1414   : > { %v2249_v59 = vsub.f32 %v2245_v57, %v2247_v58 }
0x1416   : > { %v2250_v60 = vadd.f32 1e-08, %v2249_v59 }
0x1418   : > { %3793 = vrcp.f32 %v2250_v60 }
0x141e   : > { %v3794_v61 = vpop.eup %3793 }
0x141f   : > { %v2253_v0 = vrot.slane %v3794_v61, 2 }
0x1421   : > { %v2255_v1 = vmul.f32 %v2253_v0, %v2244_v56 }
0x1423   : > { %vm2257_vm4 = vcmp.gt.f32.partialorder %v2255_v1, 0.5 }
0x1424   : > { %v2260_v2 = vsel %vm2257_vm4, 1, %v3848_v4 }
0x1425   : > { %v2261_v3 = vrot.slane %v2260_v2, 2 }
0x1427   : > { %vm2262_vm6 = vcmp.ne.s32.totalorder %v2261_v3, 0 }
0x147b   : > { %v2188_v43 = vpop.xlane.xlu0 %2187 }
0x147c   : > { %vm2211_vm0 = vcmp.gt.f32.partialorder %v2188_v43, 0.5 }
0x147d   : > { %vm2218_vm1 = vmand %vm2211_vm0, %vm2217_vm15 }
0x147e   : > { %vm2220_vm2 = vmand %vm2218_vm1, %vm2219_vm14  ;;  %vm2309_vm14 = vcmp.gt.s32.totalorder %v3919_v35, 42 }
0x147f   : > { %v3633_v44 = vsel %vm2220_vm2, 1.0, %v3849_v7 }
0x1480   : > { %v2223_v45 = vmax.f32 %v2178_v12, %v3633_v44 }
0x1482   : > { %v2229_v46 = vsub.f32 1.0, %v2223_v45 }
0x1483   : > { %v2273_v12 = vpop.xlane.xlu0 %2272 }
0x1484   : > { %v2230_v47 = vsel %vm2224_vm3, %v2229_v46, 0.0  ;;  %vm2314_vm3 = vcmp.eq.s32.totalorder %v3919_v35, 43  ;;  %v2280_v13 = vmax.f32 %v2273_v12, %v3902_v27  ;;  %v2279_v14 = vmin.f32 %v2273_v12, %v3915_v32 }
0x1485   : > { %v2231_v48 = vsel %vm385_vm11, %v2230_v47, -inf  ;;  %v2315_v62 = vsel %vm2314_vm3, %v3930_v42, 0.0  ;;  %v2290_v20 = vadd.f32 %v2273_v12, %v3924_v39 }
0x1486   : > { %2232 = vmax.xlane.f32.xlu2 %v2231_v48  ;;  %v2316_v63 = vsel %vm379_vm10, %v2315_v62, 0.0  ;;  %v2282_v15 = vrot.slane %v2280_v13, 6 }
0x1488   : > { %v2284_v16 = vsub.f32 %v2279_v14, %v2282_v15 }
0x148a   : > { %v2285_v17 = vmax.f32 %v2284_v16, 0.0 }
0x148c   : > { %v2287_v18 = vrot.slane %v2285_v17, 1 }
0x148e   : > { %2317 = vadd.xlane.f32.xlu2 %v2316_v63  ;;  %v2289_v19 = vmul.f32 %v2287_v18, %v2285_v17 }
0x1490   : > { %v2292_v21 = vrot.slane %v2289_v19, 6 }
0x1492   : > { %v2294_v22 = vsub.f32 %v2290_v20, %v2292_v21 }
0x1494   : > { %v2295_v23 = vadd.f32 1e-08, %v2294_v22 }
0x1496   : > { %3795 = vrcp.f32 %v2295_v23 }
0x149c   : > { %v3796_v24 = vpop.eup %3795 }
0x149d   : > { %v2298_v28 = vrot.slane %v3796_v24, 2 }
0x149f   : > { %v2300_v31 = vmul.f32 %v2298_v28, %v2289_v19 }
0x14a1   : > { %vm2302_vm13 = vcmp.gt.f32.partialorder %v2300_v31, 0.5 }
0x14a2   : > { %v2305_v33 = vsel %vm2302_vm13, 1, %v3848_v4 }
0x14a3   : > { %v2306_v34 = vrot.slane %v2305_v33, 2 }
0x14a5   : > { %vm2307_vm0 = vcmp.ne.s32.totalorder %v2306_v34, 0 }
0x14f9   : > { %v2233_v5 = vpop.xlane.xlu2 %2232 }
0x14fa   : > { %vm2256_vm7 = vcmp.gt.f32.partialorder %v2233_v5, 0.5 }
0x14fb   : > { %vm2263_vm8 = vmand %vm2256_vm7, %vm2262_vm6 }
0x14fc   : > { %vm2265_vm9 = vmand %vm2263_vm8, %vm2264_vm5  ;;  %vm2354_vm5 = vcmp.gt.s32.totalorder %v3919_v35, 43 }
0x14fd   : > { %v3634_v6 = vsel %vm2265_vm9, 1.0, %v3849_v7 }
0x14fe   : > { %v2268_v8 = vmax.f32 %v2223_v45, %v3634_v6 }
0x1500   : > { %v2274_v9 = vsub.f32 1.0, %v2268_v8 }
0x1501   : > { %v2318_v45 = vpop.xlane.xlu2 %2317 }
0x1502   : > { %v2275_v10 = vsel %vm2269_vm12, %v2274_v9, 0.0  ;;  %vm2359_vm12 = vcmp.eq.s32.totalorder %v3919_v35, 44  ;;  %v2325_v46 = vmax.f32 %v2318_v45, %v3902_v27  ;;  %v2324_v47 = vmin.f32 %v2318_v45, %v3915_v32 }
0x1503   : > { %v2276_v11 = vsel %vm385_vm11, %v2275_v10, -inf  ;;  %v2360_v25 = vsel %vm2359_vm12, %v3930_v42, 0.0  ;;  %v2335_v53 = vadd.f32 %v2318_v45, %v3924_v39 }
0x1504   : > { %2277 = vmax.xlane.f32.xlu1 %v2276_v11  ;;  %v2361_v26 = vsel %vm379_vm10, %v2360_v25, 0.0  ;;  %v2327_v48 = vrot.slane %v2325_v46, 6 }
0x1506   : > { %v2329_v49 = vsub.f32 %v2324_v47, %v2327_v48 }
0x1508   : > { %v2330_v50 = vmax.f32 %v2329_v49, 0.0 }
0x150a   : > { %v2332_v51 = vrot.slane %v2330_v50, 1 }
0x150c   : > { %2362 = vadd.xlane.f32.xlu1 %v2361_v26  ;;  %v2334_v52 = vmul.f32 %v2332_v51, %v2330_v50 }
0x150e   : > { %v2337_v54 = vrot.slane %v2334_v52, 6 }
0x1510   : > { %v2339_v55 = vsub.f32 %v2335_v53, %v2337_v54 }
0x1512   : > { %v2340_v56 = vadd.f32 1e-08, %v2339_v55 }
0x1514   : > { %3797 = vrcp.f32 %v2340_v56 }
0x151a   : > { %v3798_v57 = vpop.eup %3797 }
0x151b   : > { %v2343_v60 = vrot.slane %v3798_v57, 2 }
0x151d   : > { %v2345_v61 = vmul.f32 %v2343_v60, %v2334_v52 }
0x151f   : > { %vm2347_vm4 = vcmp.gt.f32.partialorder %v2345_v61, 0.5 }
0x1520   : > { %v2350_v62 = vsel %vm2347_vm4, 1, %v3848_v4 }
0x1521   : > { %v2351_v63 = vrot.slane %v2350_v62, 2 }
0x1523   : > { %vm2352_vm6 = vcmp.ne.s32.totalorder %v2351_v63, 0 }
0x1577   : > { %v2278_v36 = vpop.xlane.xlu1 %2277 }
0x1578   : > { %vm2301_vm15 = vcmp.gt.f32.partialorder %v2278_v36, 0.5 }
0x1579   : > { %vm2308_vm1 = vmand %vm2301_vm15, %vm2307_vm0 }
0x157a   : > { %vm2310_vm2 = vmand %vm2308_vm1, %vm2309_vm14  ;;  %vm2399_vm14 = vcmp.gt.s32.totalorder %v3919_v35, 44 }
0x157b   : > { %v3635_v37 = vsel %vm2310_vm2, 1.0, %v3849_v7 }
0x157c   : > { %v2313_v38 = vmax.f32 %v2268_v8, %v3635_v37 }
0x157e   : > { %v2319_v41 = vsub.f32 1.0, %v2313_v38 }
0x157f   : > { %v2363_v8 = vpop.xlane.xlu1 %2362 }
0x1580   : > { %v2320_v43 = vsel %vm2314_vm3, %v2319_v41, 0.0  ;;  %vm2404_vm3 = vcmp.eq.s32.totalorder %v3919_v35, 45  ;;  %v2370_v9 = vmax.f32 %v2363_v8, %v3902_v27  ;;  %v2369_v10 = vmin.f32 %v2363_v8, %v3915_v32 }
0x1581   : > { %v2321_v44 = vsel %vm385_vm11, %v2320_v43, -inf  ;;  %v2405_v58 = vsel %vm2404_vm3, %v3930_v42, 0.0  ;;  %v2380_v16 = vadd.f32 %v2363_v8, %v3924_v39 }
0x1582   : > { %2322 = vmax.xlane.f32.xlu0 %v2321_v44  ;;  %v2406_v59 = vsel %vm379_vm10, %v2405_v58, 0.0  ;;  %v2372_v11 = vrot.slane %v2370_v9, 6 }
0x1584   : > { %v2374_v12 = vsub.f32 %v2369_v10, %v2372_v11 }
0x1586   : > { %v2375_v13 = vmax.f32 %v2374_v12, 0.0 }
0x1588   : > { %v2377_v14 = vrot.slane %v2375_v13, 1 }
0x158a   : > { %2407 = vadd.xlane.f32.xlu0 %v2406_v59  ;;  %v2379_v15 = vmul.f32 %v2377_v14, %v2375_v13 }
0x158c   : > { %v2382_v17 = vrot.slane %v2379_v15, 6 }
0x158e   : > { %v2384_v18 = vsub.f32 %v2380_v16, %v2382_v17 }
0x1590   : > { %v2385_v19 = vadd.f32 1e-08, %v2384_v18 }
0x1592   : > { %3799 = vrcp.f32 %v2385_v19 }
0x1598   : > { %v3800_v20 = vpop.eup %3799 }
0x1599   : > { %v2388_v23 = vrot.slane %v3800_v20, 2 }
0x159b   : > { %v2390_v24 = vmul.f32 %v2388_v23, %v2379_v15 }
0x159d   : > { %vm2392_vm13 = vcmp.gt.f32.partialorder %v2390_v24, 0.5 }
0x159e   : > { %v2395_v25 = vsel %vm2392_vm13, 1, %v3848_v4 }
0x159f   : > { %v2396_v26 = vrot.slane %v2395_v25, 2 }
0x15a1   : > { %vm2397_vm15 = vcmp.ne.s32.totalorder %v2396_v26, 0 }
0x15f5   : > { %v2323_v0 = vpop.xlane.xlu0 %2322 }
0x15f6   : > { %vm2346_vm7 = vcmp.gt.f32.partialorder %v2323_v0, 0.5 }
0x15f7   : > { %vm2353_vm8 = vmand %vm2346_vm7, %vm2352_vm6 }
0x15f8   : > { %vm2355_vm9 = vmand %vm2353_vm8, %vm2354_vm5  ;;  %vm2444_vm5 = vcmp.gt.s32.totalorder %v3919_v35, 45 }
0x15f9   : > { %v3636_v1 = vsel %vm2355_vm9, 1.0, %v3849_v7 }
0x15fa   : > { %v2358_v2 = vmax.f32 %v2313_v38, %v3636_v1 }
0x15fc   : > { %v2364_v3 = vsub.f32 1.0, %v2358_v2 }
0x15fd   : > { %v2408_v38 = vpop.xlane.xlu0 %2407 }
0x15fe   : > { %v2365_v5 = vsel %vm2359_vm12, %v2364_v3, 0.0  ;;  %vm2449_vm12 = vcmp.eq.s32.totalorder %v3919_v35, 46  ;;  %v2415_v41 = vmax.f32 %v2408_v38, %v3902_v27  ;;  %v2414_v43 = vmin.f32 %v2408_v38, %v3915_v32 }
0x15ff   : > { %v2366_v6 = vsel %vm385_vm11, %v2365_v5, -inf  ;;  %v2450_v21 = vsel %vm2449_vm12, %v3930_v42, 0.0  ;;  %v2425_v49 = vadd.f32 %v2408_v38, %v3924_v39 }
0x1600   : > { %2367 = vmax.xlane.f32.xlu2 %v2366_v6  ;;  %v2451_v22 = vsel %vm379_vm10, %v2450_v21, 0.0  ;;  %v2417_v44 = vrot.slane %v2415_v41, 6 }
0x1602   : > { %v2419_v45 = vsub.f32 %v2414_v43, %v2417_v44 }
0x1604   : > { %v2420_v46 = vmax.f32 %v2419_v45, 0.0 }
0x1606   : > { %v2422_v47 = vrot.slane %v2420_v46, 1 }
0x1608   : > { %2452 = vadd.xlane.f32.xlu2 %v2451_v22  ;;  %v2424_v48 = vmul.f32 %v2422_v47, %v2420_v46 }
0x160a   : > { %v2427_v50 = vrot.slane %v2424_v48, 6 }
0x160c   : > { %v2429_v51 = vsub.f32 %v2425_v49, %v2427_v50 }
0x160e   : > { %v2430_v52 = vadd.f32 1e-08, %v2429_v51 }
0x1610   : > { %3801 = vrcp.f32 %v2430_v52 }
0x1616   : > { %v3802_v53 = vpop.eup %3801 }
0x1617   : > { %v2433_v56 = vrot.slane %v3802_v53, 2 }
0x1619   : > { %v2435_v57 = vmul.f32 %v2433_v56, %v2424_v48 }
0x161b   : > { %vm2437_vm4 = vcmp.gt.f32.partialorder %v2435_v57, 0.5 }
0x161c   : > { %v2440_v58 = vsel %vm2437_vm4, 1, %v3848_v4 }
0x161d   : > { %v2441_v59 = vrot.slane %v2440_v58, 2 }
0x161f   : > { %vm2442_vm7 = vcmp.ne.s32.totalorder %v2441_v59, 0 }
0x1673   : > { %v2368_v28 = vpop.xlane.xlu2 %2367 }
0x1674   : > { %vm2391_vm0 = vcmp.gt.f32.partialorder %v2368_v28, 0.5 }
0x1675   : > { %vm2398_vm1 = vmand %vm2391_vm0, %vm2397_vm15 }
0x1676   : > { %vm2400_vm2 = vmand %vm2398_vm1, %vm2399_vm14  ;;  %vm2489_vm14 = vcmp.gt.s32.totalorder %v3919_v35, 46 }
0x1677   : > { %v3637_v31 = vsel %vm2400_vm2, 1.0, %v3849_v7 }
0x1678   : > { %v2403_v33 = vmax.f32 %v2358_v2, %v3637_v31 }
0x167a   : > { %v2409_v34 = vsub.f32 1.0, %v2403_v33 }
0x167b   : > { %v2453_v2 = vpop.xlane.xlu2 %2452 }
0x167c   : > { %v2410_v36 = vsel %vm2404_vm3, %v2409_v34, 0.0  ;;  %vm2494_vm3 = vcmp.eq.s32.totalorder %v3919_v35, 47  ;;  %v2460_v3 = vmax.f32 %v2453_v2, %v3902_v27  ;;  %v2459_v5 = vmin.f32 %v2453_v2, %v3915_v32 }
0x167d   : > { %v2411_v37 = vsel %vm385_vm11, %v2410_v36, -inf  ;;  %v2495_v54 = vsel %vm2494_vm3, %v3930_v42, 0.0  ;;  %v2470_v12 = vadd.f32 %v2453_v2, %v3924_v39 }
0x167e   : > { %2412 = vmax.xlane.f32.xlu1 %v2411_v37  ;;  %v2496_v55 = vsel %vm379_vm10, %v2495_v54, 0.0  ;;  %v2462_v6 = vrot.slane %v2460_v3, 6 }
0x1680   : > { %v2464_v8 = vsub.f32 %v2459_v5, %v2462_v6 }
0x1682   : > { %v2465_v9 = vmax.f32 %v2464_v8, 0.0 }
0x1684   : > { %v2467_v10 = vrot.slane %v2465_v9, 1 }
0x1686   : > { %2497 = vadd.xlane.f32.xlu1 %v2496_v55  ;;  %v2469_v11 = vmul.f32 %v2467_v10, %v2465_v9 }
0x1688   : > { %v2472_v13 = vrot.slane %v2469_v11, 6 }
0x168a   : > { %v2474_v14 = vsub.f32 %v2470_v12, %v2472_v13 }
0x168c   : > { %v2475_v15 = vadd.f32 1e-08, %v2474_v14 }
0x168e   : > { %3803 = vrcp.f32 %v2475_v15 }
0x1694   : > { %v3804_v16 = vpop.eup %3803 }
0x1695   : > { %v2478_v19 = vrot.slane %v3804_v16, 2 }
0x1697   : > { %v2480_v20 = vmul.f32 %v2478_v19, %v2469_v11 }
0x1699   : > { %vm2482_vm13 = vcmp.gt.f32.partialorder %v2480_v20, 0.5 }
0x169a   : > { %v2485_v21 = vsel %vm2482_vm13, 1, %v3848_v4 }
0x169b   : > { %v2486_v22 = vrot.slane %v2485_v21, 2 }
0x169d   : > { %vm2487_vm15 = vcmp.ne.s32.totalorder %v2486_v22, 0 }
0x16f1   : > { %v2413_v60 = vpop.xlane.xlu1 %2412 }
0x16f2   : > { %vm2436_vm6 = vcmp.gt.f32.partialorder %v2413_v60, 0.5 }
0x16f3   : > { %vm2443_vm8 = vmand %vm2436_vm6, %vm2442_vm7 }
0x16f4   : > { %vm2445_vm9 = vmand %vm2443_vm8, %vm2444_vm5  ;;  %vm2534_vm5 = vcmp.gt.s32.totalorder %v3919_v35, 47 }
0x16f5   : > { %v3638_v61 = vsel %vm2445_vm9, 1.0, %v3849_v7 }
0x16f6   : > { %v2448_v62 = vmax.f32 %v2403_v33, %v3638_v61 }
0x16f8   : > { %v2454_v63 = vsub.f32 1.0, %v2448_v62 }
0x16f9   : > { %v2498_v33 = vpop.xlane.xlu1 %2497 }
0x16fa   : > { %v2455_v0 = vsel %vm2449_vm12, %v2454_v63, 0.0  ;;  %vm2539_vm12 = vcmp.eq.s32.totalorder %v3919_v35, 48  ;;  %v2505_v34 = vmax.f32 %v2498_v33, %v3902_v27  ;;  %v2504_v36 = vmin.f32 %v2498_v33, %v3915_v32 }
0x16fb   : > { %v2456_v1 = vsel %vm385_vm11, %v2455_v0, -inf  ;;  %v2540_v17 = vsel %vm2539_vm12, %v3930_v42, 0.0  ;;  %v2515_v45 = vadd.f32 %v2498_v33, %v3924_v39 }
0x16fc   : > { %2457 = vmax.xlane.f32.xlu0 %v2456_v1  ;;  %v2541_v18 = vsel %vm379_vm10, %v2540_v17, 0.0  ;;  %v2507_v37 = vrot.slane %v2505_v34, 6 }
0x16fe   : > { %v2509_v38 = vsub.f32 %v2504_v36, %v2507_v37 }
0x1700   : > { %v2510_v41 = vmax.f32 %v2509_v38, 0.0 }
0x1702   : > { %v2512_v43 = vrot.slane %v2510_v41, 1 }
0x1704   : > { %2542 = vadd.xlane.f32.xlu0 %v2541_v18  ;;  %v2514_v44 = vmul.f32 %v2512_v43, %v2510_v41 }
0x1706   : > { %v2517_v46 = vrot.slane %v2514_v44, 6 }
0x1708   : > { %v2519_v47 = vsub.f32 %v2515_v45, %v2517_v46 }
0x170a   : > { %v2520_v48 = vadd.f32 1e-08, %v2519_v47 }
0x170c   : > { %3805 = vrcp.f32 %v2520_v48 }
0x1712   : > { %v3806_v49 = vpop.eup %3805 }
0x1713   : > { %v2523_v52 = vrot.slane %v3806_v49, 2 }
0x1715   : > { %v2525_v53 = vmul.f32 %v2523_v52, %v2514_v44 }
0x1717   : > { %vm2527_vm4 = vcmp.gt.f32.partialorder %v2525_v53, 0.5 }
0x1718   : > { %v2530_v54 = vsel %vm2527_vm4, 1, %v3848_v4 }
0x1719   : > { %v2531_v55 = vrot.slane %v2530_v54, 2 }
0x171b   : > { %vm2532_vm6 = vcmp.ne.s32.totalorder %v2531_v55, 0 }
0x176f   : > { %v2458_v23 = vpop.xlane.xlu0 %2457 }
0x1770   : > { %vm2481_vm0 = vcmp.gt.f32.partialorder %v2458_v23, 0.5 }
0x1771   : > { %vm2488_vm1 = vmand %vm2481_vm0, %vm2487_vm15 }
0x1772   : > { %vm2490_vm2 = vmand %vm2488_vm1, %vm2489_vm14  ;;  %vm2579_vm14 = vcmp.gt.s32.totalorder %v3919_v35, 48 }
0x1773   : > { %v3639_v24 = vsel %vm2490_vm2, 1.0, %v3849_v7 }
0x1774   : > { %v2493_v25 = vmax.f32 %v2448_v62, %v3639_v24 }
0x1776   : > { %v2499_v26 = vsub.f32 1.0, %v2493_v25 }
0x1777   : > { %v2543_v62 = vpop.xlane.xlu0 %2542 }
0x1778   : > { %v2500_v28 = vsel %vm2494_vm3, %v2499_v26, 0.0  ;;  %vm2584_vm3 = vcmp.eq.s32.totalorder %v3919_v35, 49  ;;  %v2550_v63 = vmax.f32 %v2543_v62, %v3902_v27  ;;  %v2549_v0 = vmin.f32 %v2543_v62, %v3915_v32 }
0x1779   : > { %v2501_v31 = vsel %vm385_vm11, %v2500_v28, -inf  ;;  %v2585_v50 = vsel %vm2584_vm3, %v3930_v42, 0.0  ;;  %v2560_v8 = vadd.f32 %v2543_v62, %v3924_v39 }
0x177a   : > { %2502 = vmax.xlane.f32.xlu2 %v2501_v31  ;;  %v2586_v51 = vsel %vm379_vm10, %v2585_v50, 0.0  ;;  %v2552_v1 = vrot.slane %v2550_v63, 6 }
0x177c   : > { %v2554_v2 = vsub.f32 %v2549_v0, %v2552_v1 }
0x177e   : > { %v2555_v3 = vmax.f32 %v2554_v2, 0.0 }
0x1780   : > { %v2557_v5 = vrot.slane %v2555_v3, 1 }
0x1782   : > { %2587 = vadd.xlane.f32.xlu2 %v2586_v51  ;;  %v2559_v6 = vmul.f32 %v2557_v5, %v2555_v3 }
0x1784   : > { %v2562_v9 = vrot.slane %v2559_v6, 6 }
0x1786   : > { %v2564_v10 = vsub.f32 %v2560_v8, %v2562_v9 }
0x1788   : > { %v2565_v11 = vadd.f32 1e-08, %v2564_v10 }
0x178a   : > { %3807 = vrcp.f32 %v2565_v11 }
0x1790   : > { %v3808_v12 = vpop.eup %3807 }
0x1791   : > { %v2568_v15 = vrot.slane %v3808_v12, 2 }
0x1793   : > { %v2570_v16 = vmul.f32 %v2568_v15, %v2559_v6 }
0x1795   : > { %vm2572_vm13 = vcmp.gt.f32.partialorder %v2570_v16, 0.5 }
0x1796   : > { %v2575_v17 = vsel %vm2572_vm13, 1, %v3848_v4 }
0x1797   : > { %v2576_v18 = vrot.slane %v2575_v17, 2 }
0x1799   : > { %vm2577_vm0 = vcmp.ne.s32.totalorder %v2576_v18, 0 }
0x17ed   : > { %v2503_v56 = vpop.xlane.xlu2 %2502 }
0x17ee   : > { %vm2526_vm7 = vcmp.gt.f32.partialorder %v2503_v56, 0.5 }
0x17ef   : > { %vm2533_vm8 = vmand %vm2526_vm7, %vm2532_vm6 }
0x17f0   : > { %vm2535_vm9 = vmand %vm2533_vm8, %vm2534_vm5  ;;  %vm2624_vm5 = vcmp.gt.s32.totalorder %v3919_v35, 49 }
0x17f1   : > { %v3640_v57 = vsel %vm2535_vm9, 1.0, %v3849_v7 }
0x17f2   : > { %v2538_v58 = vmax.f32 %v2493_v25, %v3640_v57 }
0x17f4   : > { %v2544_v59 = vsub.f32 1.0, %v2538_v58 }
0x17f5   : > { %v2588_v25 = vpop.xlane.xlu2 %2587 }
0x17f6   : > { %v2545_v60 = vsel %vm2539_vm12, %v2544_v59, 0.0  ;;  %vm2629_vm12 = vcmp.eq.s32.totalorder %v3919_v35, 50  ;;  %v2595_v26 = vmax.f32 %v2588_v25, %v3902_v27  ;;  %v2594_v28 = vmin.f32 %v2588_v25, %v3915_v32 }
0x17f7   : > { %v2546_v61 = vsel %vm385_vm11, %v2545_v60, -inf  ;;  %v2630_v13 = vsel %vm2629_vm12, %v3930_v42, 0.0  ;;  %v2605_v38 = vadd.f32 %v2588_v25, %v3924_v39 }
0x17f8   : > { %2547 = vmax.xlane.f32.xlu1 %v2546_v61  ;;  %v2631_v14 = vsel %vm379_vm10, %v2630_v13, 0.0  ;;  %v2597_v31 = vrot.slane %v2595_v26, 6 }
0x17fa   : > { %v2599_v33 = vsub.f32 %v2594_v28, %v2597_v31 }
0x17fc   : > { %v2600_v34 = vmax.f32 %v2599_v33, 0.0 }
0x17fe   : > { %v2602_v36 = vrot.slane %v2600_v34, 1 }
0x1800   : > { %2632 = vadd.xlane.f32.xlu1 %v2631_v14  ;;  %v2604_v37 = vmul.f32 %v2602_v36, %v2600_v34 }
0x1802   : > { %v2607_v41 = vrot.slane %v2604_v37, 6 }
0x1804   : > { %v2609_v43 = vsub.f32 %v2605_v38, %v2607_v41 }
0x1806   : > { %v2610_v44 = vadd.f32 1e-08, %v2609_v43 }
0x1808   : > { %3809 = vrcp.f32 %v2610_v44 }
0x180e   : > { %v3810_v45 = vpop.eup %3809 }
0x180f   : > { %v2613_v48 = vrot.slane %v3810_v45, 2 }
0x1811   : > { %v2615_v49 = vmul.f32 %v2613_v48, %v2604_v37 }
0x1813   : > { %vm2617_vm4 = vcmp.gt.f32.partialorder %v2615_v49, 0.5 }
0x1814   : > { %v2620_v50 = vsel %vm2617_vm4, 1, %v3848_v4 }
0x1815   : > { %v2621_v51 = vrot.slane %v2620_v50, 2 }
0x1817   : > { %vm2622_vm6 = vcmp.ne.s32.totalorder %v2621_v51, 0 }
0x186b   : > { %v2548_v19 = vpop.xlane.xlu1 %2547 }
0x186c   : > { %vm2571_vm15 = vcmp.gt.f32.partialorder %v2548_v19, 0.5 }
0x186d   : > { %vm2578_vm1 = vmand %vm2571_vm15, %vm2577_vm0 }
0x186e   : > { %vm2580_vm2 = vmand %vm2578_vm1, %vm2579_vm14  ;;  %vm2669_vm14 = vcmp.gt.s32.totalorder %v3919_v35, 50 }
0x186f   : > { %v3641_v20 = vsel %vm2580_vm2, 1.0, %v3849_v7 }
0x1870   : > { %v2583_v21 = vmax.f32 %v2538_v58, %v3641_v20 }
0x1872   : > { %v2589_v22 = vsub.f32 1.0, %v2583_v21 }
0x1873   : > { %v2633_v58 = vpop.xlane.xlu1 %2632 }
0x1874   : > { %v2590_v23 = vsel %vm2584_vm3, %v2589_v22, 0.0  ;;  %vm2674_vm3 = vcmp.eq.s32.totalorder %v3919_v35, 51  ;;  %v2640_v59 = vmax.f32 %v2633_v58, %v3902_v27  ;;  %v2639_v60 = vmin.f32 %v2633_v58, %v3915_v32 }
0x1875   : > { %v2591_v24 = vsel %vm385_vm11, %v2590_v23, -inf  ;;  %v2675_v46 = vsel %vm2674_vm3, %v3930_v42, 0.0  ;;  %v2650_v2 = vadd.f32 %v2633_v58, %v3924_v39 }
0x1876   : > { %2592 = vmax.xlane.f32.xlu0 %v2591_v24  ;;  %v2676_v47 = vsel %vm379_vm10, %v2675_v46, 0.0  ;;  %v2642_v61 = vrot.slane %v2640_v59, 6 }
0x1878   : > { %v2644_v62 = vsub.f32 %v2639_v60, %v2642_v61 }
0x187a   : > { %v2645_v63 = vmax.f32 %v2644_v62, 0.0 }
0x187c   : > { %v2647_v0 = vrot.slane %v2645_v63, 1 }
0x187e   : > { %2677 = vadd.xlane.f32.xlu0 %v2676_v47  ;;  %v2649_v1 = vmul.f32 %v2647_v0, %v2645_v63 }
0x1880   : > { %v2652_v3 = vrot.slane %v2649_v1, 6 }
0x1882   : > { %v2654_v5 = vsub.f32 %v2650_v2, %v2652_v3 }
0x1884   : > { %v2655_v6 = vadd.f32 1e-08, %v2654_v5 }
0x1886   : > { %3811 = vrcp.f32 %v2655_v6 }
0x188c   : > { %v3812_v8 = vpop.eup %3811 }
0x188d   : > { %v2658_v11 = vrot.slane %v3812_v8, 2 }
0x188f   : > { %v2660_v12 = vmul.f32 %v2658_v11, %v2649_v1 }
0x1891   : > { %vm2662_vm13 = vcmp.gt.f32.partialorder %v2660_v12, 0.5 }
0x1892   : > { %v2665_v13 = vsel %vm2662_vm13, 1, %v3848_v4 }
0x1893   : > { %v2666_v14 = vrot.slane %v2665_v13, 2 }
0x1895   : > { %vm2667_vm15 = vcmp.ne.s32.totalorder %v2666_v14, 0 }
0x18e9   : > { %v2593_v52 = vpop.xlane.xlu0 %2592 }
0x18ea   : > { %vm2616_vm7 = vcmp.gt.f32.partialorder %v2593_v52, 0.5 }
0x18eb   : > { %vm2623_vm8 = vmand %vm2616_vm7, %vm2622_vm6 }
0x18ec   : > { %vm2625_vm9 = vmand %vm2623_vm8, %vm2624_vm5  ;;  %vm2714_vm5 = vcmp.gt.s32.totalorder %v3919_v35, 51 }
0x18ed   : > { %v3642_v53 = vsel %vm2625_vm9, 1.0, %v3849_v7 }
0x18ee   : > { %v2628_v54 = vmax.f32 %v2583_v21, %v3642_v53 }
0x18f0   : > { %v2634_v55 = vsub.f32 1.0, %v2628_v54 }
0x18f1   : > { %v2678_v21 = vpop.xlane.xlu0 %2677 }
0x18f2   : > { %v2635_v56 = vsel %vm2629_vm12, %v2634_v55, 0.0  ;;  %vm2719_vm12 = vcmp.eq.s32.totalorder %v3919_v35, 52  ;;  %v2685_v22 = vmax.f32 %v2678_v21, %v3902_v27  ;;  %v2684_v23 = vmin.f32 %v2678_v21, %v3915_v32 }
0x18f3   : > { %v2636_v57 = vsel %vm385_vm11, %v2635_v56, -inf  ;;  %v2720_v9 = vsel %vm2719_vm12, %v3930_v42, 0.0  ;;  %v2695_v33 = vadd.f32 %v2678_v21, %v3924_v39 }
0x18f4   : > { %2637 = vmax.xlane.f32.xlu2 %v2636_v57  ;;  %v2721_v10 = vsel %vm379_vm10, %v2720_v9, 0.0  ;;  %v2687_v24 = vrot.slane %v2685_v22, 6 }
0x18f6   : > { %v2689_v25 = vsub.f32 %v2684_v23, %v2687_v24 }
0x18f8   : > { %v2690_v26 = vmax.f32 %v2689_v25, 0.0 }
0x18fa   : > { %v2692_v28 = vrot.slane %v2690_v26, 1 }
0x18fc   : > { %2722 = vadd.xlane.f32.xlu2 %v2721_v10  ;;  %v2694_v31 = vmul.f32 %v2692_v28, %v2690_v26 }
0x18fe   : > { %v2697_v34 = vrot.slane %v2694_v31, 6 }
0x1900   : > { %v2699_v36 = vsub.f32 %v2695_v33, %v2697_v34 }
0x1902   : > { %v2700_v37 = vadd.f32 1e-08, %v2699_v36 }
0x1904   : > { %3813 = vrcp.f32 %v2700_v37 }
0x190a   : > { %v3814_v38 = vpop.eup %3813 }
0x190b   : > { %v2703_v44 = vrot.slane %v3814_v38, 2 }
0x190d   : > { %v2705_v45 = vmul.f32 %v2703_v44, %v2694_v31 }
0x190f   : > { %vm2707_vm4 = vcmp.gt.f32.partialorder %v2705_v45, 0.5 }
0x1910   : > { %v2710_v46 = vsel %vm2707_vm4, 1, %v3848_v4 }
0x1911   : > { %v2711_v47 = vrot.slane %v2710_v46, 2 }
0x1913   : > { %vm2712_vm7 = vcmp.ne.s32.totalorder %v2711_v47, 0 }
0x1967   : > { %v2638_v15 = vpop.xlane.xlu2 %2637 }
0x1968   : > { %vm2661_vm0 = vcmp.gt.f32.partialorder %v2638_v15, 0.5 }
0x1969   : > { %vm2668_vm1 = vmand %vm2661_vm0, %vm2667_vm15 }
0x196a   : > { %vm2670_vm2 = vmand %vm2668_vm1, %vm2669_vm14  ;;  %vm2759_vm14 = vcmp.gt.s32.totalorder %v3919_v35, 52 }
0x196b   : > { %v3643_v16 = vsel %vm2670_vm2, 1.0, %v3849_v7 }
0x196c   : > { %v2673_v17 = vmax.f32 %v2628_v54, %v3643_v16 }
0x196e   : > { %v2679_v18 = vsub.f32 1.0, %v2673_v17 }
0x196f   : > { %v2723_v54 = vpop.xlane.xlu2 %2722 }
0x1970   : > { %v2680_v19 = vsel %vm2674_vm3, %v2679_v18, 0.0  ;;  %vm2764_vm3 = vcmp.eq.s32.totalorder %v3919_v35, 53  ;;  %v2730_v55 = vmax.f32 %v2723_v54, %v3902_v27  ;;  %v2729_v56 = vmin.f32 %v2723_v54, %v3915_v32 }
0x1971   : > { %v2681_v20 = vsel %vm385_vm11, %v2680_v19, -inf  ;;  %v2765_v41 = vsel %vm2764_vm3, %v3930_v42, 0.0  ;;  %v2740_v62 = vadd.f32 %v2723_v54, %v3924_v39 }
0x1972   : > { %2682 = vmax.xlane.f32.xlu1 %v2681_v20  ;;  %v2766_v43 = vsel %vm379_vm10, %v2765_v41, 0.0  ;;  %v2732_v57 = vrot.slane %v2730_v55, 6 }
0x1974   : > { %v2734_v58 = vsub.f32 %v2729_v56, %v2732_v57 }
0x1976   : > { %v2735_v59 = vmax.f32 %v2734_v58, 0.0 }
0x1978   : > { %v2737_v60 = vrot.slane %v2735_v59, 1 }
0x197a   : > { %2767 = vadd.xlane.f32.xlu1 %v2766_v43  ;;  %v2739_v61 = vmul.f32 %v2737_v60, %v2735_v59 }
0x197c   : > { %v2742_v63 = vrot.slane %v2739_v61, 6 }
0x197e   : > { %v2744_v0 = vsub.f32 %v2740_v62, %v2742_v63 }
0x1980   : > { %v2745_v1 = vadd.f32 1e-08, %v2744_v0 }
0x1982   : > { %3815 = vrcp.f32 %v2745_v1 }
0x1988   : > { %v3816_v2 = vpop.eup %3815 }
0x1989   : > { %v2748_v6 = vrot.slane %v3816_v2, 2 }
0x198b   : > { %v2750_v8 = vmul.f32 %v2748_v6, %v2739_v61 }
0x198d   : > { %vm2752_vm13 = vcmp.gt.f32.partialorder %v2750_v8, 0.5 }
0x198e   : > { %v2755_v9 = vsel %vm2752_vm13, 1, %v3848_v4 }
0x198f   : > { %v2756_v10 = vrot.slane %v2755_v9, 2 }
0x1991   : > { %vm2757_vm15 = vcmp.ne.s32.totalorder %v2756_v10, 0 }
0x19e5   : > { %v2683_v48 = vpop.xlane.xlu1 %2682 }
0x19e6   : > { %vm2706_vm6 = vcmp.gt.f32.partialorder %v2683_v48, 0.5 }
0x19e7   : > { %vm2713_vm8 = vmand %vm2706_vm6, %vm2712_vm7 }
0x19e8   : > { %vm2715_vm9 = vmand %vm2713_vm8, %vm2714_vm5  ;;  %vm2804_vm5 = vcmp.gt.s32.totalorder %v3919_v35, 53 }
0x19e9   : > { %v3644_v49 = vsel %vm2715_vm9, 1.0, %v3849_v7 }
0x19ea   : > { %v2718_v50 = vmax.f32 %v2673_v17, %v3644_v49 }
0x19ec   : > { %v2724_v51 = vsub.f32 1.0, %v2718_v50 }
0x19ed   : > { %v2768_v17 = vpop.xlane.xlu1 %2767 }
0x19ee   : > { %v2725_v52 = vsel %vm2719_vm12, %v2724_v51, 0.0  ;;  %vm2809_vm12 = vcmp.eq.s32.totalorder %v3919_v35, 54  ;;  %v2775_v18 = vmax.f32 %v2768_v17, %v3902_v27  ;;  %v2774_v19 = vmin.f32 %v2768_v17, %v3915_v32 }
0x19ef   : > { %v2726_v53 = vsel %vm385_vm11, %v2725_v52, -inf  ;;  %v2810_v3 = vsel %vm2809_vm12, %v3930_v42, 0.0  ;;  %v2785_v25 = vadd.f32 %v2768_v17, %v3924_v39 }
0x19f0   : > { %2727 = vmax.xlane.f32.xlu0 %v2726_v53  ;;  %v2811_v5 = vsel %vm379_vm10, %v2810_v3, 0.0  ;;  %v2777_v20 = vrot.slane %v2775_v18, 6 }
0x19f2   : > { %v2779_v21 = vsub.f32 %v2774_v19, %v2777_v20 }
0x19f4   : > { %v2780_v22 = vmax.f32 %v2779_v21, 0.0 }
0x19f6   : > { %v2782_v23 = vrot.slane %v2780_v22, 1 }
0x19f8   : > { %2812 = vadd.xlane.f32.xlu0 %v2811_v5  ;;  %v2784_v24 = vmul.f32 %v2782_v23, %v2780_v22 }
0x19fa   : > { %v2787_v26 = vrot.slane %v2784_v24, 6 }
0x19fc   : > { %v2789_v28 = vsub.f32 %v2785_v25, %v2787_v26 }
0x19fe   : > { %v2790_v31 = vadd.f32 1e-08, %v2789_v28 }
0x1a00   : > { %3817 = vrcp.f32 %v2790_v31 }
0x1a06   : > { %v3818_v33 = vpop.eup %3817 }
0x1a07   : > { %v2793_v37 = vrot.slane %v3818_v33, 2 }
0x1a09   : > { %v2795_v38 = vmul.f32 %v2793_v37, %v2784_v24 }
0x1a0b   : > { %vm2797_vm4 = vcmp.gt.f32.partialorder %v2795_v38, 0.5 }
0x1a0c   : > { %v2800_v41 = vsel %vm2797_vm4, 1, %v3848_v4 }
0x1a0d   : > { %v2801_v43 = vrot.slane %v2800_v41, 2 }
0x1a0f   : > { %vm2802_vm6 = vcmp.ne.s32.totalorder %v2801_v43, 0 }
0x1a63   : > { %v2728_v11 = vpop.xlane.xlu0 %2727 }
0x1a64   : > { %vm2751_vm0 = vcmp.gt.f32.partialorder %v2728_v11, 0.5 }
0x1a65   : > { %vm2758_vm1 = vmand %vm2751_vm0, %vm2757_vm15 }
0x1a66   : > { %vm2760_vm2 = vmand %vm2758_vm1, %vm2759_vm14  ;;  %vm2849_vm14 = vcmp.gt.s32.totalorder %v3919_v35, 54 }
0x1a67   : > { %v3645_v12 = vsel %vm2760_vm2, 1.0, %v3849_v7 }
0x1a68   : > { %v2763_v13 = vmax.f32 %v2718_v50, %v3645_v12 }
0x1a6a   : > { %v2769_v14 = vsub.f32 1.0, %v2763_v13 }
0x1a6b   : > { %v2813_v50 = vpop.xlane.xlu0 %2812 }
0x1a6c   : > { %v2770_v15 = vsel %vm2764_vm3, %v2769_v14, 0.0  ;;  %vm2854_vm3 = vcmp.eq.s32.totalorder %v3919_v35, 55  ;;  %v2820_v51 = vmax.f32 %v2813_v50, %v3902_v27  ;;  %v2819_v52 = vmin.f32 %v2813_v50, %v3915_v32 }
0x1a6d   : > { %v2771_v16 = vsel %vm385_vm11, %v2770_v15, -inf  ;;  %v2855_v34 = vsel %vm2854_vm3, %v3930_v42, 0.0  ;;  %v2830_v58 = vadd.f32 %v2813_v50, %v3924_v39 }
0x1a6e   : > { %2772 = vmax.xlane.f32.xlu2 %v2771_v16  ;;  %v2856_v36 = vsel %vm379_vm10, %v2855_v34, 0.0  ;;  %v2822_v53 = vrot.slane %v2820_v51, 6 }
0x1a70   : > { %v2824_v54 = vsub.f32 %v2819_v52, %v2822_v53 }
0x1a72   : > { %v2825_v55 = vmax.f32 %v2824_v54, 0.0 }
0x1a74   : > { %v2827_v56 = vrot.slane %v2825_v55, 1 }
0x1a76   : > { %2857 = vadd.xlane.f32.xlu2 %v2856_v36  ;;  %v2829_v57 = vmul.f32 %v2827_v56, %v2825_v55 }
0x1a78   : > { %v2832_v59 = vrot.slane %v2829_v57, 6 }
0x1a7a   : > { %v2834_v60 = vsub.f32 %v2830_v58, %v2832_v59 }
0x1a7c   : > { %v2835_v61 = vadd.f32 1e-08, %v2834_v60 }
0x1a7e   : > { %3819 = vrcp.f32 %v2835_v61 }
0x1a84   : > { %v3820_v62 = vpop.eup %3819 }
0x1a85   : > { %v2838_v1 = vrot.slane %v3820_v62, 2 }
0x1a87   : > { %v2840_v2 = vmul.f32 %v2838_v1, %v2829_v57 }
0x1a89   : > { %vm2842_vm13 = vcmp.gt.f32.partialorder %v2840_v2, 0.5 }
0x1a8a   : > { %v2845_v3 = vsel %vm2842_vm13, 1, %v3848_v4 }
0x1a8b   : > { %v2846_v5 = vrot.slane %v2845_v3, 2 }
0x1a8d   : > { %vm2847_vm0 = vcmp.ne.s32.totalorder %v2846_v5, 0 }
0x1ae1   : > { %v2773_v44 = vpop.xlane.xlu2 %2772 }
0x1ae2   : > { %vm2796_vm7 = vcmp.gt.f32.partialorder %v2773_v44, 0.5 }
0x1ae3   : > { %vm2803_vm8 = vmand %vm2796_vm7, %vm2802_vm6 }
0x1ae4   : > { %vm2805_vm9 = vmand %vm2803_vm8, %vm2804_vm5  ;;  %vm2894_vm5 = vcmp.gt.s32.totalorder %v3919_v35, 55 }
0x1ae5   : > { %v3646_v45 = vsel %vm2805_vm9, 1.0, %v3849_v7 }
0x1ae6   : > { %v2808_v46 = vmax.f32 %v2763_v13, %v3646_v45 }
0x1ae8   : > { %v2814_v47 = vsub.f32 1.0, %v2808_v46 }
0x1ae9   : > { %v2858_v13 = vpop.xlane.xlu2 %2857 }
0x1aea   : > { %v2815_v48 = vsel %vm2809_vm12, %v2814_v47, 0.0  ;;  %vm2899_vm12 = vcmp.eq.s32.totalorder %v3919_v35, 56  ;;  %v2865_v14 = vmax.f32 %v2858_v13, %v3902_v27  ;;  %v2864_v15 = vmin.f32 %v2858_v13, %v3915_v32 }
0x1aeb   : > { %v2816_v49 = vsel %vm385_vm11, %v2815_v48, -inf  ;;  %v2900_v63 = vsel %vm2899_vm12, %v3930_v42, 0.0  ;;  %v2875_v21 = vadd.f32 %v2858_v13, %v3924_v39 }
0x1aec   : > { %2817 = vmax.xlane.f32.xlu1 %v2816_v49  ;;  %v2901_v0 = vsel %vm379_vm10, %v2900_v63, 0.0  ;;  %v2867_v16 = vrot.slane %v2865_v14, 6 }
0x1aee   : > { %v2869_v17 = vsub.f32 %v2864_v15, %v2867_v16 }
0x1af0   : > { %v2870_v18 = vmax.f32 %v2869_v17, 0.0 }
0x1af2   : > { %v2872_v19 = vrot.slane %v2870_v18, 1 }
0x1af4   : > { %2902 = vadd.xlane.f32.xlu1 %v2901_v0  ;;  %v2874_v20 = vmul.f32 %v2872_v19, %v2870_v18 }
0x1af6   : > { %v2877_v22 = vrot.slane %v2874_v20, 6 }
0x1af8   : > { %v2879_v23 = vsub.f32 %v2875_v21, %v2877_v22 }
0x1afa   : > { %v2880_v24 = vadd.f32 1e-08, %v2879_v23 }
0x1afc   : > { %3821 = vrcp.f32 %v2880_v24 }
0x1b02   : > { %v3822_v25 = vpop.eup %3821 }
0x1b03   : > { %v2883_v31 = vrot.slane %v3822_v25, 2 }
0x1b05   : > { %v2885_v33 = vmul.f32 %v2883_v31, %v2874_v20 }
0x1b07   : > { %vm2887_vm4 = vcmp.gt.f32.partialorder %v2885_v33, 0.5 }
0x1b08   : > { %v2890_v34 = vsel %vm2887_vm4, 1, %v3848_v4 }
0x1b09   : > { %v2891_v36 = vrot.slane %v2890_v34, 2 }
0x1b0b   : > { %vm2892_vm6 = vcmp.ne.s32.totalorder %v2891_v36, 0 }
0x1b5f   : > { %v2818_v6 = vpop.xlane.xlu1 %2817 }
0x1b60   : > { %vm2841_vm15 = vcmp.gt.f32.partialorder %v2818_v6, 0.5 }
0x1b61   : > { %vm2848_vm1 = vmand %vm2841_vm15, %vm2847_vm0 }
0x1b62   : > { %vm2850_vm2 = vmand %vm2848_vm1, %vm2849_vm14  ;;  %vm2939_vm14 = vcmp.gt.s32.totalorder %v3919_v35, 56 }
0x1b63   : > { %v3647_v8 = vsel %vm2850_vm2, 1.0, %v3849_v7 }
0x1b64   : > { %v2853_v9 = vmax.f32 %v2808_v46, %v3647_v8 }
0x1b66   : > { %v2859_v10 = vsub.f32 1.0, %v2853_v9 }
0x1b67   : > { %v2903_v46 = vpop.xlane.xlu1 %2902 }
0x1b68   : > { %v2860_v11 = vsel %vm2854_vm3, %v2859_v10, 0.0  ;;  %vm2944_vm3 = vcmp.eq.s32.totalorder %v3919_v35, 57  ;;  %v2910_v47 = vmax.f32 %v2903_v46, %v3902_v27  ;;  %v2909_v48 = vmin.f32 %v2903_v46, %v3915_v32 }
0x1b69   : > { %v2861_v12 = vsel %vm385_vm11, %v2860_v11, -inf  ;;  %v2945_v26 = vsel %vm2944_vm3, %v3930_v42, 0.0  ;;  %v2920_v54 = vadd.f32 %v2903_v46, %v3924_v39 }
0x1b6a   : > { %2862 = vmax.xlane.f32.xlu0 %v2861_v12  ;;  %v2946_v28 = vsel %vm379_vm10, %v2945_v26, 0.0  ;;  %v2912_v49 = vrot.slane %v2910_v47, 6 }
0x1b6c   : > { %v2914_v50 = vsub.f32 %v2909_v48, %v2912_v49 }
0x1b6e   : > { %v2915_v51 = vmax.f32 %v2914_v50, 0.0 }
0x1b70   : > { %v2917_v52 = vrot.slane %v2915_v51, 1 }
0x1b72   : > { %2947 = vadd.xlane.f32.xlu0 %v2946_v28  ;;  %v2919_v53 = vmul.f32 %v2917_v52, %v2915_v51 }
0x1b74   : > { %v2922_v55 = vrot.slane %v2919_v53, 6 }
0x1b76   : > { %v2924_v56 = vsub.f32 %v2920_v54, %v2922_v55 }
0x1b78   : > { %v2925_v57 = vadd.f32 1e-08, %v2924_v56 }
0x1b7a   : > { %3823 = vrcp.f32 %v2925_v57 }
0x1b80   : > { %v3824_v58 = vpop.eup %3823 }
0x1b81   : > { %v2928_v61 = vrot.slane %v3824_v58, 2 }
0x1b83   : > { %v2930_v62 = vmul.f32 %v2928_v61, %v2919_v53 }
0x1b85   : > { %vm2932_vm13 = vcmp.gt.f32.partialorder %v2930_v62, 0.5 }
0x1b86   : > { %v2935_v63 = vsel %vm2932_vm13, 1, %v3848_v4 }
0x1b87   : > { %v2936_v0 = vrot.slane %v2935_v63, 2 }
0x1b89   : > { %vm2937_vm15 = vcmp.ne.s32.totalorder %v2936_v0, 0 }
0x1bdd   : > { %v2863_v37 = vpop.xlane.xlu0 %2862 }
0x1bde   : > { %vm2886_vm7 = vcmp.gt.f32.partialorder %v2863_v37, 0.5 }
0x1bdf   : > { %vm2893_vm8 = vmand %vm2886_vm7, %vm2892_vm6 }
0x1be0   : > { %vm2895_vm9 = vmand %vm2893_vm8, %vm2894_vm5  ;;  %vm2984_vm5 = vcmp.gt.s32.totalorder %v3919_v35, 57 }
0x1be1   : > { %v3648_v38 = vsel %vm2895_vm9, 1.0, %v3849_v7 }
0x1be2   : > { %v2898_v41 = vmax.f32 %v2853_v9, %v3648_v38 }
0x1be4   : > { %v2904_v43 = vsub.f32 1.0, %v2898_v41 }
0x1be5   : > { %v2948_v9 = vpop.xlane.xlu0 %2947 }
0x1be6   : > { %v2905_v44 = vsel %vm2899_vm12, %v2904_v43, 0.0  ;;  %vm2989_vm12 = vcmp.eq.s32.totalorder %v3919_v35, 58  ;;  %v2955_v10 = vmax.f32 %v2948_v9, %v3902_v27  ;;  %v2954_v11 = vmin.f32 %v2948_v9, %v3915_v32 }
0x1be7   : > { %v2906_v45 = vsel %vm385_vm11, %v2905_v44, -inf  ;;  %v2990_v59 = vsel %vm2989_vm12, %v3930_v42, 0.0  ;;  %v2965_v17 = vadd.f32 %v2948_v9, %v3924_v39 }
0x1be8   : > { %2907 = vmax.xlane.f32.xlu2 %v2906_v45  ;;  %v2991_v60 = vsel %vm379_vm10, %v2990_v59, 0.0  ;;  %v2957_v12 = vrot.slane %v2955_v10, 6 }
0x1bea   : > { %v2959_v13 = vsub.f32 %v2954_v11, %v2957_v12 }
0x1bec   : > { %v2960_v14 = vmax.f32 %v2959_v13, 0.0 }
0x1bee   : > { %v2962_v15 = vrot.slane %v2960_v14, 1 }
0x1bf0   : > { %2992 = vadd.xlane.f32.xlu2 %v2991_v60  ;;  %v2964_v16 = vmul.f32 %v2962_v15, %v2960_v14 }
0x1bf2   : > { %v2967_v18 = vrot.slane %v2964_v16, 6 }
0x1bf4   : > { %v2969_v19 = vsub.f32 %v2965_v17, %v2967_v18 }
0x1bf6   : > { %v2970_v20 = vadd.f32 1e-08, %v2969_v19 }
0x1bf8   : > { %3825 = vrcp.f32 %v2970_v20 }
0x1bfe   : > { %v3826_v21 = vpop.eup %3825 }
0x1bff   : > { %v2973_v24 = vrot.slane %v3826_v21, 2 }
0x1c01   : > { %v2975_v25 = vmul.f32 %v2973_v24, %v2964_v16 }
0x1c03   : > { %vm2977_vm4 = vcmp.gt.f32.partialorder %v2975_v25, 0.5 }
0x1c04   : > { %v2980_v26 = vsel %vm2977_vm4, 1, %v3848_v4 }
0x1c05   : > { %v2981_v28 = vrot.slane %v2980_v26, 2 }
0x1c07   : > { %vm2982_vm7 = vcmp.ne.s32.totalorder %v2981_v28, 0 }
0x1c5b   : > { %v2908_v1 = vpop.xlane.xlu2 %2907 }
0x1c5c   : > { %vm2931_vm0 = vcmp.gt.f32.partialorder %v2908_v1, 0.5 }
0x1c5d   : > { %vm2938_vm1 = vmand %vm2931_vm0, %vm2937_vm15 }
0x1c5e   : > { %vm2940_vm2 = vmand %vm2938_vm1, %vm2939_vm14  ;;  %vm3029_vm14 = vcmp.gt.s32.totalorder %v3919_v35, 58 }
0x1c5f   : > { %v3649_v2 = vsel %vm2940_vm2, 1.0, %v3849_v7 }
0x1c60   : > { %v2943_v3 = vmax.f32 %v2898_v41, %v3649_v2 }
0x1c62   : > { %v2949_v5 = vsub.f32 1.0, %v2943_v3 }
0x1c63   : > { %v2993_v41 = vpop.xlane.xlu2 %2992 }
0x1c64   : > { %v2950_v6 = vsel %vm2944_vm3, %v2949_v5, 0.0  ;;  %vm3034_vm3 = vcmp.eq.s32.totalorder %v3919_v35, 59  ;;  %v3000_v43 = vmax.f32 %v2993_v41, %v3902_v27  ;;  %v2999_v44 = vmin.f32 %v2993_v41, %v3915_v32 }
0x1c65   : > { %v2951_v8 = vsel %vm385_vm11, %v2950_v6, -inf  ;;  %v3035_v22 = vsel %vm3034_vm3, %v3930_v42, 0.0  ;;  %v3010_v50 = vadd.f32 %v2993_v41, %v3924_v39 }
0x1c66   : > { %2952 = vmax.xlane.f32.xlu1 %v2951_v8  ;;  %v3036_v23 = vsel %vm379_vm10, %v3035_v22, 0.0  ;;  %v3002_v45 = vrot.slane %v3000_v43, 6 }
0x1c68   : > { %v3004_v46 = vsub.f32 %v2999_v44, %v3002_v45 }
0x1c6a   : > { %v3005_v47 = vmax.f32 %v3004_v46, 0.0 }
0x1c6c   : > { %v3007_v48 = vrot.slane %v3005_v47, 1 }
0x1c6e   : > { %3037 = vadd.xlane.f32.xlu1 %v3036_v23  ;;  %v3009_v49 = vmul.f32 %v3007_v48, %v3005_v47 }
0x1c70   : > { %v3012_v51 = vrot.slane %v3009_v49, 6 }
0x1c72   : > { %v3014_v52 = vsub.f32 %v3010_v50, %v3012_v51 }
0x1c74   : > { %v3015_v53 = vadd.f32 1e-08, %v3014_v52 }
0x1c76   : > { %3827 = vrcp.f32 %v3015_v53 }
0x1c7c   : > { %v3828_v54 = vpop.eup %3827 }
0x1c7d   : > { %v3018_v57 = vrot.slane %v3828_v54, 2 }
0x1c7f   : > { %v3020_v58 = vmul.f32 %v3018_v57, %v3009_v49 }
0x1c81   : > { %vm3022_vm13 = vcmp.gt.f32.partialorder %v3020_v58, 0.5 }
0x1c82   : > { %v3025_v59 = vsel %vm3022_vm13, 1, %v3848_v4 }
0x1c83   : > { %v3026_v60 = vrot.slane %v3025_v59, 2 }
0x1c85   : > { %vm3027_vm15 = vcmp.ne.s32.totalorder %v3026_v60, 0 }
0x1cd9   : > { %v2953_v31 = vpop.xlane.xlu1 %2952 }
0x1cda   : > { %vm2976_vm6 = vcmp.gt.f32.partialorder %v2953_v31, 0.5 }
0x1cdb   : > { %vm2983_vm8 = vmand %vm2976_vm6, %vm2982_vm7 }
0x1cdc   : > { %vm2985_vm9 = vmand %vm2983_vm8, %vm2984_vm5  ;;  %vm3074_vm5 = vcmp.gt.s32.totalorder %v3919_v35, 59 }
0x1cdd   : > { %v3650_v33 = vsel %vm2985_vm9, 1.0, %v3849_v7 }
0x1cde   : > { %v2988_v34 = vmax.f32 %v2943_v3, %v3650_v33 }
0x1ce0   : > { %v2994_v36 = vsub.f32 1.0, %v2988_v34 }
0x1ce1   : > { %v3038_v3 = vpop.xlane.xlu1 %3037 }
0x1ce2   : > { %v2995_v37 = vsel %vm2989_vm12, %v2994_v36, 0.0  ;;  %vm3079_vm12 = vcmp.eq.s32.totalorder %v3919_v35, 60  ;;  %v3045_v5 = vmax.f32 %v3038_v3, %v3902_v27  ;;  %v3044_v6 = vmin.f32 %v3038_v3, %v3915_v32 }
0x1ce3   : > { %v2996_v38 = vsel %vm385_vm11, %v2995_v37, -inf  ;;  %v3080_v55 = vsel %vm3079_vm12, %v3930_v42, 0.0  ;;  %v3055_v13 = vadd.f32 %v3038_v3, %v3924_v39 }
0x1ce4   : > { %2997 = vmax.xlane.f32.xlu0 %v2996_v38  ;;  %v3081_v56 = vsel %vm379_vm10, %v3080_v55, 0.0  ;;  %v3047_v8 = vrot.slane %v3045_v5, 6 }
0x1ce6   : > { %v3049_v9 = vsub.f32 %v3044_v6, %v3047_v8 }
0x1ce8   : > { %v3050_v10 = vmax.f32 %v3049_v9, 0.0 }
0x1cea   : > { %v3052_v11 = vrot.slane %v3050_v10, 1 }
0x1cec   : > { %3082 = vadd.xlane.f32.xlu0 %v3081_v56  ;;  %v3054_v12 = vmul.f32 %v3052_v11, %v3050_v10 }
0x1cee   : > { %v3057_v14 = vrot.slane %v3054_v12, 6 }
0x1cf0   : > { %v3059_v15 = vsub.f32 %v3055_v13, %v3057_v14 }
0x1cf2   : > { %v3060_v16 = vadd.f32 1e-08, %v3059_v15 }
0x1cf4   : > { %3829 = vrcp.f32 %v3060_v16 }
0x1cfa   : > { %v3830_v17 = vpop.eup %3829 }
0x1cfb   : > { %v3063_v20 = vrot.slane %v3830_v17, 2 }
0x1cfd   : > { %v3065_v21 = vmul.f32 %v3063_v20, %v3054_v12 }
0x1cff   : > { %vm3067_vm4 = vcmp.gt.f32.partialorder %v3065_v21, 0.5 }
0x1d00   : > { %v3070_v22 = vsel %vm3067_vm4, 1, %v3848_v4 }
0x1d01   : > { %v3071_v23 = vrot.slane %v3070_v22, 2 }
0x1d03   : > { %vm3072_vm6 = vcmp.ne.s32.totalorder %v3071_v23, 0 }
0x1d57   : > { %v2998_v61 = vpop.xlane.xlu0 %2997 }
0x1d58   : > { %vm3021_vm0 = vcmp.gt.f32.partialorder %v2998_v61, 0.5 }
0x1d59   : > { %vm3028_vm1 = vmand %vm3021_vm0, %vm3027_vm15 }
0x1d5a   : > { %vm3030_vm2 = vmand %vm3028_vm1, %vm3029_vm14  ;;  %vm3119_vm14 = vcmp.gt.s32.totalorder %v3919_v35, 60 }
0x1d5b   : > { %v3651_v62 = vsel %vm3030_vm2, 1.0, %v3849_v7 }
0x1d5c   : > { %v3033_v63 = vmax.f32 %v2988_v34, %v3651_v62 }
0x1d5e   : > { %v3039_v0 = vsub.f32 1.0, %v3033_v63 }
0x1d5f   : > { %v3083_v34 = vpop.xlane.xlu0 %3082 }
0x1d60   : > { %v3040_v1 = vsel %vm3034_vm3, %v3039_v0, 0.0  ;;  %vm3124_vm3 = vcmp.eq.s32.totalorder %v3919_v35, 61  ;;  %v3090_v36 = vmax.f32 %v3083_v34, %v3902_v27  ;;  %v3089_v37 = vmin.f32 %v3083_v34, %v3915_v32 }
0x1d61   : > { %v3041_v2 = vsel %vm385_vm11, %v3040_v1, -inf  ;;  %v3125_v18 = vsel %vm3124_vm3, %v3930_v42, 0.0  ;;  %v3100_v46 = vadd.f32 %v3083_v34, %v3924_v39 }
0x1d62   : > { %3042 = vmax.xlane.f32.xlu2 %v3041_v2  ;;  %v3126_v19 = vsel %vm379_vm10, %v3125_v18, 0.0  ;;  %v3092_v38 = vrot.slane %v3090_v36, 6 }
0x1d64   : > { %v3094_v41 = vsub.f32 %v3089_v37, %v3092_v38 }
0x1d66   : > { %v3095_v43 = vmax.f32 %v3094_v41, 0.0 }
0x1d68   : > { %v3097_v44 = vrot.slane %v3095_v43, 1 }
0x1d6a   : > { %3127 = vadd.xlane.f32.xlu2 %v3126_v19  ;;  %v3099_v45 = vmul.f32 %v3097_v44, %v3095_v43 }
0x1d6c   : > { %v3102_v47 = vrot.slane %v3099_v45, 6 }
0x1d6e   : > { %v3104_v48 = vsub.f32 %v3100_v46, %v3102_v47 }
0x1d70   : > { %v3105_v49 = vadd.f32 1e-08, %v3104_v48 }
0x1d72   : > { %3831 = vrcp.f32 %v3105_v49 }
0x1d78   : > { %v3832_v50 = vpop.eup %3831 }
0x1d79   : > { %v3108_v53 = vrot.slane %v3832_v50, 2 }
0x1d7b   : > { %v3110_v54 = vmul.f32 %v3108_v53, %v3099_v45  ;;  %v4811_v45 = vshrl.u32 %v362_v30, 7 }
0x1d7d   : > { %vm3112_vm13 = vcmp.gt.f32.partialorder %v3110_v54, 0.5  ;;  %v3270_v47 = vadd.s32 56, %v4811_v45  ;;  %v3269_v48 = vadd.s32 48, %v4811_v45  ;;  %v3268_v49 = vadd.s32 40, %v4811_v45 }
0x1d7e   : > { %v3115_v55 = vsel %vm3112_vm13, 1, %v3848_v4 }
0x1d7f   : > { %v3116_v56 = vrot.slane %v3115_v55, 2  ;;  %vm3276_vm13 = vcmp.lt.s32.totalorder %v3268_v49, %v3919_v35 }
0x1d81   : > { %vm3117_vm0 = vcmp.ne.s32.totalorder %v3116_v56, 0 }
0x1dd5   : > { %v3043_v24 = vpop.xlane.xlu2 %3042 }
0x1dd6   : > { %vm3066_vm7 = vcmp.gt.f32.partialorder %v3043_v24, 0.5 }
0x1dd7   : > { %vm3073_vm8 = vmand %vm3066_vm7, %vm3072_vm6 }
0x1dd8   : > { %vm3075_vm9 = vmand %vm3073_vm8, %vm3074_vm5  ;;  %vm3164_vm5 = vcmp.gt.s32.totalorder %v3919_v35, 61 }
0x1dd9   : > { %v3652_v25 = vsel %vm3075_vm9, 1.0, %v3849_v7 }
0x1dda   : > { %v3078_v26 = vmax.f32 %v3033_v63, %v3652_v25 }
0x1ddc   : > { %v3084_v28 = vsub.f32 1.0, %v3078_v26 }
0x1ddd   : > { %v3128_v63 = vpop.xlane.xlu2 %3127 }
0x1dde   : > { %v3085_v31 = vsel %vm3079_vm12, %v3084_v28, 0.0  ;;  %vm3169_vm12 = vcmp.eq.s32.totalorder %v3919_v35, 62  ;;  %v3135_v0 = vmax.f32 %v3128_v63, %v3902_v27  ;;  %v3134_v1 = vmin.f32 %v3128_v63, %v3915_v32 }
0x1ddf   : > { %v3086_v33 = vsel %vm385_vm11, %v3085_v31, -inf  ;;  %v3170_v51 = vsel %vm3169_vm12, %v3930_v42, 0.0  ;;  %v3145_v9 = vadd.f32 %v3128_v63, %v3924_v39 }
0x1de0   : > { %3087 = vmax.xlane.f32.xlu1 %v3086_v33  ;;  %v3171_v52 = vsel %vm379_vm10, %v3170_v51, 0.0  ;;  %v3137_v2 = vrot.slane %v3135_v0, 6 }
0x1de2   : > { %v3139_v3 = vsub.f32 %v3134_v1, %v3137_v2 }
0x1de4   : > { %v3140_v5 = vmax.f32 %v3139_v3, 0.0 }
0x1de6   : > { %v3142_v6 = vrot.slane %v3140_v5, 1 }
0x1de8   : > { %3172 = vadd.xlane.f32.xlu1 %v3171_v52  ;;  %v3144_v8 = vmul.f32 %v3142_v6, %v3140_v5 }
0x1dea   : > { %v3147_v10 = vrot.slane %v3144_v8, 6 }
0x1dec   : > { %v3149_v11 = vsub.f32 %v3145_v9, %v3147_v10  ;;  %v3266_v9 = vadd.s32 24, %v4811_v45 }
0x1dee   : > { %v3150_v12 = vadd.f32 1e-08, %v3149_v11 }
0x1df0   : > { %3833 = vrcp.f32 %v3150_v12 }
0x1df6   : > { %v3834_v13 = vpop.eup %3833 }
0x1df7   : > { %v3153_v16 = vrot.slane %v3834_v13, 2 }
0x1df9   : > { %v3155_v17 = vmul.f32 %v3153_v16, %v3144_v8  ;;  %v3267_v8 = vadd.s32 32, %v4811_v45 }
0x1dfb   : > { %vm3157_vm4 = vcmp.gt.f32.partialorder %v3155_v17, 0.5 }
0x1dfc   : > { %v3160_v18 = vsel %vm3157_vm4, 1, %v3848_v4 }
0x1dfd   : > { %v3161_v19 = vrot.slane %v3160_v18, 2 }
0x1dff   : > { %vm3162_vm6 = vcmp.ne.s32.totalorder %v3161_v19, 0 }
0x1e53   : > { %v3088_v57 = vpop.xlane.xlu1 %3087 }
0x1e54   : > { %vm3111_vm15 = vcmp.gt.f32.partialorder %v3088_v57, 0.5 }
0x1e55   : > { %vm3118_vm1 = vmand %vm3111_vm15, %vm3117_vm0  ;;  %vm3209_vm15 = vcmp.gt.s32.totalorder %v3919_v35, 62 }
0x1e56   : > { %vm3120_vm2 = vmand %vm3118_vm1, %vm3119_vm14 }
0x1e57   : > { %v3653_v58 = vsel %vm3120_vm2, 1.0, %v3849_v7 }
0x1e58   : > { %v3123_v59 = vmax.f32 %v3078_v26, %v3653_v58 }
0x1e5a   : > { %v3129_v60 = vsub.f32 1.0, %v3123_v59 }
0x1e5b   : > { %v3173_v25 = vpop.xlane.xlu1 %3172 }
0x1e5c   : > { %v3130_v61 = vsel %vm3124_vm3, %v3129_v60, 0.0  ;;  %vm3214_vm3 = vcmp.eq.s32.totalorder %v3919_v35, 63  ;;  %v3180_v26 = vmax.f32 %v3173_v25, %v3902_v27  ;;  %v3179_v28 = vmin.f32 %v3173_v25, %v3915_v32 }
0x1e5d   : > { %v3131_v62 = vsel %vm385_vm11, %v3130_v61, -inf  ;;  %v3215_v14 = vsel %vm3214_vm3, %v3930_v42, 0.0  ;;  %v3190_v38 = vadd.f32 %v3173_v25, %v3924_v39 }
0x1e5e   : > { %3132 = vmax.xlane.f32.xlu0 %v3131_v62  ;;  %v3216_v15 = vsel %vm379_vm10, %v3215_v14, 0.0  ;;  %v3182_v31 = vrot.slane %v3180_v26, 6  ;;  %vm3278_vm10 = vcmp.lt.s32.totalorder %v3270_v47, %v3919_v35 }
0x1e5f   : > { %3666 = vmatpush.msk.msra.mxu0 %vm3278_vm10, %v3847_v40 }
0x1e60   : > { %v3184_v33 = vsub.f32 %v3179_v28, %v3182_v31  ;;  %v3372_v28 = vperm.slane %v3902_v27, 0 }
0x1e62   : > { %v3185_v34 = vmax.f32 %v3184_v33, 0.0 }
0x1e64   : > { %v3187_v36 = vrot.slane %v3185_v34, 1 }
0x1e66   : > { %3217 = vadd.xlane.f32.xlu0 %v3216_v15  ;;  %v3189_v37 = vmul.f32 %v3187_v36, %v3185_v34 }
0x1e68   : > { %v3192_v41 = vrot.slane %v3189_v37, 6 }
0x1e6a   : > { %v3194_v43 = vsub.f32 %v3190_v38, %v3192_v41 }
0x1e6c   : > { %v3195_v44 = vadd.f32 1e-08, %v3194_v43 }
0x1e6e   : > { %3835 = vrcp.f32 %v3195_v44 }
0x1e74   : > { %v3836_v46 = vpop.eup %3835 }
0x1e75   : > { %v3198_v50 = vrot.slane %v3836_v46, 2 }
0x1e77   : > { %v3200_v30 = vmul.f32 %v3198_v50, %v3189_v37  ;;  %v3383_v37 = vperm.slane %v3902_v27, 1 }
0x1e79   : > { %vm3202_vm14 = vcmp.gt.f32.partialorder %v3200_v30, 0.5 }
0x1e7a   : > { %v3205_v51 = vsel %vm3202_vm14, 1, %v3848_v4 }
0x1e7b   : > { %v3206_v52 = vrot.slane %v3205_v51, 2 }
0x1e7d   : > { %vm3207_vm0 = vcmp.ne.s32.totalorder %v3206_v52, 0  ;;  %v3708_v52 = vld [vmem:[%s3908_s8] ss:$0 sm:$0xff] }
0x1ed1   : > { %v3133_v20 = vpop.xlane.xlu0 %3132 }
0x1ed2   : > { %vm3156_vm7 = vcmp.gt.f32.partialorder %v3133_v20, 0.5 }
0x1ed3   : > { %vm3163_vm8 = vmand %vm3156_vm7, %vm3162_vm6  ;;  %vm3271_vm7 = vcmp.lt.s32.totalorder %v4811_v45, %v3919_v35 }
0x1ed4   : > { %vm3165_vm9 = vmand %vm3163_vm8, %vm3164_vm5 }
0x1ed5   : > { %v3654_v21 = vsel %vm3165_vm9, 1.0, %v3849_v7  ;;  %vm3254_vm9 = vcmp.gt.s32.totalorder %v3919_v35, 63 }
0x1ed6   : > { %v3168_v22 = vmax.f32 %v3123_v59, %v3654_v21 }
0x1ed8   : > { %v3174_v42 = vsub.f32 1.0, %v3168_v22 }
0x1ed9   : > { %v3218_v59 = vpop.xlane.xlu0 %3217 }
0x1eda   : > { %v3175_v23 = vsel %vm3169_vm12, %v3174_v42, 0.0  ;;  %vm3277_vm12 = vcmp.lt.s32.totalorder %v3269_v48, %v3919_v35  ;;  %v3225_v60 = vmax.f32 %v3218_v59, %v3902_v27  ;;  %v3224_v61 = vmin.f32 %v3218_v59, %v3915_v32 }
0x1edb   : > { %v3176_v24 = vsel %vm385_vm11, %v3175_v23, -inf  ;;  %3667 = vmatpush.msk.msra.mxu0 %vm3277_vm12, %v3847_v40  ;;  %v3235_v3 = vadd.f32 %v3218_v59, %v3924_v39  ;;  %v3265_v32 = vadd.s32 16, %v4811_v45  ;;  %v3264_v39 = vadd.s32 8, %v4811_v45 }
0x1edc   : > { %3177 = vmax.xlane.f32.xlu2 %v3176_v24  ;;  %v3227_v62 = vrot.slane %v3225_v60, 6  ;;  %v3405_v27 = vperm.slane %v3910_v29, 1 }
0x1edd   : > { %3668 = vmatpush.msk.msra.mxu0 %vm3276_vm13, %v3847_v40  ;;  %vm3273_vm5 = vcmp.lt.s32.totalorder %v3265_v32, %v3919_v35  ;;  %vm3272_vm6 = vcmp.lt.s32.totalorder %v3264_v39, %v3919_v35 }
0x1ede   : > { %v3229_v63 = vsub.f32 %v3224_v61, %v3227_v62 }
0x1ee0   : > { %v3230_v0 = vmax.f32 %v3229_v63, 0.0 }
0x1ee2   : > { %v3232_v1 = vrot.slane %v3230_v0, 1 }
0x1ee4   : > { %v3234_v2 = vmul.f32 %v3232_v1, %v3230_v0 }
0x1ee6   : > { %v3237_v5 = vrot.slane %v3234_v2, 6 }
0x1ee8   : > { %v3239_v6 = vsub.f32 %v3235_v3, %v3237_v5 }
0x1eea   : > { %v3240_v10 = vadd.f32 1e-08, %v3239_v6 }
0x1eec   : > { %3837 = vrcp.f32 %v3240_v10 }
0x1ef2   : > { %v3838_v11 = vpop.eup %3837 }
0x1ef3   : > { %v3243_v12 = vrot.slane %v3838_v11, 2 }
0x1ef5   : > { %v3245_v13 = vmul.f32 %v3243_v12, %v3234_v2 }
0x1ef7   : > { %vm3247_vm8 = vcmp.gt.f32.partialorder %v3245_v13, 0.5 }
0x1ef8   : > { %v3250_v14 = vsel %vm3247_vm8, 1, %v3848_v4  ;;  %vm3418_vm8 = vcmask 15360  }
0x1ef9   : > { %v3251_v15 = vrot.slane %v3250_v14, 2 }
0x1efb   : > { %vm3252_vm12 = vcmp.ne.s32.totalorder %v3251_v15, 0 }
0x1f4f   : > { %v3178_v53 = vpop.xlane.xlu2 %3177 }
0x1f50   : > { %vm3201_vm1 = vcmp.gt.f32.partialorder %v3178_v53, 0.5  ;;  %v320_v53 = vld [vmem:[%s295_s11] sm:$0x1] }
0x1f51   : > { %vm3208_vm2 = vmand %vm3201_vm1, %vm3207_vm0  ;;  %vm3297_vm0 = vcmask 523264  }
0x1f52   : > { %vm3210_vm4 = vmand %vm3208_vm2, %vm3209_vm15 }
0x1f53   : > { %v3655_v54 = vsel %vm3210_vm4, 1.0, %v3849_v7 }
0x1f54   : > { %v3213_v55 = vmax.f32 %v3168_v22, %v3655_v54 }
0x1f56   : > { %v3219_v56 = vsub.f32 1.0, %v3213_v55 }
0x1f58   : > { %v3220_v57 = vsel %vm3214_vm3, %v3219_v56, 0.0  ;;  %vm3275_vm3 = vcmp.lt.s32.totalorder %v3267_v8, %v3919_v35 }
0x1f59   : > { %v3221_v58 = vsel %vm385_vm11, %v3220_v57, -inf  ;;  %3669 = vmatpush.msk.msra.mxu0 %vm3275_vm3, %v3847_v40  ;;  %vm3274_vm11 = vcmp.lt.s32.totalorder %v3266_v9, %v3919_v35 }
0x1f5a   : > { %3222 = vmax.xlane.f32.xlu1 %v3221_v58 }
0x1f5b   : > { %3670 = vmatpush.msk.msra.mxu0 %vm3274_vm11, %v3847_v40 }
0x1f5d   : > { %3671 = vmatpush.msk.msra.mxu0 %vm3273_vm5, %v3847_v40 }
0x1f5f   : > { %3672 = vmatpush.msk.msra.mxu0 %vm3272_vm6, %v3847_v40 }
0x1f61   : > { %3673 = vmatpush.msk.msra.mxu0 %vm3271_vm7, %v3847_v40  ;;  %vm3354_vm7 = vcmask 7168  }
0x1fcd   : > { %v3223_v16 = vpop.xlane.xlu1 %3222 }
0x1fce   : > { %vm3246_vm10 = vcmp.gt.f32.partialorder %v3223_v16, 0.5 }
0x1fcf   : > { %vm3253_vm13 = vmand %vm3246_vm10, %vm3252_vm12  ;;  %vm3424_vm10 = vcmask 31744  }
0x1fd0   : > { %vm3255_vm14 = vmand %vm3253_vm13, %vm3254_vm9  ;;  %vm3421_vm9 = vcmask 23552  }
0x1fd1   : > { %v3656_v17 = vsel %vm3255_vm14, 1.0, %v3849_v7 }
0x1fd2   : > { %v3258_v18 = vmax.f32 %v3213_v55, %v3656_v17  ;;  %v321_v55 = vcvt.s32.f32 %v320_v53 }
0x1fd4   : > { %vm3259_vm15 = vcmp.lt.f32.partialorder %v3258_v18, 0.5  ;;  %v3358_v59 = vperm.slane %v321_v55, 0 }
0x1fd5   : > { %v3657_v40 = vsel %vm3259_vm15, 1.0, %v3849_v7  ;;  %v3260_v22 = vsel %vm3259_vm15, 1, %v3848_v4 }
0x1fd6   : > { %v3296_v19 = vperm.slane %v3657_v40, 0  ;;  %v3325_v24 = vperm.slane %v3260_v22, 0 }
0x1fd8   : > { %3674 = vmatmul.msk.f32.vlgmr.msra.gmra.mxu0 %vm3297_vm0, %v3296_v19  ;;  %vm3326_vm2 = vcmp.eq.s32.totalorder %v3325_v24, 1 }
0x2055   : > { %v3317_v20 = vpop.f32.mrf.mxu0 }
0x2056   : > { %v3320_v21 = vadd.f32 0.5, %v3317_v20 }
0x2058   : > { %vm3692_vm1 = vcmp.lt.s32.totalorder %v3320_v21, 0  ;;  %v3693_v35 = vceil.f32 %v3320_v21  ;;  %v3694_v42 = vfloor.f32 %v3320_v21 }
0x205a   : > { %v3695_v23 = vsel %vm3692_vm1, %v3693_v35, %v3694_v42 }
0x205b   : > { %v3696_v25 = vcvt.f32.s32 %v3695_v23 }
0x205d   : > { %v3322_v26 = vperm.slane %v3696_v25, 0 }
0x205f   : > { %vm3323_vm4 = vcmp.eq.s32.totalorder %v3322_v26, %v4811_v45  ;;  %vm3324_vm3 = vcmp.eq.s32.totalorder %v3322_v26, %v3264_v39 }
0x2060   : > { %vm3327_vm11 = vmand %vm3326_vm2, %vm3323_vm4 }
0x2061   : > { %vm3328_vm5 = vmand %vm3326_vm2, %vm3324_vm3  ;;  %v3675_v31 = vsel %vm3327_vm11, 1.0, %v3849_v7 }
0x2062   : > { %v3676_v33 = vsel %vm3328_vm5, 1.0, %v3849_v7  ;;  %v3333_v4 = vsel %vm3297_vm0, %v3675_v31, -inf  ;;  %v3373_v34 = vmul.f32 %v3675_v31, %v3372_v28  ;;  %v3384_v43 = vmul.f32 %v3675_v31, %v3383_v37 }
0x2063   : > { %v3336_v36 = vsel %vm3297_vm0, %v3676_v33, -inf  ;;  %3334 = vmax.xlane.f32.xlu2 %v3333_v4  ;;  %v3374_v41 = vmul.f32 %v3676_v33, %v3372_v28  ;;  %v3385_v44 = vmul.f32 %v3676_v33, %v3383_v37  ;;  %v3394_v7 = vperm.slane %v3910_v29, 0 }
0x2064   : > { %3337 = vmax.xlane.f32.xlu0 %v3336_v36  ;;  %v3375_v38 = vsel %vm3297_vm0, %v3373_v34, 0.0  ;;  %v3386_v46 = vsel %vm3297_vm0, %v3384_v43, 0.0  ;;  %v3406_v50 = vmul.f32 %v3675_v31, %v3405_v27  ;;  %v3407_v29 = vmul.f32 %v3676_v33, %v3405_v27 }
0x2065   : > { %3376 = vadd.xlane.f32.xlu1 %v3375_v38  ;;  %v3378_v45 = vsel %vm3297_vm0, %v3374_v41, 0.0  ;;  %v3389_v47 = vsel %vm3297_vm0, %v3385_v44, 0.0  ;;  %v3395_v48 = vmul.f32 %v3675_v31, %v3394_v7  ;;  %v3396_v49 = vmul.f32 %v3676_v33, %v3394_v7 }
0x2066   : > { %v3408_v54 = vsel %vm3297_vm0, %v3406_v50, 0.0  ;;  %v3344_v56 = vmul.f32 %v3708_v52, %v3675_v31  ;;  %v3345_v57 = vmul.f32 %v3708_v52, %v3676_v33  ;;  %v3411_v58 = vsel %vm3297_vm0, %v3407_v29, 0.0 }
0x2067   : > { %v3397_v30 = vsel %vm3297_vm0, %v3395_v48, 0.0  ;;  %v3400_v51 = vsel %vm3297_vm0, %v3396_v49, 0.0  ;;  %v3360_v62 = vmul.f32 %v3675_v31, %v3358_v59  ;;  %v3361_v63 = vmul.f32 %v3676_v33, %v3358_v59 }
0x2068   : > { %v3346_v60 = vsel %vm3297_vm0, %v3344_v56, 0.0  ;;  %v3349_v61 = vsel %vm3297_vm0, %v3345_v57, 0.0 }
0x2069   : > { %v3362_v0 = vsel %vm3297_vm0, %v3360_v62, 0.0  ;;  %v3365_v1 = vsel %vm3297_vm0, %v3361_v63, 0.0 }
0x206b   : > { %3379 = vadd.xlane.f32.xlu2 %v3378_v45 }
0x206c   : > { %3387 = vadd.xlane.f32.xlu0 %v3386_v46 }
0x206d   : > { %3390 = vadd.xlane.f32.xlu1 %v3389_v47 }
0x2073   : > { %3398 = vadd.xlane.f32.xlu2 %v3397_v30 }
0x2074   : > { %3401 = vadd.xlane.f32.xlu0 %v3400_v51 }
0x2075   : > { %3409 = vadd.xlane.f32.xlu1 %v3408_v54 }
0x207b   : > { %3412 = vadd.xlane.f32.xlu2 %v3411_v58 }
0x207c   : > { %3347 = vadd.xlane.f32.xlu0 %v3346_v60 }
0x207d   : > { %3350 = vadd.xlane.f32.xlu1 %v3349_v61 }
0x2083   : > { %3363 = vadd.xlane.f32.xlu2 %v3362_v0 }
0x2084   : > { %3366 = vadd.xlane.f32.xlu0 %v3365_v1 }
0x20d6   : > { %v3335_v2 = vpop.xlane.xlu2 %3334 }
0x20d7   : > { %v3338_v3 = vpop.xlane.xlu0 %3337  ;;  %vm3339_vm6 = vcmp.gt.f32.partialorder %v3335_v2, 0.0 }
0x20d8   : > { %v3377_v5 = vpop.xlane.xlu1 %3376  ;;  %vm3340_vm12 = vcmp.gt.f32.partialorder %v3338_v3, 0.0 }
0x20d9   : > { %v3381_v32 = vsel %vm3339_vm6, %v3377_v5, -1.0 }
0x20de   : > { %v3380_v6 = vpop.xlane.xlu2 %3379 }
0x20df   : > { %v3388_v8 = vpop.xlane.xlu0 %3387  ;;  %v3382_v19 = vsel %vm3340_vm12, %v3380_v6, -1.0 }
0x20e0   : > { %v3391_v9 = vpop.xlane.xlu1 %3390  ;;  %v3392_v10 = vsel %vm3339_vm6, %v3388_v8, -1.0 }
0x20e1   : > { %v3416_v11 = vsel %vm3354_vm7, %v3381_v32, %v3392_v10  ;;  %v3393_v18 = vsel %vm3340_vm12, %v3391_v9, -1.0 }
0x20e2   : > { %v3417_v20 = vsel %vm3354_vm7, %v3382_v19, %v3393_v18 }
0x20e6   : > { %v3399_v39 = vpop.xlane.xlu2 %3398 }
0x20e7   : > { %v3402_v12 = vpop.xlane.xlu0 %3401  ;;  %v3403_v13 = vsel %vm3339_vm6, %v3399_v39, -1.0 }
0x20e8   : > { %v3419_v14 = vsel %vm3418_vm8, %v3416_v11, %v3403_v13  ;;  %v3410_v15 = vpop.xlane.xlu1 %3409  ;;  %v3404_v40 = vsel %vm3340_vm12, %v3402_v12, -1.0 }
0x20e9   : > { %v3414_v16 = vsel %vm3339_vm6, %v3410_v15, -1.0  ;;  %v3420_v22 = vsel %vm3418_vm8, %v3417_v20, %v3404_v40 }
0x20ea   : > { %v3422_v17 = vsel %vm3421_vm9, %v3419_v14, %v3414_v16 }
0x20eb   : > { %3425 = vst.msk [vmem:[%s318_s15] sm:$0xff] %vm3424_vm10, %v3422_v17 }
0x20ee   : > { %v3413_v21 = vpop.xlane.xlu2 %3412 }
0x20ef   : > { %v3348_v35 = vpop.xlane.xlu0 %3347  ;;  %v3415_v42 = vsel %vm3340_vm12, %v3413_v21, -1.0 }
0x20f0   : > { %v3352_v23 = vsel %vm3339_vm6, %v3348_v35, -1.0  ;;  %v3423_v24 = vsel %vm3421_vm9, %v3420_v22, %v3415_v42  ;;  %v3351_v25 = vpop.xlane.xlu1 %3350 }
0x20f1   : > { %3355 = vst.msk [vmem:[%s308_s18] sm:$0xff] %vm3354_vm7, %v3352_v23  ;;  %v3353_v26 = vsel %vm3340_vm12, %v3351_v25, -1.0 }
0x20f2   : > { %3426 = vst.msk [vmem:[%s318_s15 + $0x8] sm:$0xff] %vm3424_vm10, %v3423_v24 }
0x20f3   : > { %3356 = vst.msk [vmem:[%s308_s18 + $0x8] sm:$0xff] %vm3354_vm7, %v3353_v26 }
0x20f6   : > { %v3364_v28 = vpop.xlane.xlu2 %3363 }
0x20f7   : > { %v3367_v31 = vpop.xlane.xlu0 %3366  ;;  %v3368_v33 = vsel %vm3339_vm6, %v3364_v28, -1.0 }
0x20f8   : > { %v3369_v4 = vsel %vm3340_vm12, %v3367_v31, -1.0  ;;  %3370 = vst.msk [vmem:[%s313_s22] sm:$0xff] %vm3354_vm7, %v3368_v33 }
0x20f9   : > { %3371 = vst.msk [vmem:[%s313_s22 + $0x8] sm:$0xff] %vm3354_vm7, %v3369_v4 }
0x20fa PF: > { %s17_s21 = sadd.s32 1, %s3845_s21  }
0x20fb   : > { %p14_p4 = scmp.ge.s32.totalorder %s17_s21, 4  }
0x20fd   :  { %16 = sbr.rel (!%p14_p4) target bundleno = 1 (0x1), region = 99 }

</bundles_post_ra>
